<compile_context>
chip_gen: v7x
topology: tpu7x:2x2x1
jax: 0.10.0
libtpu: 0.0.40
codegen_flags: <defaults>
</compile_context>

<pallas_src>
import functools

import jax
import jax.numpy as jnp
from jax.experimental import pallas as pl
from jax.experimental.pallas import tpu as pltpu


# Geometry for MNIST-style 28x28 inputs (required so the flatten is n_f*7*7).
_H = 28
_W = 28
_HP = _H + 2            # 30: padded canvas height
_WP = _W + 2            # 30: padded canvas width
_PIX = _HP * _WP        # 900 canvas pixels per image
_MARGIN = 128           # lane margin >= largest dilated conv shift
_MAX_DIL = 4            # dilation of the deepest (a-trous) conv layers
_G = 7                  # final 7x7 grid after two 2x2 pools
_ROWL = _G * _WP        # 210: gathered valid-row lanes per image for fc5
_F5 = 50                # fc5 width
_F6 = 10                # fc6 width

# Safety: every shifted read must stay inside the zeroed lane margin, and the
# valid 7x7 grid (stride-4 canvas positions starting at (1,1)) must exist.
assert _MAX_DIL * (_WP + 1) <= _MARGIN
assert _H // 4 == _G and 1 + 4 * (_G - 1) < _HP - 1


# ----------------------------------------------------------------------------
# The fused Pallas kernel: conv1 -> pool -> conv2 -> pool -> conv3 -> conv4
#                          -> fc5 -> fc6, all in VMEM.
# ----------------------------------------------------------------------------
def _cnn_kernel(x_ref, m2_ref, m3_ref,
                w1_ref, b1_ref, w2_ref, b2_ref,
                w3_ref, b3_ref, w4_ref, b4_ref,
                w5_ref, b5_ref, w6_ref, b6_ref,
                y1_ref, y2_ref, y3_ref, y4_ref, l5_ref, l6_ref,
                canvas_ref, cols_ref, rows_ref,
                *, n_batch, n_f):
    L = n_batch * _PIX                      # flat canvas length (lanes)

    # Zero only the two 128-lane margins: they provide the zero padding the
    # dilated convolutions rely on.  The interior is always overwritten by a
    # conv/pool store before any shifted read touches it.
    canvas_ref[:, 0:_MARGIN] = jnp.zeros((n_f, _MARGIN), jnp.float32)
    canvas_ref[:, _MARGIN + L:_MARGIN + L + _MARGIN] = (
        jnp.zeros((n_f, _MARGIN), jnp.float32))

    def conv(act, cin, dil, w_r, b_r):
        # act: (cin, L) activation on the 30x30-per-image canvas; zero at every
        # position that is not a valid grid point of this layer.
        canvas_ref[0:cin, _MARGIN:_MARGIN + L] = act
        k = 0
        for dy in (-1, 0, 1):
            for dx in (-1, 0, 1):
                s = dil * (dy * _WP + dx)
                cols_ref[k * cin:(k + 1) * cin, :] = (
                    canvas_ref[0:cin, _MARGIN + s:_MARGIN + s + L])
                k += 1
        # bf16 MXU inputs, f32 accumulation.
        y = jnp.dot(w_r[...], cols_ref[0:9 * cin, :].astype(jnp.bfloat16),
                    preferred_element_type=jnp.float32)
        return jnp.maximum(y + b_r[...], 0.0)          # bias (n_f, 1) broadcast

    def pool2x2(act, dil):
        # 2x2 max pool on the (dilated) grid: max over lane offsets
        # {0, d, d*WP, d*(WP+1)}.  Only the top-left position of each window is
        # kept later (via the masks), so out-of-grid reads are harmless.
        canvas_ref[0:n_f, _MARGIN:_MARGIN + L] = act
        t = act
        for off in (dil, dil * _WP, dil * (_WP + 1)):
            t = jnp.maximum(
                t, canvas_ref[0:n_f, _MARGIN + off:_MARGIN + off + L])
        return t

    m2 = m2_ref[...]                        # valid 14x14-grid positions
    m3 = m3_ref[...]                        # valid 7x7-grid positions

    # --- conv1 (dilation 1) + pool -> grid stride 2 --------------------------
    y1 = conv(x_ref[...], 1, 1, w1_ref, b1_ref)
    y1_ref[...] = y1
    a2 = pool2x2(y1, 1) * m2

    # --- conv2 (dilation 2) + pool -> grid stride 4 --------------------------
    y2 = conv(a2, n_f, 2, w2_ref, b2_ref)
    y2_ref[...] = y2
    a3 = pool2x2(y2, 2) * m3

    # --- conv3 / conv4 (dilation 4) ------------------------------------------
    y3 = conv(a3, n_f, 4, w3_ref, b3_ref)
    y3_ref[...] = y3
    y4 = conv(y3 * m3, n_f, 4, w4_ref, b4_ref)
    y4_ref[...] = y4

    # --- fc5 ------------------------------------------------------------------
    # Gather the 7 valid canvas rows per image (all channels at once): 14
    # contiguous (n_f, 30) copies -- no per-channel flatten needed.
    for n in range(n_batch):
        for i in range(_G):
            src = n * _PIX + (1 + 4 * i) * _WP
            dst = n * _ROWL + i * _WP
            rows_ref[:, dst:dst + _WP] = y4_ref[:, src:src + _WP]

    # Per image: T = rows (n_f, 210) @ w5_wide (210, n_f*50).  Column block c
    # of w5_wide carries input-channel c's fc5 weights (zeros at invalid canvas
    # columns), so l5[n] = sum_c T[c, c*50:(c+1)*50].
    for n in range(n_batch):
        t = jnp.dot(
            rows_ref[:, n * _ROWL:(n + 1) * _ROWL].astype(jnp.bfloat16),
            w5_ref[...], preferred_element_type=jnp.float32)   # (n_f, n_f*_F5)
        acc = b5_ref[...]                                      # (1, _F5)
        for c in range(n_f):
            acc = acc + t[c:c + 1, c * _F5:(c + 1) * _F5]
        l5_ref[n:n + 1, :] = jnp.maximum(acc, 0.0)

    # --- fc6 ------------------------------------------------------------------
    l5 = l5_ref[...]
    l6_ref[...] = (jnp.dot(l5.astype(jnp.bfloat16), w6_ref[...],
                           preferred_element_type=jnp.float32) + b6_ref[...])


# ----------------------------------------------------------------------------
# Parameter preparation (one-time, outside the jitted forward).
# ----------------------------------------------------------------------------
def init_params(key, n_f):
    """Deterministic synthetic params in torch conventions."""
    ks = jax.random.split(key, 12)

    def conv_w(k, cin, cout):                       # torch Conv2d: (O, I, 3, 3)
        return jax.random.normal(k, (cout, cin, 3, 3), jnp.float32) * 0.1

    def lin_w(k, fin, fout):                        # torch Linear: (out, in)
        return jax.random.normal(k, (fout, fin), jnp.float32) * 0.05

    def bias(k, n):
        return jax.random.normal(k, (n,), jnp.float32) * 0.01

    return {
        "w1": conv_w(ks[0], 1, n_f),   "b1": bias(ks[1], n_f),
        "w2": conv_w(ks[2], n_f, n_f), "b2": bias(ks[3], n_f),
        "w3": conv_w(ks[4], n_f, n_f), "b3": bias(ks[5], n_f),
        "w4": conv_w(ks[6], n_f, n_f), "b4": bias(ks[7], n_f),
        "w5": lin_w(ks[8], n_f * _G * _G, _F5), "b5": bias(ks[9], _F5),
        "w6": lin_w(ks[10], _F5, _F6),          "b6": bias(ks[11], _F6),
    }


def prepare_params(params):
    """Convert torch-convention params to the kernel's layouts (done once)."""
    n_f = params["w1"].shape[0]

    def conv_mat(w):                 # (O, I, 3, 3) -> (O, 9*I), (ky,kx,ci) order
        cout, cin = w.shape[0], w.shape[1]
        return (jnp.transpose(w, (0, 2, 3, 1))
                .reshape(cout, 9 * cin).astype(jnp.bfloat16))

    # fc5 weight, compact "wide" layout (7*_WP, n_f*_F5):
    #   w5_wide[i*_WP + x, c*_F5 + o] = w5[o, c*49 + i*7 + j] if x == 1+4j else 0
    # i.e. only the 7 valid canvas rows are kept; invalid columns within a row
    # carry zero weight; channel c's weights live in column block c.
    w5 = params["w5"].reshape(_F5, n_f, _G, _G)          # [o, c, i, j]
    w5 = jnp.transpose(w5, (2, 3, 1, 0))                 # [i, j, c, o]
    w5_wide = jnp.zeros((_G, _WP, n_f, _F5), jnp.float32)
    w5_wide = w5_wide.at[:, 1:1 + 4 * _G:4, :, :].set(w5)
    w5_wide = w5_wide.reshape(_G * _WP, n_f * _F5).astype(jnp.bfloat16)

    return {
        "w1": conv_mat(params["w1"]), "b1": params["b1"].reshape(n_f, 1),
        "w2": conv_mat(params["w2"]), "b2": params["b2"].reshape(n_f, 1),
        "w3": conv_mat(params["w3"]), "b3": params["b3"].reshape(n_f, 1),
        "w4": conv_mat(params["w4"]), "b4": params["b4"].reshape(n_f, 1),
        "w5": w5_wide,                "b5": params["b5"].reshape(1, _F5),
        "w6": jnp.transpose(params["w6"]).astype(jnp.bfloat16),
        "b6": params["b6"].reshape(1, _F6),
    }


def _grid_mask(coords, n_batch):
    """(1, n_batch*_PIX) 0/1 mask that is 1 at canvas (i, j) with i,j in coords."""
    line = jnp.zeros((_HP,), jnp.float32).at[coords].set(1.0)
    plane = (line[:, None] * line[None, :]).reshape(1, _PIX)
    return jnp.tile(plane, (1, n_batch))


# ----------------------------------------------------------------------------
# Forward pass (jit-able): one pallas_call + tiny output formatting.
# ----------------------------------------------------------------------------
def cnn_forward(kparams, x_nchw):
    n_f = kparams["b1"].shape[0]
    n_batch = x_nchw.shape[0]
    assert x_nchw.shape[1:] == (1, _H, _W), x_nchw.shape
    L = n_batch * _PIX

    # Input canvas: zero-padded 30x30 per image, flattened onto lanes.
    x_can = jnp.pad(x_nchw, ((0, 0), (0, 0), (1, 1), (1, 1))).reshape(1, L)
    # Valid-grid masks (input independent -> constant-folded under jit).
    m2 = _grid_mask(jnp.arange(1, 28, 2), n_batch)   # 14x14 grid: odd 1..27
    m3 = _grid_mask(jnp.arange(1, 26, 4), n_batch)   # 7x7 grid: 1,5,...,25

    vmem = pl.BlockSpec(memory_space=pltpu.MemorySpace.VMEM)
    out_shape = (
        jax.ShapeDtypeStruct((n_f, L), jnp.float32),   # conv1 canvas
        jax.ShapeDtypeStruct((n_f, L), jnp.float32),   # conv2 canvas
        jax.ShapeDtypeStruct((n_f, L), jnp.float32),   # conv3 canvas
        jax.ShapeDtypeStruct((n_f, L), jnp.float32),   # conv4 canvas
        jax.ShapeDtypeStruct((n_batch, _F5), jnp.float32),
        jax.ShapeDtypeStruct((n_batch, _F6), jnp.float32),
    )
    kernel = functools.partial(_cnn_kernel, n_batch=n_batch, n_f=n_f)
    y1, y2, y3, y4, l5, l6 = pl.pallas_call(
        kernel,
        out_shape=out_shape,
        in_specs=[vmem] * 15,
        out_specs=(vmem,) * 6,
        scratch_shapes=[
            pltpu.VMEM((n_f, 2 * _MARGIN + L), jnp.float32),    # padded canvas
            pltpu.VMEM((9 * n_f, L), jnp.float32),              # im2col columns
            pltpu.VMEM((n_f, n_batch * _ROWL), jnp.float32),    # fc5 row gather
        ],
        compiler_params=pltpu.CompilerParams(
            vmem_limit_bytes=32 * 1024 * 1024),
    )(x_can, m2, m3,
      kparams["w1"], kparams["b1"], kparams["w2"], kparams["b2"],
      kparams["w3"], kparams["b3"], kparams["w4"], kparams["b4"],
      kparams["w5"], kparams["b5"], kparams["w6"], kparams["b6"])

    def to_nchw(y, stride):
        yc = y.reshape(n_f, n_batch, _HP, _WP)[:, :, 1:29:stride, 1:29:stride]
        return jnp.transpose(yc, (1, 0, 2, 3))

    layer1 = to_nchw(y1, 1)     # (N, n_f, 28, 28)
    layer2 = to_nchw(y2, 2)     # (N, n_f, 14, 14)
    layer3 = to_nchw(y3, 4)     # (N, n_f, 7, 7)
    layer4 = to_nchw(y4, 4)     # (N, n_f, 7, 7)
    return [l6, l5, layer4, layer3, layer2, layer1]


# ----------------------------------------------------------------------------
# Pure-JAX reference (mirrors the torch module) for a correctness check.
# ----------------------------------------------------------------------------
def reference_forward(params, x):
    dn = ("NCHW", "OIHW", "NCHW")
    hp = jax.lax.Precision.HIGHEST

    def conv(z, w, b):
        y = jax.lax.conv_general_dilated(z, w, (1, 1), ((1, 1), (1, 1)),
                                         dimension_numbers=dn, precision=hp)
        return jnp.maximum(y + b.reshape(1, -1, 1, 1), 0.0)

    def pool(z):
        return jax.lax.reduce_window(z, -jnp.inf, jax.lax.max,
                                     (1, 1, 2, 2), (1, 1, 2, 2), "VALID")

    l1 = conv(x, params["w1"], params["b1"])
    l2 = conv(pool(l1), params["w2"], params["b2"])
    l3 = conv(pool(l2), params["w3"], params["b3"])
    l4 = conv(l3, params["w4"], params["b4"])
    flat = l4.reshape(x.shape[0], -1)
    l5 = jnp.maximum(jnp.dot(flat, params["w5"].T, precision=hp) + params["b5"],
                     0.0)
    l6 = jnp.dot(l5, params["w6"].T, precision=hp) + params["b6"]
    return [l6, l5, l4, l3, l2, l1]


if __name__ == "__main__":
    n_f = 8
    batch = 2
    key = jax.random.PRNGKey(0)
    k_par, k_x = jax.random.split(key)

    params = init_params(k_par, n_f)
    kparams = prepare_params(params)                 # one-time layout prep
    x = jax.random.normal(k_x, (batch, 1, 28, 28), jnp.float32)

    outs = jax.jit(cnn_forward)(kparams, x)
    outs = jax.block_until_ready(outs)

    expected = [
        (batch, 10),
        (batch, 50),
        (batch, n_f, 7, 7),
        (batch, n_f, 7, 7),
        (batch, n_f, 14, 14),
        (batch, n_f, 28, 28),
    ]
    got_shapes = [tuple(o.shape) for o in outs]
    assert got_shapes == expected, got_shapes
    assert all(bool(jnp.all(jnp.isfinite(o))) for o in outs)

    # Numerical check against the plain-JAX f32 reference.  The kernel now uses
    # bf16 MXU operands with f32 accumulation, so use a bf16-aware, scale-aware
    # tolerance (bf16 rel. error ~0.4%/op, compounded over 6 layers).
    refs = reference_forward(params, x)
    for got, want in zip(outs, refs):
        diff = float(jnp.max(jnp.abs(got - want)))
        scale = float(jnp.max(jnp.abs(want)))
        assert diff <= 4e-2 * (1.0 + scale), (diff, scale)

    print("KERNEL_OK")
</pallas_src>

<mosaic_0001>
module attributes {stable_mosaic.version = 11 : i64} {
  func.func @_cnn_kernel(%arg0: memref<1x1800xf32, #tpu.memory_space<vmem>>, %arg1: memref<1x1800xf32, #tpu.memory_space<vmem>>, %arg2: memref<1x1800xf32, #tpu.memory_space<vmem>>, %arg3: memref<8x9xbf16, #tpu.memory_space<vmem>>, %arg4: memref<8x1xf32, #tpu.memory_space<vmem>>, %arg5: memref<8x72xbf16, #tpu.memory_space<vmem>>, %arg6: memref<8x1xf32, #tpu.memory_space<vmem>>, %arg7: memref<8x72xbf16, #tpu.memory_space<vmem>>, %arg8: memref<8x1xf32, #tpu.memory_space<vmem>>, %arg9: memref<8x72xbf16, #tpu.memory_space<vmem>>, %arg10: memref<8x1xf32, #tpu.memory_space<vmem>>, %arg11: memref<210x400xbf16, #tpu.memory_space<vmem>>, %arg12: memref<1x50xf32, #tpu.memory_space<vmem>>, %arg13: memref<50x10xbf16, #tpu.memory_space<vmem>>, %arg14: memref<1x10xf32, #tpu.memory_space<vmem>>, %arg15: memref<8x1800xf32, #tpu.memory_space<vmem>>, %arg16: memref<8x1800xf32, #tpu.memory_space<vmem>>, %arg17: memref<8x1800xf32, #tpu.memory_space<vmem>>, %arg18: memref<8x1800xf32, #tpu.memory_space<vmem>>, %arg19: memref<2x50xf32, #tpu.memory_space<vmem>>, %arg20: memref<2x10xf32, #tpu.memory_space<vmem>>, %arg21: memref<8x2056xf32, #tpu.memory_space<vmem>>, %arg22: memref<72x1800xf32, #tpu.memory_space<vmem>>, %arg23: memref<8x420xf32, #tpu.memory_space<vmem>>) attributes {dimension_semantics = [], scalar_prefetch = 0 : i64, scratch_operands = 3 : i64, tpu.core_type = #tpu.core_type<tc>} {
    %cst = arith.constant 0.000000e+00 : f32
    %0 = vector.broadcast %cst : f32 to vector<8x128xf32>
    %c0 = arith.constant 0 : index
    %c0_0 = arith.constant 0 : index
    %1 = vector.load %arg21[%c0, %c0_0] : memref<8x2056xf32, #tpu.memory_space<vmem>>, vector<8x128xf32>
    tpu.vector_store %arg21[%c0, %c0_0], %0 {strides = array<i32>} : memref<8x2056xf32, #tpu.memory_space<vmem>>, vector<8x128xf32>,
    %cst_1 = arith.constant 0.000000e+00 : f32
    %2 = vector.broadcast %cst_1 : f32 to vector<8x128xf32>
    %c0_2 = arith.constant 0 : index
    %c1928 = arith.constant 1928 : index
    %3 = vector.load %arg21[%c0_2, %c1928] : memref<8x2056xf32, #tpu.memory_space<vmem>>, vector<8x128xf32>
    tpu.vector_store %arg21[%c0_2, %c1928], %2 {strides = array<i32>} : memref<8x2056xf32, #tpu.memory_space<vmem>>, vector<8x128xf32>,
    %c0_3 = arith.constant 0 : index
    %c0_4 = arith.constant 0 : index
    %4 = vector.load %arg1[%c0_3, %c0_4] : memref<1x1800xf32, #tpu.memory_space<vmem>>, vector<1x1800xf32>
    %c0_5 = arith.constant 0 : index
    %c0_6 = arith.constant 0 : index
    %5 = vector.load %arg2[%c0_5, %c0_6] : memref<1x1800xf32, #tpu.memory_space<vmem>>, vector<1x1800xf32>
    %c0_7 = arith.constant 0 : index
    %c0_8 = arith.constant 0 : index
    %6 = vector.load %arg0[%c0_7, %c0_8] : memref<1x1800xf32, #tpu.memory_space<vmem>>, vector<1x1800xf32>
    %c0_9 = arith.constant 0 : index
    %c128 = arith.constant 128 : index
    %7 = vector.load %arg21[%c0_9, %c128] : memref<8x2056xf32, #tpu.memory_space<vmem>>, vector<1x1800xf32>
    tpu.vector_store %arg21[%c0_9, %c128], %6 {strides = array<i32>} : memref<8x2056xf32, #tpu.memory_space<vmem>>, vector<1x1800xf32>,
    %c0_10 = arith.constant 0 : index
    %c97 = arith.constant 97 : index
    %8 = vector.load %arg21[%c0_10, %c97] : memref<8x2056xf32, #tpu.memory_space<vmem>>, vector<1x1800xf32>
    %c0_11 = arith.constant 0 : index
    %c0_12 = arith.constant 0 : index
    %9 = vector.load %arg22[%c0_11, %c0_12] : memref<72x1800xf32, #tpu.memory_space<vmem>>, vector<1x1800xf32>
    tpu.vector_store %arg22[%c0_11, %c0_12], %8 {strides = array<i32>} : memref<72x1800xf32, #tpu.memory_space<vmem>>, vector<1x1800xf32>,
    %c0_13 = arith.constant 0 : index
    %c98 = arith.constant 98 : index
    %10 = vector.load %arg21[%c0_13, %c98] : memref<8x2056xf32, #tpu.memory_space<vmem>>, vector<1x1800xf32>
    %c1 = arith.constant 1 : index
    %c0_14 = arith.constant 0 : index
    %11 = vector.load %arg22[%c1, %c0_14] : memref<72x1800xf32, #tpu.memory_space<vmem>>, vector<1x1800xf32>
    tpu.vector_store %arg22[%c1, %c0_14], %10 {strides = array<i32>} : memref<72x1800xf32, #tpu.memory_space<vmem>>, vector<1x1800xf32>,
    %c0_15 = arith.constant 0 : index
    %c99 = arith.constant 99 : index
    %12 = vector.load %arg21[%c0_15, %c99] : memref<8x2056xf32, #tpu.memory_space<vmem>>, vector<1x1800xf32>
    %c2 = arith.constant 2 : index
    %c0_16 = arith.constant 0 : index
    %13 = vector.load %arg22[%c2, %c0_16] : memref<72x1800xf32, #tpu.memory_space<vmem>>, vector<1x1800xf32>
    tpu.vector_store %arg22[%c2, %c0_16], %12 {strides = array<i32>} : memref<72x1800xf32, #tpu.memory_space<vmem>>, vector<1x1800xf32>,
    %c0_17 = arith.constant 0 : index
    %c127 = arith.constant 127 : index
    %14 = vector.load %arg21[%c0_17, %c127] : memref<8x2056xf32, #tpu.memory_space<vmem>>, vector<1x1800xf32>
    %c3 = arith.constant 3 : index
    %c0_18 = arith.constant 0 : index
    %15 = vector.load %arg22[%c3, %c0_18] : memref<72x1800xf32, #tpu.memory_space<vmem>>, vector<1x1800xf32>
    tpu.vector_store %arg22[%c3, %c0_18], %14 {strides = array<i32>} : memref<72x1800xf32, #tpu.memory_space<vmem>>, vector<1x1800xf32>,
    %c0_19 = arith.constant 0 : index
    %c128_20 = arith.constant 128 : index
    %16 = vector.load %arg21[%c0_19, %c128_20] : memref<8x2056xf32, #tpu.memory_space<vmem>>, vector<1x1800xf32>
    %c4 = arith.constant 4 : index
    %c0_21 = arith.constant 0 : index
    %17 = vector.load %arg22[%c4, %c0_21] : memref<72x1800xf32, #tpu.memory_space<vmem>>, vector<1x1800xf32>
    tpu.vector_store %arg22[%c4, %c0_21], %16 {strides = array<i32>} : memref<72x1800xf32, #tpu.memory_space<vmem>>, vector<1x1800xf32>,
    %c0_22 = arith.constant 0 : index
    %c129 = arith.constant 129 : index
    %18 = vector.load %arg21[%c0_22, %c129] : memref<8x2056xf32, #tpu.memory_space<vmem>>, vector<1x1800xf32>
    %c5 = arith.constant 5 : index
    %c0_23 = arith.constant 0 : index
    %19 = vector.load %arg22[%c5, %c0_23] : memref<72x1800xf32, #tpu.memory_space<vmem>>, vector<1x1800xf32>
    tpu.vector_store %arg22[%c5, %c0_23], %18 {strides = array<i32>} : memref<72x1800xf32, #tpu.memory_space<vmem>>, vector<1x1800xf32>,
    %c0_24 = arith.constant 0 : index
    %c157 = arith.constant 157 : index
    %20 = vector.load %arg21[%c0_24, %c157] : memref<8x2056xf32, #tpu.memory_space<vmem>>, vector<1x1800xf32>
    %c6 = arith.constant 6 : index
    %c0_25 = arith.constant 0 : index
    %21 = vector.load %arg22[%c6, %c0_25] : memref<72x1800xf32, #tpu.memory_space<vmem>>, vector<1x1800xf32>
    tpu.vector_store %arg22[%c6, %c0_25], %20 {strides = array<i32>} : memref<72x1800xf32, #tpu.memory_space<vmem>>, vector<1x1800xf32>,
    %c0_26 = arith.constant 0 : index
    %c158 = arith.constant 158 : index
    %22 = vector.load %arg21[%c0_26, %c158] : memref<8x2056xf32, #tpu.memory_space<vmem>>, vector<1x1800xf32>
    %c7 = arith.constant 7 : index
    %c0_27 = arith.constant 0 : index
    %23 = vector.load %arg22[%c7, %c0_27] : memref<72x1800xf32, #tpu.memory_space<vmem>>, vector<1x1800xf32>
    tpu.vector_store %arg22[%c7, %c0_27], %22 {strides = array<i32>} : memref<72x1800xf32, #tpu.memory_space<vmem>>, vector<1x1800xf32>,
    %c0_28 = arith.constant 0 : index
    %c159 = arith.constant 159 : index
    %24 = vector.load %arg21[%c0_28, %c159] : memref<8x2056xf32, #tpu.memory_space<vmem>>, vector<1x1800xf32>
    %c8 = arith.constant 8 : index
    %c0_29 = arith.constant 0 : index
    %25 = vector.load %arg22[%c8, %c0_29] : memref<72x1800xf32, #tpu.memory_space<vmem>>, vector<1x1800xf32>
    tpu.vector_store %arg22[%c8, %c0_29], %24 {strides = array<i32>} : memref<72x1800xf32, #tpu.memory_space<vmem>>, vector<1x1800xf32>,
    %c0_30 = arith.constant 0 : index
    %c0_31 = arith.constant 0 : index
    %26 = vector.load %arg3[%c0_30, %c0_31] : memref<8x9xbf16, #tpu.memory_space<vmem>>, vector<8x9xbf16>
    %c0_32 = arith.constant 0 : index
    %c0_33 = arith.constant 0 : index
    %27 = vector.load %arg22[%c0_32, %c0_33] : memref<72x1800xf32, #tpu.memory_space<vmem>>, vector<9x1800xf32>
    %28 = arith.truncf %27 : vector<9x1800xf32> to vector<9x1800xbf16>
    %cst_34 = arith.constant dense<0.000000e+00> : vector<8x1800xf32>
    %29 = tpu.matmul %26, %28, %cst_34 {dimension_numbers = #tpu.dot_dimension_numbers<[1], [0], [0], [1], [0, 0, 1, 1], [], []>} : vector<8x9xbf16>, vector<9x1800xbf16>, vector<8x1800xf32> -> vector<8x1800xf32>
    %c0_35 = arith.constant 0 : index
    %c0_36 = arith.constant 0 : index
    %30 = vector.load %arg4[%c0_35, %c0_36] : memref<8x1xf32, #tpu.memory_space<vmem>>, vector<8x1xf32>
    %31 = vector.broadcast %30 : vector<8x1xf32> to vector<8x1800xf32>
    %32 = arith.addf %29, %31 : vector<8x1800xf32>
    %cst_37 = arith.constant 0.000000e+00 : f32
    %33 = vector.broadcast %cst_37 : f32 to vector<8x1800xf32>
    %34 = arith.maximumf %32, %33 : vector<8x1800xf32>
    %c0_38 = arith.constant 0 : index
    %c0_39 = arith.constant 0 : index
    %35 = vector.load %arg15[%c0_38, %c0_39] : memref<8x1800xf32, #tpu.memory_space<vmem>>, vector<8x1800xf32>
    tpu.vector_store %arg15[%c0_38, %c0_39], %34 {strides = array<i32>} : memref<8x1800xf32, #tpu.memory_space<vmem>>, vector<8x1800xf32>,
    %c0_40 = arith.constant 0 : index
    %c128_41 = arith.constant 128 : index
    %36 = vector.load %arg21[%c0_40, %c128_41] : memref<8x2056xf32, #tpu.memory_space<vmem>>, vector<8x1800xf32>
    tpu.vector_store %arg21[%c0_40, %c128_41], %34 {strides = array<i32>} : memref<8x2056xf32, #tpu.memory_space<vmem>>, vector<8x1800xf32>,
    %c0_42 = arith.constant 0 : index
    %c129_43 = arith.constant 129 : index
    %37 = vector.load %arg21[%c0_42, %c129_43] : memref<8x2056xf32, #tpu.memory_space<vmem>>, vector<8x1800xf32>
    %38 = arith.maximumf %34, %37 : vector<8x1800xf32>
    %c0_44 = arith.constant 0 : index
    %c158_45 = arith.constant 158 : index
    %39 = vector.load %arg21[%c0_44, %c158_45] : memref<8x2056xf32, #tpu.memory_space<vmem>>, vector<8x1800xf32>
    %40 = arith.maximumf %38, %39 : vector<8x1800xf32>
    %c0_46 = arith.constant 0 : index
    %c159_47 = arith.constant 159 : index
    %41 = vector.load %arg21[%c0_46, %c159_47] : memref<8x2056xf32, #tpu.memory_space<vmem>>, vector<8x1800xf32>
    %42 = arith.maximumf %40, %41 : vector<8x1800xf32>
    %43 = vector.broadcast %4 : vector<1x1800xf32> to vector<8x1800xf32>
    %44 = arith.mulf %42, %43 : vector<8x1800xf32>
    %c0_48 = arith.constant 0 : index
    %c128_49 = arith.constant 128 : index
    %45 = vector.load %arg21[%c0_48, %c128_49] : memref<8x2056xf32, #tpu.memory_space<vmem>>, vector<8x1800xf32>
    tpu.vector_store %arg21[%c0_48, %c128_49], %44 {strides = array<i32>} : memref<8x2056xf32, #tpu.memory_space<vmem>>, vector<8x1800xf32>,
    %c0_50 = arith.constant 0 : index
    %c66 = arith.constant 66 : index
    %46 = vector.load %arg21[%c0_50, %c66] : memref<8x2056xf32, #tpu.memory_space<vmem>>, vector<8x1800xf32>
    %c0_51 = arith.constant 0 : index
    %c0_52 = arith.constant 0 : index
    %47 = vector.load %arg22[%c0_51, %c0_52] : memref<72x1800xf32, #tpu.memory_space<vmem>>, vector<8x1800xf32>
    tpu.vector_store %arg22[%c0_51, %c0_52], %46 {strides = array<i32>} : memref<72x1800xf32, #tpu.memory_space<vmem>>, vector<8x1800xf32>,
    %c0_53 = arith.constant 0 : index
    %c68 = arith.constant 68 : index
    %48 = vector.load %arg21[%c0_53, %c68] : memref<8x2056xf32, #tpu.memory_space<vmem>>, vector<8x1800xf32>
    %c8_54 = arith.constant 8 : index
    %c0_55 = arith.constant 0 : index
    %49 = vector.load %arg22[%c8_54, %c0_55] : memref<72x1800xf32, #tpu.memory_space<vmem>>, vector<8x1800xf32>
    tpu.vector_store %arg22[%c8_54, %c0_55], %48 {strides = array<i32>} : memref<72x1800xf32, #tpu.memory_space<vmem>>, vector<8x1800xf32>,
    %c0_56 = arith.constant 0 : index
    %c70 = arith.constant 70 : index
    %50 = vector.load %arg21[%c0_56, %c70] : memref<8x2056xf32, #tpu.memory_space<vmem>>, vector<8x1800xf32>
    %c16 = arith.constant 16 : index
    %c0_57 = arith.constant 0 : index
    %51 = vector.load %arg22[%c16, %c0_57] : memref<72x1800xf32, #tpu.memory_space<vmem>>, vector<8x1800xf32>
    tpu.vector_store %arg22[%c16, %c0_57], %50 {strides = array<i32>} : memref<72x1800xf32, #tpu.memory_space<vmem>>, vector<8x1800xf32>,
    %c0_58 = arith.constant 0 : index
    %c126 = arith.constant 126 : index
    %52 = vector.load %arg21[%c0_58, %c126] : memref<8x2056xf32, #tpu.memory_space<vmem>>, vector<8x1800xf32>
    %c24 = arith.constant 24 : index
    %c0_59 = arith.constant 0 : index
    %53 = vector.load %arg22[%c24, %c0_59] : memref<72x1800xf32, #tpu.memory_space<vmem>>, vector<8x1800xf32>
    tpu.vector_store %arg22[%c24, %c0_59], %52 {strides = array<i32>} : memref<72x1800xf32, #tpu.memory_space<vmem>>, vector<8x1800xf32>,
    %c0_60 = arith.constant 0 : index
    %c128_61 = arith.constant 128 : index
    %54 = vector.load %arg21[%c0_60, %c128_61] : memref<8x2056xf32, #tpu.memory_space<vmem>>, vector<8x1800xf32>
    %c32 = arith.constant 32 : index
    %c0_62 = arith.constant 0 : index
    %55 = vector.load %arg22[%c32, %c0_62] : memref<72x1800xf32, #tpu.memory_space<vmem>>, vector<8x1800xf32>
    tpu.vector_store %arg22[%c32, %c0_62], %54 {strides = array<i32>} : memref<72x1800xf32, #tpu.memory_space<vmem>>, vector<8x1800xf32>,
    %c0_63 = arith.constant 0 : index
    %c130 = arith.constant 130 : index
    %56 = vector.load %arg21[%c0_63, %c130] : memref<8x2056xf32, #tpu.memory_space<vmem>>, vector<8x1800xf32>
    %c40 = arith.constant 40 : index
    %c0_64 = arith.constant 0 : index
    %57 = vector.load %arg22[%c40, %c0_64] : memref<72x1800xf32, #tpu.memory_space<vmem>>, vector<8x1800xf32>
    tpu.vector_store %arg22[%c40, %c0_64], %56 {strides = array<i32>} : memref<72x1800xf32, #tpu.memory_space<vmem>>, vector<8x1800xf32>,
    %c0_65 = arith.constant 0 : index
    %c186 = arith.constant 186 : index
    %58 = vector.load %arg21[%c0_65, %c186] : memref<8x2056xf32, #tpu.memory_space<vmem>>, vector<8x1800xf32>
    %c48 = arith.constant 48 : index
    %c0_66 = arith.constant 0 : index
    %59 = vector.load %arg22[%c48, %c0_66] : memref<72x1800xf32, #tpu.memory_space<vmem>>, vector<8x1800xf32>
    tpu.vector_store %arg22[%c48, %c0_66], %58 {strides = array<i32>} : memref<72x1800xf32, #tpu.memory_space<vmem>>, vector<8x1800xf32>,
    %c0_67 = arith.constant 0 : index
    %c188 = arith.constant 188 : index
    %60 = vector.load %arg21[%c0_67, %c188] : memref<8x2056xf32, #tpu.memory_space<vmem>>, vector<8x1800xf32>
    %c56 = arith.constant 56 : index
    %c0_68 = arith.constant 0 : index
    %61 = vector.load %arg22[%c56, %c0_68] : memref<72x1800xf32, #tpu.memory_space<vmem>>, vector<8x1800xf32>
    tpu.vector_store %arg22[%c56, %c0_68], %60 {strides = array<i32>} : memref<72x1800xf32, #tpu.memory_space<vmem>>, vector<8x1800xf32>,
    %c0_69 = arith.constant 0 : index
    %c190 = arith.constant 190 : index
    %62 = vector.load %arg21[%c0_69, %c190] : memref<8x2056xf32, #tpu.memory_space<vmem>>, vector<8x1800xf32>
    %c64 = arith.constant 64 : index
    %c0_70 = arith.constant 0 : index
    %63 = vector.load %arg22[%c64, %c0_70] : memref<72x1800xf32, #tpu.memory_space<vmem>>, vector<8x1800xf32>
    tpu.vector_store %arg22[%c64, %c0_70], %62 {strides = array<i32>} : memref<72x1800xf32, #tpu.memory_space<vmem>>, vector<8x1800xf32>,
    %c0_71 = arith.constant 0 : index
    %c0_72 = arith.constant 0 : index
    %64 = vector.load %arg5[%c0_71, %c0_72] : memref<8x72xbf16, #tpu.memory_space<vmem>>, vector<8x72xbf16>
    %c0_73 = arith.constant 0 : index
    %c0_74 = arith.constant 0 : index
    %65 = vector.load %arg22[%c0_73, %c0_74] : memref<72x1800xf32, #tpu.memory_space<vmem>>, vector<72x1800xf32>
    %66 = arith.truncf %65 : vector<72x1800xf32> to vector<72x1800xbf16>
    %cst_75 = arith.constant dense<0.000000e+00> : vector<8x1800xf32>
    %67 = tpu.matmul %64, %66, %cst_75 {dimension_numbers = #tpu.dot_dimension_numbers<[1], [0], [0], [1], [0, 0, 1, 1], [], []>} : vector<8x72xbf16>, vector<72x1800xbf16>, vector<8x1800xf32> -> vector<8x1800xf32>
    %c0_76 = arith.constant 0 : index
    %c0_77 = arith.constant 0 : index
    %68 = vector.load %arg6[%c0_76, %c0_77] : memref<8x1xf32, #tpu.memory_space<vmem>>, vector<8x1xf32>
    %69 = vector.broadcast %68 : vector<8x1xf32> to vector<8x1800xf32>
    %70 = arith.addf %67, %69 : vector<8x1800xf32>
    %cst_78 = arith.constant 0.000000e+00 : f32
    %71 = vector.broadcast %cst_78 : f32 to vector<8x1800xf32>
    %72 = arith.maximumf %70, %71 : vector<8x1800xf32>
    %c0_79 = arith.constant 0 : index
    %c0_80 = arith.constant 0 : index
    %73 = vector.load %arg16[%c0_79, %c0_80] : memref<8x1800xf32, #tpu.memory_space<vmem>>, vector<8x1800xf32>
    tpu.vector_store %arg16[%c0_79, %c0_80], %72 {strides = array<i32>} : memref<8x1800xf32, #tpu.memory_space<vmem>>, vector<8x1800xf32>,
    %c0_81 = arith.constant 0 : index
    %c128_82 = arith.constant 128 : index
    %74 = vector.load %arg21[%c0_81, %c128_82] : memref<8x2056xf32, #tpu.memory_space<vmem>>, vector<8x1800xf32>
    tpu.vector_store %arg21[%c0_81, %c128_82], %72 {strides = array<i32>} : memref<8x2056xf32, #tpu.memory_space<vmem>>, vector<8x1800xf32>,
    %c0_83 = arith.constant 0 : index
    %c130_84 = arith.constant 130 : index
    %75 = vector.load %arg21[%c0_83, %c130_84] : memref<8x2056xf32, #tpu.memory_space<vmem>>, vector<8x1800xf32>
    %76 = arith.maximumf %72, %75 : vector<8x1800xf32>
    %c0_85 = arith.constant 0 : index
    %c188_86 = arith.constant 188 : index
    %77 = vector.load %arg21[%c0_85, %c188_86] : memref<8x2056xf32, #tpu.memory_space<vmem>>, vector<8x1800xf32>
    %78 = arith.maximumf %76, %77 : vector<8x1800xf32>
    %c0_87 = arith.constant 0 : index
    %c190_88 = arith.constant 190 : index
    %79 = vector.load %arg21[%c0_87, %c190_88] : memref<8x2056xf32, #tpu.memory_space<vmem>>, vector<8x1800xf32>
    %80 = arith.maximumf %78, %79 : vector<8x1800xf32>
    %81 = vector.broadcast %5 : vector<1x1800xf32> to vector<8x1800xf32>
    %82 = arith.mulf %80, %81 : vector<8x1800xf32>
    %c0_89 = arith.constant 0 : index
    %c128_90 = arith.constant 128 : index
    %83 = vector.load %arg21[%c0_89, %c128_90] : memref<8x2056xf32, #tpu.memory_space<vmem>>, vector<8x1800xf32>
    tpu.vector_store %arg21[%c0_89, %c128_90], %82 {strides = array<i32>} : memref<8x2056xf32, #tpu.memory_space<vmem>>, vector<8x1800xf32>,
    %c0_91 = arith.constant 0 : index
    %c4_92 = arith.constant 4 : index
    %84 = vector.load %arg21[%c0_91, %c4_92] : memref<8x2056xf32, #tpu.memory_space<vmem>>, vector<8x1800xf32>
    %c0_93 = arith.constant 0 : index
    %c0_94 = arith.constant 0 : index
    %85 = vector.load %arg22[%c0_93, %c0_94] : memref<72x1800xf32, #tpu.memory_space<vmem>>, vector<8x1800xf32>
    tpu.vector_store %arg22[%c0_93, %c0_94], %84 {strides = array<i32>} : memref<72x1800xf32, #tpu.memory_space<vmem>>, vector<8x1800xf32>,
    %c0_95 = arith.constant 0 : index
    %c8_96 = arith.constant 8 : index
    %86 = vector.load %arg21[%c0_95, %c8_96] : memref<8x2056xf32, #tpu.memory_space<vmem>>, vector<8x1800xf32>
    %c8_97 = arith.constant 8 : index
    %c0_98 = arith.constant 0 : index
    %87 = vector.load %arg22[%c8_97, %c0_98] : memref<72x1800xf32, #tpu.memory_space<vmem>>, vector<8x1800xf32>
    tpu.vector_store %arg22[%c8_97, %c0_98], %86 {strides = array<i32>} : memref<72x1800xf32, #tpu.memory_space<vmem>>, vector<8x1800xf32>,
    %c0_99 = arith.constant 0 : index
    %c12 = arith.constant 12 : index
    %88 = vector.load %arg21[%c0_99, %c12] : memref<8x2056xf32, #tpu.memory_space<vmem>>, vector<8x1800xf32>
    %c16_100 = arith.constant 16 : index
    %c0_101 = arith.constant 0 : index
    %89 = vector.load %arg22[%c16_100, %c0_101] : memref<72x1800xf32, #tpu.memory_space<vmem>>, vector<8x1800xf32>
    tpu.vector_store %arg22[%c16_100, %c0_101], %88 {strides = array<i32>} : memref<72x1800xf32, #tpu.memory_space<vmem>>, vector<8x1800xf32>,
    %c0_102 = arith.constant 0 : index
    %c124 = arith.constant 124 : index
    %90 = vector.load %arg21[%c0_102, %c124] : memref<8x2056xf32, #tpu.memory_space<vmem>>, vector<8x1800xf32>
    %c24_103 = arith.constant 24 : index
    %c0_104 = arith.constant 0 : index
    %91 = vector.load %arg22[%c24_103, %c0_104] : memref<72x1800xf32, #tpu.memory_space<vmem>>, vector<8x1800xf32>
    tpu.vector_store %arg22[%c24_103, %c0_104], %90 {strides = array<i32>} : memref<72x1800xf32, #tpu.memory_space<vmem>>, vector<8x1800xf32>,
    %c0_105 = arith.constant 0 : index
    %c128_106 = arith.constant 128 : index
    %92 = vector.load %arg21[%c0_105, %c128_106] : memref<8x2056xf32, #tpu.memory_space<vmem>>, vector<8x1800xf32>
    %c32_107 = arith.constant 32 : index
    %c0_108 = arith.constant 0 : index
    %93 = vector.load %arg22[%c32_107, %c0_108] : memref<72x1800xf32, #tpu.memory_space<vmem>>, vector<8x1800xf32>
    tpu.vector_store %arg22[%c32_107, %c0_108], %92 {strides = array<i32>} : memref<72x1800xf32, #tpu.memory_space<vmem>>, vector<8x1800xf32>,
    %c0_109 = arith.constant 0 : index
    %c132 = arith.constant 132 : index
    %94 = vector.load %arg21[%c0_109, %c132] : memref<8x2056xf32, #tpu.memory_space<vmem>>, vector<8x1800xf32>
    %c40_110 = arith.constant 40 : index
    %c0_111 = arith.constant 0 : index
    %95 = vector.load %arg22[%c40_110, %c0_111] : memref<72x1800xf32, #tpu.memory_space<vmem>>, vector<8x1800xf32>
    tpu.vector_store %arg22[%c40_110, %c0_111], %94 {strides = array<i32>} : memref<72x1800xf32, #tpu.memory_space<vmem>>, vector<8x1800xf32>,
    %c0_112 = arith.constant 0 : index
    %c244 = arith.constant 244 : index
    %96 = vector.load %arg21[%c0_112, %c244] : memref<8x2056xf32, #tpu.memory_space<vmem>>, vector<8x1800xf32>
    %c48_113 = arith.constant 48 : index
    %c0_114 = arith.constant 0 : index
    %97 = vector.load %arg22[%c48_113, %c0_114] : memref<72x1800xf32, #tpu.memory_space<vmem>>, vector<8x1800xf32>
    tpu.vector_store %arg22[%c48_113, %c0_114], %96 {strides = array<i32>} : memref<72x1800xf32, #tpu.memory_space<vmem>>, vector<8x1800xf32>,
    %c0_115 = arith.constant 0 : index
    %c248 = arith.constant 248 : index
    %98 = vector.load %arg21[%c0_115, %c248] : memref<8x2056xf32, #tpu.memory_space<vmem>>, vector<8x1800xf32>
    %c56_116 = arith.constant 56 : index
    %c0_117 = arith.constant 0 : index
    %99 = vector.load %arg22[%c56_116, %c0_117] : memref<72x1800xf32, #tpu.memory_space<vmem>>, vector<8x1800xf32>
    tpu.vector_store %arg22[%c56_116, %c0_117], %98 {strides = array<i32>} : memref<72x1800xf32, #tpu.memory_space<vmem>>, vector<8x1800xf32>,
    %c0_118 = arith.constant 0 : index
    %c252 = arith.constant 252 : index
    %100 = vector.load %arg21[%c0_118, %c252] : memref<8x2056xf32, #tpu.memory_space<vmem>>, vector<8x1800xf32>
    %c64_119 = arith.constant 64 : index
    %c0_120 = arith.constant 0 : index
    %101 = vector.load %arg22[%c64_119, %c0_120] : memref<72x1800xf32, #tpu.memory_space<vmem>>, vector<8x1800xf32>
    tpu.vector_store %arg22[%c64_119, %c0_120], %100 {strides = array<i32>} : memref<72x1800xf32, #tpu.memory_space<vmem>>, vector<8x1800xf32>,
    %c0_121 = arith.constant 0 : index
    %c0_122 = arith.constant 0 : index
    %102 = vector.load %arg7[%c0_121, %c0_122] : memref<8x72xbf16, #tpu.memory_space<vmem>>, vector<8x72xbf16>
    %c0_123 = arith.constant 0 : index
    %c0_124 = arith.constant 0 : index
    %103 = vector.load %arg22[%c0_123, %c0_124] : memref<72x1800xf32, #tpu.memory_space<vmem>>, vector<72x1800xf32>
    %104 = arith.truncf %103 : vector<72x1800xf32> to vector<72x1800xbf16>
    %cst_125 = arith.constant dense<0.000000e+00> : vector<8x1800xf32>
    %105 = tpu.matmul %102, %104, %cst_125 {dimension_numbers = #tpu.dot_dimension_numbers<[1], [0], [0], [1], [0, 0, 1, 1], [], []>} : vector<8x72xbf16>, vector<72x1800xbf16>, vector<8x1800xf32> -> vector<8x1800xf32>
    %c0_126 = arith.constant 0 : index
    %c0_127 = arith.constant 0 : index
    %106 = vector.load %arg8[%c0_126, %c0_127] : memref<8x1xf32, #tpu.memory_space<vmem>>, vector<8x1xf32>
    %107 = vector.broadcast %106 : vector<8x1xf32> to vector<8x1800xf32>
    %108 = arith.addf %105, %107 : vector<8x1800xf32>
    %cst_128 = arith.constant 0.000000e+00 : f32
    %109 = vector.broadcast %cst_128 : f32 to vector<8x1800xf32>
    %110 = arith.maximumf %108, %109 : vector<8x1800xf32>
    %c0_129 = arith.constant 0 : index
    %c0_130 = arith.constant 0 : index
    %111 = vector.load %arg17[%c0_129, %c0_130] : memref<8x1800xf32, #tpu.memory_space<vmem>>, vector<8x1800xf32>
    tpu.vector_store %arg17[%c0_129, %c0_130], %110 {strides = array<i32>} : memref<8x1800xf32, #tpu.memory_space<vmem>>, vector<8x1800xf32>,
    %112 = vector.broadcast %5 : vector<1x1800xf32> to vector<8x1800xf32>
    %113 = arith.mulf %110, %112 : vector<8x1800xf32>
    %c0_131 = arith.constant 0 : index
    %c128_132 = arith.constant 128 : index
    %114 = vector.load %arg21[%c0_131, %c128_132] : memref<8x2056xf32, #tpu.memory_space<vmem>>, vector<8x1800xf32>
    tpu.vector_store %arg21[%c0_131, %c128_132], %113 {strides = array<i32>} : memref<8x2056xf32, #tpu.memory_space<vmem>>, vector<8x1800xf32>,
    %c0_133 = arith.constant 0 : index
    %c4_134 = arith.constant 4 : index
    %115 = vector.load %arg21[%c0_133, %c4_134] : memref<8x2056xf32, #tpu.memory_space<vmem>>, vector<8x1800xf32>
    %c0_135 = arith.constant 0 : index
    %c0_136 = arith.constant 0 : index
    %116 = vector.load %arg22[%c0_135, %c0_136] : memref<72x1800xf32, #tpu.memory_space<vmem>>, vector<8x1800xf32>
    tpu.vector_store %arg22[%c0_135, %c0_136], %115 {strides = array<i32>} : memref<72x1800xf32, #tpu.memory_space<vmem>>, vector<8x1800xf32>,
    %c0_137 = arith.constant 0 : index
    %c8_138 = arith.constant 8 : index
    %117 = vector.load %arg21[%c0_137, %c8_138] : memref<8x2056xf32, #tpu.memory_space<vmem>>, vector<8x1800xf32>
    %c8_139 = arith.constant 8 : index
    %c0_140 = arith.constant 0 : index
    %118 = vector.load %arg22[%c8_139, %c0_140] : memref<72x1800xf32, #tpu.memory_space<vmem>>, vector<8x1800xf32>
    tpu.vector_store %arg22[%c8_139, %c0_140], %117 {strides = array<i32>} : memref<72x1800xf32, #tpu.memory_space<vmem>>, vector<8x1800xf32>,
    %c0_141 = arith.constant 0 : index
    %c12_142 = arith.constant 12 : index
    %119 = vector.load %arg21[%c0_141, %c12_142] : memref<8x2056xf32, #tpu.memory_space<vmem>>, vector<8x1800xf32>
    %c16_143 = arith.constant 16 : index
    %c0_144 = arith.constant 0 : index
    %120 = vector.load %arg22[%c16_143, %c0_144] : memref<72x1800xf32, #tpu.memory_space<vmem>>, vector<8x1800xf32>
    tpu.vector_store %arg22[%c16_143, %c0_144], %119 {strides = array<i32>} : memref<72x1800xf32, #tpu.memory_space<vmem>>, vector<8x1800xf32>,
    %c0_145 = arith.constant 0 : index
    %c124_146 = arith.constant 124 : index
    %121 = vector.load %arg21[%c0_145, %c124_146] : memref<8x2056xf32, #tpu.memory_space<vmem>>, vector<8x1800xf32>
    %c24_147 = arith.constant 24 : index
    %c0_148 = arith.constant 0 : index
    %122 = vector.load %arg22[%c24_147, %c0_148] : memref<72x1800xf32, #tpu.memory_space<vmem>>, vector<8x1800xf32>
    tpu.vector_store %arg22[%c24_147, %c0_148], %121 {strides = array<i32>} : memref<72x1800xf32, #tpu.memory_space<vmem>>, vector<8x1800xf32>,
    %c0_149 = arith.constant 0 : index
    %c128_150 = arith.constant 128 : index
    %123 = vector.load %arg21[%c0_149, %c128_150] : memref<8x2056xf32, #tpu.memory_space<vmem>>, vector<8x1800xf32>
    %c32_151 = arith.constant 32 : index
    %c0_152 = arith.constant 0 : index
    %124 = vector.load %arg22[%c32_151, %c0_152] : memref<72x1800xf32, #tpu.memory_space<vmem>>, vector<8x1800xf32>
    tpu.vector_store %arg22[%c32_151, %c0_152], %123 {strides = array<i32>} : memref<72x1800xf32, #tpu.memory_space<vmem>>, vector<8x1800xf32>,
    %c0_153 = arith.constant 0 : index
    %c132_154 = arith.constant 132 : index
    %125 = vector.load %arg21[%c0_153, %c132_154] : memref<8x2056xf32, #tpu.memory_space<vmem>>, vector<8x1800xf32>
    %c40_155 = arith.constant 40 : index
    %c0_156 = arith.constant 0 : index
    %126 = vector.load %arg22[%c40_155, %c0_156] : memref<72x1800xf32, #tpu.memory_space<vmem>>, vector<8x1800xf32>
    tpu.vector_store %arg22[%c40_155, %c0_156], %125 {strides = array<i32>} : memref<72x1800xf32, #tpu.memory_space<vmem>>, vector<8x1800xf32>,
    %c0_157 = arith.constant 0 : index
    %c244_158 = arith.constant 244 : index
    %127 = vector.load %arg21[%c0_157, %c244_158] : memref<8x2056xf32, #tpu.memory_space<vmem>>, vector<8x1800xf32>
    %c48_159 = arith.constant 48 : index
    %c0_160 = arith.constant 0 : index
    %128 = vector.load %arg22[%c48_159, %c0_160] : memref<72x1800xf32, #tpu.memory_space<vmem>>, vector<8x1800xf32>
    tpu.vector_store %arg22[%c48_159, %c0_160], %127 {strides = array<i32>} : memref<72x1800xf32, #tpu.memory_space<vmem>>, vector<8x1800xf32>,
    %c0_161 = arith.constant 0 : index
    %c248_162 = arith.constant 248 : index
    %129 = vector.load %arg21[%c0_161, %c248_162] : memref<8x2056xf32, #tpu.memory_space<vmem>>, vector<8x1800xf32>
    %c56_163 = arith.constant 56 : index
    %c0_164 = arith.constant 0 : index
    %130 = vector.load %arg22[%c56_163, %c0_164] : memref<72x1800xf32, #tpu.memory_space<vmem>>, vector<8x1800xf32>
    tpu.vector_store %arg22[%c56_163, %c0_164], %129 {strides = array<i32>} : memref<72x1800xf32, #tpu.memory_space<vmem>>, vector<8x1800xf32>,
    %c0_165 = arith.constant 0 : index
    %c252_166 = arith.constant 252 : index
    %131 = vector.load %arg21[%c0_165, %c252_166] : memref<8x2056xf32, #tpu.memory_space<vmem>>, vector<8x1800xf32>
    %c64_167 = arith.constant 64 : index
    %c0_168 = arith.constant 0 : index
    %132 = vector.load %arg22[%c64_167, %c0_168] : memref<72x1800xf32, #tpu.memory_space<vmem>>, vector<8x1800xf32>
    tpu.vector_store %arg22[%c64_167, %c0_168], %131 {strides = array<i32>} : memref<72x1800xf32, #tpu.memory_space<vmem>>, vector<8x1800xf32>,
    %c0_169 = arith.constant 0 : index
    %c0_170 = arith.constant 0 : index
    %133 = vector.load %arg9[%c0_169, %c0_170] : memref<8x72xbf16, #tpu.memory_space<vmem>>, vector<8x72xbf16>
    %c0_171 = arith.constant 0 : index
    %c0_172 = arith.constant 0 : index
    %134 = vector.load %arg22[%c0_171, %c0_172] : memref<72x1800xf32, #tpu.memory_space<vmem>>, vector<72x1800xf32>
    %135 = arith.truncf %134 : vector<72x1800xf32> to vector<72x1800xbf16>
    %cst_173 = arith.constant dense<0.000000e+00> : vector<8x1800xf32>
    %136 = tpu.matmul %133, %135, %cst_173 {dimension_numbers = #tpu.dot_dimension_numbers<[1], [0], [0], [1], [0, 0, 1, 1], [], []>} : vector<8x72xbf16>, vector<72x1800xbf16>, vector<8x1800xf32> -> vector<8x1800xf32>
    %c0_174 = arith.constant 0 : index
    %c0_175 = arith.constant 0 : index
    %137 = vector.load %arg10[%c0_174, %c0_175] : memref<8x1xf32, #tpu.memory_space<vmem>>, vector<8x1xf32>
    %138 = vector.broadcast %137 : vector<8x1xf32> to vector<8x1800xf32>
    %139 = arith.addf %136, %138 : vector<8x1800xf32>
    %cst_176 = arith.constant 0.000000e+00 : f32
    %140 = vector.broadcast %cst_176 : f32 to vector<8x1800xf32>
    %141 = arith.maximumf %139, %140 : vector<8x1800xf32>
    %c0_177 = arith.constant 0 : index
    %c0_178 = arith.constant 0 : index
    %142 = vector.load %arg18[%c0_177, %c0_178] : memref<8x1800xf32, #tpu.memory_space<vmem>>, vector<8x1800xf32>
    tpu.vector_store %arg18[%c0_177, %c0_178], %141 {strides = array<i32>} : memref<8x1800xf32, #tpu.memory_space<vmem>>, vector<8x1800xf32>,
    %c0_179 = arith.constant 0 : index
    %c30 = arith.constant 30 : index
    %143 = vector.load %arg18[%c0_179, %c30] : memref<8x1800xf32, #tpu.memory_space<vmem>>, vector<8x30xf32>
    %c0_180 = arith.constant 0 : index
    %c0_181 = arith.constant 0 : index
    %144 = vector.load %arg23[%c0_180, %c0_181] : memref<8x420xf32, #tpu.memory_space<vmem>>, vector<8x30xf32>
    tpu.vector_store %arg23[%c0_180, %c0_181], %143 {strides = array<i32>} : memref<8x420xf32, #tpu.memory_space<vmem>>, vector<8x30xf32>,
    %c0_182 = arith.constant 0 : index
    %c150 = arith.constant 150 : index
    %145 = vector.load %arg18[%c0_182, %c150] : memref<8x1800xf32, #tpu.memory_space<vmem>>, vector<8x30xf32>
    %c0_183 = arith.constant 0 : index
    %c30_184 = arith.constant 30 : index
    %146 = vector.load %arg23[%c0_183, %c30_184] : memref<8x420xf32, #tpu.memory_space<vmem>>, vector<8x30xf32>
    tpu.vector_store %arg23[%c0_183, %c30_184], %145 {strides = array<i32>} : memref<8x420xf32, #tpu.memory_space<vmem>>, vector<8x30xf32>,
    %c0_185 = arith.constant 0 : index
    %c270 = arith.constant 270 : index
    %147 = vector.load %arg18[%c0_185, %c270] : memref<8x1800xf32, #tpu.memory_space<vmem>>, vector<8x30xf32>
    %c0_186 = arith.constant 0 : index
    %c60 = arith.constant 60 : index
    %148 = vector.load %arg23[%c0_186, %c60] : memref<8x420xf32, #tpu.memory_space<vmem>>, vector<8x30xf32>
    tpu.vector_store %arg23[%c0_186, %c60], %147 {strides = array<i32>} : memref<8x420xf32, #tpu.memory_space<vmem>>, vector<8x30xf32>,
    %c0_187 = arith.constant 0 : index
    %c390 = arith.constant 390 : index
    %149 = vector.load %arg18[%c0_187, %c390] : memref<8x1800xf32, #tpu.memory_space<vmem>>, vector<8x30xf32>
    %c0_188 = arith.constant 0 : index
    %c90 = arith.constant 90 : index
    %150 = vector.load %arg23[%c0_188, %c90] : memref<8x420xf32, #tpu.memory_space<vmem>>, vector<8x30xf32>
    tpu.vector_store %arg23[%c0_188, %c90], %149 {strides = array<i32>} : memref<8x420xf32, #tpu.memory_space<vmem>>, vector<8x30xf32>,
    %c0_189 = arith.constant 0 : index
    %c510 = arith.constant 510 : index
    %151 = vector.load %arg18[%c0_189, %c510] : memref<8x1800xf32, #tpu.memory_space<vmem>>, vector<8x30xf32>
    %c0_190 = arith.constant 0 : index
    %c120 = arith.constant 120 : index
    %152 = vector.load %arg23[%c0_190, %c120] : memref<8x420xf32, #tpu.memory_space<vmem>>, vector<8x30xf32>
    tpu.vector_store %arg23[%c0_190, %c120], %151 {strides = array<i32>} : memref<8x420xf32, #tpu.memory_space<vmem>>, vector<8x30xf32>,
    %c0_191 = arith.constant 0 : index
    %c630 = arith.constant 630 : index
    %153 = vector.load %arg18[%c0_191, %c630] : memref<8x1800xf32, #tpu.memory_space<vmem>>, vector<8x30xf32>
    %c0_192 = arith.constant 0 : index
    %c150_193 = arith.constant 150 : index
    %154 = vector.load %arg23[%c0_192, %c150_193] : memref<8x420xf32, #tpu.memory_space<vmem>>, vector<8x30xf32>
    tpu.vector_store %arg23[%c0_192, %c150_193], %153 {strides = array<i32>} : memref<8x420xf32, #tpu.memory_space<vmem>>, vector<8x30xf32>,
    %c0_194 = arith.constant 0 : index
    %c750 = arith.constant 750 : index
    %155 = vector.load %arg18[%c0_194, %c750] : memref<8x1800xf32, #tpu.memory_space<vmem>>, vector<8x30xf32>
    %c0_195 = arith.constant 0 : index
    %c180 = arith.constant 180 : index
    %156 = vector.load %arg23[%c0_195, %c180] : memref<8x420xf32, #tpu.memory_space<vmem>>, vector<8x30xf32>
    tpu.vector_store %arg23[%c0_195, %c180], %155 {strides = array<i32>} : memref<8x420xf32, #tpu.memory_space<vmem>>, vector<8x30xf32>,
    %c0_196 = arith.constant 0 : index
    %c930 = arith.constant 930 : index
    %157 = vector.load %arg18[%c0_196, %c930] : memref<8x1800xf32, #tpu.memory_space<vmem>>, vector<8x30xf32>
    %c0_197 = arith.constant 0 : index
    %c210 = arith.constant 210 : index
    %158 = vector.load %arg23[%c0_197, %c210] : memref<8x420xf32, #tpu.memory_space<vmem>>, vector<8x30xf32>
    tpu.vector_store %arg23[%c0_197, %c210], %157 {strides = array<i32>} : memref<8x420xf32, #tpu.memory_space<vmem>>, vector<8x30xf32>,
    %c0_198 = arith.constant 0 : index
    %c1050 = arith.constant 1050 : index
    %159 = vector.load %arg18[%c0_198, %c1050] : memref<8x1800xf32, #tpu.memory_space<vmem>>, vector<8x30xf32>
    %c0_199 = arith.constant 0 : index
    %c240 = arith.constant 240 : index
    %160 = vector.load %arg23[%c0_199, %c240] : memref<8x420xf32, #tpu.memory_space<vmem>>, vector<8x30xf32>
    tpu.vector_store %arg23[%c0_199, %c240], %159 {strides = array<i32>} : memref<8x420xf32, #tpu.memory_space<vmem>>, vector<8x30xf32>,
    %c0_200 = arith.constant 0 : index
    %c1170 = arith.constant 1170 : index
    %161 = vector.load %arg18[%c0_200, %c1170] : memref<8x1800xf32, #tpu.memory_space<vmem>>, vector<8x30xf32>
    %c0_201 = arith.constant 0 : index
    %c270_202 = arith.constant 270 : index
    %162 = vector.load %arg23[%c0_201, %c270_202] : memref<8x420xf32, #tpu.memory_space<vmem>>, vector<8x30xf32>
    tpu.vector_store %arg23[%c0_201, %c270_202], %161 {strides = array<i32>} : memref<8x420xf32, #tpu.memory_space<vmem>>, vector<8x30xf32>,
    %c0_203 = arith.constant 0 : index
    %c1290 = arith.constant 1290 : index
    %163 = vector.load %arg18[%c0_203, %c1290] : memref<8x1800xf32, #tpu.memory_space<vmem>>, vector<8x30xf32>
    %c0_204 = arith.constant 0 : index
    %c300 = arith.constant 300 : index
    %164 = vector.load %arg23[%c0_204, %c300] : memref<8x420xf32, #tpu.memory_space<vmem>>, vector<8x30xf32>
    tpu.vector_store %arg23[%c0_204, %c300], %163 {strides = array<i32>} : memref<8x420xf32, #tpu.memory_space<vmem>>, vector<8x30xf32>,
    %c0_205 = arith.constant 0 : index
    %c1410 = arith.constant 1410 : index
    %165 = vector.load %arg18[%c0_205, %c1410] : memref<8x1800xf32, #tpu.memory_space<vmem>>, vector<8x30xf32>
    %c0_206 = arith.constant 0 : index
    %c330 = arith.constant 330 : index
    %166 = vector.load %arg23[%c0_206, %c330] : memref<8x420xf32, #tpu.memory_space<vmem>>, vector<8x30xf32>
    tpu.vector_store %arg23[%c0_206, %c330], %165 {strides = array<i32>} : memref<8x420xf32, #tpu.memory_space<vmem>>, vector<8x30xf32>,
    %c0_207 = arith.constant 0 : index
    %c1530 = arith.constant 1530 : index
    %167 = vector.load %arg18[%c0_207, %c1530] : memref<8x1800xf32, #tpu.memory_space<vmem>>, vector<8x30xf32>
    %c0_208 = arith.constant 0 : index
    %c360 = arith.constant 360 : index
    %168 = vector.load %arg23[%c0_208, %c360] : memref<8x420xf32, #tpu.memory_space<vmem>>, vector<8x30xf32>
    tpu.vector_store %arg23[%c0_208, %c360], %167 {strides = array<i32>} : memref<8x420xf32, #tpu.memory_space<vmem>>, vector<8x30xf32>,
    %c0_209 = arith.constant 0 : index
    %c1650 = arith.constant 1650 : index
    %169 = vector.load %arg18[%c0_209, %c1650] : memref<8x1800xf32, #tpu.memory_space<vmem>>, vector<8x30xf32>
    %c0_210 = arith.constant 0 : index
    %c390_211 = arith.constant 390 : index
    %170 = vector.load %arg23[%c0_210, %c390_211] : memref<8x420xf32, #tpu.memory_space<vmem>>, vector<8x30xf32>
    tpu.vector_store %arg23[%c0_210, %c390_211], %169 {strides = array<i32>} : memref<8x420xf32, #tpu.memory_space<vmem>>, vector<8x30xf32>,
    %c0_212 = arith.constant 0 : index
    %c0_213 = arith.constant 0 : index
    %171 = vector.load %arg23[%c0_212, %c0_213] : memref<8x420xf32, #tpu.memory_space<vmem>>, vector<8x210xf32>
    %172 = arith.truncf %171 : vector<8x210xf32> to vector<8x210xbf16>
    %c0_214 = arith.constant 0 : index
    %c0_215 = arith.constant 0 : index
    %173 = vector.load %arg11[%c0_214, %c0_215] : memref<210x400xbf16, #tpu.memory_space<vmem>>, vector<210x400xbf16>
    %cst_216 = arith.constant dense<0.000000e+00> : vector<8x400xf32>
    %174 = tpu.matmul %172, %173, %cst_216 {dimension_numbers = #tpu.dot_dimension_numbers<[1], [0], [0], [1], [0, 0, 1, 1], [], []>} : vector<8x210xbf16>, vector<210x400xbf16>, vector<8x400xf32> -> vector<8x400xf32>
    %c0_217 = arith.constant 0 : index
    %c0_218 = arith.constant 0 : index
    %175 = vector.load %arg12[%c0_217, %c0_218] : memref<1x50xf32, #tpu.memory_space<vmem>>, vector<1x50xf32>
    %176 = vector.extract_strided_slice %174 {offsets = [0, 0], sizes = [1, 50], strides = [1, 1]} : vector<8x400xf32> to vector<1x50xf32>
    %177 = arith.addf %175, %176 : vector<1x50xf32>
    %178 = vector.extract_strided_slice %174 {offsets = [1, 50], sizes = [1, 50], strides = [1, 1]} : vector<8x400xf32> to vector<1x50xf32>
    %179 = arith.addf %177, %178 : vector<1x50xf32>
    %180 = vector.extract_strided_slice %174 {offsets = [2, 100], sizes = [1, 50], strides = [1, 1]} : vector<8x400xf32> to vector<1x50xf32>
    %181 = arith.addf %179, %180 : vector<1x50xf32>
    %182 = vector.extract_strided_slice %174 {offsets = [3, 150], sizes = [1, 50], strides = [1, 1]} : vector<8x400xf32> to vector<1x50xf32>
    %183 = arith.addf %181, %182 : vector<1x50xf32>
    %184 = vector.extract_strided_slice %174 {offsets = [4, 200], sizes = [1, 50], strides = [1, 1]} : vector<8x400xf32> to vector<1x50xf32>
    %185 = arith.addf %183, %184 : vector<1x50xf32>
    %186 = vector.extract_strided_slice %174 {offsets = [5, 250], sizes = [1, 50], strides = [1, 1]} : vector<8x400xf32> to vector<1x50xf32>
    %187 = arith.addf %185, %186 : vector<1x50xf32>
    %188 = vector.extract_strided_slice %174 {offsets = [6, 300], sizes = [1, 50], strides = [1, 1]} : vector<8x400xf32> to vector<1x50xf32>
    %189 = arith.addf %187, %188 : vector<1x50xf32>
    %190 = vector.extract_strided_slice %174 {offsets = [7, 350], sizes = [1, 50], strides = [1, 1]} : vector<8x400xf32> to vector<1x50xf32>
    %191 = arith.addf %189, %190 : vector<1x50xf32>
    %cst_219 = arith.constant 0.000000e+00 : f32
    %192 = vector.broadcast %cst_219 : f32 to vector<1x50xf32>
    %193 = arith.maximumf %191, %192 : vector<1x50xf32>
    %c0_220 = arith.constant 0 : index
    %c0_221 = arith.constant 0 : index
    %194 = vector.load %arg19[%c0_220, %c0_221] : memref<2x50xf32, #tpu.memory_space<vmem>>, vector<1x50xf32>
    tpu.vector_store %arg19[%c0_220, %c0_221], %193 {strides = array<i32>} : memref<2x50xf32, #tpu.memory_space<vmem>>, vector<1x50xf32>,
    %c0_222 = arith.constant 0 : index
    %c210_223 = arith.constant 210 : index
    %195 = vector.load %arg23[%c0_222, %c210_223] : memref<8x420xf32, #tpu.memory_space<vmem>>, vector<8x210xf32>
    %196 = arith.truncf %195 : vector<8x210xf32> to vector<8x210xbf16>
    %c0_224 = arith.constant 0 : index
    %c0_225 = arith.constant 0 : index
    %197 = vector.load %arg11[%c0_224, %c0_225] : memref<210x400xbf16, #tpu.memory_space<vmem>>, vector<210x400xbf16>
    %cst_226 = arith.constant dense<0.000000e+00> : vector<8x400xf32>
    %198 = tpu.matmul %196, %197, %cst_226 {dimension_numbers = #tpu.dot_dimension_numbers<[1], [0], [0], [1], [0, 0, 1, 1], [], []>} : vector<8x210xbf16>, vector<210x400xbf16>, vector<8x400xf32> -> vector<8x400xf32>
    %c0_227 = arith.constant 0 : index
    %c0_228 = arith.constant 0 : index
    %199 = vector.load %arg12[%c0_227, %c0_228] : memref<1x50xf32, #tpu.memory_space<vmem>>, vector<1x50xf32>
    %200 = vector.extract_strided_slice %198 {offsets = [0, 0], sizes = [1, 50], strides = [1, 1]} : vector<8x400xf32> to vector<1x50xf32>
    %201 = arith.addf %199, %200 : vector<1x50xf32>
    %202 = vector.extract_strided_slice %198 {offsets = [1, 50], sizes = [1, 50], strides = [1, 1]} : vector<8x400xf32> to vector<1x50xf32>
    %203 = arith.addf %201, %202 : vector<1x50xf32>
    %204 = vector.extract_strided_slice %198 {offsets = [2, 100], sizes = [1, 50], strides = [1, 1]} : vector<8x400xf32> to vector<1x50xf32>
    %205 = arith.addf %203, %204 : vector<1x50xf32>
    %206 = vector.extract_strided_slice %198 {offsets = [3, 150], sizes = [1, 50], strides = [1, 1]} : vector<8x400xf32> to vector<1x50xf32>
    %207 = arith.addf %205, %206 : vector<1x50xf32>
    %208 = vector.extract_strided_slice %198 {offsets = [4, 200], sizes = [1, 50], strides = [1, 1]} : vector<8x400xf32> to vector<1x50xf32>
    %209 = arith.addf %207, %208 : vector<1x50xf32>
    %210 = vector.extract_strided_slice %198 {offsets = [5, 250], sizes = [1, 50], strides = [1, 1]} : vector<8x400xf32> to vector<1x50xf32>
    %211 = arith.addf %209, %210 : vector<1x50xf32>
    %212 = vector.extract_strided_slice %198 {offsets = [6, 300], sizes = [1, 50], strides = [1, 1]} : vector<8x400xf32> to vector<1x50xf32>
    %213 = arith.addf %211, %212 : vector<1x50xf32>
    %214 = vector.extract_strided_slice %198 {offsets = [7, 350], sizes = [1, 50], strides = [1, 1]} : vector<8x400xf32> to vector<1x50xf32>
    %215 = arith.addf %213, %214 : vector<1x50xf32>
    %cst_229 = arith.constant 0.000000e+00 : f32
    %216 = vector.broadcast %cst_229 : f32 to vector<1x50xf32>
    %217 = arith.maximumf %215, %216 : vector<1x50xf32>
    %c1_230 = arith.constant 1 : index
    %c0_231 = arith.constant 0 : index
    %218 = vector.load %arg19[%c1_230, %c0_231] : memref<2x50xf32, #tpu.memory_space<vmem>>, vector<1x50xf32>
    tpu.vector_store %arg19[%c1_230, %c0_231], %217 {strides = array<i32>} : memref<2x50xf32, #tpu.memory_space<vmem>>, vector<1x50xf32>,
    %c0_232 = arith.constant 0 : index
    %c0_233 = arith.constant 0 : index
    %219 = vector.load %arg19[%c0_232, %c0_233] : memref<2x50xf32, #tpu.memory_space<vmem>>, vector<2x50xf32>
    %220 = arith.truncf %219 : vector<2x50xf32> to vector<2x50xbf16>
    %c0_234 = arith.constant 0 : index
    %c0_235 = arith.constant 0 : index
    %221 = vector.load %arg13[%c0_234, %c0_235] : memref<50x10xbf16, #tpu.memory_space<vmem>>, vector<50x10xbf16>
    %cst_236 = arith.constant dense<0.000000e+00> : vector<2x10xf32>
    %222 = tpu.matmul %220, %221, %cst_236 {dimension_numbers = #tpu.dot_dimension_numbers<[1], [0], [0], [1], [0, 0, 1, 1], [], []>} : vector<2x50xbf16>, vector<50x10xbf16>, vector<2x10xf32> -> vector<2x10xf32>
    %c0_237 = arith.constant 0 : index
    %c0_238 = arith.constant 0 : index
    %223 = vector.load %arg14[%c0_237, %c0_238] : memref<1x10xf32, #tpu.memory_space<vmem>>, vector<1x10xf32>
    %224 = vector.broadcast %223 : vector<1x10xf32> to vector<2x10xf32>
    %225 = arith.addf %222, %224 : vector<2x10xf32>
    %c0_239 = arith.constant 0 : index
    %c0_240 = arith.constant 0 : index
    %226 = vector.load %arg20[%c0_239, %c0_240] : memref<2x10xf32, #tpu.memory_space<vmem>>, vector<2x10xf32>
    tpu.vector_store %arg20[%c0_239, %c0_240], %225 {strides = array<i32>} : memref<2x10xf32, #tpu.memory_space<vmem>>, vector<2x10xf32>,
    return
  }
}

</mosaic_0001>

<bundles_post_ra>
// kernel: cnn_forward.1
= control target key start
LH: loop header
LB: loop body
LE: loop exit
PB: predicated region body
PF: predicated region fallthrough
CT: control target
= control target key end

     0   :  { %s11527_s0 = inlined_call_operand.vmem [shape: f32[1,1800], index: 0, kind: input, shape index: {}]   ;;  %s11528_s1 = inlined_call_operand.vmem [shape: f32[1,1800], index: 1, kind: input, shape index: {}]   ;;  %s11529_s2 = inlined_call_operand.vmem [shape: f32[1,1800], index: 2, kind: input, shape index: {}]   ;;  %s11530_s3 = inlined_call_operand.vmem [shape: bf16[8,9], index: 3, kind: input, shape index: {}]   ;;  %s11531_s4 = inlined_call_operand.vmem [shape: f32[8,1], index: 4, kind: input, shape index: {}]   ;;  %s11532_s5 = inlined_call_operand.vmem [shape: bf16[8,72], index: 5, kind: input, shape index: {}]   ;;  %s11533_s6 = inlined_call_operand.vmem [shape: f32[8,1], index: 6, kind: input, shape index: {}]   ;;  %s11534_s7 = inlined_call_operand.vmem [shape: bf16[8,72], index: 7, kind: input, shape index: {}]   ;;  %s11535_s8 = inlined_call_operand.vmem [shape: f32[8,1], index: 8, kind: input, shape index: {}]   ;;  %s11536_s9 = inlined_call_operand.vmem [shape: bf16[8,72], index: 9, kind: input, shape index: {}]   ;;  %s11537_s10 = inlined_call_operand.vmem [shape: f32[8,1], index: 10, kind: input, shape index: {}]   ;;  %s11538_s11 = inlined_call_operand.vmem [shape: bf16[210,400], index: 11, kind: input, shape index: {}]   ;;  %s11539_s12 = inlined_call_operand.vmem [shape: f32[1,50], index: 12, kind: input, shape index: {}]   ;;  %s11540_s13 = inlined_call_operand.vmem [shape: bf16[50,10], index: 13, kind: input, shape index: {}]   ;;  %s11541_s14 = inlined_call_operand.vmem [shape: f32[1,10], index: 14, kind: input, shape index: {}]   ;;  %s11542_s15 = inlined_call_operand.vmem [shape: f32[8,1800], index: 15, kind: output, shape index: {0}]   ;;  %s11543_s16 = inlined_call_operand.vmem [shape: f32[8,1800], index: 16, kind: output, shape index: {1}]   ;;  %s11544_s17 = inlined_call_operand.vmem [shape: f32[8,1800], index: 17, kind: output, shape index: {2}]   ;;  %s11545_s18 = inlined_call_operand.vmem [shape: f32[8,1800], index: 18, kind: output, shape index: {3}]   ;;  %s11546_s19 = inlined_call_operand.hbm [shape: f32[2,50], index: 19, kind: output, shape index: {4}]   ;;  %s11547_s20 = inlined_call_operand.hbm [shape: f32[2,10], index: 20, kind: output, shape index: {5}]  }
   0x1   :  { %11559 = sst [smem:[#allocation16_spill]] %s11527_s0 }
   0x2   :  { %11560 = sst [smem:[#allocation17_spill]] %s11528_s1 }
   0x3   :  { %11561 = sst [smem:[#allocation18_spill]] %s11529_s2 }
   0x4   :  { %11562 = sst [smem:[#allocation19_spill]] %s11530_s3 }
   0x5   :  { %11563 = sst [smem:[#allocation20_spill]] %s11531_s4 }
   0x6   :  { %26 = vsyncpa [#allocation6], 0  ;;  %s11564_s23 = sld [smem:[#allocation16_spill]]  ;;  %vm60_vm0 = vcmask 1047616   ;;  %v73_v1 = vlaneseq  ;;  %v7925_v2 = vmov 0.0   ;;  %s7926_s25 = smov 30  }
   0x7   :  { %59 = vst [vmem:[#allocation2] sm:$0xff] %v7925_v2  ;;  %61 = vst.msk [vmem:[#allocation2 + $0x78] sm:$0xff] %vm60_vm0, %v7925_v2  ;;  %s7927_s3 = smov 31   ;;  %s7928_s26 = smov 29  }
   0x8   :  { %vm8083_vm1 = vcmp.lt.s32.totalorder %v73_v1, 776  ;;  %s7929_s27 = smov 1   ;;  %s7930_s28 = smov 127  }
   0x9   :  { %s7931_s4 = smov 99   ;;  %s7932_s29 = smov 98  }
   0xa   :  { %s7933_s30 = smov 97  }
   0xc   :  { %v68_v0 = vld [vmem:[%s11564_s23] sm:$0xff]  ;;  %v69_v3 = vld [vmem:[%s11564_s23 + $0x8] sm:$0x7f] }
   0xd   :  { %71 = vst [vmem:[#allocation2 + $0x8] ss:$8 sm:$0xf] %v68_v0  ;;  %72 = vst [vmem:[#allocation2 + $0x8] ss:$8 sm:$0xf0] %v68_v0 }
   0xe   :  { %78 = vst.msk [vmem:[#allocation2 + $0x48] ss:$8 sm:$0xf] %vm8083_vm1, %v69_v3  ;;  %79 = vst.msk [vmem:[#allocation2 + $0x48] ss:$8 sm:$0x70] %vm8083_vm1, %v69_v3 }
  0x14   :  { %v107_v5 = vld [vmem:[#allocation2] ss:$8 sm:$0xf] }
  0x15   :  { %v108_v6 = vld [vmem:[#allocation2] ss:$8 sm:$0xf0] }
  0x16   :  { %v109_v7 = vor.u32 %v108_v6, %v107_v5  ;;  %v80_v8 = vld [vmem:[#allocation2] ss:$8 sm:$0xf] }
  0x17   :  { %v81_v9 = vld [vmem:[#allocation2] ss:$8 sm:$0xf0] }
  0x18   :  { %v82_v10 = vor.u32 %v81_v9, %v80_v8  ;;  %v110_v11 = vld [vmem:[#allocation2 + $0x40] ss:$8 sm:$0xf]  ;;  %115 = vrot.lane.b32.xlu1 %v109_v7, %s7926_s25 }
  0x19   :  { %v111_v12 = vld [vmem:[#allocation2 + $0x40] ss:$8 sm:$0x70] }
  0x1a   :  { %v112_v13 = vor.u32 %v111_v12, %v110_v11  ;;  %v133_v14 = vld [vmem:[#allocation2] ss:$8 sm:$0xf]  ;;  %89 = vrot.lane.b32.xlu0 %v82_v10, %s7927_s3 }
  0x1b   :  { %v134_v15 = vld [vmem:[#allocation2] ss:$8 sm:$0xf0] }
  0x1c   :  { %v135_v16 = vor.u32 %v134_v15, %v133_v14  ;;  %v136_v17 = vld [vmem:[#allocation2 + $0x40] ss:$8 sm:$0xf]  ;;  %117 = vrot.lane.b32.xlu1 %v112_v13, %s7926_s25 }
  0x1d   :  { %v137_v18 = vld [vmem:[#allocation2 + $0x40] ss:$8 sm:$0x70] }
  0x1e   :  { %v159_v19 = vld [vmem:[#allocation2] ss:$8 sm:$0xf]  ;;  %v138_v21 = vor.u32 %v137_v18, %v136_v17  ;;  %141 = vrot.lane.b32.xlu0 %v135_v16, %s7928_s26 }
  0x1f   :  { %v160_v20 = vld [vmem:[#allocation2] ss:$8 sm:$0xf0] }
  0x20   :  { %v161_v22 = vor.u32 %v160_v20, %v159_v19  ;;  %v162_v23 = vld [vmem:[#allocation2 + $0x40] ss:$8 sm:$0xf]  ;;  %143 = vrot.lane.b32.xlu1 %v138_v21, %s7928_s26 }
  0x21   :  { %v163_v24 = vld [vmem:[#allocation2 + $0x40] ss:$8 sm:$0xf0] }
  0x22   :  { %v84_v25 = vld [vmem:[#allocation2 + $0x40] ss:$8 sm:$0xf]  ;;  %v164_v27 = vor.u32 %v163_v24, %v162_v23  ;;  %167 = vrot.lane.b32.xlu0 %v161_v22, %s7929_s27 }
  0x23   :  { %v85_v26 = vld [vmem:[#allocation2 + $0x40] ss:$8 sm:$0x70] }
  0x24   :  { %v86_v28 = vor.u32 %v85_v26, %v84_v25  ;;  %v200_v29 = vld [vmem:[#allocation2 + $0x48] ss:$8 sm:$0xf]  ;;  %169 = vrot.lane.b32.xlu1 %v164_v27, %s7929_s27 }
  0x25   :  { %v201_v30 = vld [vmem:[#allocation2 + $0x48] ss:$8 sm:$0x70] }
  0x26   :  { %v197_v31 = vld [vmem:[#allocation2 + $0x8] ss:$8 sm:$0xf]  ;;  %v202_v34 = vor.u32 %v201_v30, %v200_v29  ;;  %91 = vrot.lane.b32.xlu0 %v86_v28, %s7927_s3 }
  0x27   :  { %v198_v32 = vld [vmem:[#allocation2 + $0x8] ss:$8 sm:$0xf0] }
  0x28   :  { %v226_v33 = vld [vmem:[#allocation2 + $0x48] ss:$8 sm:$0xf]  ;;  %v199_v37 = vor.u32 %v198_v32, %v197_v31  ;;  %207 = vrot.lane.b32.xlu1 %v202_v34, %s7930_s28 }
  0x29   :  { %v227_v35 = vld [vmem:[#allocation2 + $0x48] ss:$8 sm:$0x70] }
  0x2a   :  { %v223_v36 = vld [vmem:[#allocation2 + $0x8] ss:$8 sm:$0xf]  ;;  %v228_v46 = vor.u32 %v227_v35, %v226_v33  ;;  %205 = vrot.lane.b32.xlu0 %v199_v37, %s7930_s28 }
  0x2b   :  { %v224_v38 = vld [vmem:[#allocation2 + $0x8] ss:$8 sm:$0xf0] }
  0x2c   :  { %v185_v39 = vld [vmem:[#allocation2 + $0x8] ss:$8 sm:$0xf]  ;;  %v225_v50 = vor.u32 %v224_v38, %v223_v36  ;;  %233 = vrot.lane.b32.xlu1 %v228_v46, %s7931_s4 }
  0x2d   :  { %v186_v40 = vld [vmem:[#allocation2 + $0x8] ss:$8 sm:$0xf0] }
  0x2e   :  { %v252_v41 = vld [vmem:[#allocation2 + $0x48] ss:$8 sm:$0xf]  ;;  %v187_v43 = vor.u32 %v186_v40, %v185_v39  ;;  %231 = vrot.lane.b32.xlu0 %v225_v50, %s7931_s4 }
  0x2f   :  { %v253_v42 = vld [vmem:[#allocation2 + $0x48] ss:$8 sm:$0x70] }
  0x30   :  { %v188_v44 = vld [vmem:[#allocation2 + $0x48] ss:$8 sm:$0xf]  ;;  %192 = vst [vmem:[#allocation3 + $0x4] ss:$8 sm:$0xf] %v187_v43  ;;  %v254_v53 = vor.u32 %v253_v42, %v252_v41 }
  0x31   :  { %v189_v45 = vld [vmem:[#allocation2 + $0x48] ss:$8 sm:$0x70]  ;;  %193 = vst [vmem:[#allocation3 + $0x4] ss:$8 sm:$0xf0] %v187_v43 }
  0x32   :  { %v249_v47 = vld [vmem:[#allocation2 + $0x8] ss:$8 sm:$0xf]  ;;  %v190_v49 = vor.u32 %v189_v45, %v188_v44  ;;  %259 = vrot.lane.b32.xlu1 %v254_v53, %s7932_s29 }
  0x33   :  { %v250_v48 = vld [vmem:[#allocation2 + $0x8] ss:$8 sm:$0xf0] }
  0x34   :  { %195 = vst.msk [vmem:[#allocation3 + $0x44] ss:$8 sm:$0xf] %vm8083_vm1, %v190_v49  ;;  %196 = vst.msk [vmem:[#allocation3 + $0x44] ss:$8 sm:$0x70] %vm8083_vm1, %v190_v49  ;;  %v251_v56 = vor.u32 %v250_v48, %v249_v47 }
  0x35   :  { %v278_v51 = vld [vmem:[#allocation2 + $0x48] ss:$8 sm:$0xf] }
  0x36   :  { %v279_v52 = vld [vmem:[#allocation2 + $0x48] ss:$8 sm:$0x70]  ;;  %257 = vrot.lane.b32.xlu0 %v251_v56, %s7932_s29 }
  0x37   :  { %v275_v54 = vld [vmem:[#allocation2 + $0x8] ss:$8 sm:$0xf]  ;;  %v280_v57 = vor.u32 %v279_v52, %v278_v51 }
  0x38   :  { %v276_v55 = vld [vmem:[#allocation2 + $0x8] ss:$8 sm:$0xf0] }
  0x39   :  { %v277_v58 = vor.u32 %v276_v55, %v275_v54  ;;  %285 = vrot.lane.b32.xlu1 %v280_v57, %s7933_s30 }
  0x3b   :  { %283 = vrot.lane.b32.xlu0 %v277_v58, %s7933_s30 }
  0x3c   :  { %27 = vsyncpa [#allocation8], 0  ;;  %v7934_v59 = vmov 0   ;;  %s11567_s1 = sld [smem:[#allocation20_spill]]  ;;  %vm95_vm2 = vcmask 1046528   ;;  %vm122_vm3 = vcmask 244736  }
  0x3d   :  { %438 = vmatprep.mubr.bf16.mxu1 %v7934_v59  ;;  %520 = vmatprep.mubr.bf16.mxu0 %v7934_v59  ;;  %vm148_vm4 = vcmask 236544   ;;  %vm174_vm5 = vcmask 7168   ;;  %vm97_vm6 = vcmask 252928   ;;  %vm212_vm7 = vcmask 1039360   ;;  %s11568_s24 = sld [smem:[#allocation19_spill]]  ;;  %s7937_s2 = smov 62  }
  0x3e   :  { %7780 = vset.pattern.permute.xlu0 %v7934_v59  ;;  %7781 = vset.pattern.permute.xlu1 %v7934_v59  ;;  %vm238_vm8 = vcmask 809984   ;;  %vm264_vm9 = vcmask 801792   ;;  %vm290_vm10 = vcmask 793600   ;;  %vm357_vm11 = vcmask 1043456   ;;  %s7938_s25 = smov 60   ;;  %s7939_s3 = smov 58  }
  0x3f   :  { %vm358_vm12 = vcmask 1044480   ;;  %v7935_v56 = vmov 65535   ;;  %vm353_vm13 = vcmask 72704   ;;  %vm7936_vm14 = vmmov 0   ;;  %1167 = vrot.lane.b32.xlu1 %v7925_v2, %s7937_s2  ;;  %s7940_s26 = smov 2   ;;  %s7941_s23 = smov 70  }
  0x40   :  { %v359_v57 = vsel %vm357_vm11, 4294967295, %v7935_v56  ;;  %vm62_vm15 = vcmask 64512   ;;  %s7943_s27 = smov 126   ;;  %s7944_s4 = smov 68   ;;  %vm1302_vm0 = vcmask 490496  }
  0x41   :  { %63 = vst.msk [vmem:[#allocation2 + $0x80] sm:$0xff] %vm62_vm15, %v7925_v2  ;;  %s7954_s22 = smov 86  }
  0x42   :  { %v347_v60 = vld [vmem:[%s11567_s1] sm:$0xff]  ;;  %s7965_s1 = smov 106  }
  0x43   :  { %350 = vperm.xlu0 %7780, %v347_v60   ;;  %1377 = vrot.lane.b32.xlu1 %v7925_v2, %s7939_s3 }
  0x47   :  { %1272 = vrot.lane.b32.xlu0 %v7925_v2, %s7938_s25 }
  0x4b   :  { %1484 = vrot.lane.b32.xlu0 %v7925_v2, %s7940_s26 }
  0x8a   :  { %v116_v61 = vpop.permute.xlu1 %115 }
  0x8b   :  { %v119_v0 = vrot.slane %v116_v61, 1 }
  0x8c   :  { %v90_v62 = vpop.permute.xlu0 %89 }
  0x8d   :  { %v93_v20 = vrot.slane %v90_v62, 1 }
  0x8e   :  { %v118_v63 = vpop.permute.xlu1 %117 }
  0x8f   :  { %v120_v3 = vrot.slane %v118_v63, 1 }
  0x90   :  { %v142_v5 = vpop.permute.xlu0 %141 }
  0x91   :  { %v121_v6 = vsel %vm95_vm2, %v119_v0, %v120_v3  ;;  %v124_v7 = vsel %vm122_vm3, %v118_v63, %v120_v3  ;;  %v145_v10 = vrot.slane %v142_v5, 1  ;;  %v8157_v0 = vsel %vm358_vm12, %v359_v57, 0 }
  0x92   :  { %v123_v8 = vsel %vm122_vm3, %v116_v61, %v121_v6  ;;  %131 = vst.msk [vmem:[#allocation3 + $0x41] ss:$8 sm:$0xf] %vm8083_vm1, %v124_v7  ;;  %132 = vst.msk [vmem:[#allocation3 + $0x41] ss:$8 sm:$0x70] %vm8083_vm1, %v124_v7  ;;  %v144_v9 = vpop.permute.xlu1 %143 }
  0x93   :  { %128 = vst [vmem:[#allocation3 + $0x1] ss:$8 sm:$0xf] %v123_v8  ;;  %129 = vst [vmem:[#allocation3 + $0x1] ss:$8 sm:$0xf0] %v123_v8 }
  0x94   :  { %v146_v11 = vrot.slane %v144_v9, 1  ;;  %v168_v12 = vpop.permute.xlu0 %167  ;;  %vm3069_vm12 = vcmask 1014784  }
  0x95   :  { %v171_v17 = vrot.slane %v168_v12, 1 }
  0x96   :  { %v147_v13 = vsel %vm95_vm2, %v145_v10, %v146_v11  ;;  %v150_v14 = vsel %vm148_vm4, %v144_v9, %v146_v11  ;;  %v170_v16 = vpop.permute.xlu1 %169 }
  0x97   :  { %v149_v15 = vsel %vm148_vm4, %v142_v5, %v147_v13  ;;  %157 = vst.msk [vmem:[#allocation3 + $0x42] ss:$8 sm:$0xf] %vm8083_vm1, %v150_v14  ;;  %158 = vst.msk [vmem:[#allocation3 + $0x42] ss:$8 sm:$0x70] %vm8083_vm1, %v150_v14 }
  0x98   :  { %154 = vst [vmem:[#allocation3 + $0x2] ss:$8 sm:$0xf] %v149_v15  ;;  %155 = vst [vmem:[#allocation3 + $0x2] ss:$8 sm:$0xf0] %v149_v15  ;;  %v92_v19 = vpop.permute.xlu0 %91 }
  0x99   :  { %v172_v18 = vrot.slane %v170_v16, 1  ;;  %v94_v21 = vrot.slane %v92_v19, 1  ;;  %vm1407_vm4 = vcmask 474112  }
  0x9a   :  { %v208_v27 = vpop.permute.xlu1 %207 }
  0x9b   :  { %v173_v22 = vsel %vm95_vm2, %v171_v17, %v172_v18  ;;  %v176_v23 = vsel %vm174_vm5, %v170_v16, %v172_v18  ;;  %v96_v25 = vsel %vm95_vm2, %v93_v20, %v94_v21  ;;  %v99_v26 = vsel %vm97_vm6, %v92_v19, %v94_v21 }
  0x9c   :  { %v175_v24 = vsel %vm174_vm5, %v168_v12, %v173_v22  ;;  %183 = vst.msk [vmem:[#allocation3 + $0x43] ss:$8 sm:$0xf] %vm8083_vm1, %v176_v23  ;;  %184 = vst.msk [vmem:[#allocation3 + $0x43] ss:$8 sm:$0x70] %vm8083_vm1, %v176_v23  ;;  %v98_v28 = vsel %vm97_vm6, %v90_v62, %v96_v25  ;;  %v206_v30 = vpop.permute.xlu0 %205 }
  0x9d   :  { %180 = vst [vmem:[#allocation3 + $0x3] ss:$8 sm:$0xf] %v175_v24  ;;  %181 = vst [vmem:[#allocation3 + $0x3] ss:$8 sm:$0xf0] %v175_v24 }
  0x9e   :  { %105 = vst.msk [vmem:[#allocation3 + $0x40] ss:$8 sm:$0xf] %vm8083_vm1, %v99_v26  ;;  %106 = vst.msk [vmem:[#allocation3 + $0x40] ss:$8 sm:$0x70] %vm8083_vm1, %v99_v26  ;;  %v234_v34 = vpop.permute.xlu1 %233 }
  0x9f   :  { %v210_v29 = vrot.slane %v208_v27, 1  ;;  %102 = vst [vmem:[#allocation3] ss:$8 sm:$0xf] %v98_v28  ;;  %v209_v31 = vrot.slane %v206_v30, 1  ;;  %v236_v36 = vrot.slane %v234_v34, 1 }
  0xa0   :  { %103 = vst [vmem:[#allocation3] ss:$8 sm:$0xf0] %v98_v28  ;;  %v232_v37 = vpop.permute.xlu0 %231  ;;  %vm1652_vm5 = vcmask 1031168   ;;  %vm1862_vm6 = vcmask 556032  }
  0xa1   :  { %v214_v32 = vsel %vm212_vm7, %v208_v27, %v210_v29  ;;  %v211_v33 = vsel %vm95_vm2, %v209_v31, %v210_v29  ;;  %v235_v38 = vrot.slane %v232_v37, 1  ;;  %v240_v39 = vsel %vm238_vm8, %v234_v34, %v236_v36  ;;  %v301_v34 = vld [vmem:[%s11568_s24] sm:$0xf]  ;;  %s7942_s24 = smov 66  }
  0xa2   :  { %221 = vst.msk [vmem:[#allocation3 + $0x45] ss:$8 sm:$0xf] %vm8083_vm1, %v214_v32  ;;  %222 = vst.msk [vmem:[#allocation3 + $0x45] ss:$8 sm:$0x70] %vm8083_vm1, %v214_v32  ;;  %v213_v35 = vsel %vm212_vm7, %v206_v30, %v211_v33 }
  0xa3   :  { %218 = vst [vmem:[#allocation3 + $0x5] ss:$8 sm:$0xf] %v213_v35  ;;  %219 = vst [vmem:[#allocation3 + $0x5] ss:$8 sm:$0xf0] %v213_v35  ;;  %v237_v40 = vsel %vm95_vm2, %v235_v38, %v236_v36 }
  0xa4   :  { %247 = vst.msk [vmem:[#allocation3 + $0x46] ss:$8 sm:$0xf] %vm8083_vm1, %v240_v39  ;;  %248 = vst.msk [vmem:[#allocation3 + $0x46] ss:$8 sm:$0x70] %vm8083_vm1, %v240_v39  ;;  %v260_v41 = vpop.permute.xlu1 %259  ;;  %v239_v42 = vsel %vm238_vm8, %v232_v37, %v237_v40 }
  0xa5   :  { %v262_v43 = vrot.slane %v260_v41, 1  ;;  %244 = vst [vmem:[#allocation3 + $0x6] ss:$8 sm:$0xf] %v239_v42  ;;  %vm1967_vm8 = vcmask 539648  }
  0xa6   :  { %245 = vst [vmem:[#allocation3 + $0x6] ss:$8 sm:$0xf0] %v239_v42 }
  0xa7   :  { %v266_v46 = vsel %vm264_vm9, %v260_v41, %v262_v43 }
  0xa8   :  { %v258_v44 = vpop.permute.xlu0 %257  ;;  %273 = vst.msk [vmem:[#allocation3 + $0x47] ss:$8 sm:$0xf] %vm8083_vm1, %v266_v46  ;;  %274 = vst.msk [vmem:[#allocation3 + $0x47] ss:$8 sm:$0x70] %vm8083_vm1, %v266_v46 }
  0xa9   :  { %v261_v45 = vrot.slane %v258_v44, 1 }
  0xab   :  { %v263_v47 = vsel %vm95_vm2, %v261_v45, %v262_v43  ;;  %v286_v48 = vpop.permute.xlu1 %285 }
  0xac   :  { %v265_v49 = vsel %vm264_vm9, %v258_v44, %v263_v47  ;;  %v288_v50 = vrot.slane %v286_v48, 1 }
  0xad   :  { %v284_v51 = vpop.permute.xlu0 %283  ;;  %270 = vst [vmem:[#allocation3 + $0x7] ss:$8 sm:$0xf] %v265_v49  ;;  %271 = vst [vmem:[#allocation3 + $0x7] ss:$8 sm:$0xf0] %v265_v49 }
  0xae   :  { %v287_v52 = vrot.slane %v284_v51, 1  ;;  %v292_v53 = vsel %vm290_vm10, %v286_v48, %v288_v50 }
  0xaf   :  { %299 = vst.msk [vmem:[#allocation3 + $0xb8] ss:$8 sm:$0xf] %vm8083_vm1, %v292_v53  ;;  %300 = vst.msk [vmem:[#allocation3 + $0xb8] ss:$8 sm:$0x70] %vm8083_vm1, %v292_v53 }
  0xb0   :  { %v289_v54 = vsel %vm95_vm2, %v287_v52, %v288_v50  ;;  %v311_v62 = vld [vmem:[#allocation3 + $0x48] sm:$0xff]  ;;  %v310_v24 = vld [vmem:[#allocation3 + $0x40] sm:$0xff]  ;;  %v313_v46 = vld [vmem:[#allocation3 + $0x58] sm:$0xff]  ;;  %vm1197_vm1 = vcmask 506880   ;;  %vm1516_vm2 = vcmask 15360  }
  0xb1   :  { %v291_v55 = vsel %vm290_vm10, %v284_v51, %v289_v54  ;;  %v315_v25 = vld [vmem:[#allocation3 + $0x68] sm:$0xff]  ;;  %v314_v43 = vld [vmem:[#allocation3 + $0x60] sm:$0xff]  ;;  %v312_v52 = vld [vmem:[#allocation3 + $0x50] sm:$0xff] }
  0xb2   :  { %296 = vst [vmem:[#allocation3 + $0x78] ss:$8 sm:$0xf] %v291_v55  ;;  %297 = vst [vmem:[#allocation3 + $0x78] ss:$8 sm:$0xf0] %v291_v55 }
  0xb3   :  { %v316_v56 = vld [vmem:[#allocation3 + $0x70] sm:$0xff] }
  0xb4   :  { %v303_v58 = vld [vmem:[#allocation3 + $0x8] sm:$0xff]  ;;  %v302_v61 = vld [vmem:[#allocation3] sm:$0xff]  ;;  %v305_v3 = vld [vmem:[#allocation3 + $0x18] sm:$0xff] }
  0xb5   :  { %v307_v60 = vld [vmem:[#allocation3 + $0x28] sm:$0xff]  ;;  %v306_v4 = vld [vmem:[#allocation3 + $0x20] sm:$0xff]  ;;  %v304_v23 = vld [vmem:[#allocation3 + $0x10] sm:$0xff] }
  0xb6   :  { %v326_v63 = vld [vmem:[#allocation3 + $0xc0] sm:$0x1]  ;;  %v325_v5 = vld [vmem:[#allocation3 + $0xb8] sm:$0x1]  ;;  %v328_v41 = vld [vmem:[#allocation3 + $0xd0] sm:$0x1] }
  0xb7   :  { %v330_v6 = vld [vmem:[#allocation3 + $0xe0] sm:$0x1]  ;;  %v341_v15 = vpack.c.bf16 %v326_v63, %v311_v62  ;;  %v340_v28 = vpack.c.bf16 %v325_v5, %v310_v24  ;;  %v309_v29 = vld [vmem:[#allocation3 + $0x38] sm:$0xff]  ;;  %v308_v42 = vld [vmem:[#allocation3 + $0x30] sm:$0xff]  ;;  %v343_v47 = vpack.c.bf16 %v328_v41, %v313_v46 }
  0xb8   :  { %v345_v30 = vpack.c.bf16 %v330_v6, %v315_v25  ;;  %v329_v40 = vld [vmem:[#allocation3 + $0xd8] sm:$0x1]  ;;  %v327_v51 = vld [vmem:[#allocation3 + $0xc8] sm:$0x1] }
  0xb9   :  { %v318_v7 = vld [vmem:[#allocation3 + $0x80] sm:$0x1]  ;;  %v317_v9 = vld [vmem:[#allocation3 + $0x78] sm:$0x1]  ;;  %v320_v14 = vld [vmem:[#allocation3 + $0x90] sm:$0x1]  ;;  %v389_v32 = vand.u32 %v8157_v0, %v341_v15  ;;  %v386_v36 = vand.u32 %v8157_v0, %v340_v28  ;;  %v344_v45 = vpack.c.bf16 %v329_v40, %v314_v43  ;;  %v395_v50 = vand.u32 %v8157_v0, %v343_v47 }
  0xba   :  { %v322_v8 = vld [vmem:[#allocation3 + $0xa0] sm:$0x1]  ;;  %v333_v10 = vpack.c.bf16 %v318_v7, %v303_v58  ;;  %v332_v12 = vpack.c.bf16 %v317_v9, %v302_v61  ;;  %v321_v13 = vld [vmem:[#allocation3 + $0x98] sm:$0x1]  ;;  %v319_v16 = vld [vmem:[#allocation3 + $0x88] sm:$0x1]  ;;  %v335_v18 = vpack.c.bf16 %v320_v14, %v305_v3  ;;  %v401_v38 = vand.u32 %v8157_v0, %v345_v30 }
  0xbb   :  { %v337_v11 = vpack.c.bf16 %v322_v8, %v307_v60  ;;  %v336_v17 = vpack.c.bf16 %v321_v13, %v306_v4  ;;  %v324_v19 = vld [vmem:[#allocation3 + $0xb0] sm:$0x1]  ;;  %v334_v27 = vpack.c.bf16 %v319_v16, %v304_v23  ;;  %v323_v39 = vld [vmem:[#allocation3 + $0xa8] sm:$0x1]  ;;  %v398_v49 = vand.u32 %v8157_v0, %v344_v45 }
  0xbc   :  { %v365_v20 = vand.u32 %v8157_v0, %v333_v10  ;;  %v362_v22 = vand.u32 %v8157_v0, %v332_v12  ;;  %v371_v31 = vand.u32 %v8157_v0, %v335_v18  ;;  %v339_v33 = vpack.c.bf16 %v324_v19, %v309_v29  ;;  %v331_v55 = vld [vmem:[#allocation3 + $0xe8] sm:$0x1] }
  0xbd   :  { %v377_v21 = vand.u32 %v8157_v0, %v337_v11  ;;  %v374_v26 = vand.u32 %v8157_v0, %v336_v17  ;;  %v368_v35 = vand.u32 %v8157_v0, %v334_v27  ;;  %v338_v44 = vpack.c.bf16 %v323_v39, %v308_v42 }
  0xbe   :  { %406 = vmatprep.subr.bf16.mxu1 %v365_v20  ;;  %v383_v37 = vand.u32 %v8157_v0, %v339_v33  ;;  %v342_v53 = vpack.c.bf16 %v327_v51, %v312_v52  ;;  %v346_v57 = vpack.c.bf16 %v331_v55, %v316_v56 }
  0xbf   :  { %488 = vmatprep.subr.bf16.mxu0 %v377_v21  ;;  %407 = vmatpush1.bf16.msra.mxu1 %v362_v22  ;;  %v380_v48 = vand.u32 %v8157_v0, %v338_v44 }
  0xc0   :  { %489 = vmatpush1.bf16.msra.mxu0 %v374_v26  ;;  %447 = vmatprep.subr.bf16.mxu1 %v371_v31  ;;  %v392_v54 = vand.u32 %v8157_v0, %v342_v53  ;;  %v404_v58 = vand.u32 %v8157_v0, %v346_v57 }
  0xc1   :  { %570 = vmatprep.subr.bf16.mxu0 %v389_v32 }
  0xc2   :  { %7472 = vmatmul.mubr.msk.bf16.vlgmr.msra.gmra.mrb[0].mxu1 %vm353_vm13, %v301_v34  ;;  %v8205_v60 = vpop.permute.xlu0 %350 }
  0xc3   :  { %7474 = vmatmul.mubr.msk.bf16.vlgmr.msra.gmra.mrb[0].mxu0 %vm353_vm13, %v301_v34  ;;  %448 = vmatpush1.bf16.msra.mxu1 %v368_v35 }
  0xc4   :  { %571 = vmatpush1.bf16.msra.mxu0 %v386_v36  ;;  %529 = vmatprep.subr.bf16.mxu1 %v383_v37 }
  0xc5   :  { %652 = vmatprep.subr.bf16.mxu0 %v401_v38  ;;  %479 = vmatprep.mubr.bf16.mxu1 %v7934_v59 }
  0xc6   :  { %602 = vmatprep.mubr.bf16.mxu0 %v7934_v59 }
  0xca   :  { %7473 = vmatmul.mubr.msk.bf16.vlgmr.msra.gmra.mrb[4].mxu1 %vm353_vm13, %v301_v34 }
  0xcb   :  { %7476 = vmatmul.mubr.msk.bf16.vlgmr.msra.gmra.mrb[4].mxu0 %vm353_vm13, %v301_v34  ;;  %530 = vmatpush1.bf16.msra.mxu1 %v380_v48 }
  0xcc   :  { %653 = vmatpush1.bf16.msra.mxu0 %v398_v49  ;;  %611 = vmatprep.subr.bf16.mxu1 %v395_v50 }
  0xcd   :  { %561 = vmatprep.mubr.bf16.mxu1 %v7934_v59  ;;  %684 = vmatprep.mubr.bf16.mxu0 %v7934_v59 }
  0xd2   :  { %7475 = vmatmul.mubr.msk.bf16.vlgmr.msra.gmra.mrb[8].mxu1 %vm353_vm13, %v301_v34 }
  0xd3   :  { %7478 = vmatmul.mubr.msk.bf16.vlgmr.msra.gmra.mrb[8].mxu0 %vm353_vm13, %v301_v34  ;;  %612 = vmatpush1.bf16.msra.mxu1 %v392_v54 }
  0xd4   :  { %643 = vmatprep.mubr.bf16.mxu1 %v7934_v59  ;;  %7676 = vmatprep.subr.bf16.mxu1 %v7925_v2 }
  0xd5   :  { %2310 = vmatprep.mubr.bf16.mxu0 %v7934_v59 }
  0xda   :  { %7477 = vmatmul.mubr.msk.bf16.vlgmr.msra.gmra.mrb[12].mxu1 %vm353_vm13, %v301_v34 }
  0xdb   :  { %7677 = vmatpush3.bf16.msra.mxu1 %v404_v58  ;;  %7678 = vmatprep.mubr.msk.bf16.mxu1 %vm7936_vm14, %v7925_v2 }
  0xe2   :  { %7679 = vmatmul.mubr.msk.bf16.vlgmr.msra.gmra.mrb[16].mxu1 %vm353_vm13, %v301_v34  ;;  %vm3388_vm13 = vcmask 31744  }
  0xe3   :  { %2351 = vmatprep.mubr.bf16.mxu1 %v7934_v59 }
 0x195   :  { %v440_v61 = vpop.f32.mrb[0].mxu1 }
 0x196   :  { %v522_v62 = vpop.f32.mrb[0].mxu0  ;;  %v441_v63 = vadd.f32 %v440_v61, %v8205_v60  ;;  %v442_v4 = vpop.f32.mrb[1].mxu1 }
 0x197   :  { %v523_v0 = vadd.f32 %v522_v62, %v8205_v60  ;;  %v524_v3 = vpop.f32.mrb[1].mxu0  ;;  %v443_v5 = vadd.f32 %v442_v4, %v8205_v60  ;;  %v444_v7 = vpop.f32.mrb[2].mxu1 }
 0x198   :  { %v525_v6 = vadd.f32 %v524_v3, %v8205_v60  ;;  %v526_v8 = vpop.f32.mrb[2].mxu0  ;;  %v8211_v9 = vmax.f32 %v441_v63, 0.0  ;;  %v445_v2 = vpop.f32.mrb[3].mxu1 }
 0x199   :  { %v8213_v10 = vmax.f32 %v523_v0, 0.0  ;;  %v527_v11 = vpop.f32.mrb[3].mxu0  ;;  %v8215_v12 = vmax.f32 %v443_v5, 0.0  ;;  %v8402_v62 = vpop.permute.xlu1 %1167 }
 0x19a   :  { %v8217_v13 = vmax.f32 %v525_v6, 0.0  ;;  %748 = vst [vmem:[%s11542_s15] sm:$0xff] %v8211_v9  ;;  %956 = vrot.lane.b32.xlu0 %v8211_v9, %s7933_s30  ;;  %808 = vrot.lane.b32.xlu1 %v8211_v9, %s7930_s28  ;;  %v8404_v63 = vpop.permute.xlu0 %1272 }
 0x19b   :  { %752 = vst [vmem:[%s11542_s15 + $0x20] sm:$0xff] %v8213_v10  ;;  %749 = vst [vmem:[%s11542_s15 + $0x8] sm:$0xff] %v8215_v12 }
 0x19c   :  { %753 = vst [vmem:[%s11542_s15 + $0x28] sm:$0xff] %v8217_v13 }
 0x19d   :  { %v481_v14 = vpop.f32.mrb[4].mxu1  ;;  %v8406_v0 = vpop.permute.xlu1 %1377 }
 0x19e   :  { %v604_v15 = vpop.f32.mrb[4].mxu0  ;;  %v482_v16 = vadd.f32 %v481_v14, %v8205_v60  ;;  %v483_v18 = vpop.f32.mrb[5].mxu1  ;;  %964 = vrot.lane.b32.xlu0 %v8213_v10, %s7933_s30  ;;  %882 = vrot.lane.b32.xlu1 %v8211_v9, %s7932_s29 }
 0x19f   :  { %v605_v17 = vadd.f32 %v604_v15, %v8205_v60  ;;  %v606_v19 = vpop.f32.mrb[5].mxu0  ;;  %v484_v20 = vadd.f32 %v483_v18, %v8205_v60  ;;  %v485_v22 = vpop.f32.mrb[6].mxu1  ;;  %v8419_v15 = vshrl.u32 %v73_v1, 7 }
 0x1a0   :  { %v607_v21 = vadd.f32 %v606_v19, %v8205_v60  ;;  %v608_v23 = vpop.f32.mrb[6].mxu0  ;;  %v8247_v24 = vmax.f32 %v482_v16, 0.0  ;;  %v486_v26 = vpop.f32.mrb[7].mxu1 }
 0x1a1   :  { %v8249_v25 = vmax.f32 %v605_v17, 0.0  ;;  %v609_v27 = vpop.f32.mrb[7].mxu0  ;;  %v8251_v28 = vmax.f32 %v484_v20, 0.0  ;;  %v8408_v4 = vpop.permute.xlu0 %1484  ;;  %11569 = vst [vmem:[#allocation11_spill] sm:$0xff] %v8419_v15  ;;  %v8424_v18 = vsub.s32 0, %v8419_v15 }
 0x1a2   :  { %v8253_v29 = vmax.f32 %v607_v21, 0.0  ;;  %750 = vst [vmem:[%s11542_s15 + $0x10] sm:$0xff] %v8247_v24  ;;  %884 = vrot.lane.b32.xlu0 %v8215_v12, %s7932_s29  ;;  %816 = vrot.lane.b32.xlu1 %v8213_v10, %s7930_s28 }
 0x1a3   :  { %756 = vst [vmem:[%s11542_s15 + $0x40] sm:$0xff] %v8249_v25  ;;  %751 = vst [vmem:[%s11542_s15 + $0x18] sm:$0xff] %v8251_v28 }
 0x1a4   :  { %757 = vst [vmem:[%s11542_s15 + $0x48] sm:$0xff] %v8253_v29 }
 0x1a5   :  { %v563_v30 = vpop.f32.mrb[8].mxu1 }
 0x1a6   :  { %v686_v31 = vpop.f32.mrb[8].mxu0  ;;  %v564_v32 = vadd.f32 %v563_v30, %v8205_v60  ;;  %v565_v34 = vpop.f32.mrb[9].mxu1  ;;  %812 = vrot.lane.b32.xlu0 %v8247_v24, %s7930_s28  ;;  %890 = vrot.lane.b32.xlu1 %v8213_v10, %s7932_s29 }
 0x1a7   :  { %v687_v33 = vadd.f32 %v686_v31, %v8205_v60  ;;  %v688_v35 = vpop.f32.mrb[9].mxu0  ;;  %v566_v36 = vadd.f32 %v565_v34, %v8205_v60  ;;  %v567_v38 = vpop.f32.mrb[10].mxu1 }
 0x1a8   :  { %v689_v37 = vadd.f32 %v688_v35, %v8205_v60  ;;  %v690_v39 = vpop.f32.mrb[10].mxu0  ;;  %v8283_v40 = vmax.f32 %v564_v32, 0.0  ;;  %v568_v42 = vpop.f32.mrb[11].mxu1 }
 0x1a9   :  { %v8285_v41 = vmax.f32 %v687_v33, 0.0  ;;  %v691_v43 = vpop.f32.mrb[11].mxu0  ;;  %v8287_v44 = vmax.f32 %v566_v36, 0.0 }
 0x1aa   :  { %v8289_v45 = vmax.f32 %v689_v37, 0.0  ;;  %754 = vst [vmem:[%s11542_s15 + $0x30] sm:$0xff] %v8283_v40  ;;  %960 = vrot.lane.b32.xlu0 %v8247_v24, %s7933_s30  ;;  %810 = vrot.lane.b32.xlu1 %v8215_v12, %s7930_s28  ;;  %v8452_v37 = vsub.s32 4, %v8419_v15 }
 0x1ab   :  { %760 = vst [vmem:[%s11542_s15 + $0x60] sm:$0xff] %v8285_v41  ;;  %755 = vst [vmem:[%s11542_s15 + $0x38] sm:$0xff] %v8287_v44 }
 0x1ac   :  { %761 = vst [vmem:[%s11542_s15 + $0x68] sm:$0xff] %v8289_v45 }
 0x1ad   :  { %v645_v46 = vpop.f32.mrb[12].mxu1 }
 0x1ae   :  { %v646_v47 = vadd.f32 %v645_v46, %v8205_v60  ;;  %v647_v48 = vpop.f32.mrb[13].mxu1  ;;  %972 = vrot.lane.b32.xlu0 %v8249_v25, %s7933_s30  ;;  %958 = vrot.lane.b32.xlu1 %v8215_v12, %s7933_s30 }
 0x1af   :  { %v648_v49 = vadd.f32 %v647_v48, %v8205_v60  ;;  %v649_v50 = vpop.f32.mrb[14].mxu1 }
 0x1b0   :  { %v8317_v51 = vmax.f32 %v646_v47, 0.0  ;;  %v650_v52 = vpop.f32.mrb[15].mxu1 }
 0x1b1   :  { %v8319_v53 = vmax.f32 %v648_v49, 0.0 }
 0x1b2   :  { %758 = vst [vmem:[%s11542_s15 + $0x50] sm:$0xff] %v8317_v51  ;;  %888 = vrot.lane.b32.xlu0 %v8251_v28, %s7932_s29  ;;  %818 = vrot.lane.b32.xlu1 %v8217_v13, %s7930_s28 }
 0x1b3   :  { %759 = vst [vmem:[%s11542_s15 + $0x58] sm:$0xff] %v8319_v53 }
 0x1b5   :  { %v727_v54 = vpop.f32.mrb[16].mxu1 }
 0x1b6   :  { %v728_v55 = vadd.f32 %v727_v54, %v8205_v60  ;;  %962 = vrot.lane.b32.xlu0 %v8251_v28, %s7933_s30  ;;  %892 = vrot.lane.b32.xlu1 %v8217_v13, %s7932_s29  ;;  %v7680_v56 = vpop.f32.mrb[17].mxu1 }
 0x1b7   :  { %v730_v57 = vpop.f32.mrb[18].mxu1 }
 0x1b8   :  { %v8338_v58 = vmax.f32 %v728_v55, 0.0  ;;  %v7681_v61 = vpop.f32.mrb[19].mxu1  ;;  %v8476_v55 = vsub.s32 5, %v8419_v15 }
 0x1ba   :  { %762 = vst.msk [vmem:[%s11542_s15 + $0x70] sm:$0xff] %vm62_vm15, %v8338_v58  ;;  %777 = vst.msk [vmem:[#allocation2 + $0x78] sm:$0xff] %vm62_vm15, %v8338_v58  ;;  %820 = vrot.lane.b32.xlu0 %v8283_v40, %s7930_s28  ;;  %966 = vrot.lane.b32.xlu1 %v8217_v13, %s7933_s30 }
 0x1be   :  { %894 = vrot.lane.b32.xlu0 %v8283_v40, %s7932_s29  ;;  %886 = vrot.lane.b32.xlu1 %v8247_v24, %s7932_s29 }
 0x1c1   :  { %v792_v60 = vld [vmem:[#allocation2 + $0x78] sm:$0xff] }
 0x1c2   :  { %968 = vrot.lane.b32.xlu0 %v8283_v40, %s7933_s30  ;;  %824 = vrot.lane.b32.xlu1 %v8249_v25, %s7930_s28 }
 0x1c6   :  { %980 = vrot.lane.b32.xlu0 %v8285_v41, %s7933_s30  ;;  %898 = vrot.lane.b32.xlu1 %v8249_v25, %s7932_s29 }
 0x1ca   :  { %896 = vrot.lane.b32.xlu0 %v8287_v44, %s7932_s29  ;;  %814 = vrot.lane.b32.xlu1 %v8251_v28, %s7930_s28 }
 0x1ce   :  { %970 = vrot.lane.b32.xlu0 %v8287_v44, %s7933_s30  ;;  %826 = vrot.lane.b32.xlu1 %v8253_v29, %s7930_s28 }
 0x1d2   :  { %828 = vrot.lane.b32.xlu0 %v8317_v51, %s7930_s28  ;;  %900 = vrot.lane.b32.xlu1 %v8253_v29, %s7932_s29 }
 0x1d6   :  { %902 = vrot.lane.b32.xlu0 %v8317_v51, %s7932_s29  ;;  %974 = vrot.lane.b32.xlu1 %v8253_v29, %s7933_s30 }
 0x1da   :  { %976 = vrot.lane.b32.xlu0 %v8317_v51, %s7933_s30  ;;  %832 = vrot.lane.b32.xlu1 %v8285_v41, %s7930_s28 }
 0x1de   :  { %904 = vrot.lane.b32.xlu0 %v8319_v53, %s7932_s29  ;;  %906 = vrot.lane.b32.xlu1 %v8285_v41, %s7932_s29 }
 0x1e2   :  { %978 = vrot.lane.b32.xlu0 %v8319_v53, %s7933_s30  ;;  %822 = vrot.lane.b32.xlu1 %v8287_v44, %s7930_s28 }
 0x1e6   :  { %836 = vrot.lane.b32.xlu0 %v792_v60, %s7930_s28  ;;  %834 = vrot.lane.b32.xlu1 %v8289_v45, %s7930_s28 }
 0x1ea   :  { %910 = vrot.lane.b32.xlu0 %v792_v60, %s7932_s29  ;;  %908 = vrot.lane.b32.xlu1 %v8289_v45, %s7932_s29 }
 0x1ee   :  { %984 = vrot.lane.b32.xlu0 %v792_v60, %s7933_s30  ;;  %982 = vrot.lane.b32.xlu1 %v8289_v45, %s7933_s30  ;;  %s11570_s30 = sld [smem:[#allocation17_spill]] }
 0x1f2   :  { %830 = vrot.lane.b32.xlu1 %v8319_v53, %s7930_s28 }
 0x1f4   :  { %v8430_v20 = vld [vmem:[%s11570_s30] sm:$0xff] }
 0x1f5   :  { %v1035_v1 = vrot.slane %v8430_v20, %v8424_v18  ;;  %v1051_v43 = vrot.slane %v8430_v20, %v8452_v37 }
 0x20c   :  { %v809_v3 = vpop.permute.xlu1 %808  ;;  %v957_v5 = vpop.permute.xlu0 %956 }
 0x210   :  { %v883_v6 = vpop.permute.xlu1 %882  ;;  %v8410_v7 = vpop.permute.xlu0 %964 }
 0x214   :  { %v8412_v8 = vpop.permute.xlu1 %816  ;;  %v885_v2 = vpop.permute.xlu0 %884 }
 0x215   :  { %v912_v22 = vsel %vm264_vm9, %v883_v6, %v885_v2 }
 0x218   :  { %v8414_v11 = vpop.permute.xlu1 %890  ;;  %v8416_v14 = vpop.permute.xlu0 %812 }
 0x21c   :  { %v811_v16 = vpop.permute.xlu1 %810  ;;  %v8421_v17 = vpop.permute.xlu0 %960 }
 0x21d   :  { %v838_v19 = vsel %vm212_vm7, %v809_v3, %v811_v16  ;;  %v839_v61 = vsel %vm212_vm7, %v811_v16, %v8416_v14  ;;  %v8501_v16 = vsub.s32 1, %v8419_v15 }
 0x21e   :  { %v867_v21 = vmax.f32 %v8211_v9, %v838_v19 }
 0x220   :  { %v959_v23 = vpop.permute.xlu1 %958  ;;  %v941_v26 = vmax.f32 %v867_v21, %v912_v22  ;;  %v8436_v27 = vpop.permute.xlu0 %972  ;;  %v868_v21 = vmax.f32 %v8215_v12, %v839_v61 }
 0x221   :  { %v986_v30 = vsel %vm290_vm10, %v957_v5, %v959_v23  ;;  %v1055_v5 = vrot.slane %v8430_v20, %v8476_v55  ;;  %v987_v12 = vsel %vm290_vm10, %v959_v23, %v8421_v17 }
 0x222   :  { %v1015_v31 = vmax.f32 %v941_v26, %v986_v30 }
 0x224   :  { %v8439_v32 = vmul.f32 %v1035_v1, %v1015_v31  ;;  %v819_v33 = vpop.permute.xlu1 %818  ;;  %v8441_v34 = vpop.permute.xlu0 %888  ;;  %v1039_v31 = vrot.slane %v8430_v20, %v8501_v16 }
 0x225   :  { %v842_v9 = vsel %vm212_vm7, %v8412_v8, %v819_v33 }
 0x226   :  { %1727 = vrot.lane.b32.xlu0 %v8439_v32, %s7941_s23  ;;  %1169 = vrot.lane.b32.xlu1 %v8439_v32, %s7937_s2  ;;  %v871_v39 = vmax.f32 %v8213_v10, %v842_v9 }
 0x228   :  { %v893_v35 = vpop.permute.xlu1 %892  ;;  %v8449_v36 = vpop.permute.xlu0 %962 }
 0x229   :  { %v916_v38 = vsel %vm264_vm9, %v8414_v11, %v893_v35 }
 0x22a   :  { %1937 = vrot.lane.b32.xlu0 %v8439_v32, %s7942_s24  ;;  %1274 = vrot.lane.b32.xlu1 %v8439_v32, %s7938_s25  ;;  %v945_v42 = vmax.f32 %v871_v39, %v916_v38 }
 0x22c   :  { %v967_v46 = vpop.permute.xlu1 %966  ;;  %v8463_v47 = vpop.permute.xlu0 %820 }
 0x22d   :  { %v990_v48 = vsel %vm290_vm10, %v8410_v7, %v967_v46  ;;  %v843_v10 = vsel %vm212_vm7, %v819_v33, %v8463_v47 }
 0x22e   :  { %v1019_v49 = vmax.f32 %v945_v42, %v990_v48  ;;  %1379 = vrot.lane.b32.xlu1 %v8439_v32, %s7939_s3  ;;  %v872_v57 = vmax.f32 %v8217_v13, %v843_v10  ;;  %v8539_v10 = vld [vmem:[%s11570_s30 + $0x8] sm:$0x7f] }
 0x230   :  { %v1111_v50 = vmul.f32 %v1051_v43, %v1019_v49  ;;  %v8471_v52 = vpop.permute.xlu1 %886  ;;  %v8473_v54 = vpop.permute.xlu0 %894 }
 0x231   :  { %v917_v56 = vsel %vm264_vm9, %v893_v35, %v8473_v54  ;;  %v913_v13 = vsel %vm264_vm9, %v885_v2, %v8471_v52 }
 0x232   :  { %1126 = vst [vmem:[#allocation2 + $0x28] sm:$0xff] %v1111_v50  ;;  %1630 = vrot.lane.b32.xlu0 %v1111_v50, %s7943_s27  ;;  %1486 = vrot.lane.b32.xlu1 %v8439_v32, %s7940_s26  ;;  %v946_v60 = vmax.f32 %v872_v57, %v917_v56  ;;  %v942_v1 = vmax.f32 %v868_v21, %v913_v13 }
 0x234   :  { %v8486_v3 = vpop.permute.xlu1 %824  ;;  %v8490_v6 = vpop.permute.xlu0 %968  ;;  %v1016_v33 = vmax.f32 %v942_v1, %v987_v12  ;;  %v8566_v12 = vsub.s32 3, %v8419_v15 }
 0x235   :  { %v991_v19 = vsel %vm290_vm10, %v967_v46, %v8490_v6 }
 0x236   :  { %v1020_v22 = vmax.f32 %v946_v60, %v991_v19  ;;  %1735 = vrot.lane.b32.xlu0 %v1111_v50, %s7941_s23  ;;  %1622 = vrot.lane.b32.xlu1 %v8439_v32, %s7943_s27  ;;  %v8521_v38 = vmul.f32 %v1039_v31, %v1016_v33  ;;  %v1067_v60 = vrot.slane %v8539_v10, %v8424_v18 }
 0x238   :  { %v8503_v26 = vmul.f32 %v1055_v5, %v1020_v22  ;;  %v8505_v30 = vpop.permute.xlu1 %898  ;;  %v8507_v2 = vpop.permute.xlu0 %980 }
 0x23a   :  { %1127 = vst [vmem:[#allocation2 + $0x30] sm:$0xff] %v8503_v26  ;;  %1840 = vrot.lane.b32.xlu0 %v1111_v50, %s7944_s4  ;;  %1832 = vrot.lane.b32.xlu1 %v8439_v32, %s7944_s4 }
 0x23c   :  { %v815_v9 = vpop.permute.xlu1 %814  ;;  %v8517_v35 = vpop.permute.xlu0 %896 }
 0x23d   :  { %v841_v48 = vsel %vm212_vm7, %v815_v9, %v8412_v8  ;;  %v840_v21 = vsel %vm212_vm7, %v8416_v14, %v815_v9 }
 0x23e   :  { %1945 = vrot.lane.b32.xlu0 %v1111_v50, %s7942_s24  ;;  %1177 = vrot.lane.b32.xlu1 %v1111_v50, %s7937_s2  ;;  %v870_v8 = vmax.f32 %v8251_v28, %v841_v48  ;;  %v915_v28 = vsel %vm264_vm9, %v8441_v34, %v8414_v11  ;;  %v869_v9 = vmax.f32 %v8247_v24, %v840_v21 }
 0x23f   :  { %v914_v24 = vsel %vm264_vm9, %v8471_v52, %v8441_v34  ;;  %v1047_v48 = vrot.slane %v8430_v20, %v8566_v12  ;;  %v8612_v52 = vsub.s32 6, %v8419_v15 }
 0x240   :  { %v827_v39 = vpop.permute.xlu1 %826  ;;  %v8523_v42 = vpop.permute.xlu0 %970  ;;  %v944_v31 = vmax.f32 %v870_v8, %v915_v28 }
 0x241   :  { %v846_v23 = vsel %vm212_vm7, %v8486_v3, %v827_v39 }
 0x242   :  { %1282 = vrot.lane.b32.xlu1 %v1111_v50, %s7938_s25  ;;  %1171 = vrot.lane.b32.xlu0 %v8521_v38, %s7937_s2  ;;  %v875_v56 = vmax.f32 %v8249_v25, %v846_v23 }
 0x244   :  { %v901_v43 = vpop.permute.xlu1 %900  ;;  %v8530_v46 = vpop.permute.xlu0 %828 }
 0x245   :  { %v920_v49 = vsel %vm264_vm9, %v8505_v30, %v901_v43  ;;  %v847_v57 = vsel %vm212_vm7, %v827_v39, %v8530_v46 }
 0x246   :  { %1387 = vrot.lane.b32.xlu1 %v1111_v50, %s7939_s3  ;;  %1276 = vrot.lane.b32.xlu0 %v8521_v38, %s7938_s25  ;;  %v949_v61 = vmax.f32 %v875_v56, %v920_v49  ;;  %v876_v22 = vmax.f32 %v8253_v29, %v847_v57  ;;  %v1071_v29 = vrot.slane %v8539_v10, %v8501_v16 }
 0x248   :  { %v975_v5 = vpop.permute.xlu1 %974  ;;  %v8550_v13 = vpop.permute.xlu0 %902 }
 0x249   :  { %v994_v25 = vsel %vm290_vm10, %v8436_v27, %v975_v5  ;;  %v921_v19 = vsel %vm264_vm9, %v901_v43, %v8550_v13  ;;  %v989_v43 = vsel %vm290_vm10, %v8449_v36, %v8410_v7  ;;  %v988_v7 = vsel %vm290_vm10, %v8421_v17, %v8449_v36 }
 0x24a   :  { %v1023_v1 = vmax.f32 %v949_v61, %v994_v25  ;;  %1494 = vrot.lane.b32.xlu1 %v1111_v50, %s7940_s26  ;;  %1381 = vrot.lane.b32.xlu0 %v8521_v38, %s7939_s3  ;;  %v950_v39 = vmax.f32 %v876_v22, %v921_v19  ;;  %v1018_v49 = vmax.f32 %v944_v31, %v989_v43  ;;  %v8599_v61 = vsub.s32 2, %v8419_v15 }
 0x24b   :  { %v918_v31 = vsel %vm264_vm9, %v8473_v54, %v8517_v35  ;;  %v992_v54 = vsel %vm290_vm10, %v8490_v6, %v8523_v42 }
 0x24c   :  { %v8568_v33 = vmul.f32 %v1067_v60, %v1023_v1  ;;  %v8570_v14 = vpop.permute.xlu1 %832  ;;  %v8574_v50 = vpop.permute.xlu0 %976  ;;  %v943_v60 = vmax.f32 %v869_v9, %v914_v24  ;;  %v8609_v34 = vmul.f32 %v1047_v48, %v1018_v49  ;;  %v1043_v21 = vrot.slane %v8430_v20, %v8599_v61 }
 0x24d   :  { %v995_v23 = vsel %vm290_vm10, %v975_v5, %v8574_v50  ;;  %v1062_v5 = vsub.s32 7, %v8419_v15 }
 0x24e   :  { %1130 = vst [vmem:[#allocation2 + $0x48] sm:$0xff] %v8568_v33  ;;  %v1024_v11 = vmax.f32 %v950_v39, %v995_v23  ;;  %1624 = vrot.lane.b32.xlu1 %v8521_v38, %s7943_s27  ;;  %1488 = vrot.lane.b32.xlu0 %v8521_v38, %s7940_s26  ;;  %v1017_v22 = vmax.f32 %v943_v60, %v988_v7 }
 0x250   :  { %v8592_v56 = vmul.f32 %v1071_v29, %v1024_v11  ;;  %v8594_v57 = vpop.permute.xlu1 %906  ;;  %v8596_v8 = vpop.permute.xlu0 %904  ;;  %v8640_v23 = vmul.f32 %v1043_v21, %v1017_v22 }
 0x252   :  { %1131 = vst [vmem:[#allocation2 + $0x50] sm:$0xff] %v8592_v56  ;;  %1939 = vrot.lane.b32.xlu1 %v8521_v38, %s7942_s24  ;;  %1729 = vrot.lane.b32.xlu0 %v8521_v38, %s7941_s23 }
 0x254   :  { %v823_v25 = vpop.permute.xlu1 %822  ;;  %v8615_v19 = vpop.permute.xlu0 %978 }
 0x255   :  { %v844_v1 = vsel %vm212_vm7, %v8463_v47, %v823_v25  ;;  %v845_v17 = vsel %vm212_vm7, %v823_v25, %v8486_v3  ;;  %v919_v47 = vsel %vm264_vm9, %v8517_v35, %v8505_v30  ;;  %v1059_v3 = vrot.slane %v8430_v20, %v8612_v52 }
 0x256   :  { %v873_v36 = vmax.f32 %v8283_v40, %v844_v1  ;;  %v874_v28 = vmax.f32 %v8287_v44, %v845_v17  ;;  %1834 = vrot.lane.b32.xlu0 %v8521_v38, %s7944_s4  ;;  %1175 = vrot.lane.b32.xlu1 %v8609_v34, %s7937_s2  ;;  %v1063_v40 = vrot.slane %v8430_v20, %v1062_v5 }
 0x257   :  { %v993_v30 = vsel %vm290_vm10, %v8523_v42, %v8436_v27  ;;  %v1083_v17 = vrot.slane %v8539_v10, %v8452_v37 }
 0x258   :  { %v947_v44 = vmax.f32 %v873_v36, %v918_v31  ;;  %v948_v39 = vmax.f32 %v874_v28, %v919_v47  ;;  %v835_v29 = vpop.permute.xlu1 %834  ;;  %v837_v9 = vpop.permute.xlu0 %836 }
 0x259   :  { %v850_v20 = vsel %vm212_vm7, %v8570_v14, %v835_v29  ;;  %v851_v43 = vsel %vm212_vm7, %v835_v29, %v837_v9  ;;  %v881_v27 = vmax.f32 %v8338_v58, %v837_v9  ;;  %v1091_v58 = vrot.slane %v8539_v10, %v8612_v52 }
 0x25a   :  { %v1021_v35 = vmax.f32 %v947_v44, %v992_v54  ;;  %v1022_v11 = vmax.f32 %v948_v39, %v993_v30  ;;  %1280 = vrot.lane.b32.xlu1 %v8609_v34, %s7938_s25  ;;  %1626 = vrot.lane.b32.xlu0 %v8640_v23, %s7943_s27  ;;  %v879_v7 = vmax.f32 %v8285_v41, %v850_v20 }
 0x25b   :  { %v880_v25 = vmax.f32 %v8289_v45, %v851_v43  ;;  %v1087_v41 = vrot.slane %v8539_v10, %v8476_v55  ;;  %v922_v20 = vsel %vm264_vm9, %v8550_v13, %v8596_v8  ;;  %v997_v13 = vsel %vm290_vm10, %v8615_v19, %v8507_v2 }
 0x25c   :  { %v8655_v24 = vmul.f32 %v1059_v3, %v1021_v35  ;;  %v8657_v6 = vmul.f32 %v1063_v40, %v1022_v11  ;;  %v909_v48 = vpop.permute.xlu1 %908  ;;  %v911_v49 = vpop.permute.xlu0 %910 }
 0x25d   :  { %v924_v42 = vsel %vm264_vm9, %v8594_v57, %v909_v48  ;;  %v925_v60 = vsel %vm264_vm9, %v909_v48, %v911_v49  ;;  %v955_v21 = vmax.f32 %v881_v27, %v911_v49  ;;  %v996_v48 = vsel %vm290_vm10, %v8574_v50, %v8615_v19 }
 0x25e   :  { %1128 = vst [vmem:[#allocation2 + $0x38] sm:$0xff] %v8655_v24  ;;  %1129 = vst [vmem:[#allocation2 + $0x40] sm:$0xff] %v8657_v6  ;;  %1731 = vrot.lane.b32.xlu1 %v8640_v23, %s7941_s23  ;;  %1173 = vrot.lane.b32.xlu0 %v8640_v23, %s7937_s2  ;;  %v953_v22 = vmax.f32 %v879_v7, %v924_v42  ;;  %v954_v1 = vmax.f32 %v880_v25, %v925_v60 }
 0x260   :  { %v983_v36 = vpop.permute.xlu1 %982  ;;  %v985_v45 = vpop.permute.xlu0 %984 }
 0x261   :  { %v998_v28 = vsel %vm290_vm10, %v8507_v2, %v983_v36  ;;  %v999_v31 = vsel %vm290_vm10, %v983_v36, %v985_v45  ;;  %v1029_v47 = vmax.f32 %v955_v21, %v985_v45  ;;  %vm3174_vm10 = vcmask 982016  }
 0x262   :  { %v1027_v3 = vmax.f32 %v953_v22, %v998_v28  ;;  %v1028_v40 = vmax.f32 %v954_v1, %v999_v31  ;;  %1836 = vrot.lane.b32.xlu1 %v8640_v23, %s7944_s4  ;;  %1278 = vrot.lane.b32.xlu0 %v8640_v23, %s7938_s25 }
 0x263   :  { %v1121_v44 = vmul.f32 %v1091_v58, %v1029_v47 }
 0x264   :  { %v8684_v39 = vmul.f32 %v1083_v17, %v1027_v3  ;;  %v8686_v29 = vmul.f32 %v1087_v41, %v1028_v40  ;;  %v831_v9 = vpop.permute.xlu1 %830 }
 0x265   :  { %1136 = vst.msk [vmem:[#allocation2 + $0x78] sm:$0xff] %vm62_vm15, %v1121_v44  ;;  %v848_v54 = vsel %vm212_vm7, %v8530_v46, %v831_v9  ;;  %v849_v30 = vsel %vm212_vm7, %v831_v9, %v8570_v14  ;;  %v923_v46 = vsel %vm264_vm9, %v8596_v8, %v8594_v57  ;;  %v1075_v14 = vrot.slane %v8539_v10, %v8599_v61 }
 0x266   :  { %1134 = vst [vmem:[#allocation2 + $0x68] sm:$0xff] %v8684_v39  ;;  %1135 = vst [vmem:[#allocation2 + $0x70] sm:$0xff] %v8686_v29  ;;  %v877_v35 = vmax.f32 %v8317_v51, %v848_v54  ;;  %v878_v11 = vmax.f32 %v8319_v53, %v849_v30  ;;  %1385 = vrot.lane.b32.xlu1 %v8609_v34, %s7939_s3  ;;  %1383 = vrot.lane.b32.xlu0 %v8640_v23, %s7939_s3  ;;  %vm1757_vm7 = vcmask 572416   ;;  %vm2229_vm9 = vcmask 588800  }
 0x267   :  { %v1079_v51 = vrot.slane %v8539_v10, %v8566_v12 }
 0x268   :  { %v951_v53 = vmax.f32 %v877_v35, %v922_v20  ;;  %v952_v43 = vmax.f32 %v878_v11, %v923_v46 }
 0x26a   :  { %v1025_v57 = vmax.f32 %v951_v53, %v996_v48  ;;  %v1026_v8 = vmax.f32 %v952_v43, %v997_v13  ;;  %1492 = vrot.lane.b32.xlu1 %v8609_v34, %s7940_s26  ;;  %1490 = vrot.lane.b32.xlu0 %v8640_v23, %s7940_s26 }
 0x26c   :  { %v8721_v49 = vmul.f32 %v1075_v14, %v1025_v57  ;;  %v8723_v10 = vmul.f32 %v1079_v51, %v1026_v8  ;;  %v8725_v27 = vld [vmem:[#allocation2 + $0x78] sm:$0xff] }
 0x26d   :  { %1591 = vst.msk [vmem:[#allocation3 + $0x250] sm:$0xff] %vm62_vm15, %v8725_v27 }
 0x26e   :  { %1132 = vst [vmem:[#allocation2 + $0x58] sm:$0xff] %v8721_v49  ;;  %1133 = vst [vmem:[#allocation2 + $0x60] sm:$0xff] %v8723_v10  ;;  %1628 = vrot.lane.b32.xlu1 %v8609_v34, %s7943_s27  ;;  %1941 = vrot.lane.b32.xlu0 %v8640_v23, %s7942_s24 }
 0x272   :  { %1733 = vrot.lane.b32.xlu1 %v8609_v34, %s7941_s23  ;;  %1638 = vrot.lane.b32.xlu0 %v8568_v33, %s7943_s27 }
 0x276   :  { %1838 = vrot.lane.b32.xlu1 %v8609_v34, %s7944_s4  ;;  %1743 = vrot.lane.b32.xlu0 %v8568_v33, %s7941_s23 }
 0x27a   :  { %1943 = vrot.lane.b32.xlu1 %v8609_v34, %s7942_s24  ;;  %1848 = vrot.lane.b32.xlu0 %v8568_v33, %s7944_s4 }
 0x27e   :  { %1185 = vrot.lane.b32.xlu1 %v8568_v33, %s7937_s2  ;;  %1953 = vrot.lane.b32.xlu0 %v8568_v33, %s7942_s24 }
 0x282   :  { %1290 = vrot.lane.b32.xlu1 %v8568_v33, %s7938_s25  ;;  %1179 = vrot.lane.b32.xlu0 %v8503_v26, %s7937_s2 }
 0x286   :  { %1395 = vrot.lane.b32.xlu1 %v8568_v33, %s7939_s3  ;;  %1284 = vrot.lane.b32.xlu0 %v8503_v26, %s7938_s25 }
 0x28a   :  { %1502 = vrot.lane.b32.xlu1 %v8568_v33, %s7940_s26  ;;  %1389 = vrot.lane.b32.xlu0 %v8503_v26, %s7939_s3 }
 0x28e   :  { %1632 = vrot.lane.b32.xlu1 %v8503_v26, %s7943_s27  ;;  %1496 = vrot.lane.b32.xlu0 %v8503_v26, %s7940_s26 }
 0x292   :  { %1737 = vrot.lane.b32.xlu1 %v8503_v26, %s7941_s23  ;;  %1634 = vrot.lane.b32.xlu0 %v8655_v24, %s7943_s27 }
 0x296   :  { %1842 = vrot.lane.b32.xlu1 %v8503_v26, %s7944_s4  ;;  %1183 = vrot.lane.b32.xlu0 %v8657_v6, %s7937_s2 }
 0x298   :  { %v1170_v2 = vpop.permute.xlu1 %1169  ;;  %v8775_v33 = vpop.permute.xlu0 %1727 }
 0x299   :  { %v1198_v47 = vsel %vm1197_vm1, %v8402_v62, %v1170_v2 }
 0x29a   :  { %1947 = vrot.lane.b32.xlu1 %v8503_v26, %s7942_s24  ;;  %1288 = vrot.lane.b32.xlu0 %v8657_v6, %s7938_s25 }
 0x29c   :  { %v1275_v50 = vpop.permute.xlu1 %1274  ;;  %v8785_v19 = vpop.permute.xlu0 %1937 }
 0x29e   :  { %1181 = vrot.lane.b32.xlu1 %v8655_v24, %s7937_s2  ;;  %1739 = vrot.lane.b32.xlu0 %v8655_v24, %s7941_s23 }
 0x2a0   :  { %v1380_v42 = vpop.permute.xlu1 %1379 }
 0x2a1   :  { %v1408_v35 = vsel %vm1407_vm4, %v8406_v0, %v1380_v42 }
 0x2a2   :  { %1286 = vrot.lane.b32.xlu1 %v8655_v24, %s7938_s25  ;;  %1844 = vrot.lane.b32.xlu0 %v8655_v24, %s7944_s4 }
 0x2a4   :  { %v1487_v26 = vpop.permute.xlu1 %1486  ;;  %v8791_v60 = vpop.permute.xlu0 %1630 }
 0x2a5   :  { %v1517_v62 = vsel %vm1516_vm2, %v8408_v4, %v1487_v26 }
 0x2a6   :  { %1391 = vrot.lane.b32.xlu1 %v8655_v24, %s7939_s3  ;;  %1393 = vrot.lane.b32.xlu0 %v8657_v6, %s7939_s3  ;;  %v2163_v4 = vpack.c.bf16 %v1517_v62, %v1408_v35 }
 0x2a8   :  { %v1623_v7 = vpop.permute.xlu1 %1622  ;;  %v8797_v25 = vpop.permute.xlu0 %1735 }
 0x2aa   :  { %1498 = vrot.lane.b32.xlu1 %v8655_v24, %s7940_s26  ;;  %1500 = vrot.lane.b32.xlu0 %v8657_v6, %s7940_s26 }
 0x2ac   :  { %v8803_v21 = vpop.permute.xlu1 %1832  ;;  %v8805_v58 = vpop.permute.xlu0 %1840 }
 0x2ae   :  { %1636 = vrot.lane.b32.xlu1 %v8657_v6, %s7943_s27  ;;  %1949 = vrot.lane.b32.xlu0 %v8655_v24, %s7942_s24  ;;  %v1303_v24 = vsel %vm1302_vm0, %v8404_v63, %v1275_v50 }
 0x2af   :  { %v2148_v40 = vpack.c.bf16 %v1303_v24, %v1198_v47 }
 0x2b0   :  { %v8811_v22 = vpop.permute.xlu1 %1177  ;;  %v8813_v1 = vpop.permute.xlu0 %1945 }
 0x2b2   :  { %1741 = vrot.lane.b32.xlu1 %v8657_v6, %s7941_s23  ;;  %1646 = vrot.lane.b32.xlu0 %v8684_v39, %s7943_s27 }
 0x2b4   :  { %v8819_v17 = vpop.permute.xlu1 %1282  ;;  %v8821_v36 = vpop.permute.xlu0 %1171 }
 0x2b5   :  { %v1199_v28 = vsel %vm1197_vm1, %v1170_v2, %v8821_v36 }
 0x2b6   :  { %1846 = vrot.lane.b32.xlu1 %v8657_v6, %s7944_s4  ;;  %1751 = vrot.lane.b32.xlu0 %v8684_v39, %s7941_s23 }
 0x2b8   :  { %v8829_v41 = vpop.permute.xlu1 %1387  ;;  %v1277_v45 = vpop.permute.xlu0 %1276 }
 0x2b9   :  { %v1304_v31 = vsel %vm1302_vm0, %v1275_v50, %v1277_v45 }
 0x2ba   :  { %1951 = vrot.lane.b32.xlu1 %v8657_v6, %s7942_s24  ;;  %v2149_v3 = vpack.c.bf16 %v1304_v31, %v1199_v28  ;;  %1856 = vrot.lane.b32.xlu0 %v8684_v39, %s7944_s4 }
 0x2bc   :  { %v8840_v63 = vpop.permute.xlu1 %1494  ;;  %v8842_v44 = vpop.permute.xlu0 %1381  ;;  %2278 = vmatprep.subr.bf16.mxu0 %v2149_v3 }
 0x2bd   :  { %2279 = vmatpush1.bf16.msra.mxu0 %v2148_v40  ;;  %v1409_v54 = vsel %vm1407_vm4, %v1380_v42, %v8842_v44 }
 0x2be   :  { %1193 = vrot.lane.b32.xlu1 %v8684_v39, %s7937_s2  ;;  %1961 = vrot.lane.b32.xlu0 %v8684_v39, %s7942_s24 }
 0x2c0   :  { %v1625_v6 = vpop.permute.xlu1 %1624  ;;  %v8850_v9 = vpop.permute.xlu0 %1488 }
 0x2c1   :  { %v1518_v30 = vsel %vm1516_vm2, %v1487_v26, %v8850_v9  ;;  %v1653_v53 = vsel %vm1652_vm5, %v1623_v7, %v1625_v6 }
 0x2c2   :  { %1298 = vrot.lane.b32.xlu1 %v8684_v39, %s7938_s25  ;;  %v2164_v11 = vpack.c.bf16 %v1518_v30, %v1409_v54  ;;  %1187 = vrot.lane.b32.xlu0 %v8592_v56, %s7937_s2 }
 0x2c4   :  { %v8862_v20 = vpop.permute.xlu1 %1939  ;;  %v1730_v46 = vpop.permute.xlu0 %1729  ;;  %2280 = vmatprep.subr.bf16.mxu0 %v2164_v11 }
 0x2c5   :  { %2281 = vmatpush1.bf16.msra.mxu0 %v2163_v4  ;;  %v1968_v62 = vsel %vm1967_vm8, %v8785_v19, %v8862_v20 }
 0x2c6   :  { %1403 = vrot.lane.b32.xlu1 %v8684_v39, %s7939_s3  ;;  %1292 = vrot.lane.b32.xlu0 %v8592_v56, %s7938_s25 }
 0x2c8   :  { %v8868_v0 = vpop.permute.xlu1 %1175  ;;  %v1835_v14 = vpop.permute.xlu0 %1834 }
 0x2c9   :  { %v1863_v2 = vsel %vm1862_vm6, %v8803_v21, %v1835_v14 }
 0x2ca   :  { %1510 = vrot.lane.b32.xlu1 %v8684_v39, %s7940_s26  ;;  %1397 = vrot.lane.b32.xlu0 %v8592_v56, %s7939_s3  ;;  %v2178_v39 = vpack.c.bf16 %v1653_v53, %v8439_v32 }
 0x2cc   :  { %v8874_v51 = vpop.permute.xlu1 %1280  ;;  %v1627_v43 = vpop.permute.xlu0 %1626 }
 0x2cd   :  { %v1654_v48 = vsel %vm1652_vm5, %v1625_v6, %v1627_v43 }
 0x2ce   :  { %1640 = vrot.lane.b32.xlu1 %v8592_v56, %s7943_s27  ;;  %1504 = vrot.lane.b32.xlu0 %v8592_v56, %s7940_s26  ;;  %v2179_v13 = vpack.c.bf16 %v1654_v48, %v8521_v38  ;;  %v1758_v38 = vsel %vm1757_vm7, %v8775_v33, %v1730_v46 }
 0x2cf   :  { %v2193_v31 = vpack.c.bf16 %v1863_v2, %v1758_v38 }
 0x2d0   :  { %v8883_v57 = vpop.permute.xlu1 %1731  ;;  %v1174_v8 = vpop.permute.xlu0 %1173  ;;  %2282 = vmatprep.subr.bf16.mxu0 %v2179_v13 }
 0x2d1   :  { %2283 = vmatpush1.bf16.msra.mxu0 %v2178_v39  ;;  %v1759_v32 = vsel %vm1757_vm7, %v1730_v46, %v8883_v57  ;;  %v1200_v42 = vsel %vm1197_vm1, %v8821_v36, %v1174_v8  ;;  %v1201_v24 = vsel %vm1197_vm1, %v1174_v8, %v8868_v0 }
 0x2d2   :  { %1745 = vrot.lane.b32.xlu1 %v8592_v56, %s7941_s23  ;;  %1642 = vrot.lane.b32.xlu0 %v8721_v49, %s7943_s27 }
 0x2d4   :  { %v8892_v50 = vpop.permute.xlu1 %1836  ;;  %v1279_v7 = vpop.permute.xlu0 %1278 }
 0x2d5   :  { %v1864_v26 = vsel %vm1862_vm6, %v1835_v14, %v8892_v50  ;;  %v1305_v21 = vsel %vm1302_vm0, %v1277_v45, %v1279_v7  ;;  %v1306_v28 = vsel %vm1302_vm0, %v1279_v7, %v8874_v51 }
 0x2d6   :  { %1850 = vrot.lane.b32.xlu1 %v8592_v56, %s7944_s4  ;;  %v2194_v33 = vpack.c.bf16 %v1864_v26, %v1759_v32  ;;  %1191 = vrot.lane.b32.xlu0 %v8723_v10, %s7937_s2  ;;  %v2151_v36 = vpack.c.bf16 %v1306_v28, %v1201_v24  ;;  %v2150_v47 = vpack.c.bf16 %v1305_v21, %v1200_v42 }
 0x2d8   :  { %v8911_v3 = vpop.permute.xlu1 %1385  ;;  %2284 = vmatprep.subr.bf16.mxu0 %v2194_v33  ;;  %v1384_v40 = vpop.permute.xlu0 %1383  ;;  %2319 = vmatprep.subr.bf16.mxu1 %v2151_v36 }
 0x2d9   :  { %2285 = vmatpush1.bf16.msra.mxu0 %v2193_v31  ;;  %2320 = vmatpush1.bf16.msra.mxu1 %v2150_v47  ;;  %v1410_v54 = vsel %vm1407_vm4, %v8842_v44, %v1384_v40  ;;  %v1411_v30 = vsel %vm1407_vm4, %v1384_v40, %v8911_v3 }
 0x2da   :  { %1955 = vrot.lane.b32.xlu1 %v8592_v56, %s7942_s24  ;;  %1296 = vrot.lane.b32.xlu0 %v8723_v10, %s7938_s25 }
 0x2dc   :  { %v8917_v45 = vpop.permute.xlu1 %1492  ;;  %v1491_v6 = vpop.permute.xlu0 %1490 }
 0x2dd   :  { %v1519_v56 = vsel %vm1516_vm2, %v8850_v9, %v1491_v6  ;;  %v1520_v35 = vsel %vm1516_vm2, %v1491_v6, %v8917_v45  ;;  %v2208_v9 = vpack.c.bf16 %v1968_v62, %v1968_v62 }
 0x2de   :  { %1189 = vrot.lane.b32.xlu1 %v8721_v49, %s7937_s2  ;;  %1747 = vrot.lane.b32.xlu0 %v8721_v49, %s7941_s23  ;;  %v2166_v19 = vpack.c.bf16 %v1520_v35, %v1411_v30  ;;  %v2165_v11 = vpack.c.bf16 %v1519_v56, %v1410_v54  ;;  %v1307_v54 = vsel %vm1302_vm0, %v8874_v51, %v8819_v17 }
 0x2e0   :  { %v1629_v4 = vpop.permute.xlu1 %1628  ;;  %v1942_v14 = vpop.permute.xlu0 %1941  ;;  %2321 = vmatprep.subr.bf16.mxu1 %v2166_v19  ;;  %v1202_v19 = vsel %vm1197_vm1, %v8868_v0, %v8811_v22 }
 0x2e1   :  { %v1655_v44 = vsel %vm1652_vm5, %v1627_v43, %v1629_v4  ;;  %v1656_v46 = vsel %vm1652_vm5, %v1629_v4, %v8791_v60  ;;  %v1969_v53 = vsel %vm1967_vm8, %v8862_v20, %v1942_v14  ;;  %2322 = vmatpush1.bf16.msra.mxu1 %v2165_v11  ;;  %v2234_v20 = vsel %vm357_vm11, %v2208_v9, 0 }
 0x2e2   :  { %1294 = vrot.lane.b32.xlu1 %v8721_v49, %s7938_s25  ;;  %v2181_v48 = vpack.c.bf16 %v1656_v46, %v8609_v34  ;;  %1852 = vrot.lane.b32.xlu0 %v8721_v49, %s7944_s4  ;;  %v2209_v13 = vpack.c.bf16 %v1969_v53, %v1969_v53  ;;  %v2180_v43 = vpack.c.bf16 %v1655_v44, %v8640_v23  ;;  %v8954_v34 = vld [vmem:[%s11532_s5] sm:$0xf] }
 0x2e3   :  { %v2152_v51 = vpack.c.bf16 %v1307_v54, %v1202_v19 }
 0x2e4   :  { %v1734_v39 = vpop.permute.xlu1 %1733  ;;  %2323 = vmatprep.subr.bf16.mxu1 %v2181_v48  ;;  %v8945_v8 = vpop.permute.xlu0 %1638  ;;  %7480 = vmatprep.subr.msk.bf16.mxu0 %vm357_vm11, %v2209_v13 }
 0x2e5   :  { %2287 = vmatpush1.bf16.msra.mxu0 %v2234_v20  ;;  %2324 = vmatpush1.bf16.msra.mxu1 %v2180_v43  ;;  %v1760_v2 = vsel %vm1757_vm7, %v8883_v57, %v1734_v39  ;;  %v1761_v38 = vsel %vm1757_vm7, %v1734_v39, %v8797_v25  ;;  %v1567_v43 = vld [vmem:[#allocation2 + $0x30] sm:$0xff] }
 0x2e6   :  { %1399 = vrot.lane.b32.xlu1 %v8721_v49, %s7939_s3  ;;  %1401 = vrot.lane.b32.xlu0 %v8723_v10, %s7939_s3 }
 0x2e8   :  { %v1839_v23 = vpop.permute.xlu1 %1838  ;;  %v8966_v26 = vpop.permute.xlu0 %1743  ;;  %7481 = vmatmul.mubr.msk.bf16.vlgmr.msra.gmra.mrb[12].mxu0 %vm2229_vm9, %v8954_v34 }
 0x2e9   :  { %v1865_v32 = vsel %vm1862_vm6, %v8892_v50, %v1839_v23  ;;  %v1866_v42 = vsel %vm1862_vm6, %v1839_v23, %v8805_v58  ;;  %2392 = vmatprep.mubr.bf16.mxu0 %v7934_v59 }
 0x2ea   :  { %1506 = vrot.lane.b32.xlu1 %v8721_v49, %s7940_s26  ;;  %v2196_v7 = vpack.c.bf16 %v1866_v42, %v1761_v38  ;;  %v2195_v24 = vpack.c.bf16 %v1865_v32, %v1760_v2  ;;  %1508 = vrot.lane.b32.xlu0 %v8723_v10, %s7940_s26  ;;  %v2223_v32 = vld [vmem:[%s11533_s6] sm:$0xff]  ;;  %s7945_s6 = smov 120  }
 0x2ec   :  { %v1944_v57 = vpop.permute.xlu1 %1943  ;;  %2325 = vmatprep.subr.bf16.mxu1 %v2196_v7  ;;  %v8978_v28 = vpop.permute.xlu0 %1848 }
 0x2ed   :  { %v1970_v50 = vsel %vm1967_vm8, %v1942_v14, %v1944_v57  ;;  %v1971_v21 = vsel %vm1967_vm8, %v1944_v57, %v8813_v1  ;;  %2326 = vmatpush1.bf16.msra.mxu1 %v2195_v24  ;;  %v1412_v14 = vsel %vm1407_vm4, %v8911_v3, %v8829_v41  ;;  %v1566_v3 = vld [vmem:[#allocation2 + $0x28] sm:$0xff] }
 0x2ee   :  { %1644 = vrot.lane.b32.xlu1 %v8723_v10, %s7943_s27  ;;  %v2211_v33 = vpack.c.bf16 %v1971_v21, %v1971_v21  ;;  %v2210_v36 = vpack.c.bf16 %v1970_v50, %v1970_v50  ;;  %1957 = vrot.lane.b32.xlu0 %v8721_v49, %s7942_s24 }
 0x2f0   :  { %v8984_v31 = vpop.permute.xlu1 %1185  ;;  %7482 = vmatprep.subr.msk.bf16.mxu1 %vm357_vm11, %v2211_v33  ;;  %v2240_v47 = vsel %vm357_vm11, %v2210_v36, 0  ;;  %v8988_v40 = vpop.permute.xlu0 %1953 }
 0x2f1   :  { %2328 = vmatpush1.bf16.msra.mxu1 %v2240_v47 }
 0x2f2   :  { %1749 = vrot.lane.b32.xlu1 %v8723_v10, %s7941_s23  ;;  %1650 = vrot.lane.b32.xlu0 %v8725_v27, %s7943_s27 }
 0x2f4   :  { %v8994_v62 = vpop.permute.xlu1 %1290  ;;  %7483 = vmatmul.mubr.msk.bf16.vlgmr.msra.gmra.mrb[20].mxu1 %vm2229_vm9, %v8954_v34  ;;  %v1180_v49 = vpop.permute.xlu0 %1179 }
 0x2f5   :  { %2433 = vmatprep.mubr.bf16.mxu1 %v7934_v59  ;;  %v1203_v56 = vsel %vm1197_vm1, %v8811_v22, %v1180_v49  ;;  %v1521_v22 = vsel %vm1516_vm2, %v8917_v45, %v8840_v63 }
 0x2f6   :  { %1854 = vrot.lane.b32.xlu1 %v8723_v10, %s7944_s4  ;;  %1195 = vrot.lane.b32.xlu0 %v8686_v29, %s7937_s2  ;;  %v2167_v53 = vpack.c.bf16 %v1521_v22, %v1412_v14  ;;  %s11571_s2 = sld [smem:[#allocation18_spill]] }
 0x2f8   :  { %v9003_v6 = vpop.permute.xlu1 %1395  ;;  %v1285_v30 = vpop.permute.xlu0 %1284 }
 0x2f9   :  { %v1308_v35 = vsel %vm1302_vm0, %v8819_v17, %v1285_v30 }
 0x2fa   :  { %1959 = vrot.lane.b32.xlu1 %v8723_v10, %s7942_s24  ;;  %1300 = vrot.lane.b32.xlu0 %v8686_v29, %s7938_s25  ;;  %v2153_v11 = vpack.c.bf16 %v1308_v35, %v1203_v56  ;;  %s7946_s25 = smov 124  }
 0x2fc   :  { %v9019_v4 = vpop.permute.xlu1 %1502  ;;  %v9021_v44 = vpop.permute.xlu0 %1389  ;;  %2360 = vmatprep.subr.bf16.mxu0 %v2153_v11 }
 0x2fd   :  { %2361 = vmatpush1.bf16.msra.mxu0 %v2152_v51  ;;  %v1413_v0 = vsel %vm1407_vm4, %v8829_v41, %v9021_v44 }
 0x2fe   :  { %1514 = vrot.lane.b32.xlu1 %v8725_v27, %s7940_s26  ;;  %1405 = vrot.lane.b32.xlu0 %v8686_v29, %s7939_s3  ;;  %s7947_s3 = smov 4  }
 0x300   :  { %v1633_v10 = vpop.permute.xlu1 %1632  ;;  %v1497_v17 = vpop.permute.xlu0 %1496 }
 0x301   :  { %v1522_v46 = vsel %vm1516_vm2, %v8840_v63, %v1497_v17  ;;  %v1657_v48 = vsel %vm1652_vm5, %v8791_v60, %v1633_v10 }
 0x302   :  { %1648 = vrot.lane.b32.xlu1 %v8686_v29, %s7943_s27  ;;  %1512 = vrot.lane.b32.xlu0 %v8686_v29, %s7940_s26  ;;  %v2168_v9 = vpack.c.bf16 %v1522_v46, %v1413_v0  ;;  %v2182_v20 = vpack.c.bf16 %v1657_v48, %v1566_v3  ;;  %s7948_s26 = smov 116  }
 0x304   :  { %v1738_v45 = vpop.permute.xlu1 %1737  ;;  %v1635_v13 = vpop.permute.xlu0 %1634  ;;  %2362 = vmatprep.subr.bf16.mxu0 %v2168_v9 }
 0x305   :  { %v1658_v63 = vsel %vm1652_vm5, %v1633_v10, %v1635_v13  ;;  %2363 = vmatpush1.bf16.msra.mxu0 %v2167_v53  ;;  %v1569_v53 = vld [vmem:[#allocation2 + $0x40] sm:$0xff] }
 0x306   :  { %1753 = vrot.lane.b32.xlu1 %v8686_v29, %s7941_s23  ;;  %1755 = vrot.lane.b32.xlu0 %v8725_v27, %s7941_s23  ;;  %v2183_v41 = vpack.c.bf16 %v1658_v63, %v1567_v43  ;;  %v1568_v63 = vld [vmem:[#allocation2 + $0x38] sm:$0xff] }
 0x308   :  { %v1843_v39 = vpop.permute.xlu1 %1842  ;;  %v9049_v23 = vpop.permute.xlu0 %1183  ;;  %2364 = vmatprep.subr.bf16.mxu0 %v2183_v41 }
 0x309   :  { %2365 = vmatpush1.bf16.msra.mxu0 %v2182_v20  ;;  %v1867_v7 = vsel %vm1862_vm6, %v8805_v58, %v1843_v39  ;;  %v1762_v58 = vsel %vm1757_vm7, %v8797_v25, %v1738_v45 }
 0x30a   :  { %1858 = vrot.lane.b32.xlu1 %v8686_v29, %s7944_s4  ;;  %1860 = vrot.lane.b32.xlu0 %v8725_v27, %s7944_s4  ;;  %v2197_v35 = vpack.c.bf16 %v1867_v7, %v1762_v58 }
 0x30c   :  { %v1948_v60 = vpop.permute.xlu1 %1947  ;;  %v9055_v2 = vpop.permute.xlu0 %1288 }
 0x30d   :  { %v1972_v25 = vsel %vm1967_vm8, %v8813_v1, %v1948_v60 }
 0x30e   :  { %1965 = vrot.lane.b32.xlu1 %v8725_v27, %s7942_s24  ;;  %1963 = vrot.lane.b32.xlu0 %v8686_v29, %s7942_s24  ;;  %v2212_v48 = vpack.c.bf16 %v1972_v25, %v1972_v25 }
 0x310   :  { %v1182_v38 = vpop.permute.xlu1 %1181  ;;  %v1740_v42 = vpop.permute.xlu0 %1739 }
 0x311   :  { %v1204_v57 = vsel %vm1197_vm1, %v1180_v49, %v1182_v38  ;;  %v1205_v50 = vsel %vm1197_vm1, %v1182_v38, %v9049_v23  ;;  %v1763_v33 = vsel %vm1757_vm7, %v1738_v45, %v1740_v42 }
 0x312   :  { %2226 = vperm.xlu0 %7780, %v2223_v32  }
 0x314   :  { %v1287_v24 = vpop.permute.xlu1 %1286  ;;  %v1845_v21 = vpop.permute.xlu0 %1844 }
 0x315   :  { %v1309_v27 = vsel %vm1302_vm0, %v1285_v30, %v1287_v24  ;;  %v1310_v29 = vsel %vm1302_vm0, %v1287_v24, %v9055_v2  ;;  %v1868_v36 = vsel %vm1862_vm6, %v1843_v39, %v1845_v21 }
 0x316   :  { %v2155_v47 = vpack.c.bf16 %v1310_v29, %v1205_v50  ;;  %v2154_v54 = vpack.c.bf16 %v1309_v27, %v1204_v57  ;;  %v2198_v56 = vpack.c.bf16 %v1868_v36, %v1763_v33 }
 0x318   :  { %v1392_v49 = vpop.permute.xlu1 %1391  ;;  %2401 = vmatprep.subr.bf16.mxu1 %v2155_v47  ;;  %v9076_v19 = vpop.permute.xlu0 %1393  ;;  %2366 = vmatprep.subr.bf16.mxu0 %v2198_v56 }
 0x319   :  { %2402 = vmatpush1.bf16.msra.mxu1 %v2154_v54  ;;  %2367 = vmatpush1.bf16.msra.mxu0 %v2197_v35  ;;  %v1414_v11 = vsel %vm1407_vm4, %v9021_v44, %v1392_v49  ;;  %v1415_v22 = vsel %vm1407_vm4, %v1392_v49, %v9076_v19 }
 0x31c   :  { %v1499_v30 = vpop.permute.xlu1 %1498  ;;  %v9081_v10 = vpop.permute.xlu0 %1500 }
 0x31d   :  { %v1523_v51 = vsel %vm1516_vm2, %v1497_v17, %v1499_v30  ;;  %v1524_v0 = vsel %vm1516_vm2, %v1499_v30, %v9081_v10 }
 0x31e   :  { %v2169_v46 = vpack.c.bf16 %v1523_v51, %v1414_v11  ;;  %v2170_v14 = vpack.c.bf16 %v1524_v0, %v1415_v22  ;;  %v1311_v11 = vsel %vm1302_vm0, %v9055_v2, %v8994_v62  ;;  %v1206_v0 = vsel %vm1197_vm1, %v9049_v23, %v8984_v31  ;;  %v9138_v2 = vld [vmem:[#allocation2] sm:$0xff] }
 0x31f   :  { %3144 = vrot.lane.b32.xlu1 %v9138_v2, %s7945_s6  ;;  %3039 = vrot.lane.b32.xlu0 %v9138_v2, %s7946_s25 }
 0x320   :  { %v1637_v9 = vpop.permute.xlu1 %1636  ;;  %v1950_v17 = vpop.permute.xlu0 %1949  ;;  %2403 = vmatprep.subr.bf16.mxu1 %v2170_v14 }
 0x321   :  { %v1659_v45 = vsel %vm1652_vm5, %v1635_v13, %v1637_v9  ;;  %v1660_v44 = vsel %vm1652_vm5, %v1637_v9, %v8945_v8  ;;  %v1973_v1 = vsel %vm1967_vm8, %v1948_v60, %v1950_v17  ;;  %2404 = vmatpush1.bf16.msra.mxu1 %v2169_v46  ;;  %v2246_v13 = vsel %vm357_vm11, %v2212_v48, 0 }
 0x322   :  { %v2185_v43 = vpack.c.bf16 %v1660_v44, %v1569_v53  ;;  %v2184_v41 = vpack.c.bf16 %v1659_v45, %v1568_v63  ;;  %v2213_v3 = vpack.c.bf16 %v1973_v1, %v1973_v1  ;;  %v2156_v9 = vpack.c.bf16 %v1311_v11, %v1206_v0 }
 0x323   :  { %v1416_v53 = vsel %vm1407_vm4, %v9076_v19, %v9003_v6  ;;  %3356 = vrot.lane.b32.xlu1 %v9138_v2, %s7947_s3  ;;  %3249 = vrot.lane.b32.xlu0 %v9138_v2, %s7948_s26 }
 0x324   :  { %v1742_v39 = vpop.permute.xlu1 %1741  ;;  %2405 = vmatprep.subr.bf16.mxu1 %v2185_v43  ;;  %v9093_v20 = vpop.permute.xlu0 %1646  ;;  %7484 = vmatprep.subr.msk.bf16.mxu0 %vm357_vm11, %v2213_v3 }
 0x325   :  { %2369 = vmatpush1.bf16.msra.mxu0 %v2246_v13  ;;  %2406 = vmatpush1.bf16.msra.mxu1 %v2184_v41  ;;  %v1764_v32 = vsel %vm1757_vm7, %v1740_v42, %v1742_v39  ;;  %v1765_v60 = vsel %vm1757_vm7, %v1742_v39, %v8966_v26  ;;  %v1570_v41 = vld [vmem:[#allocation2 + $0x48] sm:$0xff] }
 0x328   :  { %v1847_v38 = vpop.permute.xlu1 %1846  ;;  %v9103_v57 = vpop.permute.xlu0 %1751  ;;  %7485 = vmatmul.mubr.msk.bf16.vlgmr.msra.gmra.mrb[16].mxu0 %vm2229_vm9, %v8954_v34 }
 0x329   :  { %v1869_v7 = vsel %vm1862_vm6, %v1845_v21, %v1847_v38  ;;  %v1870_v24 = vsel %vm1862_vm6, %v1847_v38, %v8978_v28  ;;  %2474 = vmatprep.mubr.bf16.mxu0 %v7934_v59 }
 0x32a   :  { %v2200_v50 = vpack.c.bf16 %v1870_v24, %v1765_v60  ;;  %v2199_v27 = vpack.c.bf16 %v1869_v7, %v1764_v32 }
 0x32c   :  { %v1952_v29 = vpop.permute.xlu1 %1951  ;;  %2407 = vmatprep.subr.bf16.mxu1 %v2200_v50  ;;  %v9111_v21 = vpop.permute.xlu0 %1856 }
 0x32d   :  { %v1974_v42 = vsel %vm1967_vm8, %v1950_v17, %v1952_v29  ;;  %v1975_v33 = vsel %vm1967_vm8, %v1952_v29, %v8988_v40  ;;  %2408 = vmatpush1.bf16.msra.mxu1 %v2199_v27 }
 0x32e   :  { %v2215_v36 = vpack.c.bf16 %v1975_v33, %v1975_v33  ;;  %v2214_v47 = vpack.c.bf16 %v1974_v42, %v1974_v42 }
 0x330   :  { %v9113_v54 = vpop.permute.xlu1 %1193  ;;  %7486 = vmatprep.subr.msk.bf16.mxu1 %vm357_vm11, %v2215_v36  ;;  %v2252_v58 = vsel %vm357_vm11, %v2214_v47, 0  ;;  %v9117_v56 = vpop.permute.xlu0 %1961 }
 0x331   :  { %2410 = vmatpush1.bf16.msra.mxu1 %v2252_v58 }
 0x334   :  { %v9119_v49 = vpop.permute.xlu1 %1298  ;;  %7487 = vmatmul.mubr.msk.bf16.vlgmr.msra.gmra.mrb[24].mxu1 %vm2229_vm9, %v8954_v34  ;;  %v1188_v35 = vpop.permute.xlu0 %1187 }
 0x335   :  { %2515 = vmatprep.mubr.bf16.mxu1 %v7934_v59  ;;  %v1207_v25 = vsel %vm1197_vm1, %v8984_v31, %v1188_v35  ;;  %v1525_v31 = vsel %vm1516_vm2, %v9081_v10, %v9019_v4 }
 0x336   :  { %v2171_v1 = vpack.c.bf16 %v1525_v31, %v1416_v53 }
 0x338   :  { %v9124_v30 = vpop.permute.xlu1 %1403  ;;  %v1293_v51 = vpop.permute.xlu0 %1292 }
 0x339   :  { %v1312_v22 = vsel %vm1302_vm0, %v8994_v62, %v1293_v51 }
 0x33a   :  { %v2157_v46 = vpack.c.bf16 %v1312_v22, %v1207_v25 }
 0x33c   :  { %v9136_v14 = vpop.permute.xlu1 %1510  ;;  %v1398_v45 = vpop.permute.xlu0 %1397  ;;  %2442 = vmatprep.subr.bf16.mxu0 %v2157_v46 }
 0x33d   :  { %2443 = vmatpush1.bf16.msra.mxu0 %v2156_v9  ;;  %v1417_v23 = vsel %vm1407_vm4, %v9003_v6, %v1398_v45  ;;  %v1571_v6 = vld [vmem:[#allocation2 + $0x50] sm:$0xff] }
 0x340   :  { %v1641_v44 = vpop.permute.xlu1 %1640  ;;  %v1505_v62 = vpop.permute.xlu0 %1504 }
 0x341   :  { %v1526_v17 = vsel %vm1516_vm2, %v9019_v4, %v1505_v62  ;;  %v1661_v10 = vsel %vm1652_vm5, %v8945_v8, %v1641_v44 }
 0x342   :  { %v2172_v48 = vpack.c.bf16 %v1526_v17, %v1417_v23  ;;  %v2186_v39 = vpack.c.bf16 %v1661_v10, %v1570_v41 }
 0x344   :  { %v1746_v63 = vpop.permute.xlu1 %1745  ;;  %v1643_v43 = vpop.permute.xlu0 %1642  ;;  %2444 = vmatprep.subr.bf16.mxu0 %v2172_v48 }
 0x345   :  { %v1662_v4 = vsel %vm1652_vm5, %v1641_v44, %v1643_v43  ;;  %2445 = vmatpush1.bf16.msra.mxu0 %v2171_v1  ;;  %v1573_v1 = vld [vmem:[#allocation2 + $0x60] sm:$0xff] }
 0x346   :  { %v2187_v19 = vpack.c.bf16 %v1662_v4, %v1571_v6  ;;  %v1572_v4 = vld [vmem:[#allocation2 + $0x58] sm:$0xff] }
 0x348   :  { %v1851_v3 = vpop.permute.xlu1 %1850  ;;  %v9161_v13 = vpop.permute.xlu0 %1191  ;;  %2446 = vmatprep.subr.bf16.mxu0 %v2187_v19 }
 0x349   :  { %2447 = vmatpush1.bf16.msra.mxu0 %v2186_v39  ;;  %v1871_v8 = vsel %vm1862_vm6, %v8978_v28, %v1851_v3  ;;  %v1766_v28 = vsel %vm1757_vm7, %v8966_v26, %v1746_v63 }
 0x34a   :  { %v2201_v22 = vpack.c.bf16 %v1871_v8, %v1766_v28 }
 0x34c   :  { %v1956_v38 = vpop.permute.xlu1 %1955  ;;  %v9163_v32 = vpop.permute.xlu0 %1296 }
 0x34d   :  { %v1976_v31 = vsel %vm1967_vm8, %v8988_v40, %v1956_v38 }
 0x34e   :  { %v2216_v10 = vpack.c.bf16 %v1976_v31, %v1976_v31 }
 0x350   :  { %v1190_v60 = vpop.permute.xlu1 %1189  ;;  %v1748_v7 = vpop.permute.xlu0 %1747 }
 0x351   :  { %v1208_v50 = vsel %vm1197_vm1, %v1188_v35, %v1190_v60  ;;  %v1209_v27 = vsel %vm1197_vm1, %v1190_v60, %v9161_v13  ;;  %v1767_v36 = vsel %vm1757_vm7, %v1746_v63, %v1748_v7 }
 0x354   :  { %v1295_v24 = vpop.permute.xlu1 %1294  ;;  %v1853_v33 = vpop.permute.xlu0 %1852 }
 0x355   :  { %v1313_v29 = vsel %vm1302_vm0, %v1293_v51, %v1295_v24  ;;  %v1314_v42 = vsel %vm1302_vm0, %v1295_v24, %v9163_v32  ;;  %v1872_v47 = vsel %vm1862_vm6, %v1851_v3, %v1853_v33 }
 0x356   :  { %v2159_v58 = vpack.c.bf16 %v1314_v42, %v1209_v27  ;;  %v2158_v11 = vpack.c.bf16 %v1313_v29, %v1208_v50  ;;  %v2202_v25 = vpack.c.bf16 %v1872_v47, %v1767_v36 }
 0x358   :  { %v1400_v35 = vpop.permute.xlu1 %1399  ;;  %2483 = vmatprep.subr.bf16.mxu1 %v2159_v58  ;;  %v9177_v0 = vpop.permute.xlu0 %1401  ;;  %2448 = vmatprep.subr.bf16.mxu0 %v2202_v25 }
 0x359   :  { %2484 = vmatpush1.bf16.msra.mxu1 %v2158_v11  ;;  %2449 = vmatpush1.bf16.msra.mxu0 %v2201_v22  ;;  %v1418_v46 = vsel %vm1407_vm4, %v1398_v45, %v1400_v35  ;;  %v1419_v26 = vsel %vm1407_vm4, %v1400_v35, %v9177_v0 }
 0x35c   :  { %v1507_v51 = vpop.permute.xlu1 %1506  ;;  %v9181_v44 = vpop.permute.xlu0 %1508 }
 0x35d   :  { %v1527_v9 = vsel %vm1516_vm2, %v1505_v62, %v1507_v51  ;;  %v1528_v23 = vsel %vm1516_vm2, %v1507_v51, %v9181_v44 }
 0x35e   :  { %v2173_v17 = vpack.c.bf16 %v1527_v9, %v1418_v46  ;;  %v2174_v53 = vpack.c.bf16 %v1528_v23, %v1419_v26 }
 0x360   :  { %v1645_v48 = vpop.permute.xlu1 %1644  ;;  %v1958_v62 = vpop.permute.xlu0 %1957  ;;  %2485 = vmatprep.subr.bf16.mxu1 %v2174_v53 }
 0x361   :  { %v1663_v63 = vsel %vm1652_vm5, %v1643_v43, %v1645_v48  ;;  %v1664_v45 = vsel %vm1652_vm5, %v1645_v48, %v9093_v20  ;;  %v1977_v40 = vsel %vm1967_vm8, %v1956_v38, %v1958_v62  ;;  %2486 = vmatpush1.bf16.msra.mxu1 %v2173_v17  ;;  %v2258_v43 = vsel %vm357_vm11, %v2216_v10, 0 }
 0x362   :  { %v2189_v6 = vpack.c.bf16 %v1664_v45, %v1573_v1  ;;  %v2188_v19 = vpack.c.bf16 %v1663_v63, %v1572_v4  ;;  %v2217_v41 = vpack.c.bf16 %v1977_v40, %v1977_v40  ;;  %v1575_v4 = vld [vmem:[#allocation2 + $0x70] sm:$0xff] }
 0x364   :  { %v1750_v3 = vpop.permute.xlu1 %1749  ;;  %2487 = vmatprep.subr.bf16.mxu1 %v2189_v6  ;;  %v1651_v39 = vpop.permute.xlu0 %1650  ;;  %7488 = vmatprep.subr.msk.bf16.mxu0 %vm357_vm11, %v2217_v41 }
 0x365   :  { %1696 = vst.msk [vmem:[#allocation3 + $0x2c8] sm:$0xff] %vm62_vm15, %v1651_v39  ;;  %2451 = vmatpush1.bf16.msra.mxu0 %v2258_v43  ;;  %2488 = vmatpush1.bf16.msra.mxu1 %v2188_v19  ;;  %v1768_v8 = vsel %vm1757_vm7, %v1748_v7, %v1750_v3  ;;  %v1769_v38 = vsel %vm1757_vm7, %v1750_v3, %v9103_v57 }
 0x366   :  { %v1315_v7 = vsel %vm1302_vm0, %v9163_v32, %v9119_v49  ;;  %v1210_v32 = vsel %vm1197_vm1, %v9161_v13, %v9113_v54 }
 0x367   :  { %v2160_v9 = vpack.c.bf16 %v1315_v7, %v1210_v32 }
 0x368   :  { %v1855_v60 = vpop.permute.xlu1 %1854  ;;  %v1196_v27 = vpop.permute.xlu0 %1195  ;;  %7489 = vmatmul.mubr.msk.bf16.vlgmr.msra.gmra.mrb[20].mxu0 %vm2229_vm9, %v8954_v34 }
 0x369   :  { %v1873_v24 = vsel %vm1862_vm6, %v1853_v33, %v1855_v60  ;;  %v1874_v50 = vsel %vm1862_vm6, %v1855_v60, %v9111_v21  ;;  %1241 = vst.msk [vmem:[#allocation3 + $0x70] sm:$0xff] %vm62_vm15, %v1196_v27  ;;  %2556 = vmatprep.mubr.bf16.mxu0 %v7934_v59  ;;  %v1211_v11 = vsel %vm1197_vm1, %v9113_v54, %v1196_v27  ;;  %vm3628_vm1 = vcmask 97280  }
 0x36a   :  { %v2204_v29 = vpack.c.bf16 %v1874_v50, %v1769_v38  ;;  %v2203_v42 = vpack.c.bf16 %v1873_v24, %v1768_v8  ;;  %v1529_v54 = vsel %vm1516_vm2, %v9181_v44, %v9136_v14  ;;  %v1420_v44 = vsel %vm1407_vm4, %v9177_v0, %v9124_v30 }
 0x36b   :  { %v2175_v10 = vpack.c.bf16 %v1529_v54, %v1420_v44 }
 0x36c   :  { %v1960_v36 = vpop.permute.xlu1 %1959  ;;  %2489 = vmatprep.subr.bf16.mxu1 %v2204_v29  ;;  %v1301_v58 = vpop.permute.xlu0 %1300  ;;  %v2102_v29 = vld [vmem:[#allocation3 + $0x2c8] sm:$0xff] }
 0x36d   :  { %v1978_v33 = vsel %vm1967_vm8, %v1958_v62, %v1960_v36  ;;  %v1979_v47 = vsel %vm1967_vm8, %v1960_v36, %v9117_v56  ;;  %2490 = vmatpush1.bf16.msra.mxu1 %v2203_v42  ;;  %v1316_v28 = vsel %vm1302_vm0, %v9119_v49, %v1301_v58  ;;  %1346 = vst.msk [vmem:[#allocation3 + $0xe8] sm:$0xff] %vm62_vm15, %v1301_v58  ;;  %v2087_v36 = vld [vmem:[#allocation3 + $0x250] sm:$0xff]  ;;  %vm3279_vm0 = vcmask 949248  }
 0x36e   :  { %v2219_v25 = vpack.c.bf16 %v1979_v47, %v1979_v47  ;;  %v2218_v35 = vpack.c.bf16 %v1978_v33, %v1978_v33  ;;  %v2161_v22 = vpack.c.bf16 %v1316_v28, %v1211_v11  ;;  %v2192_v7 = vpack.c.bf16 %v2102_v29, %v2087_v36 }
 0x370   :  { %v1515_v51 = vpop.permute.xlu1 %1514  ;;  %7490 = vmatprep.subr.msk.bf16.mxu1 %vm357_vm11, %v2219_v25  ;;  %v2264_v46 = vsel %vm357_vm11, %v2218_v35, 0  ;;  %v1406_v31 = vpop.permute.xlu0 %1405  ;;  %2524 = vmatprep.subr.bf16.mxu0 %v2161_v22  ;;  %v2027_v23 = vld [vmem:[#allocation3 + $0x70] sm:$0xff] }
 0x371   :  { %2492 = vmatpush1.bf16.msra.mxu1 %v2264_v46  ;;  %1451 = vst.msk [vmem:[#allocation3 + $0x160] sm:$0xff] %vm62_vm15, %v1406_v31  ;;  %2525 = vmatpush1.bf16.msra.mxu0 %v2160_v9  ;;  %v1421_v13 = vsel %vm1407_vm4, %v9124_v30, %v1406_v31  ;;  %v1574_v30 = vld [vmem:[#allocation2 + $0x68] sm:$0xff]  ;;  %vm6498_vm4 = vcmask 1040384  }
 0x372   :  { %7682 = vmatprep.subr.bf16.mxu1 %v9138_v2 }
 0x374   :  { %v1649_v49 = vpop.permute.xlu1 %1648  ;;  %7491 = vmatmul.mubr.msk.bf16.vlgmr.msra.gmra.mrb[28].mxu1 %vm2229_vm9, %v8954_v34  ;;  %v1513_v26 = vpop.permute.xlu0 %1512  ;;  %v2042_v17 = vld [vmem:[#allocation3 + $0xe8] sm:$0xff] }
 0x375   :  { %7692 = vmatprep.mubr.msk.bf16.mxu1 %vm7936_vm14, %v9138_v2  ;;  %v1666_v53 = vsel %vm1652_vm5, %v1649_v49, %v1651_v39  ;;  %v1530_v48 = vsel %vm1516_vm2, %v9136_v14, %v1513_v26  ;;  %v1531_v63 = vsel %vm1516_vm2, %v1513_v26, %v1515_v51  ;;  %v2162_v45 = vpack.c.bf16 %v2042_v17, %v2027_v23 }
 0x376   :  { %1561 = vst.msk [vmem:[#allocation3 + $0x1d8] sm:$0xff] %vm62_vm15, %v1531_v63  ;;  %v2176_v62 = vpack.c.bf16 %v1530_v48, %v1421_v13  ;;  %v1665_v40 = vsel %vm1652_vm5, %v9093_v20, %v1649_v49  ;;  %v2191_v14 = vpack.c.bf16 %v1666_v53, %v1575_v4  ;;  %vm6086_vm2 = vcmask 425136  }
 0x377   :  { %7683 = vmatpush3.bf16.msra.mxu1 %v2162_v45  ;;  %v2190_v19 = vpack.c.bf16 %v1665_v40, %v1574_v30 }
 0x378   :  { %v1754_v1 = vpop.permute.xlu1 %1753  ;;  %v1756_v6 = vpop.permute.xlu0 %1755  ;;  %2526 = vmatprep.subr.bf16.mxu0 %v2176_v62  ;;  %7684 = vmatprep.subr.bf16.mxu1 %v9138_v2  ;;  %v2057_v60 = vld [vmem:[#allocation3 + $0x160] sm:$0xff] }
 0x379   :  { %1801 = vst.msk [vmem:[#allocation3 + $0x340] sm:$0xff] %vm62_vm15, %v1756_v6  ;;  %2527 = vmatpush1.bf16.msra.mxu0 %v2175_v10  ;;  %v1770_v41 = vsel %vm1757_vm7, %v9103_v57, %v1754_v1  ;;  %v1771_v20 = vsel %vm1757_vm7, %v1754_v1, %v1756_v6 }
 0x37a   :  { %2528 = vmatprep.subr.bf16.mxu0 %v2191_v14 }
 0x37c   :  { %v1859_v0 = vpop.permute.xlu1 %1858  ;;  %v1861_v39 = vpop.permute.xlu0 %1860 }
 0x37d   :  { %v1875_v3 = vsel %vm1862_vm6, %v9111_v21, %v1859_v0  ;;  %v1876_v43 = vsel %vm1862_vm6, %v1859_v0, %v1861_v39  ;;  %1906 = vst.msk [vmem:[#allocation3 + $0x3b8] sm:$0xff] %vm62_vm15, %v1861_v39  ;;  %v2072_v8 = vld [vmem:[#allocation3 + $0x1d8] sm:$0xff]  ;;  %2529 = vmatpush1.bf16.msra.mxu0 %v2190_v19 }
 0x37e   :  { %v2205_v38 = vpack.c.bf16 %v1875_v3, %v1770_v41  ;;  %v2177_v24 = vpack.c.bf16 %v2072_v8, %v2057_v60  ;;  %v2206_v50 = vpack.c.bf16 %v1876_v43, %v1771_v20 }
 0x380   :  { %v1966_v27 = vpop.permute.xlu1 %1965  ;;  %v1964_v57 = vpop.permute.xlu0 %1963  ;;  %7685 = vmatpush3.bf16.msra.mxu1 %v2177_v24  ;;  %2530 = vmatprep.subr.bf16.mxu0 %v2206_v50  ;;  %v2117_v58 = vld [vmem:[#allocation3 + $0x340] sm:$0xff] }
 0x381   :  { %2011 = vst.msk [vmem:[#allocation3 + $0x430] sm:$0xff] %vm62_vm15, %v1966_v27  ;;  %v1980_v21 = vsel %vm1967_vm8, %v9117_v56, %v1964_v57  ;;  %v1981_v42 = vsel %vm1967_vm8, %v1964_v57, %v1966_v27  ;;  %7686 = vmatprep.subr.bf16.mxu1 %v9138_v2  ;;  %2531 = vmatpush1.bf16.msra.mxu0 %v2205_v38 }
 0x382   :  { %v2221_v33 = vpack.c.bf16 %v1981_v42, %v1981_v42  ;;  %v2220_v47 = vpack.c.bf16 %v1980_v21, %v1980_v21 }
 0x384   :  { %7687 = vmatpush3.bf16.msra.mxu1 %v2192_v7  ;;  %v2132_v11 = vld [vmem:[#allocation3 + $0x3b8] sm:$0xff]  ;;  %7492 = vmatprep.subr.msk.bf16.mxu0 %vm357_vm11, %v2221_v33  ;;  %v2270_v28 = vsel %vm357_vm11, %v2220_v47, 0 }
 0x385   :  { %7688 = vmatprep.subr.bf16.mxu1 %v9138_v2  ;;  %v2207_v25 = vpack.c.bf16 %v2132_v11, %v2117_v58  ;;  %2533 = vmatpush1.bf16.msra.mxu0 %v2270_v28 }
 0x388   :  { %v2147_v56 = vld [vmem:[#allocation3 + $0x430] sm:$0xff]  ;;  %7689 = vmatpush3.bf16.msra.mxu1 %v2207_v25  ;;  %7493 = vmatmul.mubr.msk.bf16.vlgmr.msra.gmra.mrb[24].mxu0 %vm2229_vm9, %v8954_v34 }
 0x389   :  { %v2222_v35 = vpack.c.bf16 %v2147_v56, %v2147_v56  ;;  %7690 = vmatprep.subr.bf16.mxu1 %v9138_v2  ;;  %4183 = vmatprep.mubr.bf16.mxu0 %v7934_v59 }
 0x38b   :  { %v2276_v32 = vsel %vm357_vm11, %v2222_v35, 0 }
 0x38c   :  { %7691 = vmatpush3.bf16.msra.mxu1 %v2276_v32 }
 0x38f   :  { %7693 = vmatmul.mubr.msk.bf16.vlgmr.msra.gmra.mrb[32].mxu1 %vm2229_vm9, %v8954_v34 }
 0x390   :  { %4224 = vmatprep.mubr.bf16.mxu1 %v7934_v59 }
 0x391   :  { %v9268_v22 = vpop.permute.xlu0 %2226  ;;  %v9376_v8 = vpop.permute.xlu1 %3144 }
 0x395   :  { %v9374_v60 = vpop.permute.xlu0 %3039  ;;  %v9380_v24 = vpop.permute.xlu1 %3356 }
 0x399   :  { %v9378_v38 = vpop.permute.xlu0 %3249 }
 0x3bb   :  { %v2312_v51 = vpop.f32.mrb[12].mxu0 }
 0x3bc   :  { %v2313_v46 = vadd.f32 %v2312_v51, %v9268_v22  ;;  %v2314_v9 = vpop.f32.mrb[13].mxu0 }
 0x3bd   :  { %v2315_v31 = vadd.f32 %v2314_v9, %v9268_v22  ;;  %v2316_v49 = vpop.f32.mrb[14].mxu0 }
 0x3be   :  { %v9272_v2 = vmax.f32 %v2313_v46, 0.0  ;;  %v2317_v54 = vpop.f32.mrb[15].mxu0 }
 0x3bf   :  { %v9274_v13 = vmax.f32 %v2315_v31, 0.0 }
 0x3c0   :  { %2620 = vst [vmem:[%s11543_s16] sm:$0xff] %v9272_v2  ;;  %2754 = vrot.lane.b32.xlu0 %v9272_v2, %s7944_s4  ;;  %2680 = vrot.lane.b32.xlu1 %v9272_v2, %s7943_s27 }
 0x3c1   :  { %2621 = vst [vmem:[%s11543_s16 + $0x8] sm:$0xff] %v9274_v13 }
 0x3c4   :  { %2682 = vrot.lane.b32.xlu0 %v9274_v13, %s7943_s27  ;;  %2828 = vrot.lane.b32.xlu1 %v9272_v2, %s7942_s24 }
 0x3c7   :  { %v2353_v34 = vpop.f32.mrb[20].mxu1 }
 0x3c8   :  { %v2354_v26 = vadd.f32 %v2353_v34, %v9268_v22  ;;  %v2355_v23 = vpop.f32.mrb[21].mxu1 }
 0x3c9   :  { %v2356_v17 = vadd.f32 %v2355_v23, %v9268_v22  ;;  %v2357_v53 = vpop.f32.mrb[22].mxu1 }
 0x3ca   :  { %v9294_v48 = vmax.f32 %v2354_v26, 0.0  ;;  %v2358_v63 = vpop.f32.mrb[23].mxu1 }
 0x3cb   :  { %v9296_v45 = vmax.f32 %v2356_v17, 0.0 }
 0x3cc   :  { %2622 = vst [vmem:[%s11543_s16 + $0x10] sm:$0xff] %v9294_v48  ;;  %2758 = vrot.lane.b32.xlu0 %v9294_v48, %s7944_s4  ;;  %2684 = vrot.lane.b32.xlu1 %v9294_v48, %s7943_s27 }
 0x3cd   :  { %2623 = vst [vmem:[%s11543_s16 + $0x18] sm:$0xff] %v9296_v45 }
 0x3d0   :  { %2830 = vrot.lane.b32.xlu0 %v9274_v13, %s7942_s24  ;;  %2756 = vrot.lane.b32.xlu1 %v9274_v13, %s7944_s4 }
 0x3d4   :  { %2686 = vrot.lane.b32.xlu0 %v9296_v45, %s7943_s27  ;;  %2832 = vrot.lane.b32.xlu1 %v9294_v48, %s7942_s24 }
 0x3d8   :  { %2760 = vrot.lane.b32.xlu0 %v9296_v45, %s7944_s4 }
 0x3dc   :  { %2834 = vrot.lane.b32.xlu0 %v9296_v45, %s7942_s24 }
 0x3fb   :  { %v2394_v44 = vpop.f32.mrb[16].mxu0 }
 0x3fc   :  { %v2395_v62 = vadd.f32 %v2394_v44, %v9268_v22  ;;  %v2396_v1 = vpop.f32.mrb[17].mxu0  ;;  %v9450_v44 = vld [vmem:[%s11571_s2] sm:$0xff] }
 0x3fd   :  { %v2397_v10 = vadd.f32 %v2396_v1, %v9268_v22  ;;  %v2398_v4 = vpop.f32.mrb[18].mxu0 }
 0x3fe   :  { %v9324_v40 = vmax.f32 %v2395_v62, 0.0  ;;  %v2399_v6 = vpop.f32.mrb[19].mxu0 }
 0x3ff   :  { %v9326_v14 = vmax.f32 %v2397_v10, 0.0  ;;  %v9454_v10 = vrot.slane %v9450_v44, %v8599_v61 }
 0x400   :  { %2624 = vst [vmem:[%s11543_s16 + $0x20] sm:$0xff] %v9324_v40  ;;  %2688 = vrot.lane.b32.xlu1 %v9324_v40, %s7943_s27 }
 0x401   :  { %2625 = vst [vmem:[%s11543_s16 + $0x28] sm:$0xff] %v9326_v14  ;;  %2690 = vrot.lane.b32.xlu0 %v9326_v14, %s7943_s27 }
 0x404   :  { %2762 = vrot.lane.b32.xlu1 %v9324_v40, %s7944_s4 }
 0x407   :  { %v2435_v30 = vpop.f32.mrb[24].mxu1 }
 0x408   :  { %v2436_v0 = vadd.f32 %v2435_v30, %v9268_v22  ;;  %v2437_v19 = vpop.f32.mrb[25].mxu1  ;;  %2836 = vrot.lane.b32.xlu1 %v9324_v40, %s7942_s24 }
 0x409   :  { %v2438_v41 = vadd.f32 %v2437_v19, %v9268_v22  ;;  %v2439_v3 = vpop.f32.mrb[26].mxu1 }
 0x40a   :  { %v9346_v39 = vmax.f32 %v2436_v0, 0.0  ;;  %v2440_v20 = vpop.f32.mrb[27].mxu1 }
 0x40b   :  { %v9348_v43 = vmax.f32 %v2438_v41, 0.0 }
 0x40c   :  { %2626 = vst [vmem:[%s11543_s16 + $0x30] sm:$0xff] %v9346_v39  ;;  %2692 = vrot.lane.b32.xlu0 %v9346_v39, %s7943_s27  ;;  %2764 = vrot.lane.b32.xlu1 %v9326_v14, %s7944_s4 }
 0x40d   :  { %2627 = vst [vmem:[%s11543_s16 + $0x38] sm:$0xff] %v9348_v43 }
 0x410   :  { %2766 = vrot.lane.b32.xlu0 %v9346_v39, %s7944_s4  ;;  %2838 = vrot.lane.b32.xlu1 %v9326_v14, %s7942_s24 }
 0x414   :  { %2694 = vrot.lane.b32.xlu0 %v9348_v43, %s7943_s27  ;;  %2840 = vrot.lane.b32.xlu1 %v9346_v39, %s7942_s24 }
 0x418   :  { %2768 = vrot.lane.b32.xlu0 %v9348_v43, %s7944_s4 }
 0x41c   :  { %2842 = vrot.lane.b32.xlu0 %v9348_v43, %s7942_s24 }
 0x432   :  { %v9382_v50 = vpop.permute.xlu0 %2754  ;;  %v9384_v27 = vpop.permute.xlu1 %2680 }
 0x436   :  { %v9386_v29 = vpop.permute.xlu0 %2682  ;;  %v9390_v7 = vpop.permute.xlu1 %2828 }
 0x43b   :  { %v2476_v57 = vpop.f32.mrb[20].mxu0 }
 0x43c   :  { %v2477_v21 = vadd.f32 %v2476_v57, %v9268_v22  ;;  %v2478_v42 = vpop.f32.mrb[21].mxu0 }
 0x43d   :  { %v2479_v36 = vadd.f32 %v2478_v42, %v9268_v22  ;;  %v2480_v33 = vpop.f32.mrb[22].mxu0 }
 0x43e   :  { %v9392_v47 = vmax.f32 %v2477_v21, 0.0  ;;  %v2481_v58 = vpop.f32.mrb[23].mxu0  ;;  %v9394_v11 = vpop.permute.xlu0 %2758 }
 0x43f   :  { %v9396_v28 = vmax.f32 %v2479_v36, 0.0  ;;  %v9410_v25 = vpop.permute.xlu1 %2684 }
 0x440   :  { %2628 = vst [vmem:[%s11543_s16 + $0x40] sm:$0xff] %v9392_v47  ;;  %2696 = vrot.lane.b32.xlu1 %v9392_v47, %s7943_s27 }
 0x441   :  { %2629 = vst [vmem:[%s11543_s16 + $0x48] sm:$0xff] %v9396_v28  ;;  %2698 = vrot.lane.b32.xlu0 %v9396_v28, %s7943_s27 }
 0x442   :  { %v9412_v56 = vpop.permute.xlu0 %2830 }
 0x443   :  { %v2757_v31 = vpop.permute.xlu1 %2756 }
 0x444   :  { %2770 = vrot.lane.b32.xlu1 %v9392_v47, %s7944_s4 }
 0x446   :  { %v9416_v32 = vpop.permute.xlu0 %2686 }
 0x447   :  { %v2517_v35 = vpop.f32.mrb[28].mxu1  ;;  %v2712_v34 = vsel %vm1652_vm5, %v9410_v25, %v9416_v32  ;;  %v2833_v62 = vpop.permute.xlu1 %2832 }
 0x448   :  { %v2518_v51 = vadd.f32 %v2517_v35, %v9268_v22  ;;  %v2519_v46 = vpop.f32.mrb[29].mxu1  ;;  %2844 = vrot.lane.b32.xlu1 %v9392_v47, %s7942_s24  ;;  %v2741_v63 = vmax.f32 %v9294_v48, %v2712_v34  ;;  %v2711_v34 = vsel %vm1652_vm5, %v9386_v29, %v9410_v25 }
 0x449   :  { %v2520_v9 = vadd.f32 %v2519_v46, %v9268_v22  ;;  %v2521_v49 = vpop.f32.mrb[30].mxu1 }
 0x44a   :  { %v9422_v54 = vmax.f32 %v2518_v51, 0.0  ;;  %v2522_v26 = vpop.f32.mrb[31].mxu1  ;;  %v9429_v17 = vpop.permute.xlu0 %2760 }
 0x44b   :  { %v9427_v23 = vmax.f32 %v2520_v9, 0.0  ;;  %v2786_v53 = vsel %vm1862_vm6, %v9394_v11, %v9429_v17  ;;  %v2784_v9 = vsel %vm1862_vm6, %v9382_v50, %v2757_v31  ;;  %v2785_v26 = vsel %vm1862_vm6, %v2757_v31, %v9394_v11 }
 0x44c   :  { %2630 = vst [vmem:[%s11543_s16 + $0x50] sm:$0xff] %v9422_v54  ;;  %2700 = vrot.lane.b32.xlu0 %v9422_v54, %s7943_s27  ;;  %2772 = vrot.lane.b32.xlu1 %v9396_v28, %s7944_s4  ;;  %v2815_v1 = vmax.f32 %v2741_v63, %v2786_v53  ;;  %v2858_v50 = vsel %vm1967_vm8, %v9390_v7, %v9412_v56 }
 0x44d   :  { %2631 = vst [vmem:[%s11543_s16 + $0x58] sm:$0xff] %v9427_v23 }
 0x44e   :  { %v9456_v4 = vpop.permute.xlu0 %2834 }
 0x44f   :  { %v2860_v6 = vsel %vm1967_vm8, %v2833_v62, %v9456_v4 }
 0x450   :  { %2774 = vrot.lane.b32.xlu0 %v9422_v54, %s7944_s4  ;;  %v2889_v48 = vmax.f32 %v2815_v1, %v2860_v6  ;;  %2846 = vrot.lane.b32.xlu1 %v9396_v28, %s7942_s24  ;;  %v2859_v1 = vsel %vm1967_vm8, %v9412_v56, %v2833_v62 }
 0x452   :  { %v9465_v30 = vmul.f32 %v9454_v10, %v2889_v48 }
 0x454   :  { %2702 = vrot.lane.b32.xlu0 %v9427_v23, %s7943_s27  ;;  %2996 = vst [vmem:[#allocation2 + $0x18] sm:$0xff] %v9465_v30  ;;  %2848 = vrot.lane.b32.xlu1 %v9422_v54, %s7942_s24 }
 0x458   :  { %2776 = vrot.lane.b32.xlu0 %v9427_v23, %s7944_s4 }
 0x45b   :  { %v2558_v0 = vpop.f32.mrb[24].mxu0 }
 0x45c   :  { %2850 = vrot.lane.b32.xlu0 %v9427_v23, %s7942_s24  ;;  %v2559_v19 = vadd.f32 %v2558_v0, %v9268_v22  ;;  %v2560_v41 = vpop.f32.mrb[25].mxu0 }
 0x45d   :  { %v2561_v3 = vadd.f32 %v2560_v41, %v9268_v22  ;;  %v2562_v20 = vpop.f32.mrb[26].mxu0 }
 0x45e   :  { %v9478_v57 = vmax.f32 %v2559_v19, 0.0  ;;  %v2563_v21 = vpop.f32.mrb[27].mxu0 }
 0x45f   :  { %v9480_v42 = vmax.f32 %v2561_v3, 0.0 }
 0x460   :  { %2632 = vst [vmem:[%s11543_s16 + $0x60] sm:$0xff] %v9478_v57  ;;  %2704 = vrot.lane.b32.xlu1 %v9478_v57, %s7943_s27 }
 0x461   :  { %2633 = vst [vmem:[%s11543_s16 + $0x68] sm:$0xff] %v9480_v42  ;;  %2706 = vrot.lane.b32.xlu0 %v9480_v42, %s7943_s27 }
 0x462   :  { %v2599_v36 = vpop.f32.mrb[32].mxu1 }
 0x463   :  { %v2600_v33 = vadd.f32 %v2599_v36, %v9268_v22  ;;  %v7694_v58 = vpop.f32.mrb[33].mxu1  ;;  %v2710_v22 = vsel %vm1652_vm5, %v9384_v27, %v9386_v29  ;;  %v2740_v27 = vmax.f32 %v9274_v13, %v2711_v34  ;;  %v9532_v29 = vrot.slane %v9450_v44, %v8424_v18 }
 0x464   :  { %2778 = vrot.lane.b32.xlu1 %v9478_v57, %s7944_s4  ;;  %v2602_v35 = vpop.f32.mrb[34].mxu1  ;;  %v2739_v49 = vmax.f32 %v9272_v2, %v2710_v22  ;;  %v9536_v13 = vrot.slane %v9450_v44, %v8501_v16  ;;  %v9567_v58 = vrot.slane %v9450_v44, %v8452_v37 }
 0x465   :  { %v9497_v51 = vmax.f32 %v2600_v33, 0.0  ;;  %v7695_v46 = vpop.f32.mrb[35].mxu1  ;;  %v2814_v2 = vmax.f32 %v2740_v27, %v2785_v26 }
 0x466   :  { %v2813_v53 = vmax.f32 %v2739_v49, %v2784_v9 }
 0x467   :  { %2634 = vst.msk [vmem:[%s11543_s16 + $0x70] sm:$0xff] %vm62_vm15, %v9497_v51  ;;  %2649 = vst.msk [vmem:[#allocation2 + $0x78] sm:$0xff] %vm62_vm15, %v9497_v51  ;;  %v2888_v25 = vmax.f32 %v2814_v2, %v2859_v1  ;;  %s7949_s16 = smov 12  }
 0x468   :  { %2852 = vrot.lane.b32.xlu1 %v9478_v57, %s7942_s24  ;;  %v2887_v11 = vmax.f32 %v2813_v53, %v2858_v50  ;;  %v9581_v53 = vrot.slane %v9450_v44, %v8476_v55 }
 0x469   :  { %v9546_v56 = vmul.f32 %v9536_v13, %v2888_v25 }
 0x46a   :  { %v9543_v7 = vmul.f32 %v9532_v29, %v2887_v11 }
 0x46c   :  { %2780 = vrot.lane.b32.xlu1 %v9480_v42, %s7944_s4 }
 0x46e   :  { %v2664_v63 = vld [vmem:[#allocation2 + $0x78] sm:$0xff] }
 0x46f   :  { %2708 = vrot.lane.b32.xlu0 %v2664_v63, %s7943_s27  ;;  %s7953_s27 = smov 48  }
 0x470   :  { %2854 = vrot.lane.b32.xlu1 %v9480_v42, %s7942_s24 }
 0x472   :  { %v9538_v31 = vpop.permute.xlu1 %2688 }
 0x473   :  { %2782 = vrot.lane.b32.xlu0 %v2664_v63, %s7944_s4  ;;  %v2691_v6 = vpop.permute.xlu0 %2690 }
 0x474   :  { %2856 = vrot.lane.b32.xlu1 %v2664_v63, %s7942_s24  ;;  %v2714_v0 = vsel %vm1652_vm5, %v9538_v31, %v2691_v6  ;;  %s7950_s24 = smov 8  }
 0x475   :  { %v2743_v20 = vmax.f32 %v9324_v40, %v2714_v0  ;;  %v9602_v0 = vrot.slane %v9450_v44, %v8612_v52 }
 0x476   :  { %v2763_v62 = vpop.permute.xlu1 %2762 }
 0x477   :  { %3041 = vrot.lane.b32.xlu0 %v9543_v7, %s7946_s25 }
 0x478   :  { %3043 = vrot.lane.b32.xlu1 %v9546_v56, %s7946_s25 }
 0x47a   :  { %v2837_v48 = vpop.permute.xlu1 %2836 }
 0x47b   :  { %3146 = vrot.lane.b32.xlu0 %v9543_v7, %s7945_s6 }
 0x47c   :  { %3148 = vrot.lane.b32.xlu1 %v9546_v56, %s7945_s6 }
 0x47e   :  { %v2693_v19 = vpop.permute.xlu0 %2692  ;;  %v2765_v41 = vpop.permute.xlu1 %2764 }
 0x47f   :  { %3251 = vrot.lane.b32.xlu0 %v9543_v7, %s7948_s26  ;;  %v2788_v3 = vsel %vm1862_vm6, %v2763_v62, %v2765_v41  ;;  %v2715_v21 = vsel %vm1652_vm5, %v2691_v6, %v2693_v19 }
 0x480   :  { %3253 = vrot.lane.b32.xlu1 %v9546_v56, %s7948_s26  ;;  %v2817_v33 = vmax.f32 %v2743_v20, %v2788_v3  ;;  %v2744_v40 = vmax.f32 %v9326_v14, %v2715_v21  ;;  %v2713_v20 = vsel %vm1652_vm5, %v9416_v32, %v9538_v31  ;;  %v2787_v21 = vsel %vm1862_vm6, %v9429_v17, %v2763_v62 }
 0x481   :  { %v9639_v32 = vrot.slane %v9450_v44, %v8566_v12 }
 0x482   :  { %v2767_v36 = vpop.permute.xlu0 %2766  ;;  %v2839_v35 = vpop.permute.xlu1 %2838 }
 0x483   :  { %3358 = vrot.lane.b32.xlu0 %v9543_v7, %s7947_s3  ;;  %v2862_v46 = vsel %vm1967_vm8, %v2837_v48, %v2839_v35  ;;  %v2789_v22 = vsel %vm1862_vm6, %v2765_v41, %v2767_v36 }
 0x484   :  { %v2891_v9 = vmax.f32 %v2817_v33, %v2862_v46  ;;  %3360 = vrot.lane.b32.xlu1 %v9546_v56, %s7947_s3  ;;  %v2818_v26 = vmax.f32 %v2744_v40, %v2789_v22  ;;  %v2861_v33 = vsel %vm1967_vm8, %v9456_v4, %v2837_v48  ;;  %v9674_v40 = vrot.slane %v9450_v44, %v1062_v5  ;;  %v9691_v44 = vld [vmem:[%s11571_s2 + $0x8] sm:$0x7f]  ;;  %s7951_s2 = smov 122  }
 0x486   :  { %v2695_v49 = vpop.permute.xlu0 %2694  ;;  %v9577_v34 = vmul.f32 %v9567_v58, %v2891_v9  ;;  %v2841_v27 = vpop.permute.xlu1 %2840 }
 0x487   :  { %3496 = vrot.lane.b32.xlu0 %v9546_v56, %s7946_s25  ;;  %v2863_v63 = vsel %vm1967_vm8, %v2839_v35, %v2841_v27  ;;  %v2716_v1 = vsel %vm1652_vm5, %v2693_v19, %v2695_v49 }
 0x488   :  { %2998 = vst [vmem:[#allocation2 + $0x28] sm:$0xff] %v9577_v34  ;;  %v2892_v14 = vmax.f32 %v2818_v26, %v2863_v63  ;;  %3600 = vrot.lane.b32.xlu1 %v9546_v56, %s7949_s16  ;;  %v2745_v25 = vmax.f32 %v9346_v39, %v2716_v1 }
 0x48a   :  { %v2769_v2 = vpop.permute.xlu0 %2768  ;;  %v9591_v50 = vmul.f32 %v9581_v53, %v2892_v14 }
 0x48b   :  { %v2790_v11 = vsel %vm1862_vm6, %v2767_v36, %v2769_v2  ;;  %3494 = vrot.lane.b32.xlu0 %v9543_v7, %s7946_s25  ;;  %v2742_v36 = vmax.f32 %v9296_v45, %v2713_v20 }
 0x48c   :  { %2999 = vst [vmem:[#allocation2 + $0x30] sm:$0xff] %v9591_v50  ;;  %3705 = vrot.lane.b32.xlu1 %v9546_v56, %s7950_s24  ;;  %v2819_v6 = vmax.f32 %v2745_v25, %v2790_v11 }
 0x48d   :  { %v2816_v35 = vmax.f32 %v2742_v36, %v2787_v21 }
 0x48e   :  { %v2843_v19 = vpop.permute.xlu0 %2842 }
 0x48f   :  { %v2864_v41 = vsel %vm1967_vm8, %v2841_v27, %v2843_v19  ;;  %3703 = vrot.lane.b32.xlu0 %v9543_v7, %s7950_s24  ;;  %v2890_v17 = vmax.f32 %v2816_v35, %v2861_v33  ;;  %v9714_v33 = vrot.slane %v9691_v44, %v8501_v16 }
 0x490   :  { %v2893_v3 = vmax.f32 %v2819_v6, %v2864_v41  ;;  %3598 = vrot.lane.b32.xlu1 %v9543_v7, %s7949_s16  ;;  %v9700_v6 = vrot.slane %v9691_v44, %v8424_v18 }
 0x491   :  { %v9646_v45 = vmul.f32 %v9639_v32, %v2890_v17 }
 0x492   :  { %v9610_v39 = vmul.f32 %v9602_v0, %v2893_v3 }
 0x493   :  { %3811 = vrot.lane.b32.xlu0 %v9546_v56, %s7947_s3 }
 0x494   :  { %3000 = vst [vmem:[#allocation2 + $0x38] sm:$0xff] %v9610_v39  ;;  %3809 = vrot.lane.b32.xlu1 %v9543_v7, %s7947_s3 }
 0x497   :  { %3045 = vrot.lane.b32.xlu0 %v9465_v30, %s7946_s25 }
 0x498   :  { %3498 = vrot.lane.b32.xlu1 %v9465_v30, %s7946_s25 }
 0x49b   :  { %3150 = vrot.lane.b32.xlu0 %v9465_v30, %s7945_s6 }
 0x49c   :  { %3255 = vrot.lane.b32.xlu1 %v9465_v30, %s7948_s26 }
 0x49f   :  { %3602 = vrot.lane.b32.xlu0 %v9465_v30, %s7949_s16 }
 0x4a0   :  { %3362 = vrot.lane.b32.xlu1 %v9465_v30, %s7947_s3 }
 0x4a3   :  { %3707 = vrot.lane.b32.xlu0 %v9465_v30, %s7950_s24 }
 0x4a4   :  { %3813 = vrot.lane.b32.xlu1 %v9465_v30, %s7947_s3 }
 0x4a7   :  { %3257 = vrot.lane.b32.xlu0 %v9646_v45, %s7948_s26 }
 0x4a8   :  { %3047 = vrot.lane.b32.xlu1 %v9646_v45, %s7946_s25 }
 0x4ab   :  { %3364 = vrot.lane.b32.xlu0 %v9646_v45, %s7947_s3 }
 0x4ac   :  { %3152 = vrot.lane.b32.xlu1 %v9646_v45, %s7945_s6 }
 0x4af   :  { %3500 = vrot.lane.b32.xlu0 %v9646_v45, %s7946_s25 }
 0x4b0   :  { %3502 = vrot.lane.b32.xlu1 %v9577_v34, %s7946_s25 }
 0x4b2   :  { %v2697_v4 = vpop.permute.xlu1 %2696 }
 0x4b3   :  { %3604 = vrot.lane.b32.xlu0 %v9646_v45, %s7949_s16  ;;  %v2717_v30 = vsel %vm1652_vm5, %v2695_v49, %v2697_v4  ;;  %v2699_v46 = vpop.permute.xlu0 %2698 }
 0x4b4   :  { %3051 = vrot.lane.b32.xlu1 %v9591_v50, %s7946_s25  ;;  %v2746_v48 = vmax.f32 %v9348_v43, %v2717_v30  ;;  %v2718_v43 = vsel %vm1652_vm5, %v2697_v4, %v2699_v46 }
 0x4b5   :  { %v2747_v1 = vmax.f32 %v9392_v47, %v2718_v43 }
 0x4b6   :  { %v2771_v31 = vpop.permute.xlu1 %2770 }
 0x4b7   :  { %3709 = vrot.lane.b32.xlu0 %v9646_v45, %s7950_s24  ;;  %v2791_v62 = vsel %vm1862_vm6, %v2769_v2, %v2771_v31 }
 0x4b8   :  { %3156 = vrot.lane.b32.xlu1 %v9591_v50, %s7945_s6  ;;  %v2820_v22 = vmax.f32 %v2746_v48, %v2791_v62 }
 0x4ba   :  { %v2845_v9 = vpop.permute.xlu1 %2844 }
 0x4bb   :  { %3815 = vrot.lane.b32.xlu0 %v9646_v45, %s7947_s3  ;;  %v2865_v49 = vsel %vm1967_vm8, %v2843_v19, %v2845_v9 }
 0x4bc   :  { %v2894_v26 = vmax.f32 %v2820_v22, %v2865_v49  ;;  %3606 = vrot.lane.b32.xlu1 %v9577_v34, %s7949_s16 }
 0x4be   :  { %v2701_v27 = vpop.permute.xlu0 %2700  ;;  %v9683_v63 = vmul.f32 %v9674_v40, %v2894_v26  ;;  %v2773_v14 = vpop.permute.xlu1 %2772 }
 0x4bf   :  { %3049 = vrot.lane.b32.xlu0 %v9577_v34, %s7946_s25  ;;  %v2792_v5 = vsel %vm1862_vm6, %v2771_v31, %v2773_v14  ;;  %v2719_v2 = vsel %vm1652_vm5, %v2699_v46, %v2701_v27  ;;  %v9735_v46 = vrot.slane %v9691_v44, %v8599_v61 }
 0x4c0   :  { %3001 = vst [vmem:[#allocation2 + $0x40] sm:$0xff] %v9683_v63  ;;  %3711 = vrot.lane.b32.xlu1 %v9577_v34, %s7950_s24  ;;  %v2821_v25 = vmax.f32 %v2747_v1, %v2792_v5  ;;  %v2748_v3 = vmax.f32 %v9396_v28, %v2719_v2  ;;  %v9759_v1 = vrot.slane %v9691_v44, %v8566_v12 }
 0x4c2   :  { %v2775_v11 = vpop.permute.xlu0 %2774  ;;  %v2847_v19 = vpop.permute.xlu1 %2846 }
 0x4c3   :  { %3154 = vrot.lane.b32.xlu0 %v9577_v34, %s7945_s6  ;;  %v2866_v41 = vsel %vm1967_vm8, %v2845_v9, %v2847_v19  ;;  %v2793_v47 = vsel %vm1862_vm6, %v2773_v14, %v2775_v11 }
 0x4c4   :  { %v2895_v20 = vmax.f32 %v2821_v25, %v2866_v41  ;;  %3261 = vrot.lane.b32.xlu1 %v9591_v50, %s7948_s26  ;;  %v2822_v18 = vmax.f32 %v2748_v3, %v2793_v47 }
 0x4c6   :  { %v2703_v21 = vpop.permute.xlu0 %2702  ;;  %v9710_v36 = vmul.f32 %v9700_v6, %v2895_v20  ;;  %v2849_v35 = vpop.permute.xlu1 %2848 }
 0x4c7   :  { %3259 = vrot.lane.b32.xlu0 %v9577_v34, %s7948_s26  ;;  %v2867_v17 = vsel %vm1967_vm8, %v2847_v19, %v2849_v35  ;;  %v2720_v4 = vsel %vm1652_vm5, %v2701_v27, %v2703_v21 }
 0x4c8   :  { %3002 = vst [vmem:[#allocation2 + $0x48] sm:$0xff] %v9710_v36  ;;  %v2896_v28 = vmax.f32 %v2822_v18, %v2867_v17  ;;  %3368 = vrot.lane.b32.xlu1 %v9591_v50, %s7947_s3  ;;  %v2749_v62 = vmax.f32 %v9422_v54, %v2720_v4 }
 0x4ca   :  { %v2777_v30 = vpop.permute.xlu0 %2776  ;;  %v9724_v31 = vmul.f32 %v9714_v33, %v2896_v28 }
 0x4cb   :  { %v2794_v16 = vsel %vm1862_vm6, %v2775_v11, %v2777_v30  ;;  %3366 = vrot.lane.b32.xlu0 %v9577_v34, %s7947_s3 }
 0x4cc   :  { %3003 = vst [vmem:[#allocation2 + $0x50] sm:$0xff] %v9724_v31  ;;  %3817 = vrot.lane.b32.xlu1 %v9577_v34, %s7947_s3  ;;  %v2823_v48 = vmax.f32 %v2749_v62, %v2794_v16  ;;  %v9795_v62 = vrot.slane %v9691_v44, %v8612_v52 }
 0x4ce   :  { %v2851_v22 = vpop.permute.xlu0 %2850 }
 0x4cf   :  { %v2868_v9 = vsel %vm1967_vm8, %v2849_v35, %v2851_v22  ;;  %3504 = vrot.lane.b32.xlu0 %v9591_v50, %s7946_s25 }
 0x4d0   :  { %v2897_v49 = vmax.f32 %v2823_v48, %v2868_v9  ;;  %3506 = vrot.lane.b32.xlu1 %v9610_v39, %s7946_s25 }
 0x4d2   :  { %v9743_v54 = vmul.f32 %v9735_v46, %v2897_v49  ;;  %v2705_v26 = vpop.permute.xlu1 %2704 }
 0x4d3   :  { %3608 = vrot.lane.b32.xlu0 %v9591_v50, %s7949_s16  ;;  %v2721_v61 = vsel %vm1652_vm5, %v2703_v21, %v2705_v26  ;;  %v2707_v14 = vpop.permute.xlu0 %2706  ;;  %v9780_v21 = vrot.slane %v9691_v44, %v8452_v37 }
 0x4d4   :  { %3004 = vst [vmem:[#allocation2 + $0x58] sm:$0xff] %v9743_v54  ;;  %3610 = vrot.lane.b32.xlu1 %v9610_v39, %s7949_s16  ;;  %v2750_v27 = vmax.f32 %v9427_v23, %v2721_v61  ;;  %v2722_v23 = vsel %vm1652_vm5, %v2705_v26, %v2707_v14 }
 0x4d5   :  { %v2751_v47 = vmax.f32 %v9478_v57, %v2722_v23 }
 0x4d6   :  { %v2779_v34 = vpop.permute.xlu1 %2778 }
 0x4d7   :  { %3713 = vrot.lane.b32.xlu0 %v9591_v50, %s7950_s24  ;;  %v2795_v43 = vsel %vm1862_vm6, %v2777_v30, %v2779_v34 }
 0x4d8   :  { %3715 = vrot.lane.b32.xlu1 %v9610_v39, %s7950_s24  ;;  %v2824_v5 = vmax.f32 %v2750_v27, %v2795_v43 }
 0x4da   :  { %v2853_v2 = vpop.permute.xlu1 %2852 }
 0x4db   :  { %3819 = vrot.lane.b32.xlu0 %v9591_v50, %s7947_s3  ;;  %v2869_v11 = vsel %vm1967_vm8, %v2851_v22, %v2853_v2  ;;  %v9801_v22 = vrot.slane %v9691_v44, %v8476_v55 }
 0x4dc   :  { %v2898_v25 = vmax.f32 %v2824_v5, %v2869_v11  ;;  %3821 = vrot.lane.b32.xlu1 %v9610_v39, %s7947_s3 }
 0x4de   :  { %v9768_v19 = vmul.f32 %v9759_v1, %v2898_v25  ;;  %v2781_v41 = vpop.permute.xlu1 %2780 }
 0x4df   :  { %3053 = vrot.lane.b32.xlu0 %v9610_v39, %s7946_s25  ;;  %v2796_v12 = vsel %vm1862_vm6, %v2779_v34, %v2781_v41 }
 0x4e0   :  { %3005 = vst [vmem:[#allocation2 + $0x60] sm:$0xff] %v9768_v19  ;;  %3055 = vrot.lane.b32.xlu1 %v9683_v63, %s7946_s25  ;;  %v2825_v20 = vmax.f32 %v2751_v47, %v2796_v12 }
 0x4e1   :  { %v2709_v50 = vpop.permute.xlu0 %2708 }
 0x4e2   :  { %v2723_v3 = vsel %vm1652_vm5, %v2707_v14, %v2709_v50  ;;  %v2855_v18 = vpop.permute.xlu1 %2854  ;;  %v2753_v57 = vmax.f32 %v9497_v51, %v2709_v50  ;;  %vm6098_vm5 = vcmask 671136  }
 0x4e3   :  { %3158 = vrot.lane.b32.xlu0 %v9610_v39, %s7945_s6  ;;  %v2870_v35 = vsel %vm1967_vm8, %v2853_v2, %v2855_v18  ;;  %v2752_v28 = vmax.f32 %v9480_v42, %v2723_v3 }
 0x4e4   :  { %v2899_v17 = vmax.f32 %v2825_v20, %v2870_v35  ;;  %3160 = vrot.lane.b32.xlu1 %v9683_v63, %s7945_s6 }
 0x4e5   :  { %v2783_v4 = vpop.permute.xlu0 %2782 }
 0x4e6   :  { %v2827_v30 = vmax.f32 %v2753_v57, %v2783_v4  ;;  %v2797_v16 = vsel %vm1862_vm6, %v2781_v41, %v2783_v4  ;;  %v9791_v37 = vmul.f32 %v9780_v21, %v2899_v17  ;;  %v2857_v48 = vpop.permute.xlu1 %2856  ;;  %vm6105_vm6 = vcmask 917136  }
 0x4e7   :  { %3263 = vrot.lane.b32.xlu0 %v9610_v39, %s7948_s26  ;;  %v2826_v51 = vmax.f32 %v2752_v28, %v2797_v16  ;;  %v2871_v42 = vsel %vm1967_vm8, %v2855_v18, %v2857_v48  ;;  %vm6112_vm8 = vcmask 1048448  }
 0x4e8   :  { %3006 = vst [vmem:[#allocation2 + $0x68] sm:$0xff] %v9791_v37  ;;  %v2901_v9 = vmax.f32 %v2827_v30, %v2857_v48  ;;  %3265 = vrot.lane.b32.xlu1 %v9683_v63, %s7948_s26 }
 0x4e9   :  { %v3042_v49 = vpop.permute.xlu0 %3041  ;;  %v2900_v52 = vmax.f32 %v2826_v51, %v2871_v42 }
 0x4ea   :  { %v2993_v26 = vmul.f32 %v9795_v62, %v2901_v9  ;;  %v9808_v61 = vpop.permute.xlu1 %3043  ;;  %v3070_v14 = vsel %vm3069_vm12, %v9374_v60, %v3042_v49 }
 0x4eb   :  { %3370 = vrot.lane.b32.xlu0 %v9610_v39, %s7947_s3  ;;  %v9813_v55 = vmul.f32 %v9801_v22, %v2900_v52  ;;  %v3071_v39 = vsel %vm3069_vm12, %v3042_v49, %v9808_v61 }
 0x4ec   :  { %3008 = vst.msk [vmem:[#allocation2 + $0x78] sm:$0xff] %vm62_vm15, %v2993_v26  ;;  %3372 = vrot.lane.b32.xlu1 %v9683_v63, %s7947_s3 }
 0x4ed   :  { %v3147_v44 = vpop.permute.xlu0 %3146  ;;  %3007 = vst [vmem:[#allocation2 + $0x70] sm:$0xff] %v9813_v55 }
 0x4ee   :  { %v3175_v34 = vsel %vm3174_vm10, %v9376_v8, %v3147_v44  ;;  %v9821_v43 = vpop.permute.xlu1 %3148 }
 0x4ef   :  { %3508 = vrot.lane.b32.xlu0 %v9683_v63, %s7946_s25  ;;  %v3176_v27 = vsel %vm3174_vm10, %v3147_v44, %v9821_v43  ;;  %v4022_v8 = vpack.c.bf16 %v3175_v34, %v3070_v14 }
 0x4f0   :  { %3510 = vrot.lane.b32.xlu1 %v9710_v36, %s7946_s25  ;;  %v4023_v5 = vpack.c.bf16 %v3176_v27, %v3071_v39 }
 0x4f1   :  { %v3252_v2 = vpop.permute.xlu0 %3251 }
 0x4f2   :  { %v9833_v11 = vpop.permute.xlu1 %3253  ;;  %4151 = vmatprep.subr.bf16.mxu0 %v4023_v5  ;;  %v3280_v50 = vsel %vm3279_vm0, %v9378_v38, %v3252_v2 }
 0x4f3   :  { %3612 = vrot.lane.b32.xlu0 %v9683_v63, %s7949_s16  ;;  %4152 = vmatpush1.bf16.msra.mxu0 %v4022_v8  ;;  %v3448_v25 = vld [vmem:[#allocation2 + $0x78] sm:$0xff]  ;;  %v3281_v12 = vsel %vm3279_vm0, %v3252_v2, %v9833_v11 }
 0x4f4   :  { %3059 = vrot.lane.b32.xlu1 %v9724_v31, %s7946_s25  ;;  %3463 = vst.msk [vmem:[#allocation3 + $0x250] sm:$0xff] %vm62_vm15, %v3448_v25 }
 0x4f5   :  { %v3359_v60 = vpop.permute.xlu0 %3358 }
 0x4f6   :  { %v3389_v23 = vsel %vm3388_vm13, %v9380_v24, %v3359_v60  ;;  %v9842_v41 = vpop.permute.xlu1 %3360 }
 0x4f7   :  { %3717 = vrot.lane.b32.xlu0 %v9683_v63, %s7950_s24  ;;  %v3390_v47 = vsel %vm3388_vm13, %v3359_v60, %v9842_v41  ;;  %v4037_v24 = vpack.c.bf16 %v3389_v23, %v3280_v50 }
 0x4f8   :  { %3164 = vrot.lane.b32.xlu1 %v9724_v31, %s7945_s6  ;;  %v4038_v3 = vpack.c.bf16 %v3390_v47, %v3281_v12 }
 0x4f9   :  { %v3497_v20 = vpop.permute.xlu0 %3496 }
 0x4fa   :  { %v3601_v18 = vpop.permute.xlu1 %3600  ;;  %4153 = vmatprep.subr.bf16.mxu0 %v4038_v3 }
 0x4fb   :  { %3823 = vrot.lane.b32.xlu0 %v9683_v63, %s7947_s3  ;;  %4154 = vmatpush1.bf16.msra.mxu0 %v4037_v24 }
 0x4fc   :  { %3614 = vrot.lane.b32.xlu1 %v9710_v36, %s7949_s16 }
 0x4fd   :  { %v3495_v35 = vpop.permute.xlu0 %3494 }
 0x4fe   :  { %v3706_v57 = vpop.permute.xlu1 %3705  ;;  %v3524_v30 = vsel %vm3069_vm12, %v3495_v35, %v3497_v20 }
 0x4ff   :  { %3057 = vrot.lane.b32.xlu0 %v9710_v36, %s7946_s25  ;;  %v4052_v9 = vpack.c.bf16 %v3524_v30, %v9543_v7 }
 0x500   :  { %3719 = vrot.lane.b32.xlu1 %v9710_v36, %s7950_s24 }
 0x501   :  { %v3704_v38 = vpop.permute.xlu0 %3703 }
 0x502   :  { %v3599_v17 = vpop.permute.xlu1 %3598  ;;  %v3733_v7 = vsel %vm62_vm15, %v3704_v38, %v3706_v57 }
 0x503   :  { %3162 = vrot.lane.b32.xlu0 %v9710_v36, %s7945_s6 }
 0x504   :  { %3269 = vrot.lane.b32.xlu1 %v9724_v31, %s7948_s26 }
 0x505   :  { %v3812_v63 = vpop.permute.xlu0 %3811 }
 0x506   :  { %v3810_v28 = vpop.permute.xlu1 %3809 }
 0x507   :  { %3267 = vrot.lane.b32.xlu0 %v9710_v36, %s7948_s26  ;;  %v3841_v44 = vsel %vm3388_vm13, %v3810_v28, %v3812_v63 }
 0x508   :  { %3376 = vrot.lane.b32.xlu1 %v9724_v31, %s7947_s3  ;;  %v4082_v60 = vpack.c.bf16 %v3841_v44, %v3841_v44 }
 0x509   :  { %v3046_v4 = vpop.permute.xlu0 %3045 }
 0x50a   :  { %v9871_v16 = vpop.permute.xlu1 %3498  ;;  %v4107_v47 = vsel %vm357_vm11, %v4082_v60, 0 }
 0x50b   :  { %3374 = vrot.lane.b32.xlu0 %v9710_v36, %s7947_s3  ;;  %v3525_v48 = vsel %vm3069_vm12, %v3497_v20, %v9871_v16  ;;  %v9925_v20 = vld [vmem:[%s11534_s7] sm:$0xf] }
 0x50c   :  { %3825 = vrot.lane.b32.xlu1 %v9710_v36, %s7947_s3  ;;  %v4053_v51 = vpack.c.bf16 %v3525_v48, %v9546_v56  ;;  %v3629_v56 = vsel %vm3628_vm1, %v3599_v17, %v3601_v18 }
 0x50d   :  { %v3151_v42 = vpop.permute.xlu0 %3150  ;;  %v4067_v2 = vpack.c.bf16 %v3733_v7, %v3629_v56  ;;  %v9974_v56 = vld [vmem:[#allocation2 + $0x78] sm:$0xff] }
 0x50e   :  { %v3256_v49 = vpop.permute.xlu1 %3255  ;;  %4155 = vmatprep.subr.bf16.mxu0 %v4053_v51  ;;  %v3177_v50 = vsel %vm3174_vm10, %v9821_v43, %v3151_v42  ;;  %v3072_v43 = vsel %vm3069_vm12, %v9808_v61, %v3046_v4 }
 0x50f   :  { %3512 = vrot.lane.b32.xlu0 %v9724_v31, %s7946_s25  ;;  %4156 = vmatpush1.bf16.msra.mxu0 %v4052_v9  ;;  %v4024_v17 = vpack.c.bf16 %v3177_v50, %v3072_v43 }
 0x510   :  { %3514 = vrot.lane.b32.xlu1 %v9743_v54, %s7946_s25 }
 0x511   :  { %v9885_v52 = vpop.permute.xlu0 %3602 }
 0x512   :  { %v3363_v26 = vpop.permute.xlu1 %3362  ;;  %v3630_v34 = vsel %vm3628_vm1, %v3601_v18, %v9885_v52 }
 0x513   :  { %3616 = vrot.lane.b32.xlu0 %v9724_v31, %s7949_s16 }
 0x514   :  { %3618 = vrot.lane.b32.xlu1 %v9743_v54, %s7949_s16 }
 0x515   :  { %v9893_v36 = vpop.permute.xlu0 %3707 }
 0x516   :  { %v3734_v39 = vsel %vm62_vm15, %v3706_v57, %v9893_v36  ;;  %v9900_v27 = vpop.permute.xlu1 %3813 }
 0x517   :  { %3721 = vrot.lane.b32.xlu0 %v9724_v31, %s7950_s24  ;;  %v3842_v14 = vsel %vm3388_vm13, %v3812_v63, %v9900_v27  ;;  %v4068_v5 = vpack.c.bf16 %v3734_v39, %v3630_v34  ;;  %v3391_v63 = vsel %vm3388_vm13, %v9842_v41, %v3363_v26 }
 0x518   :  { %3723 = vrot.lane.b32.xlu1 %v9743_v54, %s7950_s24  ;;  %v4083_v8 = vpack.c.bf16 %v3842_v14, %v3842_v14 }
 0x519   :  { %v9908_v25 = vpop.permute.xlu0 %3257  ;;  %4157 = vmatprep.subr.bf16.mxu0 %v4068_v5 }
 0x51a   :  { %v9910_v23 = vpop.permute.xlu1 %3047  ;;  %4158 = vmatpush1.bf16.msra.mxu0 %v4067_v2  ;;  %v3283_v57 = vsel %vm3279_vm0, %v3256_v49, %v9908_v25 }
 0x51b   :  { %3827 = vrot.lane.b32.xlu0 %v9724_v31, %s7947_s3  ;;  %7495 = vmatprep.subr.msk.bf16.mxu0 %vm357_vm11, %v4083_v8  ;;  %v3073_v24 = vsel %vm3069_vm12, %v3046_v4, %v9910_v23  ;;  %v3282_v4 = vsel %vm3279_vm0, %v9833_v11, %v3256_v49  ;;  %v3436_v11 = vld [vmem:[#allocation2 + $0x18] sm:$0xff] }
 0x51c   :  { %3829 = vrot.lane.b32.xlu1 %v9743_v54, %s7947_s3  ;;  %v4039_v48 = vpack.c.bf16 %v3391_v63, %v3282_v4 }
 0x51d   :  { %v9917_v12 = vpop.permute.xlu0 %3364 }
 0x51e   :  { %v3153_v3 = vpop.permute.xlu1 %3152  ;;  %4160 = vmatpush1.bf16.msra.mxu0 %v4107_v47  ;;  %v3392_v31 = vsel %vm3388_vm13, %v3363_v26, %v9917_v12 }
 0x51f   :  { %3061 = vrot.lane.b32.xlu0 %v9743_v54, %s7946_s25  ;;  %v3178_v18 = vsel %vm3174_vm10, %v3151_v42, %v3153_v3  ;;  %v4040_v30 = vpack.c.bf16 %v3392_v31, %v3283_v57 }
 0x520   :  { %3063 = vrot.lane.b32.xlu1 %v9768_v19, %s7946_s25  ;;  %v4025_v35 = vpack.c.bf16 %v3178_v18, %v3073_v24 }
 0x521   :  { %v3501_v38 = vpop.permute.xlu0 %3500  ;;  %7496 = vmatmul.mubr.msk.bf16.vlgmr.msra.gmra.mrb[28].mxu0 %vm2229_vm9, %v9925_v20 }
 0x522   :  { %v9944_v28 = vpop.permute.xlu1 %3502  ;;  %4192 = vmatprep.subr.bf16.mxu1 %v4025_v35  ;;  %4265 = vmatprep.mubr.bf16.mxu0 %v7934_v59  ;;  %v3526_v51 = vsel %vm3069_vm12, %v9871_v16, %v3501_v38 }
 0x523   :  { %3166 = vrot.lane.b32.xlu0 %v9743_v54, %s7945_s6  ;;  %v3527_v61 = vsel %vm3069_vm12, %v3501_v38, %v9944_v28  ;;  %4193 = vmatpush1.bf16.msra.mxu1 %v4024_v17  ;;  %v4054_v26 = vpack.c.bf16 %v3526_v51, %v3436_v11  ;;  %v3439_v11 = vld [vmem:[#allocation2 + $0x30] sm:$0xff] }
 0x524   :  { %3168 = vrot.lane.b32.xlu1 %v9768_v19, %s7945_s6  ;;  %4194 = vmatprep.subr.bf16.mxu1 %v4040_v30  ;;  %v4055_v9 = vpack.c.bf16 %v3527_v61, %v9646_v45 }
 0x525   :  { %v3605_v41 = vpop.permute.xlu0 %3604 }
 0x526   :  { %v9957_v42 = vpop.permute.xlu1 %3051  ;;  %v3631_v5 = vsel %vm3628_vm1, %v9885_v52, %v3605_v41 }
 0x527   :  { %3271 = vrot.lane.b32.xlu0 %v9743_v54, %s7948_s26  ;;  %4195 = vmatpush1.bf16.msra.mxu1 %v4039_v48 }
 0x528   :  { %3273 = vrot.lane.b32.xlu1 %v9768_v19, %s7948_s26  ;;  %4196 = vmatprep.subr.bf16.mxu1 %v4055_v9 }
 0x529   :  { %v3710_v49 = vpop.permute.xlu0 %3709 }
 0x52a   :  { %v9964_v7 = vpop.permute.xlu1 %3156  ;;  %v3735_v34 = vsel %vm62_vm15, %v9893_v36, %v3710_v49 }
 0x52b   :  { %3378 = vrot.lane.b32.xlu0 %v9743_v54, %s7947_s3  ;;  %4197 = vmatpush1.bf16.msra.mxu1 %v4054_v26  ;;  %v4069_v36 = vpack.c.bf16 %v3735_v34, %v3631_v5 }
 0x52c   :  { %3380 = vrot.lane.b32.xlu1 %v9768_v19, %s7947_s3 }
 0x52d   :  { %v3816_v45 = vpop.permute.xlu0 %3815 }
 0x52e   :  { %v9970_v16 = vpop.permute.xlu1 %3606 }
 0x52f   :  { %3516 = vrot.lane.b32.xlu0 %v9768_v19, %s7946_s25  ;;  %v3632_v39 = vsel %vm3628_vm1, %v3605_v41, %v9970_v16 }
 0x530   :  { %3522 = vrot.lane.b32.xlu1 %v9974_v56, %s7946_s25 }
 0x531   :  { %v3050_v44 = vpop.permute.xlu0 %3049 }
 0x532   :  { %v9980_v54 = vpop.permute.xlu1 %3711  ;;  %v3074_v60 = vsel %vm3069_vm12, %v9910_v23, %v3050_v44  ;;  %v3075_v47 = vsel %vm3069_vm12, %v3050_v44, %v9957_v42 }
 0x533   :  { %3620 = vrot.lane.b32.xlu0 %v9768_v19, %s7949_s16  ;;  %v3736_v14 = vsel %vm62_vm15, %v3710_v49, %v9980_v54 }
 0x534   :  { %3518 = vrot.lane.b32.xlu1 %v9791_v37, %s7946_s25  ;;  %v4070_v2 = vpack.c.bf16 %v3736_v14, %v3632_v39 }
 0x535   :  { %v3155_v8 = vpop.permute.xlu0 %3154 }
 0x536   :  { %v3179_v50 = vsel %vm3174_vm10, %v3153_v3, %v3155_v8  ;;  %v3180_v31 = vsel %vm3174_vm10, %v3155_v8, %v9964_v7  ;;  %v9999_v24 = vpop.permute.xlu1 %3261  ;;  %4198 = vmatprep.subr.bf16.mxu1 %v4070_v2  ;;  %v3843_v3 = vsel %vm3388_vm13, %v9900_v27, %v3816_v45 }
 0x537   :  { %3725 = vrot.lane.b32.xlu0 %v9768_v19, %s7950_s24  ;;  %v4027_v52 = vpack.c.bf16 %v3180_v31, %v3075_v47  ;;  %v4026_v18 = vpack.c.bf16 %v3179_v50, %v3074_v60  ;;  %4199 = vmatpush1.bf16.msra.mxu1 %v4069_v36  ;;  %v4084_v57 = vpack.c.bf16 %v3843_v3, %v3843_v3 }
 0x538   :  { %3067 = vrot.lane.b32.xlu1 %v9813_v55, %s7946_s25 }
 0x539   :  { %v3260_v23 = vpop.permute.xlu0 %3259  ;;  %4233 = vmatprep.subr.bf16.mxu0 %v4027_v52  ;;  %v4113_v51 = vsel %vm357_vm11, %v4084_v57, 0 }
 0x53a   :  { %4234 = vmatpush1.bf16.msra.mxu0 %v4026_v18  ;;  %v10007_v43 = vpop.permute.xlu1 %3368  ;;  %v3284_v38 = vsel %vm3279_vm0, %v9908_v25, %v3260_v23  ;;  %v3285_v27 = vsel %vm3279_vm0, %v3260_v23, %v9999_v24 }
 0x53b   :  { %3831 = vrot.lane.b32.xlu0 %v9768_v19, %s7947_s3 }
 0x53c   :  { %3172 = vrot.lane.b32.xlu1 %v9813_v55, %s7945_s6 }
 0x53d   :  { %v3367_v35 = vpop.permute.xlu0 %3366 }
 0x53e   :  { %v3393_v17 = vsel %vm3388_vm13, %v9917_v12, %v3367_v35  ;;  %v3394_v63 = vsel %vm3388_vm13, %v3367_v35, %v10007_v43  ;;  %v3818_v30 = vpop.permute.xlu1 %3817 }
 0x53f   :  { %3065 = vrot.lane.b32.xlu0 %v9791_v37, %s7946_s25  ;;  %v3844_v19 = vsel %vm3388_vm13, %v3816_v45, %v3818_v30  ;;  %v4042_v61 = vpack.c.bf16 %v3394_v63, %v3285_v27  ;;  %v4041_v4 = vpack.c.bf16 %v3393_v17, %v3284_v38 }
 0x540   :  { %3622 = vrot.lane.b32.xlu1 %v9791_v37, %s7949_s16  ;;  %v4085_v25 = vpack.c.bf16 %v3844_v19, %v3844_v19 }
 0x541   :  { %v3505_v41 = vpop.permute.xlu0 %3504  ;;  %4235 = vmatprep.subr.bf16.mxu0 %v4042_v61 }
 0x542   :  { %v3528_v12 = vsel %vm3069_vm12, %v9944_v28, %v3505_v41  ;;  %v10028_v48 = vpop.permute.xlu1 %3506  ;;  %4236 = vmatpush1.bf16.msra.mxu0 %v4041_v4  ;;  %7497 = vmatprep.subr.msk.bf16.mxu1 %vm357_vm11, %v4085_v25  ;;  %v3438_v28 = vld [vmem:[#allocation2 + $0x28] sm:$0xff]  ;;  %v3792_v4 = vld [vmem:[#allocation2 + $0x80] sm:$0xff] }
 0x543   :  { %3170 = vrot.lane.b32.xlu0 %v9791_v37, %s7945_s6  ;;  %v3529_v9 = vsel %vm3069_vm12, %v3505_v41, %v10028_v48  ;;  %4201 = vmatpush1.bf16.msra.mxu1 %v4113_v51  ;;  %v4056_v45 = vpack.c.bf16 %v3528_v12, %v3438_v28 }
 0x544   :  { %3727 = vrot.lane.b32.xlu1 %v9791_v37, %s7950_s24  ;;  %v4057_v49 = vpack.c.bf16 %v3529_v9, %v3439_v11 }
 0x545   :  { %v3609_v26 = vpop.permute.xlu0 %3608 }
 0x546   :  { %v10038_v44 = vpop.permute.xlu1 %3610  ;;  %7498 = vmatmul.mubr.msk.bf16.vlgmr.msra.gmra.mrb[36].mxu1 %vm2229_vm9, %v9925_v20  ;;  %4237 = vmatprep.subr.bf16.mxu0 %v4057_v49  ;;  %v3633_v8 = vsel %vm3628_vm1, %v9970_v16, %v3609_v26 }
 0x547   :  { %3275 = vrot.lane.b32.xlu0 %v9791_v37, %s7948_s26  ;;  %4238 = vmatpush1.bf16.msra.mxu0 %v4056_v45  ;;  %v3634_v5 = vsel %vm3628_vm1, %v3609_v26, %v10038_v44  ;;  %v3441_v26 = vld [vmem:[#allocation2 + $0x40] sm:$0xff]  ;;  %v3440_v45 = vld [vmem:[#allocation2 + $0x38] sm:$0xff] }
 0x548   :  { %3277 = vrot.lane.b32.xlu1 %v9813_v55, %s7948_s26  ;;  %4306 = vmatprep.mubr.bf16.mxu1 %v7934_v59 }
 0x549   :  { %v3714_v34 = vpop.permute.xlu0 %3713 }
 0x54a   :  { %v3737_v39 = vsel %vm62_vm15, %v9980_v54, %v3714_v34  ;;  %v10049_v14 = vpop.permute.xlu1 %3715 }
 0x54b   :  { %3382 = vrot.lane.b32.xlu0 %v9791_v37, %s7947_s3  ;;  %v3738_v2 = vsel %vm62_vm15, %v3714_v34, %v10049_v14  ;;  %v4071_v54 = vpack.c.bf16 %v3737_v39, %v3633_v8  ;;  %v10117_v34 = vld [vmem:[#allocation2] sm:$0xff] }
 0x54c   :  { %3384 = vrot.lane.b32.xlu1 %v9813_v55, %s7947_s3  ;;  %v4072_v36 = vpack.c.bf16 %v3738_v2, %v3634_v5 }
 0x54d   :  { %v3820_v60 = vpop.permute.xlu0 %3819 }
 0x54e   :  { %v3845_v47 = vsel %vm3388_vm13, %v3818_v30, %v3820_v60  ;;  %v10062_v50 = vpop.permute.xlu1 %3821  ;;  %4239 = vmatprep.subr.bf16.mxu0 %v4072_v36 }
 0x54f   :  { %3386 = vrot.lane.b32.xlu0 %v9974_v56, %s7947_s3  ;;  %v3846_v31 = vsel %vm3388_vm13, %v3820_v60, %v10062_v50  ;;  %4240 = vmatpush1.bf16.msra.mxu0 %v4071_v54  ;;  %v4086_v52 = vpack.c.bf16 %v3845_v47, %v3845_v47 }
 0x550   :  { %3833 = vrot.lane.b32.xlu1 %v9791_v37, %s7947_s3  ;;  %v4087_v16 = vpack.c.bf16 %v3846_v31, %v3846_v31 }
 0x551   :  { %v3054_v18 = vpop.permute.xlu0 %3053  ;;  %v4119_v23 = vsel %vm357_vm11, %v4086_v52, 0 }
 0x552   :  { %v10071_v3 = vpop.permute.xlu1 %3055  ;;  %7499 = vmatprep.subr.msk.bf16.mxu0 %vm357_vm11, %v4087_v16  ;;  %v3076_v27 = vsel %vm3069_vm12, %v9957_v42, %v3054_v18 }
 0x553   :  { %3520 = vrot.lane.b32.xlu0 %v9813_v55, %s7946_s25  ;;  %4242 = vmatpush1.bf16.msra.mxu0 %v4119_v23  ;;  %v3077_v38 = vsel %vm3069_vm12, %v3054_v18, %v10071_v3 }
 0x554   :  { %3626 = vrot.lane.b32.xlu1 %v9974_v56, %s7949_s16 }
 0x555   :  { %v3159_v35 = vpop.permute.xlu0 %3158 }
 0x556   :  { %v3181_v57 = vsel %vm3174_vm10, %v9964_v7, %v3159_v35  ;;  %v10080_v37 = vpop.permute.xlu1 %3160  ;;  %7500 = vmatmul.mubr.msk.bf16.vlgmr.msra.gmra.mrb[32].mxu0 %vm2229_vm9, %v9925_v20 }
 0x557   :  { %3624 = vrot.lane.b32.xlu0 %v9813_v55, %s7949_s16  ;;  %v3182_v17 = vsel %vm3174_vm10, %v3159_v35, %v10080_v37  ;;  %4347 = vmatprep.mubr.bf16.mxu0 %v7934_v59  ;;  %v4028_v30 = vpack.c.bf16 %v3181_v57, %v3076_v27 }
 0x558   :  { %3731 = vrot.lane.b32.xlu1 %v9974_v56, %s7950_s24  ;;  %v4029_v7 = vpack.c.bf16 %v3182_v17, %v3077_v38 }
 0x559   :  { %v3264_v63 = vpop.permute.xlu0 %3263 }
 0x55a   :  { %v10095_v19 = vpop.permute.xlu1 %3265  ;;  %4274 = vmatprep.subr.bf16.mxu1 %v4029_v7  ;;  %v3286_v51 = vsel %vm3279_vm0, %v9999_v24, %v3264_v63 }
 0x55b   :  { %3729 = vrot.lane.b32.xlu0 %v9813_v55, %s7950_s24  ;;  %4275 = vmatpush1.bf16.msra.mxu1 %v4028_v30  ;;  %v3287_v41 = vsel %vm3279_vm0, %v3264_v63, %v10095_v19 }
 0x55c   :  { %3835 = vrot.lane.b32.xlu1 %v9813_v55, %s7947_s3  ;;  %v4097_v55 = vld [vmem:[%s11535_s8] sm:$0xff]  ;;  %s7952_s8 = smov 32  }
 0x55d   :  { %v3371_v61 = vpop.permute.xlu0 %3370 }
 0x55e   :  { %v3395_v42 = vsel %vm3388_vm13, %v10007_v43, %v3371_v61  ;;  %v3373_v25 = vpop.permute.xlu1 %3372 }
 0x55f   :  { %3837 = vrot.lane.b32.xlu0 %v9974_v56, %s7947_s3  ;;  %v3396_v12 = vsel %vm3388_vm13, %v3371_v61, %v3373_v25  ;;  %v4043_v11 = vpack.c.bf16 %v3395_v42, %v3286_v51 }
 0x560   :  { %3839 = vrot.lane.b32.xlu1 %v3792_v4, %s7947_s3  ;;  %v4044_v9 = vpack.c.bf16 %v3396_v12, %v3287_v41 }
 0x561   :  { %v3509_v43 = vpop.permute.xlu0 %3508 }
 0x562   :  { %v3530_v56 = vsel %vm3069_vm12, %v10028_v48, %v3509_v43  ;;  %v3511_v49 = vpop.permute.xlu1 %3510  ;;  %4276 = vmatprep.subr.bf16.mxu1 %v4044_v9 }
 0x563   :  { %4100 = vperm.xlu0 %7780, %v4097_v55   ;;  %v3531_v28 = vsel %vm3069_vm12, %v3509_v43, %v3511_v49  ;;  %4277 = vmatpush1.bf16.msra.mxu1 %v4043_v11  ;;  %v4058_v5 = vpack.c.bf16 %v3530_v56, %v3440_v45 }
 0x564   :  { %v4059_v24 = vpack.c.bf16 %v3531_v28, %v3441_v26  ;;  %4568 = vrot.lane.b32.xlu1 %v10117_v34, %s7946_s25 }
 0x565   :  { %v3613_v39 = vpop.permute.xlu0 %3612 }
 0x566   :  { %v10121_v2 = vpop.permute.xlu1 %3059  ;;  %4278 = vmatprep.subr.bf16.mxu1 %v4059_v24  ;;  %v3635_v18 = vsel %vm3628_vm1, %v10038_v44, %v3613_v39  ;;  %v3443_v24 = vld [vmem:[#allocation2 + $0x50] sm:$0xff] }
 0x567   :  { %4279 = vmatpush1.bf16.msra.mxu1 %v4058_v5  ;;  %4672 = vrot.lane.b32.xlu0 %v10117_v34, %s7945_s6 }
 0x568   :  { %4776 = vrot.lane.b32.xlu1 %v10117_v34, %s7948_s26 }
 0x569   :  { %v3718_v48 = vpop.permute.xlu0 %3717 }
 0x56a   :  { %v10127_v8 = vpop.permute.xlu1 %3164  ;;  %v3739_v47 = vsel %vm62_vm15, %v10049_v14, %v3718_v48 }
 0x56b   :  { %4882 = vrot.lane.b32.xlu0 %v10117_v34, %s7947_s3  ;;  %v4073_v57 = vpack.c.bf16 %v3739_v47, %v3635_v18 }
 0x56d   :  { %v3824_v36 = vpop.permute.xlu0 %3823 }
 0x56e   :  { %v3615_v60 = vpop.permute.xlu1 %3614 }
 0x56f   :  { %v3636_v52 = vsel %vm3628_vm1, %v3613_v39, %v3615_v60  ;;  %v3442_v39 = vld [vmem:[#allocation2 + $0x48] sm:$0xff] }
 0x571   :  { %v3058_v54 = vpop.permute.xlu0 %3057 }
 0x572   :  { %v3720_v31 = vpop.permute.xlu1 %3719  ;;  %v3078_v38 = vsel %vm3069_vm12, %v10071_v3, %v3058_v54  ;;  %v3079_v17 = vsel %vm3069_vm12, %v3058_v54, %v10121_v2  ;;  %v3847_v3 = vsel %vm3388_vm13, %v10062_v50, %v3824_v36 }
 0x573   :  { %v3740_v16 = vsel %vm62_vm15, %v3718_v48, %v3720_v31  ;;  %v4088_v42 = vpack.c.bf16 %v3847_v3, %v3847_v3 }
 0x574   :  { %v4074_v23 = vpack.c.bf16 %v3740_v16, %v3636_v52 }
 0x575   :  { %v3163_v35 = vpop.permute.xlu0 %3162 }
 0x576   :  { %v3183_v14 = vsel %vm3174_vm10, %v10080_v37, %v3163_v35  ;;  %v3184_v27 = vsel %vm3174_vm10, %v3163_v35, %v10127_v8  ;;  %v10145_v7 = vpop.permute.xlu1 %3269  ;;  %4280 = vmatprep.subr.bf16.mxu1 %v4074_v23 }
 0x577   :  { %v4031_v63 = vpack.c.bf16 %v3184_v27, %v3079_v17  ;;  %v4030_v44 = vpack.c.bf16 %v3183_v14, %v3078_v38  ;;  %4281 = vmatpush1.bf16.msra.mxu1 %v4073_v57 }
 0x579   :  { %v3268_v30 = vpop.permute.xlu0 %3267  ;;  %4315 = vmatprep.subr.bf16.mxu0 %v4031_v63 }
 0x57a   :  { %4316 = vmatpush1.bf16.msra.mxu0 %v4030_v44  ;;  %v10149_v61 = vpop.permute.xlu1 %3376  ;;  %v3288_v37 = vsel %vm3279_vm0, %v10095_v19, %v3268_v30  ;;  %v3289_v12 = vsel %vm3279_vm0, %v3268_v30, %v10145_v7  ;;  %v4125_v19 = vsel %vm357_vm11, %v4088_v42, 0 }
 0x57d   :  { %v3375_v4 = vpop.permute.xlu0 %3374 }
 0x57e   :  { %v3397_v41 = vsel %vm3388_vm13, %v3373_v25, %v3375_v4  ;;  %v3398_v51 = vsel %vm3388_vm13, %v3375_v4, %v10149_v61  ;;  %v3826_v55 = vpop.permute.xlu1 %3825 }
 0x57f   :  { %v3848_v9 = vsel %vm3388_vm13, %v3824_v36, %v3826_v55  ;;  %v4046_v50 = vpack.c.bf16 %v3398_v51, %v3289_v12  ;;  %v4045_v43 = vpack.c.bf16 %v3397_v41, %v3288_v37 }
 0x580   :  { %v4089_v11 = vpack.c.bf16 %v3848_v9, %v3848_v9 }
 0x581   :  { %v3513_v56 = vpop.permute.xlu0 %3512  ;;  %4317 = vmatprep.subr.bf16.mxu0 %v4046_v50 }
 0x582   :  { %v3532_v28 = vsel %vm3069_vm12, %v3511_v49, %v3513_v56  ;;  %v10160_v26 = vpop.permute.xlu1 %3514  ;;  %4318 = vmatpush1.bf16.msra.mxu0 %v4045_v43  ;;  %7501 = vmatprep.subr.msk.bf16.mxu1 %vm357_vm11, %v4089_v11 }
 0x583   :  { %v3533_v25 = vsel %vm3069_vm12, %v3513_v56, %v10160_v26  ;;  %4283 = vmatpush1.bf16.msra.mxu1 %v4125_v19  ;;  %v4060_v48 = vpack.c.bf16 %v3532_v28, %v3442_v39 }
 0x584   :  { %v4061_v45 = vpack.c.bf16 %v3533_v25, %v3443_v24 }
 0x585   :  { %v3617_v5 = vpop.permute.xlu0 %3616 }
 0x586   :  { %v10166_v36 = vpop.permute.xlu1 %3618  ;;  %7502 = vmatmul.mubr.msk.bf16.vlgmr.msra.gmra.mrb[40].mxu1 %vm2229_vm9, %v9925_v20  ;;  %4319 = vmatprep.subr.bf16.mxu0 %v4061_v45  ;;  %v3637_v18 = vsel %vm3628_vm1, %v3615_v60, %v3617_v5 }
 0x587   :  { %4320 = vmatpush1.bf16.msra.mxu0 %v4060_v48  ;;  %4388 = vmatprep.mubr.bf16.mxu1 %v7934_v59  ;;  %v3638_v52 = vsel %vm3628_vm1, %v3617_v5, %v10166_v36  ;;  %v3445_v48 = vld [vmem:[#allocation2 + $0x60] sm:$0xff] }
 0x589   :  { %v3722_v49 = vpop.permute.xlu0 %3721 }
 0x58a   :  { %v3741_v54 = vsel %vm62_vm15, %v3720_v31, %v3722_v49  ;;  %v10172_v47 = vpop.permute.xlu1 %3723 }
 0x58b   :  { %v3742_v16 = vsel %vm62_vm15, %v3722_v49, %v10172_v47  ;;  %v4075_v57 = vpack.c.bf16 %v3741_v54, %v3637_v18 }
 0x58c   :  { %v4076_v23 = vpack.c.bf16 %v3742_v16, %v3638_v52 }
 0x58d   :  { %v3828_v35 = vpop.permute.xlu0 %3827 }
 0x58e   :  { %v3849_v38 = vsel %vm3388_vm13, %v3826_v55, %v3828_v35  ;;  %v10180_v17 = vpop.permute.xlu1 %3829  ;;  %4321 = vmatprep.subr.bf16.mxu0 %v4076_v23 }
 0x58f   :  { %v3850_v31 = vsel %vm3388_vm13, %v3828_v35, %v10180_v17  ;;  %4322 = vmatpush1.bf16.msra.mxu0 %v4075_v57  ;;  %v4090_v14 = vpack.c.bf16 %v3849_v38, %v3849_v38 }
 0x590   :  { %v4091_v27 = vpack.c.bf16 %v3850_v31, %v3850_v31 }
 0x591   :  { %v3062_v63 = vpop.permute.xlu0 %3061  ;;  %v4131_v44 = vsel %vm357_vm11, %v4090_v14, 0 }
 0x592   :  { %v3064_v30 = vpop.permute.xlu1 %3063  ;;  %7503 = vmatprep.subr.msk.bf16.mxu0 %vm357_vm11, %v4091_v27  ;;  %v3080_v41 = vsel %vm3069_vm12, %v10121_v2, %v3062_v63 }
 0x593   :  { %4324 = vmatpush1.bf16.msra.mxu0 %v4131_v44  ;;  %v3081_v42 = vsel %vm3069_vm12, %v3062_v63, %v3064_v30 }
 0x595   :  { %v3167_v60 = vpop.permute.xlu0 %3166 }
 0x596   :  { %v3185_v3 = vsel %vm3174_vm10, %v10127_v8, %v3167_v60  ;;  %v3169_v4 = vpop.permute.xlu1 %3168  ;;  %7504 = vmatmul.mubr.msk.bf16.vlgmr.msra.gmra.mrb[36].mxu0 %vm2229_vm9, %v9925_v20 }
 0x597   :  { %v3186_v37 = vsel %vm3174_vm10, %v3167_v60, %v3169_v4  ;;  %4429 = vmatprep.mubr.bf16.mxu0 %v7934_v59  ;;  %v4032_v55 = vpack.c.bf16 %v3185_v3, %v3080_v41 }
 0x598   :  { %v4033_v12 = vpack.c.bf16 %v3186_v37, %v3081_v42 }
 0x599   :  { %v3272_v51 = vpop.permute.xlu0 %3271 }
 0x59a   :  { %v3274_v9 = vpop.permute.xlu1 %3273  ;;  %4356 = vmatprep.subr.bf16.mxu1 %v4033_v12  ;;  %v3290_v28 = vsel %vm3279_vm0, %v10145_v7, %v3272_v51  ;;  %v3444_v7 = vld [vmem:[#allocation2 + $0x58] sm:$0xff] }
 0x59b   :  { %4357 = vmatpush1.bf16.msra.mxu1 %v4032_v55  ;;  %v3291_v11 = vsel %vm3279_vm0, %v3272_v51, %v3274_v9 }
 0x59d   :  { %v3379_v8 = vpop.permute.xlu0 %3378 }
 0x59e   :  { %v3399_v50 = vsel %vm3388_vm13, %v10149_v61, %v3379_v8  ;;  %v3381_v43 = vpop.permute.xlu1 %3380 }
 0x59f   :  { %v3400_v56 = vsel %vm3388_vm13, %v3379_v8, %v3381_v43  ;;  %v4047_v25 = vpack.c.bf16 %v3399_v50, %v3290_v28 }
 0x5a0   :  { %v4048_v19 = vpack.c.bf16 %v3400_v56, %v3291_v11 }
 0x5a1   :  { %v3517_v2 = vpop.permute.xlu0 %3516 }
 0x5a2   :  { %v10201_v24 = vpop.permute.xlu1 %3522  ;;  %4358 = vmatprep.subr.bf16.mxu1 %v4048_v19  ;;  %v3534_v61 = vsel %vm3069_vm12, %v10160_v26, %v3517_v2 }
 0x5a3   :  { %3567 = vst.msk [vmem:[#allocation3 + $0x2c8] sm:$0xff] %vm62_vm15, %v10201_v24  ;;  %4359 = vmatpush1.bf16.msra.mxu1 %v4047_v25  ;;  %v4062_v52 = vpack.c.bf16 %v3534_v61, %v3444_v7  ;;  %v3447_v7 = vld [vmem:[#allocation2 + $0x70] sm:$0xff] }
 0x5a5   :  { %v3621_v45 = vpop.permute.xlu0 %3620 }
 0x5a6   :  { %v3519_v39 = vpop.permute.xlu1 %3518 }
 0x5a7   :  { %v3535_v5 = vsel %vm3069_vm12, %v3517_v2, %v3519_v39 }
 0x5a8   :  { %v4063_v49 = vpack.c.bf16 %v3535_v5, %v3445_v48 }
 0x5a9   :  { %v3726_v54 = vpop.permute.xlu0 %3725 }
 0x5aa   :  { %v3068_v16 = vpop.permute.xlu1 %3067  ;;  %4360 = vmatprep.subr.bf16.mxu1 %v4063_v49  ;;  %v3743_v26 = vsel %vm62_vm15, %v10172_v47, %v3726_v54  ;;  %v3639_v47 = vsel %vm3628_vm1, %v10166_v36, %v3621_v45 }
 0x5ab   :  { %3113 = vst.msk [vmem:[#allocation3 + $0x70] sm:$0xff] %vm62_vm15, %v3068_v16  ;;  %4361 = vmatpush1.bf16.msra.mxu1 %v4062_v52  ;;  %v4077_v12 = vpack.c.bf16 %v3743_v26, %v3639_v47  ;;  %v3446_v52 = vld [vmem:[#allocation2 + $0x68] sm:$0xff]  ;;  %v3976_v47 = vld [vmem:[#allocation3 + $0x2c8] sm:$0xff] }
 0x5ad   :  { %v3832_v18 = vpop.permute.xlu0 %3831 }
 0x5ae   :  { %v3173_v23 = vpop.permute.xlu1 %3172  ;;  %v3851_v50 = vsel %vm3388_vm13, %v10180_v17, %v3832_v18 }
 0x5af   :  { %3218 = vst.msk [vmem:[#allocation3 + $0xe8] sm:$0xff] %vm62_vm15, %v3173_v23  ;;  %v4092_v61 = vpack.c.bf16 %v3851_v50, %v3851_v50 }
 0x5b1   :  { %v3066_v35 = vpop.permute.xlu0 %3065 }
 0x5b2   :  { %v10210_v57 = vpop.permute.xlu1 %3622  ;;  %v3082_v31 = vsel %vm3069_vm12, %v3064_v30, %v3066_v35  ;;  %v3083_v14 = vsel %vm3069_vm12, %v3066_v35, %v3068_v16  ;;  %v3901_v35 = vld [vmem:[#allocation3 + $0x70] sm:$0xff] }
 0x5b3   :  { %v3640_v60 = vsel %vm3628_vm1, %v3621_v45, %v10210_v57 }
 0x5b5   :  { %v3171_v38 = vpop.permute.xlu0 %3170 }
 0x5b6   :  { %v3187_v27 = vsel %vm3174_vm10, %v3169_v4, %v3171_v38  ;;  %v3188_v63 = vsel %vm3174_vm10, %v3171_v38, %v3173_v23  ;;  %v10218_v44 = vpop.permute.xlu1 %3727  ;;  %v3916_v16 = vld [vmem:[#allocation3 + $0xe8] sm:$0xff] }
 0x5b7   :  { %v3744_v3 = vsel %vm62_vm15, %v3726_v54, %v10218_v44  ;;  %v4035_v42 = vpack.c.bf16 %v3188_v63, %v3083_v14  ;;  %v4034_v37 = vpack.c.bf16 %v3187_v27, %v3082_v31  ;;  %v4137_v54 = vsel %vm357_vm11, %v4092_v61, 0 }
 0x5b8   :  { %v4078_v30 = vpack.c.bf16 %v3744_v3, %v3640_v60  ;;  %v4036_v26 = vpack.c.bf16 %v3916_v16, %v3901_v35 }
 0x5b9   :  { %v3276_v41 = vpop.permute.xlu0 %3275  ;;  %4397 = vmatprep.subr.bf16.mxu0 %v4035_v42 }
 0x5ba   :  { %v3278_v4 = vpop.permute.xlu1 %3277  ;;  %4398 = vmatpush1.bf16.msra.mxu0 %v4034_v37  ;;  %4362 = vmatprep.subr.bf16.mxu1 %v4078_v30  ;;  %v3292_v56 = vsel %vm3279_vm0, %v3274_v9, %v3276_v41 }
 0x5bb   :  { %3323 = vst.msk [vmem:[#allocation3 + $0x160] sm:$0xff] %vm62_vm15, %v3278_v4  ;;  %4363 = vmatpush1.bf16.msra.mxu1 %v4077_v12  ;;  %v3293_v11 = vsel %vm3279_vm0, %v3276_v41, %v3278_v4  ;;  %v3961_v4 = vld [vmem:[#allocation3 + $0x250] sm:$0xff] }
 0x5bd   :  { %v3383_v51 = vpop.permute.xlu0 %3382 }
 0x5be   :  { %v3401_v55 = vsel %vm3388_vm13, %v3381_v43, %v3383_v51  ;;  %v3385_v8 = vpop.permute.xlu1 %3384 }
 0x5bf   :  { %v3402_v36 = vsel %vm3388_vm13, %v3383_v51, %v3385_v8  ;;  %v4049_v2 = vpack.c.bf16 %v3401_v55, %v3292_v56  ;;  %v4066_v55 = vpack.c.bf16 %v3976_v47, %v3961_v4 }
 0x5c0   :  { %v4050_v28 = vpack.c.bf16 %v3402_v36, %v3293_v11 }
 0x5c1   :  { %v3387_v19 = vpop.permute.xlu0 %3386 }
 0x5c2   :  { %v3403_v25 = vsel %vm3388_vm13, %v3385_v8, %v3387_v19  ;;  %v3834_v45 = vpop.permute.xlu1 %3833  ;;  %4399 = vmatprep.subr.bf16.mxu0 %v4050_v28  ;;  %v3931_v31 = vld [vmem:[#allocation3 + $0x160] sm:$0xff] }
 0x5c3   :  { %3433 = vst.msk [vmem:[#allocation3 + $0x1d8] sm:$0xff] %vm62_vm15, %v3403_v25  ;;  %v3852_v43 = vsel %vm3388_vm13, %v3832_v18, %v3834_v45  ;;  %4400 = vmatpush1.bf16.msra.mxu0 %v4049_v2 }
 0x5c4   :  { %v4093_v17 = vpack.c.bf16 %v3852_v43, %v3852_v43 }
 0x5c5   :  { %v3521_v5 = vpop.permute.xlu0 %3520 }
 0x5c6   :  { %v3536_v48 = vsel %vm3069_vm12, %v3519_v39, %v3521_v5  ;;  %v3537_v9 = vsel %vm3069_vm12, %v3521_v5, %v10201_v24  ;;  %v3627_v49 = vpop.permute.xlu1 %3626  ;;  %7505 = vmatprep.subr.msk.bf16.mxu1 %vm357_vm11, %v4093_v17 }
 0x5c7   :  { %3672 = vst.msk [vmem:[#allocation3 + $0x340] sm:$0xff] %vm62_vm15, %v3627_v49  ;;  %v4065_v23 = vpack.c.bf16 %v3537_v9, %v3447_v7  ;;  %4365 = vmatpush1.bf16.msra.mxu1 %v4137_v54  ;;  %v4064_v18 = vpack.c.bf16 %v3536_v48, %v3446_v52 }
 0x5c8   :  { %7696 = vmatprep.subr.bf16.mxu1 %v10117_v34 }
 0x5c9   :  { %v3625_v39 = vpop.permute.xlu0 %3624  ;;  %4401 = vmatprep.subr.bf16.mxu0 %v4065_v23 }
 0x5ca   :  { %v3732_v24 = vpop.permute.xlu1 %3731  ;;  %4402 = vmatpush1.bf16.msra.mxu0 %v4064_v18  ;;  %7506 = vmatmul.mubr.msk.bf16.vlgmr.msra.gmra.mrb[44].mxu1 %vm2229_vm9, %v9925_v20  ;;  %v3946_v38 = vld [vmem:[#allocation3 + $0x1d8] sm:$0xff]  ;;  %v3641_v63 = vsel %vm3628_vm1, %v10210_v57, %v3625_v39  ;;  %v3642_v3 = vsel %vm3628_vm1, %v3625_v39, %v3627_v49 }
 0x5cb   :  { %3776 = vst.msk [vmem:[#allocation3 + $0x3b8] sm:$0xff] %vm62_vm15, %v3732_v24  ;;  %7697 = vmatpush3.bf16.msra.mxu1 %v4036_v26  ;;  %7706 = vmatprep.mubr.msk.bf16.mxu1 %vm7936_vm14, %v10117_v34  ;;  %v4051_v27 = vpack.c.bf16 %v3946_v38, %v3931_v31 }
 0x5cc   :  { %7698 = vmatprep.subr.bf16.mxu1 %v10117_v34 }
 0x5cd   :  { %v3730_v14 = vpop.permute.xlu0 %3729 }
 0x5ce   :  { %v3745_v60 = vsel %vm62_vm15, %v10218_v44, %v3730_v14  ;;  %v3746_v42 = vsel %vm62_vm15, %v3730_v14, %v3732_v24  ;;  %v3836_v37 = vpop.permute.xlu1 %3835  ;;  %v3991_v56 = vld [vmem:[#allocation3 + $0x340] sm:$0xff] }
 0x5cf   :  { %v3853_v30 = vsel %vm3388_vm13, %v3834_v45, %v3836_v37  ;;  %v4080_v41 = vpack.c.bf16 %v3746_v42, %v3642_v3  ;;  %v4079_v12 = vpack.c.bf16 %v3745_v60, %v3641_v63  ;;  %7699 = vmatpush3.bf16.msra.mxu1 %v4051_v27 }
 0x5d0   :  { %7700 = vmatprep.subr.bf16.mxu1 %v10117_v34  ;;  %v4094_v57 = vpack.c.bf16 %v3853_v30, %v3853_v30 }
 0x5d1   :  { %v3838_v51 = vpop.permute.xlu0 %3837  ;;  %4403 = vmatprep.subr.bf16.mxu0 %v4080_v41 }
 0x5d2   :  { %v3854_v44 = vsel %vm3388_vm13, %v3836_v37, %v3838_v51  ;;  %v3840_v8 = vpop.permute.xlu1 %3839  ;;  %4404 = vmatpush1.bf16.msra.mxu0 %v4079_v12  ;;  %v4006_v50 = vld [vmem:[#allocation3 + $0x3b8] sm:$0xff]  ;;  %v4143_v28 = vsel %vm357_vm11, %v4094_v57, 0 }
 0x5d3   :  { %v3855_v11 = vsel %vm3388_vm13, %v3838_v51, %v3840_v8  ;;  %v4095_v36 = vpack.c.bf16 %v3854_v44, %v3854_v44  ;;  %7701 = vmatpush3.bf16.msra.mxu1 %v4066_v55  ;;  %v4081_v19 = vpack.c.bf16 %v4006_v50, %v3991_v56 }
 0x5d4   :  { %3885 = vst.msk [vmem:[#allocation3 + $0x430] sm:$0xff] %vm62_vm15, %v3855_v11  ;;  %7702 = vmatprep.subr.bf16.mxu1 %v10117_v34 }
 0x5d5   :  { %7507 = vmatprep.subr.msk.bf16.mxu0 %vm357_vm11, %v4095_v36 }
 0x5d6   :  { %4406 = vmatpush1.bf16.msra.mxu0 %v4143_v28  ;;  %v4569_v44 = vpop.permute.xlu1 %4568 }
 0x5d7   :  { %7703 = vmatpush3.bf16.msra.mxu1 %v4081_v19 }
 0x5d8   :  { %7704 = vmatprep.subr.bf16.mxu1 %v10117_v34 }
 0x5d9   :  { %7508 = vmatmul.mubr.msk.bf16.vlgmr.msra.gmra.mrb[40].mxu0 %vm2229_vm9, %v9925_v20 }
 0x5da   :  { %5707 = vmatprep.mubr.bf16.mxu0 %v7934_v59 }
 0x5db   :  { %v4021_v2 = vld [vmem:[#allocation3 + $0x430] sm:$0xff] }
 0x5dc   :  { %v4096_v25 = vpack.c.bf16 %v4021_v2, %v4021_v2 }
 0x5de   :  { %v4149_v45 = vsel %vm357_vm11, %v4096_v25, 0 }
 0x5df   :  { %7705 = vmatpush3.bf16.msra.mxu1 %v4149_v45 }
 0x5e2   :  { %7707 = vmatmul.mubr.msk.bf16.vlgmr.msra.gmra.mrb[48].mxu1 %vm2229_vm9, %v9925_v20  ;;  %v10271_v61 = vpop.permute.xlu0 %4100 }
 0x5e3   :  { %5748 = vmatprep.mubr.bf16.mxu1 %v7934_v59 }
 0x5e6   :  { %v4673_v8 = vpop.permute.xlu0 %4672 }
 0x5ea   :  { %v4883_v50 = vpop.permute.xlu0 %4882 }
 0x5f4   :  { %v4185_v43 = vpop.f32.mrb[28].mxu0 }
 0x5f5   :  { %v4186_v34 = vadd.f32 %v4185_v43, %v10271_v61  ;;  %v4187_v17 = vpop.f32.mrb[29].mxu0 }
 0x5f6   :  { %v4188_v5 = vadd.f32 %v4187_v17, %v10271_v61  ;;  %v4189_v48 = vpop.f32.mrb[30].mxu0 }
 0x5f7   :  { %v4478_v9 = vmax.f32 %v4186_v34, 0.0  ;;  %v4190_v49 = vpop.f32.mrb[31].mxu0 }
 0x5f8   :  { %v4479_v7 = vmax.f32 %v4188_v5, 0.0 }
 0x5f9   :  { %4493 = vst [vmem:[%s11544_s17] sm:$0xff] %v4478_v9  ;;  %v10279_v20 = vmul.f32 %v4478_v9, %v9532_v29 }
 0x5fa   :  { %4494 = vst [vmem:[%s11544_s17 + $0x8] sm:$0xff] %v4479_v7  ;;  %v10285_v54 = vmul.f32 %v4479_v7, %v9536_v13 }
 0x5fb   :  { %4523 = vst [vmem:[#allocation2 + $0x8] sm:$0xff] %v10279_v20  ;;  %5123 = vrot.lane.b32.xlu0 %v10279_v20, %s7949_s16  ;;  %4570 = vrot.lane.b32.xlu1 %v10279_v20, %s7946_s25 }
 0x5fc   :  { %4524 = vst [vmem:[#allocation2 + $0x10] sm:$0xff] %v10285_v54 }
 0x5ff   :  { %5333 = vrot.lane.b32.xlu0 %v10279_v20, %s7947_s3  ;;  %4674 = vrot.lane.b32.xlu1 %v10279_v20, %s7945_s6 }
 0x603   :  { %4572 = vrot.lane.b32.xlu0 %v10285_v54, %s7946_s25  ;;  %4778 = vrot.lane.b32.xlu1 %v10279_v20, %s7948_s26 }
 0x607   :  { %4676 = vrot.lane.b32.xlu0 %v10285_v54, %s7945_s6  ;;  %4884 = vrot.lane.b32.xlu1 %v10279_v20, %s7947_s3 }
 0x60b   :  { %4780 = vrot.lane.b32.xlu0 %v10285_v54, %s7948_s26  ;;  %5019 = vrot.lane.b32.xlu1 %v10279_v20, %s7946_s25 }
 0x60f   :  { %4886 = vrot.lane.b32.xlu0 %v10285_v54, %s7947_s3  ;;  %5227 = vrot.lane.b32.xlu1 %v10279_v20, %s7950_s24 }
 0x613   :  { %5125 = vrot.lane.b32.xlu0 %v10285_v54, %s7949_s16  ;;  %5021 = vrot.lane.b32.xlu1 %v10285_v54, %s7946_s25 }
 0x617   :  { %5229 = vrot.lane.b32.xlu0 %v10285_v54, %s7950_s24  ;;  %5335 = vrot.lane.b32.xlu1 %v10285_v54, %s7947_s3 }
 0x619   :  { %v4226_v29 = vpop.f32.mrb[36].mxu1 }
 0x61a   :  { %v4227_v13 = vadd.f32 %v4226_v29, %v10271_v61  ;;  %v4228_v52 = vpop.f32.mrb[37].mxu1 }
 0x61b   :  { %v4229_v16 = vadd.f32 %v4228_v52, %v10271_v61  ;;  %v4230_v23 = vpop.f32.mrb[38].mxu1 }
 0x61c   :  { %v4480_v18 = vmax.f32 %v4227_v13, 0.0  ;;  %v4231_v35 = vpop.f32.mrb[39].mxu1 }
 0x61d   :  { %v4481_v39 = vmax.f32 %v4229_v16, 0.0 }
 0x61e   :  { %4495 = vst [vmem:[%s11544_s17 + $0x10] sm:$0xff] %v4480_v18  ;;  %v10327_v26 = vmul.f32 %v4480_v18, %v9454_v10 }
 0x61f   :  { %4496 = vst [vmem:[%s11544_s17 + $0x18] sm:$0xff] %v4481_v39  ;;  %v10333_v24 = vmul.f32 %v4481_v39, %v9639_v32 }
 0x620   :  { %4525 = vst [vmem:[#allocation2 + $0x18] sm:$0xff] %v10327_v26  ;;  %5023 = vrot.lane.b32.xlu0 %v10327_v26, %s7946_s25  ;;  %5127 = vrot.lane.b32.xlu1 %v10327_v26, %s7949_s16 }
 0x621   :  { %4526 = vst [vmem:[#allocation2 + $0x20] sm:$0xff] %v10333_v24 }
 0x624   :  { %5337 = vrot.lane.b32.xlu0 %v10327_v26, %s7947_s3  ;;  %5231 = vrot.lane.b32.xlu1 %v10327_v26, %s7950_s24 }
 0x628   :  { %4576 = vrot.lane.b32.xlu0 %v10333_v24, %s7946_s25  ;;  %4574 = vrot.lane.b32.xlu1 %v10327_v26, %s7946_s25 }
 0x629   :  { %v4267_v10 = vpop.f32.mrb[32].mxu0 }
 0x62a   :  { %v4268_v32 = vadd.f32 %v4267_v10, %v10271_v61  ;;  %v4269_v38 = vpop.f32.mrb[33].mxu0 }
 0x62b   :  { %v4270_v31 = vadd.f32 %v4269_v38, %v10271_v61  ;;  %v4271_v14 = vpop.f32.mrb[34].mxu0 }
 0x62c   :  { %v4482_v27 = vmax.f32 %v4268_v32, 0.0  ;;  %4680 = vrot.lane.b32.xlu0 %v10333_v24, %s7945_s6  ;;  %4678 = vrot.lane.b32.xlu1 %v10327_v26, %s7945_s6  ;;  %v4272_v63 = vpop.f32.mrb[35].mxu0 }
 0x62d   :  { %v4483_v60 = vmax.f32 %v4270_v31, 0.0 }
 0x62e   :  { %4497 = vst [vmem:[%s11544_s17 + $0x20] sm:$0xff] %v4482_v27  ;;  %v4512_v3 = vmul.f32 %v4482_v27, %v9567_v58 }
 0x62f   :  { %4498 = vst [vmem:[%s11544_s17 + $0x28] sm:$0xff] %v4483_v60  ;;  %v10363_v42 = vmul.f32 %v4483_v60, %v9581_v53 }
 0x630   :  { %4527 = vst [vmem:[#allocation2 + $0x28] sm:$0xff] %v4512_v3  ;;  %4784 = vrot.lane.b32.xlu0 %v10333_v24, %s7948_s26  ;;  %4782 = vrot.lane.b32.xlu1 %v10327_v26, %s7948_s26 }
 0x631   :  { %4528 = vst [vmem:[#allocation2 + $0x30] sm:$0xff] %v10363_v42 }
 0x634   :  { %4890 = vrot.lane.b32.xlu0 %v10333_v24, %s7947_s3  ;;  %4888 = vrot.lane.b32.xlu1 %v10327_v26, %s7947_s3 }
 0x637   :  { %v10374_v58 = vld [vmem:[#allocation2 + $0x28] sm:$0xff] }
 0x638   :  { %5027 = vrot.lane.b32.xlu0 %v4512_v3, %s7946_s25  ;;  %4578 = vrot.lane.b32.xlu1 %v4512_v3, %s7946_s25 }
 0x63c   :  { %5131 = vrot.lane.b32.xlu0 %v4512_v3, %s7949_s16  ;;  %4682 = vrot.lane.b32.xlu1 %v4512_v3, %s7945_s6 }
 0x640   :  { %5235 = vrot.lane.b32.xlu0 %v4512_v3, %s7950_s24  ;;  %4786 = vrot.lane.b32.xlu1 %v4512_v3, %s7948_s26 }
 0x644   :  { %5341 = vrot.lane.b32.xlu0 %v4512_v3, %s7947_s3  ;;  %4892 = vrot.lane.b32.xlu1 %v4512_v3, %s7947_s3 }
 0x648   :  { %4580 = vrot.lane.b32.xlu0 %v10363_v42, %s7946_s25  ;;  %5025 = vrot.lane.b32.xlu1 %v10333_v24, %s7946_s25 }
 0x64c   :  { %4684 = vrot.lane.b32.xlu0 %v10363_v42, %s7945_s6  ;;  %5129 = vrot.lane.b32.xlu1 %v10333_v24, %s7949_s16 }
 0x650   :  { %4788 = vrot.lane.b32.xlu0 %v10363_v42, %s7948_s26  ;;  %5233 = vrot.lane.b32.xlu1 %v10333_v24, %s7950_s24 }
 0x654   :  { %4894 = vrot.lane.b32.xlu0 %v10363_v42, %s7947_s3  ;;  %5339 = vrot.lane.b32.xlu1 %v10333_v24, %s7947_s3 }
 0x658   :  { %5029 = vrot.lane.b32.xlu1 %v10363_v42, %s7946_s25 }
 0x659   :  { %v4308_v53 = vpop.f32.mrb[40].mxu1 }
 0x65a   :  { %v4309_v37 = vadd.f32 %v4308_v53, %v10271_v61  ;;  %v4310_v47 = vpop.f32.mrb[41].mxu1 }
 0x65b   :  { %v4311_v30 = vadd.f32 %v4310_v47, %v10271_v61  ;;  %v4312_v41 = vpop.f32.mrb[42].mxu1 }
 0x65c   :  { %v4484_v12 = vmax.f32 %v4309_v37, 0.0  ;;  %v4313_v4 = vpop.f32.mrb[43].mxu1  ;;  %5133 = vrot.lane.b32.xlu1 %v10363_v42, %s7949_s16 }
 0x65d   :  { %v4485_v51 = vmax.f32 %v4311_v30, 0.0 }
 0x65e   :  { %4499 = vst [vmem:[%s11544_s17 + $0x30] sm:$0xff] %v4484_v12  ;;  %v4514_v57 = vmul.f32 %v4484_v12, %v9602_v0  ;;  %v4777_v0 = vpop.permute.xlu1 %4776 }
 0x65f   :  { %4500 = vst [vmem:[%s11544_s17 + $0x38] sm:$0xff] %v4485_v51  ;;  %v10414_v55 = vmul.f32 %v4485_v51, %v9674_v40 }
 0x660   :  { %4529 = vst [vmem:[#allocation2 + $0x38] sm:$0xff] %v4514_v57  ;;  %5031 = vrot.lane.b32.xlu0 %v4514_v57, %s7946_s25  ;;  %5237 = vrot.lane.b32.xlu1 %v10363_v42, %s7950_s24 }
 0x661   :  { %4530 = vst [vmem:[#allocation2 + $0x40] sm:$0xff] %v10414_v55 }
 0x664   :  { %5135 = vrot.lane.b32.xlu0 %v4514_v57, %s7949_s16  ;;  %5343 = vrot.lane.b32.xlu1 %v10363_v42, %s7947_s3 }
 0x667   :  { %v10423_v11 = vld [vmem:[#allocation2 + $0x38] sm:$0xff] }
 0x668   :  { %5239 = vrot.lane.b32.xlu0 %v4514_v57, %s7950_s24  ;;  %4582 = vrot.lane.b32.xlu1 %v4514_v57, %s7946_s25  ;;  %v10427_v40 = vld [vmem:[#allocation2 + $0x40] sm:$0xff] }
 0x669   :  { %v4349_v36 = vpop.f32.mrb[36].mxu0 }
 0x66a   :  { %v4350_v56 = vadd.f32 %v4349_v36, %v10271_v61  ;;  %v4351_v28 = vpop.f32.mrb[37].mxu0 }
 0x66b   :  { %v4352_v19 = vadd.f32 %v4351_v28, %v10271_v61  ;;  %v4353_v2 = vpop.f32.mrb[38].mxu0 }
 0x66c   :  { %v4486_v25 = vmax.f32 %v4350_v56, 0.0  ;;  %5345 = vrot.lane.b32.xlu0 %v4514_v57, %s7947_s3  ;;  %4686 = vrot.lane.b32.xlu1 %v4514_v57, %s7945_s6  ;;  %v4354_v45 = vpop.f32.mrb[39].mxu0 }
 0x66d   :  { %v4487_v43 = vmax.f32 %v4352_v19, 0.0  ;;  %v4571_v34 = vpop.permute.xlu1 %4570  ;;  %v5124_v17 = vpop.permute.xlu0 %5123 }
 0x66e   :  { %4501 = vst [vmem:[%s11544_s17 + $0x40] sm:$0xff] %v4486_v25  ;;  %v4516_v5 = vmul.f32 %v4486_v25, %v9700_v6  ;;  %v4598_v48 = vsel %vm3069_vm12, %v4569_v44, %v4571_v34 }
 0x66f   :  { %4502 = vst [vmem:[%s11544_s17 + $0x48] sm:$0xff] %v4487_v43  ;;  %v10442_v9 = vmul.f32 %v4487_v43, %v9714_v33  ;;  %4627 = vst [vmem:[#allocation3] sm:$0xff] %v4598_v48 }
 0x670   :  { %4531 = vst [vmem:[#allocation2 + $0x48] sm:$0xff] %v4516_v5  ;;  %4584 = vrot.lane.b32.xlu0 %v10414_v55, %s7946_s25  ;;  %4790 = vrot.lane.b32.xlu1 %v4514_v57, %s7948_s26 }
 0x671   :  { %4532 = vst [vmem:[#allocation2 + $0x50] sm:$0xff] %v10442_v9  ;;  %v4675_v49 = vpop.permute.xlu1 %4674  ;;  %v5334_v6 = vpop.permute.xlu0 %5333 }
 0x672   :  { %v4702_v7 = vsel %vm3174_vm10, %v4673_v8, %v4675_v49 }
 0x673   :  { %4731 = vst [vmem:[#allocation3 + $0x78] sm:$0xff] %v4702_v7  ;;  %v5546_v38 = vpack.c.bf16 %v4702_v7, %v4598_v48 }
 0x674   :  { %4688 = vrot.lane.b32.xlu0 %v10414_v55, %s7945_s6  ;;  %4896 = vrot.lane.b32.xlu1 %v4514_v57, %s7947_s3 }
 0x675   :  { %v4779_v33 = vpop.permute.xlu1 %4778  ;;  %v10452_v29 = vpop.permute.xlu0 %4572 }
 0x676   :  { %v4806_v13 = vsel %vm3279_vm0, %v4777_v0, %v4779_v33  ;;  %v4599_v52 = vsel %vm3069_vm12, %v4571_v34, %v10452_v29 }
 0x677   :  { %4628 = vst [vmem:[#allocation3 + $0x8] sm:$0xff] %v4599_v52  ;;  %v10457_v16 = vld [vmem:[#allocation2 + $0x48] sm:$0xff] }
 0x678   :  { %4792 = vrot.lane.b32.xlu0 %v10414_v55, %s7948_s26  ;;  %4586 = vrot.lane.b32.xlu1 %v4516_v5, %s7946_s25  ;;  %v10462_v23 = vld [vmem:[#allocation2 + $0x50] sm:$0xff] }
 0x679   :  { %v4885_v18 = vpop.permute.xlu1 %4884  ;;  %v10464_v35 = vpop.permute.xlu0 %4676 }
 0x67a   :  { %v4914_v39 = vsel %vm3388_vm13, %v4883_v50, %v4885_v18  ;;  %v4703_v10 = vsel %vm3174_vm10, %v4675_v49, %v10464_v35 }
 0x67b   :  { %4732 = vst [vmem:[#allocation3 + $0x80] sm:$0xff] %v4703_v10  ;;  %v5547_v32 = vpack.c.bf16 %v4703_v10, %v4599_v52  ;;  %v5561_v37 = vpack.c.bf16 %v4914_v39, %v4806_v13  ;;  %v10540_v10 = vld [vmem:[%s11536_s9] sm:$0xf] }
 0x67c   :  { %4898 = vrot.lane.b32.xlu0 %v10414_v55, %s7947_s3  ;;  %4690 = vrot.lane.b32.xlu1 %v4516_v5, %s7945_s6 }
 0x67d   :  { %v5020_v31 = vpop.permute.xlu1 %5019  ;;  %v10472_v14 = vpop.permute.xlu0 %4780  ;;  %5675 = vmatprep.subr.bf16.mxu0 %v5547_v32 }
 0x67e   :  { %v4807_v27 = vsel %vm3279_vm0, %v4779_v33, %v10472_v14  ;;  %5676 = vmatpush1.bf16.msra.mxu0 %v5546_v38 }
 0x680   :  { %5035 = vrot.lane.b32.xlu0 %v4516_v5, %s7946_s25  ;;  %4794 = vrot.lane.b32.xlu1 %v4516_v5, %s7948_s26 }
 0x681   :  { %v5228_v63 = vpop.permute.xlu1 %5227  ;;  %v10478_v60 = vpop.permute.xlu0 %4886 }
 0x682   :  { %v4915_v3 = vsel %vm3388_vm13, %v4885_v18, %v10478_v60 }
 0x683   :  { %v5562_v53 = vpack.c.bf16 %v4915_v3, %v4807_v27 }
 0x684   :  { %5139 = vrot.lane.b32.xlu0 %v4516_v5, %s7949_s16  ;;  %4900 = vrot.lane.b32.xlu1 %v4516_v5, %s7947_s3 }
 0x685   :  { %v5022_v47 = vpop.permute.xlu1 %5021  ;;  %v5126_v30 = vpop.permute.xlu0 %5125  ;;  %5677 = vmatprep.subr.bf16.mxu0 %v5562_v53 }
 0x686   :  { %v5049_v41 = vsel %vm3069_vm12, %v5020_v31, %v5022_v47  ;;  %v5153_v12 = vsel %vm3628_vm1, %v5124_v17, %v5126_v30  ;;  %5678 = vmatpush1.bf16.msra.mxu0 %v5561_v37 }
 0x687   :  { %v5576_v28 = vpack.c.bf16 %v5049_v41, %v10279_v20 }
 0x688   :  { %5243 = vrot.lane.b32.xlu0 %v4516_v5, %s7950_s24  ;;  %5033 = vrot.lane.b32.xlu1 %v10414_v55, %s7946_s25 }
 0x689   :  { %v5336_v4 = vpop.permute.xlu1 %5335  ;;  %v5230_v51 = vpop.permute.xlu0 %5229 }
 0x68a   :  { %v5365_v57 = vsel %vm3388_vm13, %v5334_v6, %v5336_v4  ;;  %v5257_v44 = vsel %vm62_vm15, %v5228_v63, %v5230_v51 }
 0x68b   :  { %v5591_v20 = vpack.c.bf16 %v5257_v44, %v5153_v12  ;;  %v5606_v34 = vpack.c.bf16 %v5365_v57, %v5365_v57 }
 0x68c   :  { %5349 = vrot.lane.b32.xlu0 %v4516_v5, %s7947_s3  ;;  %5137 = vrot.lane.b32.xlu1 %v10414_v55, %s7949_s16 }
 0x690   :  { %4588 = vrot.lane.b32.xlu0 %v10442_v9, %s7946_s25  ;;  %5241 = vrot.lane.b32.xlu1 %v10414_v55, %s7950_s24 }
 0x692   :  { %v10498_v8 = vpop.permute.xlu1 %5127  ;;  %v10500_v0 = vpop.permute.xlu0 %5023 }
 0x693   :  { %v5154_v50 = vsel %vm3628_vm1, %v5126_v30, %v10498_v8  ;;  %v5050_v36 = vsel %vm3069_vm12, %v5022_v47, %v10500_v0 }
 0x694   :  { %4692 = vrot.lane.b32.xlu0 %v10442_v9, %s7945_s6  ;;  %5347 = vrot.lane.b32.xlu1 %v10414_v55, %s7947_s3  ;;  %v5577_v56 = vpack.c.bf16 %v5050_v36, %v10285_v54 }
 0x696   :  { %v10512_v19 = vpop.permute.xlu1 %5231  ;;  %v10514_v2 = vpop.permute.xlu0 %5337  ;;  %5679 = vmatprep.subr.bf16.mxu0 %v5577_v56 }
 0x697   :  { %v5258_v25 = vsel %vm62_vm15, %v5230_v51, %v10512_v19  ;;  %v5366_v45 = vsel %vm3388_vm13, %v5336_v4, %v10514_v2  ;;  %5680 = vmatpush1.bf16.msra.mxu0 %v5576_v28 }
 0x698   :  { %4796 = vrot.lane.b32.xlu0 %v10442_v9, %s7948_s26  ;;  %5037 = vrot.lane.b32.xlu1 %v10442_v9, %s7946_s25  ;;  %v5592_v54 = vpack.c.bf16 %v5258_v25, %v5154_v50  ;;  %v5607_v48 = vpack.c.bf16 %v5366_v45, %v5366_v45 }
 0x69a   :  { %v4575_v55 = vpop.permute.xlu1 %4574  ;;  %v4577_v43 = vpop.permute.xlu0 %4576  ;;  %5681 = vmatprep.subr.bf16.mxu0 %v5592_v54 }
 0x69b   :  { %v4600_v17 = vsel %vm3069_vm12, %v10452_v29, %v4575_v55  ;;  %v4601_v5 = vsel %vm3069_vm12, %v4575_v55, %v4577_v43  ;;  %5682 = vmatpush1.bf16.msra.mxu0 %v5591_v20  ;;  %v5631_v29 = vsel %vm357_vm11, %v5606_v34, 0 }
 0x69c   :  { %4629 = vst [vmem:[#allocation3 + $0x10] sm:$0xff] %v4600_v17  ;;  %4630 = vst [vmem:[#allocation3 + $0x18] sm:$0xff] %v4601_v5  ;;  %4902 = vrot.lane.b32.xlu0 %v10442_v9, %s7947_s3  ;;  %5141 = vrot.lane.b32.xlu1 %v10442_v9, %s7949_s16 }
 0x69d   :  { %v4390_v49 = vpop.f32.mrb[44].mxu1  ;;  %7510 = vmatprep.subr.msk.bf16.mxu0 %vm357_vm11, %v5607_v48 }
 0x69e   :  { %v4391_v6 = vadd.f32 %v4390_v49, %v10271_v61  ;;  %v4392_v7 = vpop.f32.mrb[45].mxu1  ;;  %v4679_v33 = vpop.permute.xlu1 %4678 }
 0x69f   :  { %v4393_v13 = vadd.f32 %v4392_v7, %v10271_v61  ;;  %v4394_v52 = vpop.f32.mrb[46].mxu1  ;;  %v4704_v18 = vsel %vm3174_vm10, %v10464_v35, %v4679_v33  ;;  %v4681_v39 = vpop.permute.xlu0 %4680  ;;  %5684 = vmatpush1.bf16.msra.mxu0 %v5631_v29 }
 0x6a0   :  { %v4488_v32 = vmax.f32 %v4391_v6, 0.0  ;;  %v4395_v38 = vpop.f32.mrb[47].mxu1  ;;  %4733 = vst [vmem:[#allocation3 + $0x88] sm:$0xff] %v4704_v18  ;;  %v4705_v31 = vsel %vm3174_vm10, %v4679_v33, %v4681_v39  ;;  %5245 = vrot.lane.b32.xlu1 %v10442_v9, %s7950_s24  ;;  %v5548_v3 = vpack.c.bf16 %v4704_v18, %v4600_v17 }
 0x6a1   :  { %v4489_v27 = vmax.f32 %v4393_v13, 0.0  ;;  %4734 = vst [vmem:[#allocation3 + $0x90] sm:$0xff] %v4705_v31  ;;  %v5549_v63 = vpack.c.bf16 %v4705_v31, %v4601_v5 }
 0x6a2   :  { %4503 = vst [vmem:[%s11544_s17 + $0x50] sm:$0xff] %v4488_v32  ;;  %v4518_v35 = vmul.f32 %v4488_v32, %v9735_v46  ;;  %v4783_v53 = vpop.permute.xlu1 %4782  ;;  %7511 = vmatmul.mubr.msk.bf16.vlgmr.msra.gmra.mrb[44].mxu0 %vm2229_vm9, %v10540_v10 }
 0x6a3   :  { %4504 = vst [vmem:[%s11544_s17 + $0x58] sm:$0xff] %v4489_v27  ;;  %v10555_v37 = vmul.f32 %v4489_v27, %v9759_v1  ;;  %v4808_v47 = vsel %vm3279_vm0, %v10472_v14, %v4783_v53  ;;  %v4785_v30 = vpop.permute.xlu0 %4784  ;;  %5716 = vmatprep.subr.bf16.mxu1 %v5549_v63  ;;  %5789 = vmatprep.mubr.bf16.mxu0 %v7934_v59 }
 0x6a4   :  { %4533 = vst [vmem:[#allocation2 + $0x58] sm:$0xff] %v4518_v35  ;;  %v4809_v46 = vsel %vm3279_vm0, %v4783_v53, %v4785_v30  ;;  %5039 = vrot.lane.b32.xlu0 %v4518_v35, %s7946_s25  ;;  %5351 = vrot.lane.b32.xlu1 %v10442_v9, %s7947_s3 }
 0x6a5   :  { %4534 = vst [vmem:[#allocation2 + $0x60] sm:$0xff] %v10555_v37  ;;  %5717 = vmatpush1.bf16.msra.mxu1 %v5548_v3 }
 0x6a6   :  { %v4889_v1 = vpop.permute.xlu1 %4888 }
 0x6a7   :  { %v4916_v41 = vsel %vm3388_vm13, %v10478_v60, %v4889_v1  ;;  %v4891_v14 = vpop.permute.xlu0 %4890 }
 0x6a8   :  { %v4917_v12 = vsel %vm3388_vm13, %v4889_v1, %v4891_v14  ;;  %5143 = vrot.lane.b32.xlu0 %v4518_v35, %s7949_s16  ;;  %4590 = vrot.lane.b32.xlu1 %v4518_v35, %s7946_s25  ;;  %v5563_v51 = vpack.c.bf16 %v4916_v41, %v4808_v47 }
 0x6a9   :  { %v5564_v4 = vpack.c.bf16 %v4917_v12, %v4809_v46 }
 0x6aa   :  { %v4579_v57 = vpop.permute.xlu1 %4578 }
 0x6ab   :  { %v10571_v44 = vsel %vm3069_vm12, %v4577_v43, %v4579_v57  ;;  %v10573_v9 = vpop.permute.xlu0 %5027  ;;  %5718 = vmatprep.subr.bf16.mxu1 %v5564_v4  ;;  %v10575_v50 = vld [vmem:[#allocation2 + $0x58] sm:$0xff] }
 0x6ac   :  { %v4431_v36 = vpop.f32.mrb[40].mxu0  ;;  %4631 = vst [vmem:[#allocation3 + $0x20] sm:$0xff] %v10571_v44  ;;  %5247 = vrot.lane.b32.xlu0 %v4518_v35, %s7950_s24  ;;  %4694 = vrot.lane.b32.xlu1 %v4518_v35, %s7945_s6  ;;  %v10580_v60 = vld [vmem:[#allocation2 + $0x60] sm:$0xff] }
 0x6ad   :  { %v4432_v56 = vadd.f32 %v4431_v36, %v10271_v61  ;;  %v4433_v28 = vpop.f32.mrb[41].mxu0  ;;  %5719 = vmatpush1.bf16.msra.mxu1 %v5563_v51 }
 0x6ae   :  { %v4434_v25 = vadd.f32 %v4433_v28, %v10271_v61  ;;  %v4683_v45 = vpop.permute.xlu1 %4682  ;;  %v4435_v54 = vpop.f32.mrb[42].mxu0 }
 0x6af   :  { %v4490_v20 = vmax.f32 %v4432_v56, 0.0  ;;  %v10585_v55 = vsel %vm3174_vm10, %v4681_v39, %v4683_v45  ;;  %v10587_v43 = vpop.permute.xlu0 %5131  ;;  %v4436_v34 = vpop.f32.mrb[43].mxu0 }
 0x6b0   :  { %v4491_v17 = vmax.f32 %v4434_v25, 0.0  ;;  %4735 = vst [vmem:[#allocation3 + $0x98] sm:$0xff] %v10585_v55  ;;  %5353 = vrot.lane.b32.xlu0 %v4518_v35, %s7947_s3  ;;  %4798 = vrot.lane.b32.xlu1 %v4518_v35, %s7948_s26  ;;  %v5550_v4 = vpack.c.bf16 %v10585_v55, %v10571_v44 }
 0x6b1   :  { %4505 = vst [vmem:[%s11544_s17 + $0x60] sm:$0xff] %v4490_v20  ;;  %v10596_v5 = vmul.f32 %v4490_v20, %v9780_v21 }
 0x6b2   :  { %4506 = vst [vmem:[%s11544_s17 + $0x68] sm:$0xff] %v4491_v17  ;;  %v10602_v48 = vmul.f32 %v4491_v17, %v9801_v22  ;;  %v4787_v49 = vpop.permute.xlu1 %4786 }
 0x6b3   :  { %4535 = vst [vmem:[#allocation2 + $0x68] sm:$0xff] %v10596_v5  ;;  %v10606_v6 = vsel %vm3279_vm0, %v4785_v30, %v4787_v49  ;;  %v10608_v7 = vpop.permute.xlu0 %5235 }
 0x6b4   :  { %4536 = vst [vmem:[#allocation2 + $0x70] sm:$0xff] %v10602_v48  ;;  %4592 = vrot.lane.b32.xlu0 %v10555_v37, %s7946_s25  ;;  %4904 = vrot.lane.b32.xlu1 %v4518_v35, %s7947_s3 }
 0x6b5   :  { %v4472_v21 = vpop.f32.mrb[48].mxu1 }
 0x6b6   :  { %v4473_v33 = vadd.f32 %v4472_v21, %v10271_v61  ;;  %v4893_v22 = vpop.permute.xlu1 %4892  ;;  %v7708_v29 = vpop.f32.mrb[49].mxu1 }
 0x6b7   :  { %v10616_v13 = vsel %vm3388_vm13, %v4891_v14, %v4893_v22  ;;  %v10618_v52 = vpop.permute.xlu0 %5341  ;;  %v4475_v18 = vpop.f32.mrb[50].mxu1 }
 0x6b8   :  { %v4492_v39 = vmax.f32 %v4473_v33, 0.0  ;;  %4696 = vrot.lane.b32.xlu0 %v10555_v37, %s7945_s6  ;;  %4594 = vrot.lane.b32.xlu1 %v10596_v5, %s7946_s25  ;;  %v7709_v32 = vpop.f32.mrb[51].mxu1 }
 0x6ba   :  { %4507 = vst.msk [vmem:[%s11544_s17 + $0x70] sm:$0xff] %vm62_vm15, %v4492_v39  ;;  %v4522_v61 = vmul.f32 %v4492_v39, %v9795_v62  ;;  %v5026_v38 = vpop.permute.xlu1 %5025  ;;  %v10629_v31 = vld [vmem:[#allocation2 + $0x68] sm:$0xff]  ;;  %s7957_s17 = smov 110  }
 0x6bb   :  { %v5051_v27 = vsel %vm3069_vm12, %v10500_v0, %v5026_v38  ;;  %v5052_v63 = vsel %vm3069_vm12, %v5026_v38, %v10573_v9  ;;  %v10635_v3 = vpop.permute.xlu0 %4580  ;;  %v10637_v35 = vld [vmem:[#allocation2 + $0x70] sm:$0xff] }
 0x6bc   :  { %4537 = vst.msk [vmem:[#allocation2 + $0x78] sm:$0xff] %vm62_vm15, %v4522_v61  ;;  %v4603_v53 = vsel %vm3069_vm12, %v4579_v57, %v10635_v3  ;;  %4800 = vrot.lane.b32.xlu0 %v10555_v37, %s7948_s26  ;;  %4698 = vrot.lane.b32.xlu1 %v10596_v5, %s7945_s6  ;;  %v5579_v62 = vpack.c.bf16 %v5052_v63, %v10333_v24 }
 0x6bd   :  { %v5578_v0 = vpack.c.bf16 %v5051_v27, %v10327_v26  ;;  %4632 = vst [vmem:[#allocation3 + $0x28] sm:$0xff] %v4603_v53 }
 0x6be   :  { %v5130_v47 = vpop.permute.xlu1 %5129  ;;  %5720 = vmatprep.subr.bf16.mxu1 %v5579_v62 }
 0x6bf   :  { %v5155_v30 = vsel %vm3628_vm1, %v10498_v8, %v5130_v47  ;;  %v5156_v46 = vsel %vm3628_vm1, %v5130_v47, %v10587_v43  ;;  %v10652_v1 = vpop.permute.xlu0 %4684  ;;  %5721 = vmatpush1.bf16.msra.mxu1 %v5578_v0 }
 0x6c0   :  { %v4707_v41 = vsel %vm3174_vm10, %v4683_v45, %v10652_v1  ;;  %4906 = vrot.lane.b32.xlu0 %v10555_v37, %s7947_s3  ;;  %4802 = vrot.lane.b32.xlu1 %v10596_v5, %s7948_s26 }
 0x6c1   :  { %4736 = vst [vmem:[#allocation3 + $0xa0] sm:$0xff] %v4707_v41  ;;  %v5551_v26 = vpack.c.bf16 %v4707_v41, %v4603_v53  ;;  %v5621_v41 = vld [vmem:[%s11537_s10] sm:$0xff] }
 0x6c2   :  { %v5234_v24 = vpop.permute.xlu1 %5233 }
 0x6c3   :  { %v5259_v8 = vsel %vm62_vm15, %v10512_v19, %v5234_v24  ;;  %v5260_v14 = vsel %vm62_vm15, %v5234_v24, %v10608_v7  ;;  %v10664_v12 = vpop.permute.xlu0 %4788  ;;  %5757 = vmatprep.subr.bf16.mxu0 %v5551_v26  ;;  %v10668_v51 = vld [vmem:[#allocation2 + $0x78] sm:$0xff] }
 0x6c4   :  { %v4811_v57 = vsel %vm3279_vm0, %v4787_v49, %v10664_v12  ;;  %5043 = vrot.lane.b32.xlu0 %v10596_v5, %s7946_s25  ;;  %4908 = vrot.lane.b32.xlu1 %v10596_v5, %s7947_s3  ;;  %v5594_v19 = vpack.c.bf16 %v5260_v14, %v5156_v46  ;;  %v5593_v36 = vpack.c.bf16 %v5259_v8, %v5155_v30 }
 0x6c5   :  { %4988 = vst.msk [vmem:[#allocation3 + $0x250] sm:$0xff] %vm62_vm15, %v10668_v51  ;;  %5758 = vmatpush1.bf16.msra.mxu0 %v5550_v4  ;;  %v5565_v49 = vpack.c.bf16 %v10616_v13, %v10606_v6  ;;  %v5316_v4 = vld [vmem:[#allocation2 + $0x80] sm:$0xff] }
 0x6c6   :  { %v5340_v56 = vpop.permute.xlu1 %5339  ;;  %5722 = vmatprep.subr.bf16.mxu1 %v5594_v19 }
 0x6c7   :  { %v5367_v44 = vsel %vm3388_vm13, %v10514_v2, %v5340_v56  ;;  %v5368_v28 = vsel %vm3388_vm13, %v5340_v56, %v10618_v52  ;;  %v10682_v25 = vpop.permute.xlu0 %4894  ;;  %5723 = vmatpush1.bf16.msra.mxu1 %v5593_v36 }
 0x6c8   :  { %v4919_v45 = vsel %vm3388_vm13, %v4893_v22, %v10682_v25  ;;  %5041 = vrot.lane.b32.xlu1 %v10555_v37, %s7946_s25  ;;  %5147 = vrot.lane.b32.xlu0 %v10596_v5, %s7949_s16  ;;  %v5609_v54 = vpack.c.bf16 %v5368_v28, %v5368_v28  ;;  %v5608_v20 = vpack.c.bf16 %v5367_v44, %v5367_v44 }
 0x6c9   :  { %v5566_v55 = vpack.c.bf16 %v4919_v45, %v4811_v57 }
 0x6ca   :  { %v5030_v34 = vpop.permute.xlu1 %5029  ;;  %7512 = vmatprep.subr.msk.bf16.mxu1 %vm357_vm11, %v5609_v54  ;;  %v5637_v2 = vsel %vm357_vm11, %v5608_v20, 0 }
 0x6cb   :  { %v5053_v17 = vsel %vm3069_vm12, %v10573_v9, %v5030_v34  ;;  %5759 = vmatprep.subr.bf16.mxu0 %v5566_v55  ;;  %5725 = vmatpush1.bf16.msra.mxu1 %v5637_v2 }
 0x6cc   :  { %5145 = vrot.lane.b32.xlu1 %v10555_v37, %s7949_s16  ;;  %5251 = vrot.lane.b32.xlu0 %v10596_v5, %s7950_s24  ;;  %v5580_v13 = vpack.c.bf16 %v5053_v17, %v10374_v58 }
 0x6cd   :  { %5760 = vmatpush1.bf16.msra.mxu0 %v5565_v49 }
 0x6ce   :  { %v5134_v21 = vpop.permute.xlu1 %5133  ;;  %7513 = vmatmul.mubr.msk.bf16.vlgmr.msra.gmra.mrb[52].mxu1 %vm2229_vm9, %v10540_v10 }
 0x6cf   :  { %v5157_v33 = vsel %vm3628_vm1, %v10587_v43, %v5134_v21  ;;  %5830 = vmatprep.mubr.bf16.mxu1 %v7934_v59 }
 0x6d0   :  { %5249 = vrot.lane.b32.xlu1 %v10555_v37, %s7950_s24  ;;  %5357 = vrot.lane.b32.xlu0 %v10596_v5, %s7947_s3 }
 0x6d2   :  { %v5238_v9 = vpop.permute.xlu1 %5237  ;;  %v10709_v6 = vpop.permute.xlu0 %5031 }
 0x6d3   :  { %v5261_v22 = vsel %vm62_vm15, %v10608_v7, %v5238_v9  ;;  %v5054_v29 = vsel %vm3069_vm12, %v5030_v34, %v10709_v6 }
 0x6d4   :  { %5355 = vrot.lane.b32.xlu1 %v10555_v37, %s7947_s3  ;;  %4596 = vrot.lane.b32.xlu0 %v10602_v48, %s7946_s25  ;;  %v5581_v43 = vpack.c.bf16 %v5054_v29, %v10363_v42  ;;  %v5595_v61 = vpack.c.bf16 %v5261_v22, %v5157_v33 }
 0x6d6   :  { %v5344_v5 = vpop.permute.xlu1 %5343  ;;  %v10721_v18 = vpop.permute.xlu0 %5135  ;;  %5761 = vmatprep.subr.bf16.mxu0 %v5581_v43 }
 0x6d7   :  { %v5369_v7 = vsel %vm3388_vm13, %v10618_v52, %v5344_v5  ;;  %v5158_v39 = vsel %vm3628_vm1, %v5134_v21, %v10721_v18  ;;  %5762 = vmatpush1.bf16.msra.mxu0 %v5580_v13 }
 0x6d8   :  { %5045 = vrot.lane.b32.xlu1 %v10602_v48, %s7946_s25  ;;  %4700 = vrot.lane.b32.xlu0 %v10602_v48, %s7945_s6  ;;  %v5610_v63 = vpack.c.bf16 %v5369_v7, %v5369_v7  ;;  %s7959_s6 = smov 84  }
 0x6da   :  { %v4583_v42 = vpop.permute.xlu1 %4582  ;;  %v10731_v37 = vpop.permute.xlu0 %5239  ;;  %v5643_v30 = vsel %vm357_vm11, %v5610_v63, 0 }
 0x6db   :  { %v4604_v58 = vsel %vm3069_vm12, %v10635_v3, %v4583_v42  ;;  %v5262_v32 = vsel %vm62_vm15, %v5238_v9, %v10731_v37 }
 0x6dc   :  { %4633 = vst [vmem:[#allocation3 + $0x30] sm:$0xff] %v4604_v58  ;;  %5149 = vrot.lane.b32.xlu1 %v10602_v48, %s7949_s16  ;;  %4804 = vrot.lane.b32.xlu0 %v10602_v48, %s7948_s26  ;;  %v5596_v52 = vpack.c.bf16 %v5262_v32, %v5158_v39  ;;  %s7963_s26 = smov 56  }
 0x6de   :  { %v4687_v38 = vpop.permute.xlu1 %4686  ;;  %v10741_v27 = vpop.permute.xlu0 %5345  ;;  %5763 = vmatprep.subr.bf16.mxu0 %v5596_v52 }
 0x6df   :  { %v4708_v3 = vsel %vm3174_vm10, %v10652_v1, %v4687_v38  ;;  %v5370_v53 = vsel %vm3388_vm13, %v5344_v5, %v10741_v27  ;;  %5764 = vmatpush1.bf16.msra.mxu0 %v5595_v61 }
 0x6e0   :  { %4737 = vst [vmem:[#allocation3 + $0xa8] sm:$0xff] %v4708_v3  ;;  %5253 = vrot.lane.b32.xlu1 %v10602_v48, %s7950_s24  ;;  %4910 = vrot.lane.b32.xlu0 %v10602_v48, %s7947_s3  ;;  %v5611_v62 = vpack.c.bf16 %v5370_v53, %v5370_v53 }
 0x6e2   :  { %v4791_v0 = vpop.permute.xlu1 %4790  ;;  %v4585_v47 = vpop.permute.xlu0 %4584  ;;  %7514 = vmatprep.subr.msk.bf16.mxu0 %vm357_vm11, %v5611_v62 }
 0x6e3   :  { %v4812_v46 = vsel %vm3279_vm0, %v10664_v12, %v4791_v0  ;;  %v4605_v1 = vsel %vm3069_vm12, %v4583_v42, %v4585_v47  ;;  %5766 = vmatpush1.bf16.msra.mxu0 %v5643_v30  ;;  %v5552_v12 = vpack.c.bf16 %v4708_v3, %v4604_v58 }
 0x6e4   :  { %4634 = vst [vmem:[#allocation3 + $0x38] sm:$0xff] %v4605_v1  ;;  %5359 = vrot.lane.b32.xlu1 %v10602_v48, %s7947_s3  ;;  %5047 = vrot.lane.b32.xlu0 %v10668_v51, %s7946_s25 }
 0x6e6   :  { %v4897_v26 = vpop.permute.xlu1 %4896  ;;  %v4689_v24 = vpop.permute.xlu0 %4688  ;;  %7515 = vmatmul.mubr.msk.bf16.vlgmr.msra.gmra.mrb[48].mxu0 %vm2229_vm9, %v10540_v10 }
 0x6e7   :  { %v4920_v8 = vsel %vm3388_vm13, %v10682_v25, %v4897_v26  ;;  %v4709_v14 = vsel %vm3174_vm10, %v4687_v38, %v4689_v24  ;;  %5871 = vmatprep.mubr.bf16.mxu0 %v7934_v59 }
 0x6e8   :  { %4738 = vst [vmem:[#allocation3 + $0xb0] sm:$0xff] %v4709_v14  ;;  %5624 = vperm.xlu1 %7781, %v5621_v41   ;;  %5151 = vrot.lane.b32.xlu0 %v10668_v51, %s7949_s16  ;;  %v5553_v48 = vpack.c.bf16 %v4709_v14, %v4605_v1  ;;  %v5567_v20 = vpack.c.bf16 %v4920_v8, %v4812_v46  ;;  %s7958_s16 = smov 20  }
 0x6ea   :  { %v4587_v57 = vpop.permute.xlu1 %4586  ;;  %v4793_v19 = vpop.permute.xlu0 %4792  ;;  %5798 = vmatprep.subr.bf16.mxu1 %v5553_v48 }
 0x6eb   :  { %v10772_v36 = vsel %vm3069_vm12, %v4585_v47, %v4587_v57  ;;  %v4813_v56 = vsel %vm3279_vm0, %v4791_v0, %v4793_v19  ;;  %5799 = vmatpush1.bf16.msra.mxu1 %v5552_v12 }
 0x6ec   :  { %4635 = vst [vmem:[#allocation3 + $0x40] sm:$0xff] %v10772_v36  ;;  %5255 = vrot.lane.b32.xlu0 %v10668_v51, %s7950_s24  ;;  %5363 = vrot.lane.b32.xlu1 %v5316_v4, %s7947_s3 }
 0x6ee   :  { %v4691_v44 = vpop.permute.xlu1 %4690  ;;  %v4899_v28 = vpop.permute.xlu0 %4898 }
 0x6ef   :  { %v4710_v25 = vsel %vm3174_vm10, %v4689_v24, %v4691_v44  ;;  %v4921_v45 = vsel %vm3388_vm13, %v4897_v26, %v4899_v28 }
 0x6f0   :  { %4739 = vst [vmem:[#allocation3 + $0xb8] sm:$0xff] %v4710_v25  ;;  %5361 = vrot.lane.b32.xlu0 %v10668_v51, %s7947_s3  ;;  %v5568_v54 = vpack.c.bf16 %v4921_v45, %v4813_v56  ;;  %v5554_v0 = vpack.c.bf16 %v4710_v25, %v10772_v36 }
 0x6f2   :  { %v4795_v55 = vpop.permute.xlu1 %4794  ;;  %v5036_v34 = vpop.permute.xlu0 %5035  ;;  %5800 = vmatprep.subr.bf16.mxu1 %v5568_v54 }
 0x6f3   :  { %v4814_v2 = vsel %vm3279_vm0, %v4793_v19, %v4795_v55  ;;  %5801 = vmatpush1.bf16.msra.mxu1 %v5567_v20 }
 0x6f4   :  { %4912 = vrot.lane.b32.xlu0 %v10668_v51, %s7947_s3 }
 0x6f6   :  { %v4901_v17 = vpop.permute.xlu1 %4900  ;;  %v5140_v49 = vpop.permute.xlu0 %5139 }
 0x6f7   :  { %v4922_v21 = vsel %vm3388_vm13, %v4899_v28, %v4901_v17 }
 0x6f8   :  { %v5569_v48 = vpack.c.bf16 %v4922_v21, %v4814_v2 }
 0x6fa   :  { %v5034_v33 = vpop.permute.xlu1 %5033  ;;  %v5244_v9 = vpop.permute.xlu0 %5243 }
 0x6fb   :  { %v5055_v22 = vsel %vm3069_vm12, %v10709_v6, %v5034_v33  ;;  %v5056_v29 = vsel %vm3069_vm12, %v5034_v33, %v5036_v34 }
 0x6fc   :  { %v5583_v43 = vpack.c.bf16 %v5056_v29, %v10427_v40  ;;  %v5582_v13 = vpack.c.bf16 %v5055_v22, %v10423_v11 }
 0x6fe   :  { %v5138_v5 = vpop.permute.xlu1 %5137  ;;  %v5350_v7 = vpop.permute.xlu0 %5349  ;;  %5802 = vmatprep.subr.bf16.mxu1 %v5583_v43 }
 0x6ff   :  { %v5159_v51 = vsel %vm3628_vm1, %v10721_v18, %v5138_v5  ;;  %v5160_v39 = vsel %vm3628_vm1, %v5138_v5, %v5140_v49  ;;  %5803 = vmatpush1.bf16.msra.mxu1 %v5582_v13 }
 0x702   :  { %v5242_v42 = vpop.permute.xlu1 %5241  ;;  %v4589_v58 = vpop.permute.xlu0 %4588 }
 0x703   :  { %v5263_v6 = vsel %vm62_vm15, %v10731_v37, %v5242_v42  ;;  %v5264_v32 = vsel %vm62_vm15, %v5242_v42, %v5244_v9  ;;  %v4607_v40 = vsel %vm3069_vm12, %v4587_v57, %v4589_v58 }
 0x704   :  { %4636 = vst [vmem:[#allocation3 + $0x48] sm:$0xff] %v4607_v40  ;;  %v5598_v11 = vpack.c.bf16 %v5264_v32, %v5160_v39  ;;  %v5597_v52 = vpack.c.bf16 %v5263_v6, %v5159_v51 }
 0x706   :  { %v5348_v61 = vpop.permute.xlu1 %5347  ;;  %v4693_v38 = vpop.permute.xlu0 %4692  ;;  %5804 = vmatprep.subr.bf16.mxu1 %v5598_v11 }
 0x707   :  { %v5371_v18 = vsel %vm3388_vm13, %v10741_v27, %v5348_v61  ;;  %v5372_v63 = vsel %vm3388_vm13, %v5348_v61, %v5350_v7  ;;  %v4711_v3 = vsel %vm3174_vm10, %v4691_v44, %v4693_v38  ;;  %5805 = vmatpush1.bf16.msra.mxu1 %v5597_v52 }
 0x708   :  { %4740 = vst [vmem:[#allocation3 + $0xc0] sm:$0xff] %v4711_v3  ;;  %v5613_v37 = vpack.c.bf16 %v5372_v63, %v5372_v63  ;;  %v5555_v53 = vpack.c.bf16 %v4711_v3, %v4607_v40  ;;  %v5612_v62 = vpack.c.bf16 %v5371_v18, %v5371_v18 }
 0x70a   :  { %v5038_v47 = vpop.permute.xlu1 %5037  ;;  %v4797_v30 = vpop.permute.xlu0 %4796  ;;  %7516 = vmatprep.subr.msk.bf16.mxu1 %vm357_vm11, %v5613_v37  ;;  %5839 = vmatprep.subr.bf16.mxu0 %v5555_v53  ;;  %v5649_v46 = vsel %vm357_vm11, %v5612_v62, 0 }
 0x70b   :  { %v5057_v27 = vsel %vm3069_vm12, %v5036_v34, %v5038_v47  ;;  %v4815_v1 = vsel %vm3279_vm0, %v4795_v55, %v4797_v30  ;;  %5807 = vmatpush1.bf16.msra.mxu1 %v5649_v46  ;;  %5840 = vmatpush1.bf16.msra.mxu0 %v5554_v0 }
 0x70c   :  { %v5584_v28 = vpack.c.bf16 %v5057_v27, %v10457_v16 }
 0x70e   :  { %v5142_v41 = vpop.permute.xlu1 %5141  ;;  %v4903_v26 = vpop.permute.xlu0 %4902  ;;  %7517 = vmatmul.mubr.msk.bf16.vlgmr.msra.gmra.mrb[56].mxu1 %vm2229_vm9, %v10540_v10 }
 0x70f   :  { %v5161_v24 = vsel %vm3628_vm1, %v5140_v49, %v5142_v41  ;;  %v4923_v8 = vsel %vm3388_vm13, %v4901_v17, %v4903_v26  ;;  %5912 = vmatprep.mubr.bf16.mxu1 %v7934_v59 }
 0x710   :  { %v5570_v14 = vpack.c.bf16 %v4923_v8, %v4815_v1 }
 0x712   :  { %v5246_v12 = vpop.permute.xlu1 %5245  ;;  %5841 = vmatprep.subr.bf16.mxu0 %v5570_v14 }
 0x713   :  { %v5265_v4 = vsel %vm62_vm15, %v5244_v9, %v5246_v12  ;;  %5842 = vmatpush1.bf16.msra.mxu0 %v5569_v48 }
 0x714   :  { %v5599_v17 = vpack.c.bf16 %v5265_v4, %v5161_v24 }
 0x716   :  { %v5352_v57 = vpop.permute.xlu1 %5351  ;;  %v10814_v19 = vpop.permute.xlu0 %5039 }
 0x717   :  { %v5373_v36 = vsel %vm3388_vm13, %v5350_v7, %v5352_v57  ;;  %v5058_v56 = vsel %vm3069_vm12, %v5038_v47, %v10814_v19 }
 0x718   :  { %v5585_v44 = vpack.c.bf16 %v5058_v56, %v10462_v23  ;;  %v5614_v33 = vpack.c.bf16 %v5373_v36, %v5373_v36 }
 0x71a   :  { %v4591_v25 = vpop.permute.xlu1 %4590  ;;  %v10821_v45 = vpop.permute.xlu0 %5143  ;;  %5843 = vmatprep.subr.bf16.mxu0 %v5585_v44  ;;  %v5655_v5 = vsel %vm357_vm11, %v5614_v33, 0 }
 0x71b   :  { %v4608_v54 = vsel %vm3069_vm12, %v4589_v58, %v4591_v25  ;;  %v5162_v20 = vsel %vm3628_vm1, %v5142_v41, %v10821_v45  ;;  %5844 = vmatpush1.bf16.msra.mxu0 %v5584_v28 }
 0x71c   :  { %4637 = vst [vmem:[#allocation3 + $0x50] sm:$0xff] %v4608_v54 }
 0x71e   :  { %v4695_v55 = vpop.permute.xlu1 %4694  ;;  %v10826_v34 = vpop.permute.xlu0 %5247 }
 0x71f   :  { %v4712_v2 = vsel %vm3174_vm10, %v4693_v38, %v4695_v55  ;;  %v5266_v23 = vsel %vm62_vm15, %v5246_v12, %v10826_v34 }
 0x720   :  { %4741 = vst [vmem:[#allocation3 + $0xc8] sm:$0xff] %v4712_v2  ;;  %v5600_v16 = vpack.c.bf16 %v5266_v23, %v5162_v20  ;;  %v5556_v40 = vpack.c.bf16 %v4712_v2, %v4608_v54 }
 0x722   :  { %v4799_v49 = vpop.permute.xlu1 %4798  ;;  %v10831_v21 = vpop.permute.xlu0 %5353  ;;  %5845 = vmatprep.subr.bf16.mxu0 %v5600_v16 }
 0x723   :  { %v4816_v9 = vsel %vm3279_vm0, %v4797_v30, %v4799_v49  ;;  %v5374_v22 = vsel %vm3388_vm13, %v5352_v57, %v10831_v21  ;;  %5846 = vmatpush1.bf16.msra.mxu0 %v5599_v17  ;;  %v10881_v17 = vld [vmem:[#allocation2] sm:$0xff] }
 0x724   :  { %v5615_v29 = vpack.c.bf16 %v5374_v22, %v5374_v22  ;;  %11572 = vst [vmem:[#allocation12_spill] sm:$0xff] %v10881_v17 }
 0x726   :  { %v4905_v43 = vpop.permute.xlu1 %4904  ;;  %v4593_v13 = vpop.permute.xlu0 %4592  ;;  %7518 = vmatprep.subr.msk.bf16.mxu0 %vm357_vm11, %v5615_v29 }
 0x727   :  { %v4924_v7 = vsel %vm3388_vm13, %v4903_v26, %v4905_v43  ;;  %v4609_v51 = vsel %vm3069_vm12, %v4591_v25, %v4593_v13  ;;  %5848 = vmatpush1.bf16.msra.mxu0 %v5655_v5 }
 0x728   :  { %4638 = vst [vmem:[#allocation3 + $0x58] sm:$0xff] %v4609_v51  ;;  %v5571_v53 = vpack.c.bf16 %v4924_v7, %v4816_v9 }
 0x72a   :  { %v4595_v39 = vpop.permute.xlu1 %4594  ;;  %v4697_v42 = vpop.permute.xlu0 %4696  ;;  %7519 = vmatmul.mubr.msk.bf16.vlgmr.msra.gmra.mrb[52].mxu0 %vm2229_vm9, %v10540_v10 }
 0x72b   :  { %v10843_v58 = vsel %vm3069_vm12, %v4593_v13, %v4595_v39  ;;  %v4713_v6 = vsel %vm3174_vm10, %v4695_v55, %v4697_v42  ;;  %5953 = vmatprep.mubr.bf16.mxu0 %v7934_v59 }
 0x72c   :  { %4639 = vst [vmem:[#allocation3 + $0x60] sm:$0xff] %v10843_v58  ;;  %4742 = vst [vmem:[#allocation3 + $0xd0] sm:$0xff] %v4713_v6  ;;  %v5557_v32 = vpack.c.bf16 %v4713_v6, %v4609_v51 }
 0x72e   :  { %v4699_v11 = vpop.permute.xlu1 %4698  ;;  %v4801_v52 = vpop.permute.xlu0 %4800  ;;  %5880 = vmatprep.subr.bf16.mxu1 %v5557_v32 }
 0x72f   :  { %v10849_v61 = vsel %vm3174_vm10, %v4697_v42, %v4699_v11  ;;  %v4817_v38 = vsel %vm3279_vm0, %v4799_v49, %v4801_v52  ;;  %5881 = vmatpush1.bf16.msra.mxu1 %v5556_v40 }
 0x730   :  { %4743 = vst [vmem:[#allocation3 + $0xd8] sm:$0xff] %v10849_v61  ;;  %v5558_v49 = vpack.c.bf16 %v10849_v61, %v10843_v58 }
 0x732   :  { %v4803_v18 = vpop.permute.xlu1 %4802  ;;  %v4907_v63 = vpop.permute.xlu0 %4906 }
 0x733   :  { %v10854_v59 = vsel %vm3279_vm0, %v4801_v52, %v4803_v18  ;;  %v4925_v3 = vsel %vm3388_vm13, %v4905_v43, %v4907_v63 }
 0x734   :  { %v5572_v37 = vpack.c.bf16 %v4925_v3, %v4817_v38 }
 0x736   :  { %v4909_v62 = vpop.permute.xlu1 %4908  ;;  %v5044_v0 = vpop.permute.xlu0 %5043  ;;  %5882 = vmatprep.subr.bf16.mxu1 %v5572_v37 }
 0x737   :  { %v10858_v47 = vsel %vm3388_vm13, %v4907_v63, %v4909_v62  ;;  %5883 = vmatpush1.bf16.msra.mxu1 %v5571_v53 }
 0x738   :  { %v5573_v42 = vpack.c.bf16 %v10858_v47, %v10854_v59 }
 0x73a   :  { %v5042_v30 = vpop.permute.xlu1 %5041  ;;  %v5148_v46 = vpop.permute.xlu0 %5147 }
 0x73b   :  { %v5059_v27 = vsel %vm3069_vm12, %v10814_v19, %v5042_v30  ;;  %v5060_v1 = vsel %vm3069_vm12, %v5042_v30, %v5044_v0 }
 0x73c   :  { %v5587_v41 = vpack.c.bf16 %v5060_v1, %v10580_v60  ;;  %v5586_v26 = vpack.c.bf16 %v5059_v27, %v10575_v50 }
 0x73e   :  { %v5146_v24 = vpop.permute.xlu1 %5145  ;;  %v5252_v8 = vpop.permute.xlu0 %5251  ;;  %5884 = vmatprep.subr.bf16.mxu1 %v5587_v41 }
 0x73f   :  { %v5163_v14 = vsel %vm3628_vm1, %v10821_v45, %v5146_v24  ;;  %v5164_v48 = vsel %vm3628_vm1, %v5146_v24, %v5148_v46  ;;  %5885 = vmatpush1.bf16.msra.mxu1 %v5586_v26 }
 0x742   :  { %v5250_v12 = vpop.permute.xlu1 %5249  ;;  %v5358_v4 = vpop.permute.xlu0 %5357 }
 0x743   :  { %v5267_v57 = vsel %vm62_vm15, %v10826_v34, %v5250_v12  ;;  %v5268_v19 = vsel %vm62_vm15, %v5250_v12, %v5252_v8 }
 0x744   :  { %v5602_v36 = vpack.c.bf16 %v5268_v19, %v5164_v48  ;;  %v5601_v60 = vpack.c.bf16 %v5267_v57, %v5163_v14  ;;  %v5485_v14 = vld [vmem:[#allocation3 + $0x250] sm:$0xff] }
 0x746   :  { %v5356_v56 = vpop.permute.xlu1 %5355  ;;  %v4597_v50 = vpop.permute.xlu0 %4596  ;;  %5886 = vmatprep.subr.bf16.mxu1 %v5602_v36 }
 0x747   :  { %v5375_v44 = vsel %vm3388_vm13, %v10831_v21, %v5356_v56  ;;  %v5376_v28 = vsel %vm3388_vm13, %v5356_v56, %v5358_v4  ;;  %v4611_v25 = vsel %vm3069_vm12, %v4595_v39, %v4597_v50  ;;  %4641 = vst.msk [vmem:[#allocation3 + $0x70] sm:$0xff] %vm62_vm15, %v4597_v50  ;;  %5887 = vmatpush1.bf16.msra.mxu1 %v5601_v60 }
 0x748   :  { %4640 = vst [vmem:[#allocation3 + $0x68] sm:$0xff] %v4611_v25  ;;  %v5617_v45 = vpack.c.bf16 %v5376_v28, %v5376_v28  ;;  %v5616_v54 = vpack.c.bf16 %v5375_v44, %v5375_v44 }
 0x74a   :  { %v5046_v20 = vpop.permute.xlu1 %5045  ;;  %v4701_v55 = vpop.permute.xlu0 %4700  ;;  %7520 = vmatprep.subr.msk.bf16.mxu1 %vm357_vm11, %v5617_v45  ;;  %v5661_v34 = vsel %vm357_vm11, %v5616_v54, 0 }
 0x74b   :  { %v5061_v2 = vsel %vm3069_vm12, %v5044_v0, %v5046_v20  ;;  %v4715_v23 = vsel %vm3174_vm10, %v4699_v11, %v4701_v55  ;;  %4745 = vst.msk [vmem:[#allocation3 + $0xe8] sm:$0xff] %vm62_vm15, %v4701_v55  ;;  %5889 = vmatpush1.bf16.msra.mxu1 %v5661_v34  ;;  %vm6121_vm10 = vcmask 359536  }
 0x74c   :  { %4744 = vst [vmem:[#allocation3 + $0xe0] sm:$0xff] %v4715_v23  ;;  %v5559_v16 = vpack.c.bf16 %v4715_v23, %v4611_v25  ;;  %7710 = vmatprep.subr.bf16.mxu1 %v10881_v17  ;;  %v5588_v52 = vpack.c.bf16 %v5061_v2, %v10629_v31 }
 0x74e   :  { %v5150_v21 = vpop.permute.xlu1 %5149  ;;  %v4805_v33 = vpop.permute.xlu0 %4804  ;;  %7521 = vmatmul.mubr.msk.bf16.vlgmr.msra.gmra.mrb[60].mxu1 %vm2229_vm9, %v10540_v10  ;;  %5921 = vmatprep.subr.bf16.mxu0 %v5559_v16  ;;  %v5425_v13 = vld [vmem:[#allocation3 + $0x70] sm:$0xff] }
 0x74f   :  { %v5165_v9 = vsel %vm3628_vm1, %v5148_v46, %v5150_v21  ;;  %v4819_v22 = vsel %vm3279_vm0, %v4803_v18, %v4805_v33  ;;  %4849 = vst.msk [vmem:[#allocation3 + $0x160] sm:$0xff] %vm62_vm15, %v4805_v33  ;;  %5922 = vmatpush1.bf16.msra.mxu0 %v5558_v49  ;;  %7720 = vmatprep.mubr.msk.bf16.mxu1 %vm7936_vm14, %v10881_v17  ;;  %v7875_v46 = vld [vmem:[%s11536_s9] sm:$0xf]  ;;  %vm6151_vm0 = vcmask 48128  }
 0x752   :  { %v5254_v29 = vpop.permute.xlu1 %5253  ;;  %v4911_v43 = vpop.permute.xlu0 %4910  ;;  %v5440_v5 = vld [vmem:[#allocation3 + $0xe8] sm:$0xff] }
 0x753   :  { %v5269_v7 = vsel %vm62_vm15, %v5252_v8, %v5254_v29  ;;  %v4927_v51 = vsel %vm3388_vm13, %v4909_v62, %v4911_v43  ;;  %v5560_v10 = vpack.c.bf16 %v5440_v5, %v5425_v13 }
 0x754   :  { %v5574_v39 = vpack.c.bf16 %v4927_v51, %v4819_v22  ;;  %v5603_v3 = vpack.c.bf16 %v5269_v7, %v5165_v9 }
 0x755   :  { %7711 = vmatpush3.bf16.msra.mxu1 %v5560_v10  ;;  %v10968_v10 = vld [vmem:[%s11538_s11] ss:$16 sps:$4 sm:$0xff]  }
 0x756   :  { %v5360_v58 = vpop.permute.xlu1 %5359  ;;  %v5048_v6 = vpop.permute.xlu0 %5047  ;;  %5923 = vmatprep.subr.bf16.mxu0 %v5574_v39  ;;  %7712 = vmatprep.subr.bf16.mxu1 %v10881_v17  ;;  %v5455_v41 = vld [vmem:[#allocation3 + $0x160] sm:$0xff]  ;;  %v10973_v39 = vld [vmem:[%s11538_s11 + $0x4] ss:$16 sps:$4 sm:$0xff]  }
 0x757   :  { %v5377_v32 = vsel %vm3388_vm13, %v5358_v4, %v5360_v58  ;;  %v5062_v40 = vsel %vm3069_vm12, %v5046_v20, %v5048_v6  ;;  %5092 = vst.msk [vmem:[#allocation3 + $0x2c8] sm:$0xff] %vm62_vm15, %v5048_v6  ;;  %5924 = vmatpush1.bf16.msra.mxu0 %v5573_v42  ;;  %v10978_v42 = vld [vmem:[%s11538_s11 + $0x8] ss:$16 sps:$4 sm:$0xff]   ;;  %vm6494_vm12 = vcmask 670720  }
 0x758   :  { %v5589_v11 = vpack.c.bf16 %v5062_v40, %v10637_v35  ;;  %v5618_v53 = vpack.c.bf16 %v5377_v32, %v5377_v32 }
 0x75a   :  { %v5152_v61 = vpop.permute.xlu0 %5151  ;;  %5925 = vmatprep.subr.bf16.mxu0 %v5589_v11  ;;  %v5667_v0 = vsel %vm357_vm11, %v5618_v53, 0 }
 0x75b   :  { %v5166_v38 = vsel %vm3628_vm1, %v5150_v21, %v5152_v61  ;;  %5196 = vst.msk [vmem:[#allocation3 + $0x340] sm:$0xff] %vm62_vm15, %v5152_v61  ;;  %5926 = vmatpush1.bf16.msra.mxu0 %v5588_v52  ;;  %vm6149_vm1 = vcmask 1048384  }
 0x75e   :  { %v5256_v18 = vpop.permute.xlu0 %5255  ;;  %v5500_v8 = vld [vmem:[#allocation3 + $0x2c8] sm:$0xff] }
 0x75f   :  { %v5270_v63 = vsel %vm62_vm15, %v5254_v29, %v5256_v18  ;;  %5300 = vst.msk [vmem:[#allocation3 + $0x3b8] sm:$0xff] %vm62_vm15, %v5256_v18  ;;  %v5590_v48 = vpack.c.bf16 %v5500_v8, %v5485_v14  ;;  %v11050_v8 = vld [vmem:[%s11538_s11 + $0x4c] ss:$16 sps:$4 sm:$0xff]   ;;  %v11056_v14 = vld [vmem:[%s11538_s11 + $0x64] ss:$16 sps:$4 sm:$0xff]  }
 0x760   :  { %v5604_v59 = vpack.c.bf16 %v5270_v63, %v5166_v38 }
 0x762   :  { %v5362_v37 = vpop.permute.xlu0 %5361  ;;  %5927 = vmatprep.subr.bf16.mxu0 %v5604_v59  ;;  %v5515_v60 = vld [vmem:[#allocation3 + $0x340] sm:$0xff] }
 0x763   :  { %v5378_v35 = vsel %vm3388_vm13, %v5360_v58, %v5362_v37  ;;  %5928 = vmatpush1.bf16.msra.mxu0 %v5603_v3  ;;  %v10983_v58 = vld [vmem:[%s11538_s11 + $0xc] ss:$16 sps:$4 sm:$0xff]  }
 0x764   :  { %v5619_v31 = vpack.c.bf16 %v5378_v35, %v5378_v35 }
 0x766   :  { %v4913_v62 = vpop.permute.xlu0 %4912  ;;  %7522 = vmatprep.subr.msk.bf16.mxu0 %vm357_vm11, %v5619_v31  ;;  %v5530_v12 = vld [vmem:[#allocation3 + $0x3b8] sm:$0xff] }
 0x767   :  { %v4928_v47 = vsel %vm3388_vm13, %v4911_v43, %v4913_v62  ;;  %v10911_v30 = vpop.permute.xlu1 %5624  ;;  %5930 = vmatpush1.bf16.msra.mxu0 %v5667_v0  ;;  %v5605_v44 = vpack.c.bf16 %v5530_v12, %v5515_v60  ;;  %v11068_v12 = vld [vmem:[%s11538_s11 + $0x60] ss:$16 sps:$4 sm:$0xff]  }
 0x768   :  { %4958 = vst.msk [vmem:[#allocation3 + $0x1d8] sm:$0xff] %vm62_vm15, %v4928_v47  ;;  %6511 = vmatprep.subr.bf16.mxu0 %v10973_v39  ;;  %v11011_v47 = vld [vmem:[%s11538_s11 + $0x20] ss:$16 sps:$4 sm:$0xff]  }
 0x76a   :  { %7523 = vmatmul.mubr.msk.bf16.vlgmr.msra.gmra.mrb[56].mxu0 %vm2229_vm9, %v7875_v46 }
 0x76b   :  { %v5364_v27 = vpop.permute.xlu1 %5363  ;;  %6512 = vmatpush1.bf16.msra.mxu0 %v10968_v10 }
 0x76c   :  { %v5379_v1 = vsel %vm3388_vm13, %v5362_v37, %v5364_v27  ;;  %v11021_v27 = vld [vmem:[%s11538_s11 + $0x28] ss:$16 sps:$4 sm:$0xff]   ;;  %vm6145_vm13 = vcmask 900096  }
 0x76d   :  { %5409 = vst.msk [vmem:[#allocation3 + $0x430] sm:$0xff] %vm62_vm15, %v5379_v1  ;;  %v11026_v1 = vld [vmem:[%s11538_s11 + $0x2c] ss:$16 sps:$4 sm:$0xff]  }
 0x76f   :  { %v5470_v26 = vld [vmem:[#allocation3 + $0x1d8] sm:$0xff] }
 0x770   :  { %v5575_v24 = vpack.c.bf16 %v5470_v26, %v5455_v41  ;;  %v11035_v41 = vld [vmem:[%s11538_s11 + $0x40] ss:$16 sps:$4 sm:$0xff]   ;;  %v11040_v26 = vld [vmem:[%s11538_s11 + $0x44] ss:$16 sps:$4 sm:$0xff]  }
 0x772   :  { %7713 = vmatpush3.bf16.msra.mxu1 %v5575_v24  ;;  %v11045_v24 = vld [vmem:[%s11538_s11 + $0x48] ss:$16 sps:$4 sm:$0xff]  }
 0x773   :  { %7714 = vmatprep.subr.bf16.mxu1 %v10881_v17 }
 0x774   :  { %v5545_v57 = vld [vmem:[#allocation3 + $0x430] sm:$0xff] }
 0x775   :  { %v5709_v4 = vpop.f32.mrb[44].mxu0  ;;  %v5620_v45 = vpack.c.bf16 %v5545_v57, %v5545_v57  ;;  %v11080_v57 = vld [vmem:[%s11538_s11 + $0x84] ss:$16 sps:$4 sm:$0xff]  }
 0x776   :  { %7715 = vmatpush3.bf16.msra.mxu1 %v5590_v48  ;;  %v5710_v19 = vadd.f32 %v5709_v4, %v10911_v30  ;;  %v5711_v36 = vpop.f32.mrb[45].mxu0  ;;  %v11061_v48 = vld [vmem:[%s11538_s11 + $0x6c] ss:$16 sps:$4 sm:$0xff]   ;;  %v11075_v4 = vld [vmem:[%s11538_s11 + $0x68] ss:$16 sps:$4 sm:$0xff]  }
 0x777   :  { %7716 = vmatprep.subr.bf16.mxu1 %v10881_v17  ;;  %v10924_v56 = vadd.f32 %v5711_v36, %v10911_v30  ;;  %v5713_v50 = vpop.f32.mrb[46].mxu0  ;;  %v5673_v20 = vsel %vm357_vm11, %v5620_v45, 0  ;;  %v11086_v36 = vld [vmem:[%s11538_s11 + $0x8c] ss:$16 sps:$4 sm:$0xff]   ;;  %vm6083_vm11 = vcmask 261120  }
 0x778   :  { %v6002_v28 = vmax.f32 %v5710_v19, 0.0  ;;  %v5714_v25 = vpop.f32.mrb[47].mxu0 }
 0x779   :  { %v11552_v54 = vmax.f32 %v10924_v56, 0.0  ;;  %v11094_v25 = vld [vmem:[%s11538_s11 + $0x80] ss:$16 sps:$4 sm:$0xff]  }
 0x77a   :  { %7717 = vmatpush3.bf16.msra.mxu1 %v5605_v44  ;;  %6017 = vst [vmem:[%s11545_s18] sm:$0xff] %v6002_v28  ;;  %6034 = vrot.lane.b32.xlu0 %v6002_v28, %s7932_s29  ;;  %s7966_s29 = smov 6  }
 0x77b   :  { %7718 = vmatprep.subr.bf16.mxu1 %v10881_v17  ;;  %6018 = vst [vmem:[%s11545_s18 + $0x8] sm:$0xff] %v11552_v54 }
 0x77e   :  { %7719 = vmatpush3.bf16.msra.mxu1 %v5673_v20 }
 0x77f   :  { %6552 = vmatprep.subr.bf16.mxu1 %v10983_v58 }
 0x781   :  { %7721 = vmatmul.mubr.msk.bf16.vlgmr.msra.gmra.mrb[64].mxu1 %vm2229_vm9, %v7875_v46  ;;  %v11016_v46 = vld [vmem:[%s11538_s11 + $0x24] ss:$16 sps:$4 sm:$0xff]   ;;  %vm6114_vm9 = vcmask 113664  }
 0x782   :  { %6553 = vmatpush1.bf16.msra.mxu1 %v10978_v42  ;;  %6513 = vmatprep.subr.bf16.mxu0 %v11016_v46 }
 0x783   :  { %6554 = vmatprep.subr.bf16.mxu1 %v11026_v1  ;;  %6514 = vmatpush1.bf16.msra.mxu0 %v11011_v47 }
 0x784   :  { %6515 = vmatprep.subr.bf16.mxu0 %v11040_v26 }
 0x786   :  { %6555 = vmatpush1.bf16.msra.mxu1 %v11021_v27 }
 0x787   :  { %6556 = vmatprep.subr.bf16.mxu1 %v11050_v8  ;;  %6516 = vmatpush1.bf16.msra.mxu0 %v11035_v41 }
 0x788   :  { %6517 = vmatprep.subr.bf16.mxu0 %v11056_v14 }
 0x78a   :  { %6557 = vmatpush1.bf16.msra.mxu1 %v11045_v24 }
 0x78b   :  { %6558 = vmatprep.subr.bf16.mxu1 %v11061_v48  ;;  %6518 = vmatpush1.bf16.msra.mxu0 %v11068_v12 }
 0x78c   :  { %6519 = vmatprep.subr.bf16.mxu0 %v11080_v57 }
 0x78e   :  { %6559 = vmatpush1.bf16.msra.mxu1 %v11075_v4 }
 0x78f   :  { %6560 = vmatprep.subr.bf16.mxu1 %v11086_v36  ;;  %6520 = vmatpush1.bf16.msra.mxu0 %v11094_v25 }
 0x7a1   :  { %v5750_v55 = vpop.f32.mrb[52].mxu1 }
 0x7a2   :  { %v10940_v34 = vadd.f32 %v5750_v55, %v10911_v30  ;;  %v5752_v2 = vpop.f32.mrb[53].mxu1  ;;  %v11101_v55 = vld [vmem:[%s11538_s11 + $0x88] ss:$16 sps:$4 sm:$0xff]  }
 0x7a3   :  { %v5753_v23 = vadd.f32 %v5752_v2, %v10911_v30  ;;  %v5754_v16 = vpop.f32.mrb[54].mxu1  ;;  %v11106_v2 = vld [vmem:[%s11538_s11 + $0xa4] ss:$16 sps:$4 sm:$0xff]   ;;  %6561 = vmatpush1.bf16.msra.mxu1 %v11101_v55 }
 0x7a4   :  { %v11551_v49 = vmax.f32 %v10940_v34, 0.0  ;;  %v5755_v21 = vpop.f32.mrb[55].mxu1  ;;  %v11112_v16 = vld [vmem:[%s11538_s11 + $0xac] ss:$16 sps:$4 sm:$0xff]   ;;  %6521 = vmatprep.subr.bf16.mxu0 %v11106_v2 }
 0x7a5   :  { %v10944_v33 = vmax.f32 %v5753_v23, 0.0  ;;  %v11125_v21 = vld [vmem:[%s11538_s11 + $0xa0] ss:$16 sps:$4 sm:$0xff]   ;;  %6562 = vmatprep.subr.bf16.mxu1 %v11112_v16 }
 0x7a6   :  { %6019 = vst [vmem:[%s11545_s18 + $0x10] sm:$0xff] %v11551_v49  ;;  %6522 = vmatpush1.bf16.msra.mxu0 %v11125_v21 }
 0x7a7   :  { %6020 = vst [vmem:[%s11545_s18 + $0x18] sm:$0xff] %v10944_v33 }
 0x7b9   :  { %v5791_v9 = vpop.f32.mrb[48].mxu0 }
 0x7ba   :  { %v5792_v22 = vadd.f32 %v5791_v9, %v10911_v30  ;;  %v5793_v29 = vpop.f32.mrb[49].mxu0  ;;  %v11132_v9 = vld [vmem:[%s11538_s11 + $0xa8] ss:$16 sps:$4 sm:$0xff]  }
 0x7bb   :  { %v5794_v43 = vadd.f32 %v5793_v29, %v10911_v30  ;;  %v5795_v13 = vpop.f32.mrb[50].mxu0  ;;  %v11143_v29 = vld [vmem:[%s11538_s11 + $0xcc] ss:$16 sps:$4 sm:$0xff]   ;;  %6563 = vmatpush1.bf16.msra.mxu1 %v11132_v9 }
 0x7bc   :  { %v6006_v5 = vmax.f32 %v5792_v22, 0.0  ;;  %v5796_v7 = vpop.f32.mrb[51].mxu0  ;;  %v11137_v22 = vld [vmem:[%s11538_s11 + $0xc4] ss:$16 sps:$4 sm:$0xff]   ;;  %v11157_v13 = vld [vmem:[%s11538_s11 + $0xc8] ss:$16 sps:$4 sm:$0xff]   ;;  %6564 = vmatprep.subr.bf16.mxu1 %v11143_v29 }
 0x7bd   :  { %v6007_v51 = vmax.f32 %v5794_v43, 0.0  ;;  %v11150_v43 = vld [vmem:[%s11538_s11 + $0xc0] ss:$16 sps:$4 sm:$0xff]   ;;  %6523 = vmatprep.subr.bf16.mxu0 %v11137_v22  ;;  %v11168_v7 = vld [vmem:[%s11538_s11 + $0xec] ss:$16 sps:$4 sm:$0xff]  }
 0x7be   :  { %6021 = vst [vmem:[%s11545_s18 + $0x20] sm:$0xff] %v6006_v5  ;;  %6065 = vrot.lane.b32.xlu1 %v6006_v5, %s7951_s2  ;;  %6079 = vrot.lane.b32.xlu0 %v6006_v5, %s7952_s8  ;;  %v11162_v5 = vld [vmem:[%s11538_s11 + $0xe4] ss:$16 sps:$4 sm:$0xff]  }
 0x7bf   :  { %6022 = vst [vmem:[%s11545_s18 + $0x28] sm:$0xff] %v6007_v51  ;;  %6524 = vmatpush1.bf16.msra.mxu0 %v11150_v43  ;;  %6565 = vmatpush1.bf16.msra.mxu1 %v11157_v13 }
 0x7c0   :  { %6525 = vmatprep.subr.bf16.mxu0 %v11162_v5  ;;  %6566 = vmatprep.subr.bf16.mxu1 %v11168_v7 }
 0x7c2   :  { %6081 = vrot.lane.b32.xlu1 %v6007_v51, %s7952_s8 }
 0x7c6   :  { %6092 = vrot.lane.b32.xlu1 %v6007_v51, %s7941_s23  ;;  %v11174_v51 = vld [vmem:[%s11538_s11 + $0xe0] ss:$16 sps:$4 sm:$0xff]  }
 0x7c7   :  { %6526 = vmatpush1.bf16.msra.mxu0 %v11174_v51 }
 0x7e1   :  { %v5832_v6 = vpop.f32.mrb[56].mxu1 }
 0x7e2   :  { %v5833_v32 = vadd.f32 %v5832_v6, %v10911_v30  ;;  %v5834_v40 = vpop.f32.mrb[57].mxu1 }
 0x7e3   :  { %v5835_v11 = vadd.f32 %v5834_v40, %v10911_v30  ;;  %v5836_v52 = vpop.f32.mrb[58].mxu1  ;;  %v11188_v40 = vld [vmem:[%s11538_s11 + $0x104] ss:$16 sps:$4 sm:$0xff]  }
 0x7e4   :  { %v6008_v61 = vmax.f32 %v5833_v32, 0.0  ;;  %v5837_v38 = vpop.f32.mrb[59].mxu1  ;;  %v11183_v32 = vld [vmem:[%s11538_s11 + $0xe8] ss:$16 sps:$4 sm:$0xff]   ;;  %6527 = vmatprep.subr.bf16.mxu0 %v11188_v40 }
 0x7e5   :  { %v6009_v18 = vmax.f32 %v5835_v11, 0.0  ;;  %v11196_v11 = vld [vmem:[%s11538_s11 + $0x100] ss:$16 sps:$4 sm:$0xff]   ;;  %6567 = vmatpush1.bf16.msra.mxu1 %v11183_v32  ;;  %v11203_v38 = vld [vmem:[%s11538_s11 + $0x108] ss:$16 sps:$4 sm:$0xff]  }
 0x7e6   :  { %6023 = vst [vmem:[%s11545_s18 + $0x30] sm:$0xff] %v6008_v61  ;;  %6094 = vrot.lane.b32.xlu0 %v6008_v61, %s7941_s23  ;;  %6528 = vmatpush1.bf16.msra.mxu0 %v11196_v11 }
 0x7e7   :  { %6024 = vst [vmem:[%s11545_s18 + $0x38] sm:$0xff] %v6009_v18  ;;  %6102 = vrot.lane.b32.xlu1 %v6009_v18, %s7953_s27  ;;  %s7955_s27 = smov 34   ;;  %v11208_v18 = vld [vmem:[%s11538_s11 + $0x10c] ss:$16 sps:$4 sm:$0xff]  }
 0x7e8   :  { %6568 = vmatprep.subr.bf16.mxu1 %v11208_v18 }
 0x7e9   :  { %6569 = vmatpush1.bf16.msra.mxu1 %v11203_v38 }
 0x7ec   :  { %v6035_v63 = vpop.permute.xlu0 %6034 }
 0x7ed   :  { %6037 = vst.msk [vmem:[#allocation4] sm:$0xff] %vm122_vm3, %v6035_v63  ;;  %vm6073_vm3 = vcmask 179200  }
 0x7fd   :  { %v5873_v59 = vpop.f32.mrb[52].mxu0 }
 0x7fe   :  { %v5874_v3 = vadd.f32 %v5873_v59, %v10911_v30  ;;  %v5875_v37 = vpop.f32.mrb[53].mxu0  ;;  %v11214_v59 = vld [vmem:[%s11538_s11 + $0x124] ss:$16 sps:$4 sm:$0xff]  }
 0x7ff   :  { %v5876_v53 = vadd.f32 %v5875_v37, %v10911_v30  ;;  %v5877_v35 = vpop.f32.mrb[54].mxu0  ;;  %6529 = vmatprep.subr.bf16.mxu0 %v11214_v59  ;;  %v11227_v37 = vld [vmem:[%s11538_s11 + $0x128] ss:$16 sps:$4 sm:$0xff]  }
 0x800   :  { %v6010_v31 = vmax.f32 %v5874_v3, 0.0  ;;  %v5878_v62 = vpop.f32.mrb[55].mxu0  ;;  %v11220_v3 = vld [vmem:[%s11538_s11 + $0x120] ss:$16 sps:$4 sm:$0xff]   ;;  %v11237_v35 = vld [vmem:[%s11538_s11 + $0x144] ss:$16 sps:$4 sm:$0xff]  }
 0x801   :  { %v6011_v0 = vmax.f32 %v5876_v53, 0.0  ;;  %v11232_v53 = vld [vmem:[%s11538_s11 + $0x12c] ss:$16 sps:$4 sm:$0xff]   ;;  %6530 = vmatpush1.bf16.msra.mxu0 %v11220_v3  ;;  %v11251_v62 = vld [vmem:[%s11538_s11 + $0x148] ss:$16 sps:$4 sm:$0xff]  }
 0x802   :  { %6025 = vst [vmem:[%s11545_s18 + $0x40] sm:$0xff] %v6010_v31  ;;  %6109 = vrot.lane.b32.xlu0 %v6010_v31, %s7954_s22  ;;  %s7956_s22 = smov 72   ;;  %6570 = vmatprep.subr.bf16.mxu1 %v11232_v53  ;;  %v11244_v31 = vld [vmem:[%s11538_s11 + $0x140] ss:$16 sps:$4 sm:$0xff]  }
 0x803   :  { %6026 = vst [vmem:[%s11545_s18 + $0x48] sm:$0xff] %v6011_v0  ;;  %6571 = vmatpush1.bf16.msra.mxu1 %v11227_v37  ;;  %6531 = vmatprep.subr.bf16.mxu0 %v11237_v35 }
 0x805   :  { %6532 = vmatpush1.bf16.msra.mxu0 %v11244_v31 }
 0x806   :  { %6118 = vrot.lane.b32.xlu0 %v6011_v0, %s7946_s25  ;;  %v11256_v0 = vld [vmem:[%s11538_s11 + $0x14c] ss:$16 sps:$4 sm:$0xff]   ;;  %s7960_s25 = smov 46  }
 0x807   :  { %6572 = vmatprep.subr.bf16.mxu1 %v11256_v0 }
 0x808   :  { %6573 = vmatpush1.bf16.msra.mxu1 %v11251_v62 }
 0x821   :  { %v5914_v19 = vpop.f32.mrb[60].mxu1 }
 0x822   :  { %v5915_v60 = vadd.f32 %v5914_v19, %v10911_v30  ;;  %v5916_v50 = vpop.f32.mrb[61].mxu1 }
 0x823   :  { %v5917_v44 = vadd.f32 %v5916_v50, %v10911_v30  ;;  %v5918_v28 = vpop.f32.mrb[62].mxu1 }
 0x824   :  { %v6012_v45 = vmax.f32 %v5915_v60, 0.0  ;;  %v5919_v20 = vpop.f32.mrb[63].mxu1 }
 0x825   :  { %v6013_v23 = vmax.f32 %v5917_v44, 0.0  ;;  %v11263_v44 = vld [vmem:[%s11538_s11 + $0x164] ss:$16 sps:$4 sm:$0xff]   ;;  %v11270_v20 = vld [vmem:[%s11538_s11 + $0x160] ss:$16 sps:$4 sm:$0xff]  }
 0x826   :  { %6027 = vst [vmem:[%s11545_s18 + $0x50] sm:$0xff] %v6012_v45  ;;  %6125 = vrot.lane.b32.xlu1 %v6012_v45, %s7955_s27  ;;  %6533 = vmatprep.subr.bf16.mxu0 %v11263_v44 }
 0x827   :  { %6028 = vst [vmem:[%s11545_s18 + $0x58] sm:$0xff] %v6013_v23  ;;  %6132 = vrot.lane.b32.xlu0 %v6013_v23, %s7956_s22  ;;  %6534 = vmatpush1.bf16.msra.mxu0 %v11270_v20 }
 0x82a   :  { %6141 = vrot.lane.b32.xlu1 %v6013_v23, %s7957_s17  ;;  %v11275_v23 = vld [vmem:[%s11538_s11 + $0x16c] ss:$16 sps:$4 sm:$0xff]  }
 0x82b   :  { %6574 = vmatprep.subr.bf16.mxu1 %v11275_v23 }
 0x830   :  { %v11176_v6 = vpop.permute.xlu1 %6065  ;;  %v6080_v61 = vpop.permute.xlu0 %6079 }
 0x831   :  { %6074 = vst.msk [vmem:[#allocation4 + $0x8] sm:$0xff] %vm6073_vm3, %v11176_v6  ;;  %vm6043_vm3 = vcmask 490736  }
 0x834   :  { %v6082_v52 = vpop.permute.xlu1 %6081 }
 0x835   :  { %v6084_v63 = vsel %vm6083_vm11, %v6080_v61, %v6082_v52  ;;  %vm6161_vm11 = vcmask 162816  }
 0x836   :  { %6087 = vst.msk [vmem:[#allocation4 + $0x8] sm:$0xff] %vm6086_vm2, %v6084_v63  ;;  %v11282_v63 = vld [vmem:[%s11538_s11 + $0x168] ss:$16 sps:$4 sm:$0xff]   ;;  %vm6164_vm2 = vcmask 293936  }
 0x837   :  { %11573 = vst [vmem:[#allocation13_spill] sm:$0xff] %v11282_v63  ;;  %6575 = vmatpush1.bf16.msra.mxu1 %v11282_v63  ;;  %v11576_v63 = vmax.f32 %v10924_v56, 0.0  ;;  %v11577_v56 = vmax.f32 %v10940_v34, 0.0 }
 0x83d   :  { %v5955_v19 = vpop.f32.mrb[56].mxu0 }
 0x83e   :  { %v5956_v60 = vadd.f32 %v5955_v19, %v10911_v30  ;;  %v5957_v50 = vpop.f32.mrb[57].mxu0 }
 0x83f   :  { %v5958_v28 = vadd.f32 %v5957_v50, %v10911_v30  ;;  %v5959_v45 = vpop.f32.mrb[58].mxu0  ;;  %v11301_v50 = vld [vmem:[%s11538_s11 + $0x180] ss:$16 sps:$4 sm:$0xff]  }
 0x840   :  { %v6014_v52 = vmax.f32 %v5956_v60, 0.0  ;;  %v5960_v61 = vpop.f32.mrb[59].mxu0  ;;  %v11292_v60 = vld [vmem:[%s11538_s11 + $0x184] ss:$16 sps:$4 sm:$0xff]   ;;  %v11311_v45 = vld [vmem:[%s11538_s11 + $0x18c] ss:$16 sps:$4 sm:$0xff]  }
 0x841   :  { %v6015_v19 = vmax.f32 %v5958_v28, 0.0  ;;  %11574 = vst [vmem:[#allocation14_spill] sm:$0xff] %v11292_v60  ;;  %v11306_v28 = vld [vmem:[%s11538_s11 + $0x188] ss:$16 sps:$4 sm:$0xff]   ;;  %11575 = vst [vmem:[#allocation15_spill] sm:$0xff] %v11311_v45  ;;  %6535 = vmatprep.subr.bf16.mxu0 %v11292_v60  ;;  %6576 = vmatprep.subr.bf16.mxu1 %v11311_v45 }
 0x842   :  { %6029 = vst [vmem:[%s11545_s18 + $0x60] sm:$0xff] %v6014_v52  ;;  %6157 = vrot.lane.b32.xlu1 %v6014_v52, %s7958_s16  ;;  %6143 = vrot.lane.b32.xlu0 %v6014_v52, %s7957_s17  ;;  %v6222_v52 = vld [vmem:[%s11538_s11 + $0x1a0] sm:$0x11] }
 0x843   :  { %6030 = vst [vmem:[%s11545_s18 + $0x68] sm:$0xff] %v6015_v19  ;;  %v6223_v61 = vld [vmem:[%s11538_s11 + $0x1a8] sm:$0x11]  ;;  %v7578_v49 = vcombine.high %v6222_v52, %v6222_v52  ;;  %v7577_v15 = vcombine.low %v6222_v52, %v6222_v52  ;;  %6536 = vmatpush1.bf16.msra.mxu0 %v11301_v50  ;;  %6577 = vmatpush1.bf16.msra.mxu1 %v11306_v28 }
 0x844   :  { %v7580_v54 = vcombine.high %v6223_v61, %v6223_v61  ;;  %v7579_v17 = vcombine.low %v6223_v61, %v6223_v61 }
 0x845   :  { %7581 = vmatprep.subr.msk.bf16.mxu0 %vm6498_vm4, %v7578_v49  ;;  %v6500_v60 = vsel %vm6498_vm4, %v7577_v15, 0  ;;  %v6093_v49 = vpop.permute.xlu1 %6092 }
 0x846   :  { %6040 = vrot.lane.b32.xlu1 %v11576_v63, %s7950_s24  ;;  %6159 = vrot.lane.b32.xlu0 %v6015_v19, %s7958_s16  ;;  %v6506_v45 = vsel %vm6498_vm4, %v7579_v17, 0  ;;  %s7964_s16 = smov 28  }
 0x847   :  { %7583 = vmatprep.subr.msk.bf16.mxu1 %vm6498_vm4, %v7580_v54  ;;  %6538 = vmatpush1.bf16.msra.mxu0 %v6500_v60 }
 0x848   :  { %6579 = vmatpush1.bf16.msra.mxu1 %v6506_v45  ;;  %7107 = vmatprep.subr.bf16.mxu0 %v10973_v39 }
 0x849   :  { %7148 = vmatprep.subr.bf16.mxu1 %v10983_v58 }
 0x84a   :  { %6054 = vrot.lane.b32.xlu1 %v10944_v33, %s7959_s6  ;;  %6047 = vrot.lane.b32.xlu0 %v11577_v56, %s7960_s25 }
 0x84e   :  { %6063 = vrot.lane.b32.xlu0 %v10944_v33, %s7951_s2 }
 0x854   :  { %v5996_v15 = vpop.f32.mrb[64].mxu1 }
 0x855   :  { %v5997_v17 = vadd.f32 %v5996_v15, %v10911_v30  ;;  %v7722_v54 = vpop.f32.mrb[65].mxu1 }
 0x856   :  { %v5999_v63 = vpop.f32.mrb[66].mxu1 }
 0x857   :  { %v6016_v19 = vmax.f32 %v5997_v17, 0.0  ;;  %v7723_v52 = vpop.f32.mrb[67].mxu1 }
 0x858   :  { %v6095_v34 = vpop.permute.xlu0 %6094 }
 0x859   :  { %6031 = vst.msk [vmem:[%s11545_s18 + $0x70] sm:$0xff] %vm62_vm15, %v6016_v19  ;;  %v6096_v39 = vsel %vm1757_vm7, %v6093_v49, %v6095_v34  ;;  %v6103_v58 = vpop.permute.xlu1 %6102  ;;  %vm6128_vm15 = vcmask 605536   ;;  %vm6135_vm7 = vcmask 851536  }
 0x85a   :  { %6099 = vst.msk [vmem:[#allocation4 + $0x8] sm:$0xff] %vm6098_vm5, %v6096_v39  ;;  %vm6050_vm5 = vcmask 736736  }
 0x85b   :  { %6106 = vst.msk [vmem:[#allocation4 + $0x8] sm:$0xff] %vm6105_vm6, %v6103_v58  ;;  %vm6057_vm6 = vcmask 982736  }
 0x874   :  { %v6110_v30 = vpop.permute.xlu0 %6109 }
 0x875   :  { %6113 = vst.msk [vmem:[#allocation4 + $0x8] sm:$0xff] %vm6112_vm8, %v6110_v30  ;;  %vm6067_vm8 = vcmask 998400  }
 0x876   :  { %6115 = vst.msk [vmem:[#allocation4 + $0x10] sm:$0xff] %vm6114_vm9, %v6110_v30  ;;  %vm6071_vm9 = vcmask 1048512  }
 0x878   :  { %v6119_v33 = vpop.permute.xlu0 %6118 }
 0x879   :  { %6122 = vst.msk [vmem:[#allocation4 + $0x10] sm:$0xff] %vm6121_vm10, %v6119_v33  ;;  %vm6818_vm10 = vcmask 375808  }
 0x87c   :  { %v6167_v60 = vld [vmem:[#allocation4 + $0x8] sm:$0xff] }
 0x87d   :  { %v6169_v45 = vpack.c.bf16 %v6167_v60, %v6167_v60 }
 0x87f   :  { %7582 = vmatprep.mubr.msk.bf16.mxu0 %vm6494_vm12, %v6169_v45  ;;  %7584 = vmatprep.mubr.msk.bf16.mxu1 %vm6494_vm12, %v6169_v45 }
 0x898   :  { %v6126_v61 = vpop.permute.xlu1 %6125 }
 0x899   :  { %6129 = vst.msk [vmem:[#allocation4 + $0x10] sm:$0xff] %vm6128_vm15, %v6126_v61  ;;  %v6133_v56 = vpop.permute.xlu0 %6132  ;;  %vm6747_vm15 = vcmask 401408  }
 0x89a   :  { %6136 = vst.msk [vmem:[#allocation4 + $0x10] sm:$0xff] %vm6135_vm7, %v6133_v56 }
 0x89c   :  { %v6142_v15 = vpop.permute.xlu1 %6141 }
 0x8b4   :  { %v6158_v17 = vpop.permute.xlu1 %6157  ;;  %v6144_v54 = vpop.permute.xlu0 %6143 }
 0x8b5   :  { %v6146_v49 = vsel %vm6145_vm13, %v6142_v15, %v6144_v54  ;;  %6152 = vst.msk [vmem:[#allocation4 + $0x18] sm:$0xff] %vm6151_vm0, %v6144_v54 }
 0x8b6   :  { %6150 = vst.msk [vmem:[#allocation4 + $0x10] sm:$0xff] %vm6149_vm1, %v6146_v49 }
 0x8b8   :  { %v6041_v63 = vpop.permute.xlu1 %6040  ;;  %v6160_v19 = vpop.permute.xlu0 %6159 }
 0x8b9   :  { %6044 = vst.msk [vmem:[#allocation4] sm:$0xff] %vm6043_vm3, %v6041_v63  ;;  %v6162_v52 = vsel %vm6161_vm11, %v6158_v17, %v6160_v19 }
 0x8ba   :  { %6165 = vst.msk [vmem:[#allocation4 + $0x18] sm:$0xff] %vm6164_vm2, %v6162_v52 }
 0x8bc   :  { %v6055_v34 = vpop.permute.xlu1 %6054  ;;  %v6048_v39 = vpop.permute.xlu0 %6047 }
 0x8bd   :  { %6051 = vst.msk [vmem:[#allocation4] sm:$0xff] %vm6050_vm5, %v6048_v39  ;;  %v6750_v58 = vld [vmem:[#allocation4 + $0x10] sm:$0xff] }
 0x8be   :  { %6058 = vst.msk [vmem:[#allocation4] sm:$0xff] %vm6057_vm6, %v6055_v34  ;;  %v6753_v30 = vpack.c.bf16 %v6750_v58, %v6750_v58 }
 0x8c0   :  { %6814 = vrot.lane.b32.xlu1 %v6753_v30, %s7960_s25  ;;  %v6064_v33 = vpop.permute.xlu0 %6063 }
 0x8c1   :  { %v6068_v60 = vsel %vm6067_vm8, %v6064_v33, %v11176_v6  ;;  %v6751_v61 = vld [vmem:[#allocation4 + $0x18] sm:$0xff] }
 0x8c2   :  { %6072 = vst.msk [vmem:[#allocation4] sm:$0xff] %vm6071_vm9, %v6068_v60  ;;  %v6754_v56 = vpack.c.bf16 %v6751_v61, %v6751_v61 }
 0x8c4   :  { %6812 = vrot.lane.b32.xlu1 %v6169_v45, %s7960_s25  ;;  %6816 = vrot.lane.b32.xlu0 %v6754_v56, %s7960_s25 }
 0x8c9   :  { %v6166_v15 = vld [vmem:[#allocation4] sm:$0xff] }
 0x8ca   :  { %v6168_v17 = vpack.c.bf16 %v6166_v15, %v6166_v15 }
 0x8cc   :  { %6544 = vmatmul.mubr.bf16.vlgmr.msra.gmra.mrb[60].mxu0 %v6168_v17  ;;  %6585 = vmatmul.mubr.bf16.vlgmr.msra.gmra.mrb[68].mxu1 %v6168_v17 }
 0x8cd   :  { %7108 = vmatpush1.bf16.msra.mxu0 %v10968_v10  ;;  %7149 = vmatpush1.bf16.msra.mxu1 %v10978_v42  ;;  %v6807_v10 = vld [vmem:[%s11538_s11 + $0x1a0] sm:$0x11]  ;;  %v6808_v42 = vld [vmem:[%s11538_s11 + $0x1a8] sm:$0x11]  ;;  %s7962_s11 = smov 78  }
 0x8ce   :  { %7109 = vmatprep.subr.bf16.mxu0 %v11016_v46  ;;  %7150 = vmatprep.subr.bf16.mxu1 %v11026_v1  ;;  %v7638_v46 = vcombine.high %v6807_v10, %v6807_v10  ;;  %v11580_v1 = vld [vmem:[#allocation15_spill] sm:$0xff] }
 0x8d1   :  { %7110 = vmatpush1.bf16.msra.mxu0 %v11011_v47  ;;  %7151 = vmatpush1.bf16.msra.mxu1 %v11021_v27  ;;  %v11578_v47 = vld [vmem:[#allocation13_spill] sm:$0xff]  ;;  %v11579_v27 = vld [vmem:[#allocation14_spill] sm:$0xff] }
 0x8d2   :  { %7111 = vmatprep.subr.bf16.mxu0 %v11040_v26  ;;  %7152 = vmatprep.subr.bf16.mxu1 %v11050_v8  ;;  %v7637_v26 = vcombine.low %v6807_v10, %v6807_v10 }
 0x8d4   :  { %v7096_v8 = vsel %vm6498_vm4, %v7637_v26, 0 }
 0x8d5   :  { %7112 = vmatpush1.bf16.msra.mxu0 %v11035_v41  ;;  %7153 = vmatpush1.bf16.msra.mxu1 %v11045_v24  ;;  %v7640_v41 = vcombine.high %v6808_v42, %v6808_v42  ;;  %v7639_v24 = vcombine.low %v6808_v42, %v6808_v42 }
 0x8d6   :  { %7113 = vmatprep.subr.bf16.mxu0 %v11056_v14  ;;  %7154 = vmatprep.subr.bf16.mxu1 %v11061_v48  ;;  %v11581_v48 = vld [vmem:[#allocation12_spill] sm:$0xff] }
 0x8d7   :  { %v7102_v14 = vsel %vm6498_vm4, %v7639_v24, 0 }
 0x8d9   :  { %7114 = vmatpush1.bf16.msra.mxu0 %v11068_v12  ;;  %7155 = vmatpush1.bf16.msra.mxu1 %v11075_v4 }
 0x8da   :  { %7115 = vmatprep.subr.bf16.mxu0 %v11080_v57  ;;  %7156 = vmatprep.subr.bf16.mxu1 %v11086_v36 }
 0x8dd   :  { %7116 = vmatpush1.bf16.msra.mxu0 %v11094_v25  ;;  %7157 = vmatpush1.bf16.msra.mxu1 %v11101_v55  ;;  %v7961_v55 = vmov 1966171168  }
 0x8de   :  { %7117 = vmatprep.subr.bf16.mxu0 %v11106_v2  ;;  %7158 = vmatprep.subr.bf16.mxu1 %v11112_v16  ;;  %v6597_v2 = vunpack.c.l.s4 %v7961_v55 }
 0x8e0   :  { %v6598_v16 = vunpack.c.0.s8 %v6597_v2 }
 0x8e1   :  { %7118 = vmatpush1.bf16.msra.mxu0 %v11125_v21  ;;  %7159 = vmatpush1.bf16.msra.mxu1 %v11132_v9  ;;  %v11582_v21 = vld [vmem:[#allocation11_spill] sm:$0xff] }
 0x8e2   :  { %7119 = vmatprep.subr.bf16.mxu0 %v11137_v22  ;;  %7160 = vmatprep.subr.bf16.mxu1 %v11143_v29  ;;  %v11419_v9 = vsub.s32 %v6598_v16, %v11582_v21 }
 0x8e5   :  { %7120 = vmatpush1.bf16.msra.mxu0 %v11150_v43  ;;  %7161 = vmatpush1.bf16.msra.mxu1 %v11157_v13 }
 0x8e6   :  { %7121 = vmatprep.subr.bf16.mxu0 %v11162_v5  ;;  %7162 = vmatprep.subr.bf16.mxu1 %v11168_v7 }
 0x8e9   :  { %7122 = vmatpush1.bf16.msra.mxu0 %v11174_v51  ;;  %7163 = vmatpush1.bf16.msra.mxu1 %v11183_v32 }
 0x8ea   :  { %7123 = vmatprep.subr.bf16.mxu0 %v11188_v40  ;;  %7164 = vmatprep.subr.bf16.mxu1 %v11208_v18 }
 0x8ed   :  { %7124 = vmatpush1.bf16.msra.mxu0 %v11196_v11  ;;  %7165 = vmatpush1.bf16.msra.mxu1 %v11203_v38 }
 0x8ee   :  { %7125 = vmatprep.subr.bf16.mxu0 %v11214_v59  ;;  %7166 = vmatprep.subr.bf16.mxu1 %v11232_v53 }
 0x8f1   :  { %7126 = vmatpush1.bf16.msra.mxu0 %v11220_v3  ;;  %7167 = vmatpush1.bf16.msra.mxu1 %v11227_v37 }
 0x8f2   :  { %7127 = vmatprep.subr.bf16.mxu0 %v11237_v35  ;;  %7168 = vmatprep.subr.bf16.mxu1 %v11256_v0 }
 0x8f5   :  { %7128 = vmatpush1.bf16.msra.mxu0 %v11244_v31  ;;  %7169 = vmatpush1.bf16.msra.mxu1 %v11251_v62 }
 0x8f6   :  { %7129 = vmatprep.subr.bf16.mxu0 %v11263_v44  ;;  %7170 = vmatprep.subr.bf16.mxu1 %v11275_v23 }
 0x8f9   :  { %7130 = vmatpush1.bf16.msra.mxu0 %v11270_v20  ;;  %7171 = vmatpush1.bf16.msra.mxu1 %v11578_v47 }
 0x8fa   :  { %7131 = vmatprep.subr.bf16.mxu0 %v11579_v27  ;;  %7172 = vmatprep.subr.bf16.mxu1 %v11580_v1 }
 0x8fd   :  { %7132 = vmatpush1.bf16.msra.mxu0 %v11301_v50  ;;  %7173 = vmatpush1.bf16.msra.mxu1 %v11306_v28 }
 0x8fe   :  { %7641 = vmatprep.subr.msk.bf16.mxu0 %vm6498_vm4, %v7638_v46  ;;  %7643 = vmatprep.subr.msk.bf16.mxu1 %vm6498_vm4, %v7640_v41 }
 0x901   :  { %7134 = vmatpush1.bf16.msra.mxu0 %v7096_v8  ;;  %7175 = vmatpush1.bf16.msra.mxu1 %v7102_v14 }
 0x902   :  { %7724 = vmatprep.subr.bf16.mxu0 %v11581_v48 }
 0x932   :  { %v6815_v12 = vpop.permute.xlu1 %6814 }
 0x936   :  { %v6813_v4 = vpop.permute.xlu1 %6812  ;;  %v6817_v57 = vpop.permute.xlu0 %6816 }
 0x937   :  { %v6819_v36 = vsel %vm6818_vm10, %v6813_v4, %v6815_v12  ;;  %v6820_v25 = vsel %vm6818_vm10, %v6815_v12, %v6817_v57 }
 0x938   :  { %7642 = vmatprep.mubr.msk.bf16.mxu0 %vm6494_vm12, %v6820_v25  ;;  %7644 = vmatprep.mubr.msk.bf16.mxu1 %vm6494_vm12, %v6820_v25  ;;  %vm6742_vm12 = vcmask 277504  }
 0x939   :  { %7140 = vmatmul.mubr.bf16.vlgmr.msra.gmra.mrb[64].mxu0 %v6819_v36  ;;  %7181 = vmatmul.mubr.bf16.vlgmr.msra.gmra.mrb[72].mxu1 %v6819_v36 }
 0x93a   :  { %7732 = vmatprep.mubr.msk.bf16.mxu0 %vm7936_vm14, %v11581_v48  ;;  %vm6635_vm14 = vcmask 228352  }
 0x99f   :  { %v11421_v22 = vpop.f32.mrb[60].mxu0  ;;  %v6586_v29 = vpop.f32.mrb[68].mxu1 }
 0x9a0   :  { %v6602_v43 = vrot.slane %v11421_v22, %v11419_v9  ;;  %v6547_v13 = vpop.f32.mrb[61].mxu0  ;;  %v6588_v5 = vpop.f32.mrb[69].mxu1  ;;  %v6701_v28 = vcombine.high %v6586_v29, %v6586_v29 }
 0x9a1   :  { %v6616_v7 = vcombine.low %v11421_v22, %v6547_v13  ;;  %v6659_v51 = vcombine.high %v6547_v13, %v6547_v13  ;;  %v6679_v6 = vcombine.high %v6547_v13, %v6586_v29  ;;  %v6549_v32 = vpop.f32.mrb[62].mxu0  ;;  %v6590_v40 = vpop.f32.mrb[70].mxu1  ;;  %v6722_v38 = vcombine.high %v6586_v29, %v6588_v5 }
 0x9a2   :  { %v6603_v11 = vcombine.high %v6602_v43, %v6602_v43  ;;  %v6550_v18 = vpop.f32.mrb[63].mxu0  ;;  %v6591_v59 = vpop.f32.mrb[71].mxu1  ;;  %v6645_v53 = vrot.slane %v6547_v13, %v11419_v9  ;;  %v6708_v63 = vrot.slane %v6701_v28, %v11419_v9  ;;  %v6593_v13 = vld [vmem:[%s11539_s12] sm:$0x1] }
 0x9a3   :  { %v6623_v37 = vrot.slane %v6616_v7, %v11419_v9  ;;  %v6666_v35 = vrot.slane %v6659_v51, %v11419_v9  ;;  %v6686_v44 = vrot.slane %v6679_v6, %v11419_v9  ;;  %v6729_v20 = vrot.slane %v6722_v38, %v11419_v9 }
 0x9a4   :  { %v6610_v3 = vrot.slane %v6603_v11, %v11419_v9  ;;  %v6646_v31 = vcombine.high %v6645_v53, %v6645_v53  ;;  %v6715_v34 = vrot.slane %v6708_v63, %v11419_v9  ;;  %v6594_v7 = vadd.f32 %v6593_v13, %v11421_v22 }
 0x9a5   :  { %v6673_v62 = vrot.slane %v6666_v35, %v11419_v9  ;;  %v6630_v0 = vrot.slane %v6623_v37, %v11419_v9  ;;  %v6687_v45 = vcombine.high %v6686_v44, %v6686_v44  ;;  %v6730_v54 = vcombine.high %v6729_v20, %v6729_v20  ;;  %v7869_v35 = vld [vmem:[%s11540_s13 + $0x8] sm:$0xff]  }
 0x9a6   :  { %6611 = vrot.lane.b32.xlu0 %v6610_v3, %s7962_s11  ;;  %v6653_v50 = vrot.slane %v6646_v31, %v11419_v9  ;;  %v6716_v58 = vcombine.high %v6715_v34, %v6715_v34  ;;  %v7868_v3 = vld [vmem:[%s11540_s13] sm:$0xff]  }
 0x9a7   :  { %v6631_v23 = vcombine.high %v6630_v0, %v6630_v0  ;;  %v6737_v19 = vrot.slane %v6730_v54, %v11419_v9  ;;  %v6694_v52 = vrot.slane %v6687_v45, %v11419_v9  ;;  %7725 = vmatpush3.bf16.msra.mxu0 %v7868_v3  ;;  %v7876_v31 = vld [vmem:[#allocation2] sm:$0xff] }
 0x9a8   :  { %v6654_v49 = vcombine.high %v6653_v50, %v6653_v50  ;;  %7726 = vmatprep.subr.bf16.mxu0 %v7876_v31 }
 0x9a9   :  { %v6738_v39 = vcombine.high %v6737_v19, %v6737_v19 }
 0x9aa   :  { %6674 = vrot.lane.b32.xlu0 %v6673_v62, %s7963_s26 }
 0x9ab   :  { %7727 = vmatpush3.bf16.msra.mxu0 %v7869_v35 }
 0x9ac   :  { %7728 = vmatprep.subr.bf16.mxu0 %v7876_v31 }
 0x9ae   :  { %6632 = vrot.lane.b32.xlu0 %v6631_v23, %s7964_s16  ;;  %v7871_v23 = vld [vmem:[%s11540_s13 + $0x18] ss:$0 sps:$4 sm:$0x11]  }
 0x9af   :  { %v7384_v63 = vsel %vm6498_vm4, %v7871_v23, 0  ;;  %vm7379_vm4 = vcmask 408576  }
 0x9b2   :  { %6655 = vrot.lane.b32.xlu0 %v6654_v49, %s7965_s1 }
 0x9b6   :  { %6695 = vrot.lane.b32.xlu0 %v6694_v52, %s7966_s29 }
 0x9ba   :  { %6739 = vrot.lane.b32.xlu0 %v6738_v39, %s7955_s27 }
 0x9be   :  { %6717 = vrot.lane.b32.xlu0 %v6716_v58, %s7959_s6 }
 0xa0c   :  { %v11446_v30 = vpop.f32.mrb[64].mxu0  ;;  %v7182_v33 = vpop.f32.mrb[72].mxu1 }
 0xa0d   :  { %v7198_v60 = vrot.slane %v11446_v30, %v11419_v9  ;;  %v7143_v61 = vpop.f32.mrb[65].mxu0  ;;  %v7184_v56 = vpop.f32.mrb[73].mxu1  ;;  %v7296_v21 = vcombine.high %v7182_v33, %v7182_v33 }
 0xa0e   :  { %v7212_v15 = vcombine.low %v11446_v30, %v7143_v61  ;;  %v7254_v17 = vcombine.high %v7143_v61, %v7143_v61  ;;  %v7274_v10 = vcombine.high %v7143_v61, %v7182_v33  ;;  %v7145_v42 = vpop.f32.mrb[66].mxu0  ;;  %v7186_v47 = vpop.f32.mrb[74].mxu1  ;;  %v7317_v27 = vcombine.high %v7182_v33, %v7184_v56 }
 0xa0f   :  { %v7199_v46 = vcombine.high %v7198_v60, %v7198_v60  ;;  %v7146_v1 = vpop.f32.mrb[67].mxu0  ;;  %v7187_v41 = vpop.f32.mrb[75].mxu1  ;;  %v7240_v8 = vrot.slane %v7143_v61, %v11419_v9  ;;  %v7303_v6 = vrot.slane %v7296_v21, %v11419_v9  ;;  %v7189_v61 = vld [vmem:[%s11539_s12] sm:$0x1]  ;;  %s7967_s12 = smov [#allocation5]  }
 0xa10   :  { %v7219_v24 = vrot.slane %v7212_v15, %v11419_v9  ;;  %v7261_v14 = vrot.slane %v7254_v17, %v11419_v9  ;;  %v7281_v36 = vrot.slane %v7274_v10, %v11419_v9  ;;  %v7324_v25 = vrot.slane %v7317_v27, %v11419_v9  ;;  %s7442_s0 = sshll.u32 %s7967_s12, 4  ;;  %s7443_s0 = int_to_ptr.vmem [resolvable:$true] %s7442_s0 }
 0xa11   :  { %v7206_v26 = vrot.slane %v7199_v46, %v11419_v9  ;;  %v7241_v48 = vcombine.high %v7240_v8, %v7240_v8  ;;  %v7310_v22 = vrot.slane %v7303_v6, %v11419_v9  ;;  %v7190_v15 = vadd.f32 %v7189_v61, %v11446_v30  ;;  %s7877_s21 = scalar_lea.vmem %s7443_s0, 32  ;;  %p7882_p1 = scmp.lt.s32.totalorder %s7443_s0, %s7443_s0 }
 0xa12   :  { %v7268_v12 = vrot.slane %v7261_v14, %v11419_v9  ;;  %v7226_v4 = vrot.slane %v7219_v24, %v11419_v9  ;;  %v7282_v29 = vcombine.high %v7281_v36, %v7281_v36  ;;  %v7325_v43 = vcombine.high %v7324_v25, %v7324_v25  ;;  %p7878_p0 = scmp.ne.s32.totalorder %s7443_s0, %s7877_s21  ;;  %p7883_p2 = scmp.lt.s32.totalorder %s7877_s21, %s7877_s21 }
 0xa13   :  { %7207 = vrot.lane.b32.xlu1 %v7206_v26, %s7962_s11  ;;  %v7248_v2 = vrot.slane %v7241_v48, %v11419_v9  ;;  %v7311_v20 = vcombine.high %v7310_v22, %v7310_v22 }
 0xa14   :  { %v7227_v55 = vcombine.high %v7226_v4, %v7226_v4  ;;  %v7332_v32 = vrot.slane %v7325_v43, %v11419_v9  ;;  %v7289_v11 = vrot.slane %v7282_v29, %v11419_v9  ;;  %v7870_v9 = vld [vmem:[%s11540_s13 + $0x10] sm:$0xff]   ;;  %p7884_p3 = por %p7883_p2, %p7882_p1 }
 0xa15   :  { %v7249_v5 = vcombine.high %v7248_v2, %v7248_v2  ;;  %7729 = vmatpush3.bf16.msra.mxu0 %v7870_v9 }
 0xa16   :  { %v7333_v37 = vcombine.high %v7332_v32, %v7332_v32  ;;  %7730 = vmatprep.subr.bf16.mxu0 %v7876_v31  ;;  %p7885_p4 = pnand %p7884_p3, %p7878_p0 }
 0xa17   :  { %7269 = vrot.lane.b32.xlu1 %v7268_v12, %s7963_s26 }
 0xa18   :  { %v6612_v57 = vpop.permute.xlu0 %6611 }
 0xa19   :  { %v6614_v38 = vadd.f32 %v6612_v57, %v6594_v7  ;;  %7731 = vmatpush3.bf16.msra.mxu0 %v7384_v63 }
 0xa1b   :  { %7228 = vrot.lane.b32.xlu1 %v7227_v55, %s7964_s16 }
 0xa1c   :  { %v6675_v16 = vpop.permute.xlu0 %6674 }
 0xa1f   :  { %7250 = vrot.lane.b32.xlu1 %v7249_v5, %s7965_s1 }
 0xa20   :  { %v6633_v51 = vpop.permute.xlu0 %6632 }
 0xa21   :  { %v6634_v40 = vrot.slane %v6633_v51, 1 }
 0xa23   :  { %v6636_v18 = vsel %vm6635_vm14, %v6633_v51, %v6634_v40  ;;  %7290 = vrot.lane.b32.xlu1 %v7289_v11, %s7966_s29 }
 0xa24   :  { %v6656_v59 = vpop.permute.xlu0 %6655  ;;  %v6638_v53 = vadd.f32 %v6636_v18, %v6614_v38 }
 0xa26   :  { %v6658_v0 = vadd.f32 %v6656_v59, %v6638_v53 }
 0xa27   :  { %7334 = vrot.lane.b32.xlu1 %v7333_v37, %s7955_s27 }
 0xa28   :  { %v6696_v62 = vpop.permute.xlu0 %6695  ;;  %v6677_v45 = vadd.f32 %v6675_v16, %v6658_v0 }
 0xa29   :  { %v6697_v44 = vrot.slane %v6696_v62, 1 }
 0xa2b   :  { %7312 = vrot.lane.b32.xlu1 %v7311_v20, %s7959_s6  ;;  %v6698_v50 = vsel %vm6151_vm0, %v6696_v62, %v6697_v44 }
 0xa2c   :  { %v6740_v28 = vpop.permute.xlu0 %6739  ;;  %v6700_v49 = vadd.f32 %v6698_v50, %v6677_v45 }
 0xa2d   :  { %v6741_v54 = vrot.slane %v6740_v28, 1 }
 0xa2f   :  { %v6743_v34 = vsel %vm6742_vm12, %v6740_v28, %v6741_v54 }
 0xa30   :  { %v6718_v19 = vpop.permute.xlu0 %6717 }
 0xa31   :  { %v6720_v52 = vadd.f32 %v6718_v19, %v6700_v49 }
 0xa33   :  { %v6745_v39 = vadd.f32 %v6743_v34, %v6720_v52 }
 0xa35   :  { %v6746_v58 = vmax.f32 %v6745_v39, 0.0 }
 0xa37   :  { %6748 = vst.msk [vmem:[#allocation5] sm:$0x1] %vm6747_vm15, %v6746_v58 }
 0xa85   :  { %v7208_v33 = vpop.permute.xlu1 %7207 }
 0xa86   :  { %v7210_v10 = vadd.f32 %v7208_v33, %v7190_v15 }
 0xa89   :  { %v7270_v60 = vpop.permute.xlu1 %7269 }
 0xa8d   :  { %v7229_v56 = vpop.permute.xlu1 %7228 }
 0xa8e   :  { %v7230_v17 = vrot.slane %v7229_v56, 1 }
 0xa90   :  { %v7231_v42 = vsel %vm6635_vm14, %v7229_v56, %v7230_v17 }
 0xa91   :  { %v7251_v47 = vpop.permute.xlu1 %7250  ;;  %v7233_v46 = vadd.f32 %v7231_v42, %v7210_v10 }
 0xa93   :  { %v7253_v1 = vadd.f32 %v7251_v47, %v7233_v46 }
 0xa95   :  { %v7291_v27 = vpop.permute.xlu1 %7290  ;;  %v7272_v8 = vadd.f32 %v7270_v60, %v7253_v1 }
 0xa96   :  { %v7292_v41 = vrot.slane %v7291_v27, 1 }
 0xa98   :  { %v7293_v26 = vsel %vm6151_vm0, %v7291_v27, %v7292_v41 }
 0xa99   :  { %v7335_v24 = vpop.permute.xlu1 %7334  ;;  %v7295_v48 = vadd.f32 %v7293_v26, %v7272_v8 }
 0xa9a   :  { %v7336_v14 = vrot.slane %v7335_v24, 1 }
 0xa9c   :  { %v7337_v57 = vsel %vm6742_vm12, %v7335_v24, %v7336_v14 }
 0xa9d   :  { %v7313_v12 = vpop.permute.xlu1 %7312 }
 0xa9e   :  { %v7315_v4 = vadd.f32 %v7313_v12, %v7295_v48 }
 0xaa0   :  { %v7339_v30 = vadd.f32 %v7337_v57, %v7315_v4 }
 0xaa2   :  { %v7340_v36 = vmax.f32 %v7339_v30, 0.0 }
 0xaa4   :  { %7341 = vst.msk [vmem:[#allocation5 + $0x1] sm:$0x1] %vm6747_vm15, %v7340_v36 }
 0xaab   :  { %v7342_v25 = vld [vmem:[#allocation5] sm:$0x3] }
 0xaac   :  { %v7343_v55 = vpack.c.bf16 %v7342_v25, %v7342_v25 }
 0xaae   :  { %7733 = vmatmul.mubr.msk.bf16.vlgmr.msra.gmra.mrb[68].mxu0 %vm7379_vm4, %v7343_v55 }
 0xaaf   :  { %7888 = shalt.err (!%p7885_p4)
}
 0xab0   :  { %s7889_s24 = scalar_lea.hbm %s11546_s19, 32 }
 0xab1   :  { %p7890_p5 = scmp.ne.s32.totalorder %s11546_s19, %s7889_s24  ;;  %p7893_p6 = scmp.lt.u32.totalorder %s7889_s24, %s11546_s19 }
 0xab3   :  { %p7895_p7 = pnand %p7893_p6, %p7890_p5 }
 0xab5   :  { %7898 = shalt.err (!%p7895_p7)
}
 0xab6   :  { %7445 = dma.vmem_to_hbm [thread:$0]  %s7443_s0, 32, %s11546_s19, [#allocation6]   ;;  %v7645_v2 = vld [vmem:[%s11541_s14] ss:$0 sm:$0xff]  ;;  %vm7426_vm7 = vcmask 74752  }
 0xab7   :  { %s7968_s1 = smov [#allocation7]  }
 0xab8   :  { %s7452_s29 = sshll.u32 %s7968_s1, 4  ;;  %s7453_s29 = int_to_ptr.vmem [resolvable:$true] %s7452_s29 }
 0xab9   :  { %s7899_s23 = scalar_lea.vmem %s7453_s29, 32  ;;  %p7904_p9 = scmp.lt.s32.totalorder %s7453_s29, %s7453_s29 }
 0xaba   :  { %p7900_p8 = scmp.ne.s32.totalorder %s7453_s29, %s7899_s23  ;;  %p7905_p10 = scmp.lt.s32.totalorder %s7899_s23, %s7899_s23 }
 0xabc   :  { %p7906_p11 = por %p7905_p10, %p7904_p9 }
 0xabe   :  { %p7907_p12 = pnand %p7906_p11, %p7900_p8 }
 0xb81   :  { %v7420_v16 = vpop.f32.mrb[68].mxu0 }
 0xb82   :  { %v7421_v21 = vadd.f32 %v7645_v2, %v7420_v16  ;;  %v7734_v29 = vpop.f32.mrb[69].mxu0 }
 0xb83   :  { %v7423_v43 = vpop.f32.mrb[70].mxu0 }
 0xb84   :  { %v7735_v13 = vpop.f32.mrb[71].mxu0  ;;  %7427 = vst.msk [vmem:[#allocation7] sm:$0x3] %vm7426_vm7, %v7421_v21 }
 0xb85   :  { %7910 = shalt.err (!%p7907_p12)
}
 0xb86   :  { %s7911_s14 = scalar_lea.hbm %s11547_s20, 32 }
 0xb87   :  { %p7912_p13 = scmp.ne.s32.totalorder %s11547_s20, %s7911_s14  ;;  %p7915_p0 = scmp.lt.u32.totalorder %s7911_s14, %s11547_s20 }
 0xb89   :  { %p7917_p1 = pnand %p7915_p0, %p7912_p13 }
 0xb8b   :  { %7920 = shalt.err (!%p7917_p1)
}
 0xb8c   :  { %7455 = dma.vmem_to_hbm [thread:$0]  %s7453_s29, 32, %s11547_s20, [#allocation8]  }
 0xb8d   :  { %7921 = dma.done.wait [#allocation6], 32  }
 0xb8e   :  { %7922 = vsyncadd [#allocation6], 4294967264 }
 0xb8f   :  { %7923 = dma.done.wait [#allocation8], 32  }
 0xb90   :  { %7924 = vsyncadd [#allocation8], 4294967264 }
 0xb91   :  { %7470 = vsyncpa [#allocation6], 1 }
 0xb92   :  { %7471 = vsyncpa [#allocation8], 1 }

</bundles_post_ra>
